<compile_context>
chip_gen: v5e
topology: v5e:2x2
jax: 0.10.0
libtpu: 0.0.40
codegen_flags: <defaults>
</compile_context>

<pallas_src>
import functools

import numpy as np
import jax
import jax.numpy as jnp
from jax import lax
from jax.experimental import pallas as pl
from jax.experimental.pallas import tpu as pltpu

KH = 3            # conv3x3 kernel size
PAD = 1           # padding = dilation = 1
EPS = 1e-5        # nn.InstanceNorm2d default eps (affine=False)
SLOPE = 0.1       # LeakyReLU negative_slope
VMEM_LIMIT = 48 * 1024 * 1024


def _round_up(v, m):
    return -(-v // m) * m


def _pick_cout_tile(cout_p, n_batch):
    """Largest 128-multiple divisor of cout_p (<= 512); when N == 1 keep >= 2
    cout tiles so both v7x TensorCores have a parallel grid slice."""
    divisors = [d for d in range(128, cout_p + 1, 128) if cout_p % d == 0]
    cap = 512
    if n_batch == 1 and cout_p >= 256:
        cap = min(cap, cout_p // 2)
    cands = [d for d in divisors if d <= cap]
    return max(cands) if cands else 128


# ---------------------------------------------------------------------------
# Fused kernel: 3x3 conv (implicit im2col, 9 shifted matmuls) -> InstanceNorm
#               -> optional residual add -> LeakyReLU(0.1)
# ---------------------------------------------------------------------------
def _fused_conv_kernel(x_ref, w_ref, m_ref, *rest, wp, n_rows, cin_p, inv_hw,
                       has_residual):
    """One grid step = one (sample, cout-tile).

    x_ref : (1, n_xrows, cin_p)  bf16  flat zero-padded input sample (+halo)
    w_ref : (9*cin_p, tc)        bf16  flattened 3x3 weights for this cout tile
    m_ref : (n_rows, 1)          f32   1.0 at valid output rows, 0.0 elsewhere
    r_ref : (1, n_rows, tc)      f32   optional residual (same flat layout)
    o_ref : (1, n_rows, tc)      bf16/f32 fused output
    acc   : (n_rows, tc)         f32   VMEM scratch accumulator
    """
    if has_residual:
        r_ref, o_ref, acc_ref = rest
    else:
        o_ref, acc_ref = rest
        r_ref = None

    # Implicit im2col: accumulate 9 shifted matmuls (K = cin_p per tap).
    for t in range(KH * KH):
        dy, dx = divmod(t, KH)
        off = dy * wp + dx                              # static row offset
        tap = jnp.dot(x_ref[0, pl.ds(off, n_rows), :],
                      w_ref[pl.ds(t * cin_p, cin_p), :],
                      preferred_element_type=jnp.float32)
        if t == 0:
            acc_ref[...] = tap
        else:
            acc_ref[...] += tap

    acc = acc_ref[...]                                  # (n_rows, tc) f32
    m = m_ref[...]                                      # (n_rows, 1)  f32

    # InstanceNorm over the valid rows: two-pass centered variance (no
    # E[x^2]-E[x]^2 cancellation).
    mean = jnp.sum(acc * m, axis=0, keepdims=True) * inv_hw      # (1, tc)
    cent = (acc - mean) * m
    var = jnp.sum(cent * cent, axis=0, keepdims=True) * inv_hw   # biased var
    out = (acc - mean) * lax.rsqrt(var + EPS)

    if has_residual:
        out = out + r_ref[0]                            # f32 residual add

    o_ref[0] = jnp.where(out >= 0, out, SLOPE * out).astype(o_ref.dtype)


# ---------------------------------------------------------------------------
# conv3x3 (bias=False) -> InstanceNorm2d -> [+ residual] -> LeakyReLU(0.1)
# ---------------------------------------------------------------------------
def conv3x3_in_lrelu(x_nhwc, w_hwio, residual=None, out_dtype=jnp.bfloat16):
    n, h, w, cin = x_nhwc.shape
    kh, kw, wcin, cout = w_hwio.shape
    assert (kh, kw, wcin) == (KH, KH, cin)

    hp, wp = h + 2 * PAD, w + 2 * PAD
    cin_p = _round_up(cin, 128)
    cout_p = _round_up(cout, 128)
    n_rows = _round_up(h * wp, 16)                 # output rows we compute
    n_xrows = _round_up(n_rows + 2 * wp + 2, 16)   # input rows incl. tap halo

    # Flat zero-padded input (N, n_xrows, Cin_p) bf16 — no 9x patch blow-up.
    xp = jnp.pad(x_nhwc.astype(jnp.bfloat16),
                 ((0, 0), (PAD, PAD), (PAD, PAD), (0, cin_p - cin)))
    xf = jnp.pad(xp.reshape(n, hp * wp, cin_p),
                 ((0, 0), (0, n_xrows - hp * wp), (0, 0)))

    # Flattened weight (9*Cin_p, Cout_p) bf16, tap-major to match the kernel.
    wt = w_hwio.astype(jnp.bfloat16).reshape(KH * KH, cin, cout)
    wt = jnp.pad(wt, ((0, 0), (0, cin_p - cin), (0, cout_p - cout)))
    wt = wt.reshape(KH * KH * cin_p, cout_p)

    # Row-validity mask: the flat-padded layout has 2 junk columns per image
    # row plus tail padding rows; they are excluded from the IN statistics.
    j = jnp.arange(n_rows, dtype=jnp.int32)
    mask = ((j < h * wp) & (j % wp < w)).astype(jnp.float32).reshape(n_rows, 1)

    tc = _pick_cout_tile(cout_p, n)
    n_c = cout_p // tc

    inputs = [xf, wt, mask]
    in_specs = [
        pl.BlockSpec((1, n_xrows, cin_p), lambda b, cj: (b, 0, 0)),
        pl.BlockSpec((KH * KH * cin_p, tc), lambda b, cj: (0, cj)),
        pl.BlockSpec((n_rows, 1), lambda b, cj: (0, 0)),
    ]
    if residual is not None:
        assert residual.shape == (n, h, w, cout), (
            "Bottleneck skip connection needs stride=1 and in_planes == out_planes")
        rf = jnp.pad(residual.astype(jnp.float32),
                     ((0, 0), (0, 0), (0, wp - w), (0, cout_p - cout)))
        rf = jnp.pad(rf.reshape(n, h * wp, cout_p),
                     ((0, 0), (0, n_rows - h * wp), (0, 0)))
        inputs.append(rf)
        in_specs.append(pl.BlockSpec((1, n_rows, tc), lambda b, cj: (b, 0, cj)))

    out_bytes = jnp.dtype(out_dtype).itemsize
    vmem_est = (2 * n_xrows * cin_p * 2            # input slab (double-buffered)
                + 2 * KH * KH * cin_p * tc * 2     # resident weight slab
                + 2 * n_rows * 128 * 4             # row mask (lane padded)
                + 2 * n_rows * tc * out_bytes      # output tile
                + (2 * n_rows * tc * 4 if residual is not None else 0)
                + n_rows * tc * 4)                 # f32 accumulator scratch
    if vmem_est > 40 * 1024 * 1024:
        # TODO(synk): hw-tiled two-pass fallback for feature maps too large for
        #             whole-sample VMEM residency (v7x: 64 MiB per TensorCore).
        raise NotImplementedError("feature map too large for the fused kernel")

    kern = functools.partial(_fused_conv_kernel, wp=wp, n_rows=n_rows,
                             cin_p=cin_p, inv_hw=1.0 / float(h * w),
                             has_residual=residual is not None)

    cost = pl.CostEstimate(
        flops=2 * n * n_rows * KH * KH * cin_p * cout_p,
        transcendentals=n * cout_p,
        bytes_accessed=int(xf.size * 2 + n * wt.size * 2 + mask.size * 4
                           + n * n_rows * cout_p * out_bytes
                           + (residual is not None) * n * n_rows * cout_p * 4))

    out = pl.pallas_call(
        kern,
        out_shape=jax.ShapeDtypeStruct((n, n_rows, cout_p), out_dtype),
        grid=(n, n_c),
        in_specs=in_specs,
        out_specs=pl.BlockSpec((1, n_rows, tc), lambda b, cj: (b, 0, cj)),
        scratch_shapes=[pltpu.VMEM((n_rows, tc), jnp.float32)],
        compiler_params=pltpu.CompilerParams(
            dimension_semantics=("parallel", "parallel"),
            vmem_limit_bytes=VMEM_LIMIT),
        cost_estimate=cost,
    )(*inputs)

    # Drop the pad columns / tail rows / pad channels.
    out = out[:, :h * wp, :cout].reshape(n, h, wp, cout)[:, :, :w, :]
    return out


# ---------------------------------------------------------------------------
# Bottleneck forward (NCHW in / NCHW out)
# ---------------------------------------------------------------------------
def bottleneck_forward(x_nchw, w1_hwio, w2_hwio):
    x = jnp.transpose(x_nchw, (0, 2, 3, 1)).astype(jnp.float32)       # NHWC
    out1 = conv3x3_in_lrelu(x, w1_hwio, out_dtype=jnp.bfloat16)       # conv1+bn1+relu
    out2 = conv3x3_in_lrelu(out1, w2_hwio, residual=x,
                            out_dtype=jnp.float32)                    # conv2+bn2+add+relu
    return jnp.transpose(out2, (0, 3, 1, 2))                          # NCHW


# Pure-JAX reference (XLA conv, same bf16 matmul inputs) for correctness check.
def reference_forward(x_nchw, w1_hwio, w2_hwio):
    x = jnp.transpose(x_nchw, (0, 2, 3, 1)).astype(jnp.float32)

    def conv_in(inp, w):
        y = lax.conv_general_dilated(
            inp.astype(jnp.bfloat16), w.astype(jnp.bfloat16),
            (1, 1), [(PAD, PAD), (PAD, PAD)],
            dimension_numbers=("NHWC", "HWIO", "NHWC"),
            preferred_element_type=jnp.float32)
        m = jnp.mean(y, axis=(1, 2), keepdims=True)
        v = jnp.mean((y - m) ** 2, axis=(1, 2), keepdims=True)
        return (y - m) * lax.rsqrt(v + EPS)

    y = conv_in(x, w1_hwio)
    y = jnp.where(y >= 0, y, SLOPE * y)
    y = conv_in(y, w2_hwio)
    y = y + x
    y = jnp.where(y >= 0, y, SLOPE * y)
    return jnp.transpose(y, (0, 3, 1, 2))


if __name__ == "__main__":
    key = jax.random.PRNGKey(0)
    k_x, k_w1, k_w2 = jax.random.split(key, 3)

    # Bottleneck(32, 32, stride=1) on a (2, 32, 16, 16) input.
    N, C, H, W = 2, 32, 16, 16
    x = jax.random.normal(k_x, (N, C, H, W), jnp.float32)
    fan_in = KH * KH * C
    w1 = jax.random.normal(k_w1, (KH, KH, C, C), jnp.float32) / np.sqrt(fan_in)
    w2 = jax.random.normal(k_w2, (KH, KH, C, C), jnp.float32) / np.sqrt(fan_in)

    fwd = jax.jit(bottleneck_forward)
    out = jax.block_until_ready(fwd(x, w1, w2))

    ref = reference_forward(x, w1, w2)
    assert out.shape == ref.shape == (N, C, H, W), out.shape
    np.testing.assert_allclose(np.asarray(out), np.asarray(ref),
                               atol=2e-3, rtol=2e-3)
    print("KERNEL_OK")
</pallas_src>

<mosaic_0001>
module attributes {stable_mosaic.version = 11 : i64} {
  func.func @_fused_conv_kernel(%arg0: i32, %arg1: i32, %arg2: memref<1x336x128xbf16, #tpu.memory_space<vmem>>, %arg3: memref<1152x128xbf16, #tpu.memory_space<vmem>>, %arg4: memref<288x1xf32, #tpu.memory_space<vmem>>, %arg5: memref<1x288x128xbf16, #tpu.memory_space<vmem>>, %arg6: memref<288x128xf32, #tpu.memory_space<vmem>>) attributes {dimension_semantics = [#tpu.dimension_semantics<parallel>, #tpu.dimension_semantics<parallel>], iteration_bounds = array<i64: 2, 1>, scalar_prefetch = 0 : i64, scratch_operands = 1 : i64, tpu.core_type = #tpu.core_type<tc>, window_params = [{transform_indices = @transform_0, window_bounds = array<i64: 1, 336, 128>}, {transform_indices = @transform_1, window_bounds = array<i64: 1152, 128>}, {pipeline_mode = #tpu.pipeline_mode<synchronous>, transform_indices = @transform_2, window_bounds = array<i64: 288, 1>}, {transform_indices = @transform_3, window_bounds = array<i64: 1, 288, 128>}]} {
    %c0 = arith.constant 0 : index
    %c0_0 = arith.constant 0 : index
    %c0_1 = arith.constant 0 : index
    %0 = vector.load %arg2[%c0, %c0_0, %c0_1] : memref<1x336x128xbf16, #tpu.memory_space<vmem>>, vector<1x288x128xbf16>
    %1 = vector.shape_cast %0 : vector<1x288x128xbf16> to vector<288x128xbf16>
    %c0_2 = arith.constant 0 : index
    %c0_3 = arith.constant 0 : index
    %2 = vector.load %arg3[%c0_2, %c0_3] : memref<1152x128xbf16, #tpu.memory_space<vmem>>, vector<128x128xbf16>
    %cst = arith.constant dense<0.000000e+00> : vector<288x128xf32>
    %3 = tpu.matmul %1, %2, %cst {dimension_numbers = #tpu.dot_dimension_numbers<[1], [0], [0], [1], [0, 0, 1, 1], [], []>} : vector<288x128xbf16>, vector<128x128xbf16>, vector<288x128xf32> -> vector<288x128xf32>
    %c0_4 = arith.constant 0 : index
    %c0_5 = arith.constant 0 : index
    %4 = vector.load %arg6[%c0_4, %c0_5] : memref<288x128xf32, #tpu.memory_space<vmem>>, vector<288x128xf32>
    tpu.vector_store %arg6[%c0_4, %c0_5], %3 {strides = array<i32>} : memref<288x128xf32, #tpu.memory_space<vmem>>, vector<288x128xf32>,
    %c0_6 = arith.constant 0 : index
    %c1 = arith.constant 1 : index
    %c0_7 = arith.constant 0 : index
    %5 = vector.load %arg2[%c0_6, %c1, %c0_7] : memref<1x336x128xbf16, #tpu.memory_space<vmem>>, vector<1x288x128xbf16>
    %6 = vector.shape_cast %5 : vector<1x288x128xbf16> to vector<288x128xbf16>
    %c128 = arith.constant 128 : index
    %c0_8 = arith.constant 0 : index
    %7 = vector.load %arg3[%c128, %c0_8] : memref<1152x128xbf16, #tpu.memory_space<vmem>>, vector<128x128xbf16>
    %cst_9 = arith.constant dense<0.000000e+00> : vector<288x128xf32>
    %8 = tpu.matmul %6, %7, %cst_9 {dimension_numbers = #tpu.dot_dimension_numbers<[1], [0], [0], [1], [0, 0, 1, 1], [], []>} : vector<288x128xbf16>, vector<128x128xbf16>, vector<288x128xf32> -> vector<288x128xf32>
    %c0_10 = arith.constant 0 : index
    %c0_11 = arith.constant 0 : index
    %9 = vector.load %arg6[%c0_10, %c0_11] : memref<288x128xf32, #tpu.memory_space<vmem>>, vector<288x128xf32>
    %10 = arith.addf %9, %8 : vector<288x128xf32>
    %c0_12 = arith.constant 0 : index
    %c0_13 = arith.constant 0 : index
    %11 = vector.load %arg6[%c0_12, %c0_13] : memref<288x128xf32, #tpu.memory_space<vmem>>, vector<288x128xf32>
    tpu.vector_store %arg6[%c0_12, %c0_13], %10 {strides = array<i32>} : memref<288x128xf32, #tpu.memory_space<vmem>>, vector<288x128xf32>,
    %c0_14 = arith.constant 0 : index
    %c2 = arith.constant 2 : index
    %c0_15 = arith.constant 0 : index
    %12 = vector.load %arg2[%c0_14, %c2, %c0_15] : memref<1x336x128xbf16, #tpu.memory_space<vmem>>, vector<1x288x128xbf16>
    %13 = vector.shape_cast %12 : vector<1x288x128xbf16> to vector<288x128xbf16>
    %c256 = arith.constant 256 : index
    %c0_16 = arith.constant 0 : index
    %14 = vector.load %arg3[%c256, %c0_16] : memref<1152x128xbf16, #tpu.memory_space<vmem>>, vector<128x128xbf16>
    %cst_17 = arith.constant dense<0.000000e+00> : vector<288x128xf32>
    %15 = tpu.matmul %13, %14, %cst_17 {dimension_numbers = #tpu.dot_dimension_numbers<[1], [0], [0], [1], [0, 0, 1, 1], [], []>} : vector<288x128xbf16>, vector<128x128xbf16>, vector<288x128xf32> -> vector<288x128xf32>
    %c0_18 = arith.constant 0 : index
    %c0_19 = arith.constant 0 : index
    %16 = vector.load %arg6[%c0_18, %c0_19] : memref<288x128xf32, #tpu.memory_space<vmem>>, vector<288x128xf32>
    %17 = arith.addf %16, %15 : vector<288x128xf32>
    %c0_20 = arith.constant 0 : index
    %c0_21 = arith.constant 0 : index
    %18 = vector.load %arg6[%c0_20, %c0_21] : memref<288x128xf32, #tpu.memory_space<vmem>>, vector<288x128xf32>
    tpu.vector_store %arg6[%c0_20, %c0_21], %17 {strides = array<i32>} : memref<288x128xf32, #tpu.memory_space<vmem>>, vector<288x128xf32>,
    %c0_22 = arith.constant 0 : index
    %c18 = arith.constant 18 : index
    %c0_23 = arith.constant 0 : index
    %19 = vector.load %arg2[%c0_22, %c18, %c0_23] : memref<1x336x128xbf16, #tpu.memory_space<vmem>>, vector<1x288x128xbf16>
    %20 = vector.shape_cast %19 : vector<1x288x128xbf16> to vector<288x128xbf16>
    %c384 = arith.constant 384 : index
    %c0_24 = arith.constant 0 : index
    %21 = vector.load %arg3[%c384, %c0_24] : memref<1152x128xbf16, #tpu.memory_space<vmem>>, vector<128x128xbf16>
    %cst_25 = arith.constant dense<0.000000e+00> : vector<288x128xf32>
    %22 = tpu.matmul %20, %21, %cst_25 {dimension_numbers = #tpu.dot_dimension_numbers<[1], [0], [0], [1], [0, 0, 1, 1], [], []>} : vector<288x128xbf16>, vector<128x128xbf16>, vector<288x128xf32> -> vector<288x128xf32>
    %c0_26 = arith.constant 0 : index
    %c0_27 = arith.constant 0 : index
    %23 = vector.load %arg6[%c0_26, %c0_27] : memref<288x128xf32, #tpu.memory_space<vmem>>, vector<288x128xf32>
    %24 = arith.addf %23, %22 : vector<288x128xf32>
    %c0_28 = arith.constant 0 : index
    %c0_29 = arith.constant 0 : index
    %25 = vector.load %arg6[%c0_28, %c0_29] : memref<288x128xf32, #tpu.memory_space<vmem>>, vector<288x128xf32>
    tpu.vector_store %arg6[%c0_28, %c0_29], %24 {strides = array<i32>} : memref<288x128xf32, #tpu.memory_space<vmem>>, vector<288x128xf32>,
    %c0_30 = arith.constant 0 : index
    %c19 = arith.constant 19 : index
    %c0_31 = arith.constant 0 : index
    %26 = vector.load %arg2[%c0_30, %c19, %c0_31] : memref<1x336x128xbf16, #tpu.memory_space<vmem>>, vector<1x288x128xbf16>
    %27 = vector.shape_cast %26 : vector<1x288x128xbf16> to vector<288x128xbf16>
    %c512 = arith.constant 512 : index
    %c0_32 = arith.constant 0 : index
    %28 = vector.load %arg3[%c512, %c0_32] : memref<1152x128xbf16, #tpu.memory_space<vmem>>, vector<128x128xbf16>
    %cst_33 = arith.constant dense<0.000000e+00> : vector<288x128xf32>
    %29 = tpu.matmul %27, %28, %cst_33 {dimension_numbers = #tpu.dot_dimension_numbers<[1], [0], [0], [1], [0, 0, 1, 1], [], []>} : vector<288x128xbf16>, vector<128x128xbf16>, vector<288x128xf32> -> vector<288x128xf32>
    %c0_34 = arith.constant 0 : index
    %c0_35 = arith.constant 0 : index
    %30 = vector.load %arg6[%c0_34, %c0_35] : memref<288x128xf32, #tpu.memory_space<vmem>>, vector<288x128xf32>
    %31 = arith.addf %30, %29 : vector<288x128xf32>
    %c0_36 = arith.constant 0 : index
    %c0_37 = arith.constant 0 : index
    %32 = vector.load %arg6[%c0_36, %c0_37] : memref<288x128xf32, #tpu.memory_space<vmem>>, vector<288x128xf32>
    tpu.vector_store %arg6[%c0_36, %c0_37], %31 {strides = array<i32>} : memref<288x128xf32, #tpu.memory_space<vmem>>, vector<288x128xf32>,
    %c0_38 = arith.constant 0 : index
    %c20 = arith.constant 20 : index
    %c0_39 = arith.constant 0 : index
    %33 = vector.load %arg2[%c0_38, %c20, %c0_39] : memref<1x336x128xbf16, #tpu.memory_space<vmem>>, vector<1x288x128xbf16>
    %34 = vector.shape_cast %33 : vector<1x288x128xbf16> to vector<288x128xbf16>
    %c640 = arith.constant 640 : index
    %c0_40 = arith.constant 0 : index
    %35 = vector.load %arg3[%c640, %c0_40] : memref<1152x128xbf16, #tpu.memory_space<vmem>>, vector<128x128xbf16>
    %cst_41 = arith.constant dense<0.000000e+00> : vector<288x128xf32>
    %36 = tpu.matmul %34, %35, %cst_41 {dimension_numbers = #tpu.dot_dimension_numbers<[1], [0], [0], [1], [0, 0, 1, 1], [], []>} : vector<288x128xbf16>, vector<128x128xbf16>, vector<288x128xf32> -> vector<288x128xf32>
    %c0_42 = arith.constant 0 : index
    %c0_43 = arith.constant 0 : index
    %37 = vector.load %arg6[%c0_42, %c0_43] : memref<288x128xf32, #tpu.memory_space<vmem>>, vector<288x128xf32>
    %38 = arith.addf %37, %36 : vector<288x128xf32>
    %c0_44 = arith.constant 0 : index
    %c0_45 = arith.constant 0 : index
    %39 = vector.load %arg6[%c0_44, %c0_45] : memref<288x128xf32, #tpu.memory_space<vmem>>, vector<288x128xf32>
    tpu.vector_store %arg6[%c0_44, %c0_45], %38 {strides = array<i32>} : memref<288x128xf32, #tpu.memory_space<vmem>>, vector<288x128xf32>,
    %c0_46 = arith.constant 0 : index
    %c36 = arith.constant 36 : index
    %c0_47 = arith.constant 0 : index
    %40 = vector.load %arg2[%c0_46, %c36, %c0_47] : memref<1x336x128xbf16, #tpu.memory_space<vmem>>, vector<1x288x128xbf16>
    %41 = vector.shape_cast %40 : vector<1x288x128xbf16> to vector<288x128xbf16>
    %c768 = arith.constant 768 : index
    %c0_48 = arith.constant 0 : index
    %42 = vector.load %arg3[%c768, %c0_48] : memref<1152x128xbf16, #tpu.memory_space<vmem>>, vector<128x128xbf16>
    %cst_49 = arith.constant dense<0.000000e+00> : vector<288x128xf32>
    %43 = tpu.matmul %41, %42, %cst_49 {dimension_numbers = #tpu.dot_dimension_numbers<[1], [0], [0], [1], [0, 0, 1, 1], [], []>} : vector<288x128xbf16>, vector<128x128xbf16>, vector<288x128xf32> -> vector<288x128xf32>
    %c0_50 = arith.constant 0 : index
    %c0_51 = arith.constant 0 : index
    %44 = vector.load %arg6[%c0_50, %c0_51] : memref<288x128xf32, #tpu.memory_space<vmem>>, vector<288x128xf32>
    %45 = arith.addf %44, %43 : vector<288x128xf32>
    %c0_52 = arith.constant 0 : index
    %c0_53 = arith.constant 0 : index
    %46 = vector.load %arg6[%c0_52, %c0_53] : memref<288x128xf32, #tpu.memory_space<vmem>>, vector<288x128xf32>
    tpu.vector_store %arg6[%c0_52, %c0_53], %45 {strides = array<i32>} : memref<288x128xf32, #tpu.memory_space<vmem>>, vector<288x128xf32>,
    %c0_54 = arith.constant 0 : index
    %c37 = arith.constant 37 : index
    %c0_55 = arith.constant 0 : index
    %47 = vector.load %arg2[%c0_54, %c37, %c0_55] : memref<1x336x128xbf16, #tpu.memory_space<vmem>>, vector<1x288x128xbf16>
    %48 = vector.shape_cast %47 : vector<1x288x128xbf16> to vector<288x128xbf16>
    %c896 = arith.constant 896 : index
    %c0_56 = arith.constant 0 : index
    %49 = vector.load %arg3[%c896, %c0_56] : memref<1152x128xbf16, #tpu.memory_space<vmem>>, vector<128x128xbf16>
    %cst_57 = arith.constant dense<0.000000e+00> : vector<288x128xf32>
    %50 = tpu.matmul %48, %49, %cst_57 {dimension_numbers = #tpu.dot_dimension_numbers<[1], [0], [0], [1], [0, 0, 1, 1], [], []>} : vector<288x128xbf16>, vector<128x128xbf16>, vector<288x128xf32> -> vector<288x128xf32>
    %c0_58 = arith.constant 0 : index
    %c0_59 = arith.constant 0 : index
    %51 = vector.load %arg6[%c0_58, %c0_59] : memref<288x128xf32, #tpu.memory_space<vmem>>, vector<288x128xf32>
    %52 = arith.addf %51, %50 : vector<288x128xf32>
    %c0_60 = arith.constant 0 : index
    %c0_61 = arith.constant 0 : index
    %53 = vector.load %arg6[%c0_60, %c0_61] : memref<288x128xf32, #tpu.memory_space<vmem>>, vector<288x128xf32>
    tpu.vector_store %arg6[%c0_60, %c0_61], %52 {strides = array<i32>} : memref<288x128xf32, #tpu.memory_space<vmem>>, vector<288x128xf32>,
    %c0_62 = arith.constant 0 : index
    %c38 = arith.constant 38 : index
    %c0_63 = arith.constant 0 : index
    %54 = vector.load %arg2[%c0_62, %c38, %c0_63] : memref<1x336x128xbf16, #tpu.memory_space<vmem>>, vector<1x288x128xbf16>
    %55 = vector.shape_cast %54 : vector<1x288x128xbf16> to vector<288x128xbf16>
    %c1024 = arith.constant 1024 : index
    %c0_64 = arith.constant 0 : index
    %56 = vector.load %arg3[%c1024, %c0_64] : memref<1152x128xbf16, #tpu.memory_space<vmem>>, vector<128x128xbf16>
    %cst_65 = arith.constant dense<0.000000e+00> : vector<288x128xf32>
    %57 = tpu.matmul %55, %56, %cst_65 {dimension_numbers = #tpu.dot_dimension_numbers<[1], [0], [0], [1], [0, 0, 1, 1], [], []>} : vector<288x128xbf16>, vector<128x128xbf16>, vector<288x128xf32> -> vector<288x128xf32>
    %c0_66 = arith.constant 0 : index
    %c0_67 = arith.constant 0 : index
    %58 = vector.load %arg6[%c0_66, %c0_67] : memref<288x128xf32, #tpu.memory_space<vmem>>, vector<288x128xf32>
    %59 = arith.addf %58, %57 : vector<288x128xf32>
    %c0_68 = arith.constant 0 : index
    %c0_69 = arith.constant 0 : index
    %60 = vector.load %arg6[%c0_68, %c0_69] : memref<288x128xf32, #tpu.memory_space<vmem>>, vector<288x128xf32>
    tpu.vector_store %arg6[%c0_68, %c0_69], %59 {strides = array<i32>} : memref<288x128xf32, #tpu.memory_space<vmem>>, vector<288x128xf32>,
    %c0_70 = arith.constant 0 : index
    %c0_71 = arith.constant 0 : index
    %61 = vector.load %arg6[%c0_70, %c0_71] : memref<288x128xf32, #tpu.memory_space<vmem>>, vector<288x128xf32>
    %c0_72 = arith.constant 0 : index
    %c0_73 = arith.constant 0 : index
    %62 = vector.load %arg4[%c0_72, %c0_73] : memref<288x1xf32, #tpu.memory_space<vmem>>, vector<288x1xf32>
    %63 = vector.broadcast %62 : vector<288x1xf32> to vector<288x128xf32>
    %64 = arith.mulf %61, %63 : vector<288x128xf32>
    %cst_74 = arith.constant dense<0.000000e+00> : vector<128xf32>
    %65 = vector.multi_reduction <add>, %64, %cst_74 [0] : vector<288x128xf32> to vector<128xf32>
    %66 = vector.shape_cast %65 : vector<128xf32> to vector<1x128xf32>
    %cst_75 = arith.constant 3.906250e-03 : f32
    %67 = vector.broadcast %cst_75 : f32 to vector<1x128xf32>
    %68 = arith.mulf %66, %67 : vector<1x128xf32>
    %69 = vector.broadcast %68 : vector<1x128xf32> to vector<288x128xf32>
    %70 = arith.subf %61, %69 : vector<288x128xf32>
    %71 = vector.broadcast %62 : vector<288x1xf32> to vector<288x128xf32>
    %72 = arith.mulf %70, %71 : vector<288x128xf32>
    %73 = arith.mulf %72, %72 : vector<288x128xf32>
    %cst_76 = arith.constant dense<0.000000e+00> : vector<128xf32>
    %74 = vector.multi_reduction <add>, %73, %cst_76 [0] : vector<288x128xf32> to vector<128xf32>
    %75 = vector.shape_cast %74 : vector<128xf32> to vector<1x128xf32>
    %cst_77 = arith.constant 3.906250e-03 : f32
    %76 = vector.broadcast %cst_77 : f32 to vector<1x128xf32>
    %77 = arith.mulf %75, %76 : vector<1x128xf32>
    %78 = vector.broadcast %68 : vector<1x128xf32> to vector<288x128xf32>
    %79 = arith.subf %61, %78 : vector<288x128xf32>
    %cst_78 = arith.constant 9.99999974E-6 : f32
    %80 = vector.broadcast %cst_78 : f32 to vector<1x128xf32>
    %81 = arith.addf %77, %80 : vector<1x128xf32>
    %82 = math.rsqrt %81 : vector<1x128xf32>
    %83 = vector.broadcast %82 : vector<1x128xf32> to vector<288x128xf32>
    %84 = arith.mulf %79, %83 : vector<288x128xf32>
    %cst_79 = arith.constant 0.000000e+00 : f32
    %85 = vector.broadcast %cst_79 : f32 to vector<288x128xf32>
    %86 = arith.cmpf oge, %84, %85 : vector<288x128xf32>
    %cst_80 = arith.constant 1.000000e-01 : f32
    %87 = vector.broadcast %cst_80 : f32 to vector<288x128xf32>
    %88 = arith.mulf %87, %84 : vector<288x128xf32>
    %89 = arith.select %86, %84, %88 : vector<288x128xi1>, vector<288x128xf32>
    %90 = arith.truncf %89 : vector<288x128xf32> to vector<288x128xbf16>
    %c0_81 = arith.constant 0 : index
    %c0_82 = arith.constant 0 : index
    %c0_83 = arith.constant 0 : index
    %91 = vector.load %arg5[%c0_81, %c0_82, %c0_83] : memref<1x288x128xbf16, #tpu.memory_space<vmem>>, vector<1x288x128xbf16>
    %92 = vector.shape_cast %91 : vector<1x288x128xbf16> to vector<288x128xbf16>
    %93 = vector.shape_cast %90 : vector<288x128xbf16> to vector<1x288x128xbf16>
    tpu.vector_store %arg5[%c0_81, %c0_82, %c0_83], %93 {strides = array<i32>} : memref<1x288x128xbf16, #tpu.memory_space<vmem>>, vector<1x288x128xbf16>,
    return
  }
  func.func @transform_0(%arg0: i32, %arg1: i32) -> (i32, i32, i32) {
    %c0_i32 = arith.constant 0 : i32
    %c0_i32_0 = arith.constant 0 : i32
    %c0_i32_1 = arith.constant 0 : i32
    return %arg0, %c0_i32, %c0_i32_0 : i32, i32, i32
  }
  func.func @transform_1(%arg0: i32, %arg1: i32) -> (i32, i32) {
    %c0_i32 = arith.constant 0 : i32
    %c0_i32_0 = arith.constant 0 : i32
    return %c0_i32, %arg1 : i32, i32
  }
  func.func @transform_2(%arg0: i32, %arg1: i32) -> (i32, i32) {
    %c0_i32 = arith.constant 0 : i32
    %c0_i32_0 = arith.constant 0 : i32
    %c0_i32_1 = arith.constant 0 : i32
    return %c0_i32, %c0_i32_0 : i32, i32
  }
  func.func @transform_3(%arg0: i32, %arg1: i32) -> (i32, i32, i32) {
    %c0_i32 = arith.constant 0 : i32
    %c0_i32_0 = arith.constant 0 : i32
    return %arg0, %c0_i32, %arg1 : i32, i32, i32
  }
}

module attributes {stable_mosaic.version = 11 : i64} {
  func.func @_fused_conv_kernel(%arg0: i32, %arg1: i32, %arg2: memref<1x336x128xbf16, #tpu.memory_space<vmem>>, %arg3: memref<1152x128xbf16, #tpu.memory_space<vmem>>, %arg4: memref<288x1xf32, #tpu.memory_space<vmem>>, %arg5: memref<1x288x128xf32, #tpu.memory_space<vmem>>, %arg6: memref<1x288x128xf32, #tpu.memory_space<vmem>>, %arg7: memref<288x128xf32, #tpu.memory_space<vmem>>) attributes {dimension_semantics = [#tpu.dimension_semantics<parallel>, #tpu.dimension_semantics<parallel>], iteration_bounds = array<i64: 2, 1>, scalar_prefetch = 0 : i64, scratch_operands = 1 : i64, tpu.core_type = #tpu.core_type<tc>, window_params = [{transform_indices = @transform_0, window_bounds = array<i64: 1, 336, 128>}, {transform_indices = @transform_1, window_bounds = array<i64: 1152, 128>}, {pipeline_mode = #tpu.pipeline_mode<synchronous>, transform_indices = @transform_2, window_bounds = array<i64: 288, 1>}, {transform_indices = @transform_3, window_bounds = array<i64: 1, 288, 128>}, {transform_indices = @transform_4, window_bounds = array<i64: 1, 288, 128>}]} {
    %c0 = arith.constant 0 : index
    %c0_0 = arith.constant 0 : index
    %c0_1 = arith.constant 0 : index
    %0 = vector.load %arg2[%c0, %c0_0, %c0_1] : memref<1x336x128xbf16, #tpu.memory_space<vmem>>, vector<1x288x128xbf16>
    %1 = vector.shape_cast %0 : vector<1x288x128xbf16> to vector<288x128xbf16>
    %c0_2 = arith.constant 0 : index
    %c0_3 = arith.constant 0 : index
    %2 = vector.load %arg3[%c0_2, %c0_3] : memref<1152x128xbf16, #tpu.memory_space<vmem>>, vector<128x128xbf16>
    %cst = arith.constant dense<0.000000e+00> : vector<288x128xf32>
    %3 = tpu.matmul %1, %2, %cst {dimension_numbers = #tpu.dot_dimension_numbers<[1], [0], [0], [1], [0, 0, 1, 1], [], []>} : vector<288x128xbf16>, vector<128x128xbf16>, vector<288x128xf32> -> vector<288x128xf32>
    %c0_4 = arith.constant 0 : index
    %c0_5 = arith.constant 0 : index
    %4 = vector.load %arg7[%c0_4, %c0_5] : memref<288x128xf32, #tpu.memory_space<vmem>>, vector<288x128xf32>
    tpu.vector_store %arg7[%c0_4, %c0_5], %3 {strides = array<i32>} : memref<288x128xf32, #tpu.memory_space<vmem>>, vector<288x128xf32>,
    %c0_6 = arith.constant 0 : index
    %c1 = arith.constant 1 : index
    %c0_7 = arith.constant 0 : index
    %5 = vector.load %arg2[%c0_6, %c1, %c0_7] : memref<1x336x128xbf16, #tpu.memory_space<vmem>>, vector<1x288x128xbf16>
    %6 = vector.shape_cast %5 : vector<1x288x128xbf16> to vector<288x128xbf16>
    %c128 = arith.constant 128 : index
    %c0_8 = arith.constant 0 : index
    %7 = vector.load %arg3[%c128, %c0_8] : memref<1152x128xbf16, #tpu.memory_space<vmem>>, vector<128x128xbf16>
    %cst_9 = arith.constant dense<0.000000e+00> : vector<288x128xf32>
    %8 = tpu.matmul %6, %7, %cst_9 {dimension_numbers = #tpu.dot_dimension_numbers<[1], [0], [0], [1], [0, 0, 1, 1], [], []>} : vector<288x128xbf16>, vector<128x128xbf16>, vector<288x128xf32> -> vector<288x128xf32>
    %c0_10 = arith.constant 0 : index
    %c0_11 = arith.constant 0 : index
    %9 = vector.load %arg7[%c0_10, %c0_11] : memref<288x128xf32, #tpu.memory_space<vmem>>, vector<288x128xf32>
    %10 = arith.addf %9, %8 : vector<288x128xf32>
    %c0_12 = arith.constant 0 : index
    %c0_13 = arith.constant 0 : index
    %11 = vector.load %arg7[%c0_12, %c0_13] : memref<288x128xf32, #tpu.memory_space<vmem>>, vector<288x128xf32>
    tpu.vector_store %arg7[%c0_12, %c0_13], %10 {strides = array<i32>} : memref<288x128xf32, #tpu.memory_space<vmem>>, vector<288x128xf32>,
    %c0_14 = arith.constant 0 : index
    %c2 = arith.constant 2 : index
    %c0_15 = arith.constant 0 : index
    %12 = vector.load %arg2[%c0_14, %c2, %c0_15] : memref<1x336x128xbf16, #tpu.memory_space<vmem>>, vector<1x288x128xbf16>
    %13 = vector.shape_cast %12 : vector<1x288x128xbf16> to vector<288x128xbf16>
    %c256 = arith.constant 256 : index
    %c0_16 = arith.constant 0 : index
    %14 = vector.load %arg3[%c256, %c0_16] : memref<1152x128xbf16, #tpu.memory_space<vmem>>, vector<128x128xbf16>
    %cst_17 = arith.constant dense<0.000000e+00> : vector<288x128xf32>
    %15 = tpu.matmul %13, %14, %cst_17 {dimension_numbers = #tpu.dot_dimension_numbers<[1], [0], [0], [1], [0, 0, 1, 1], [], []>} : vector<288x128xbf16>, vector<128x128xbf16>, vector<288x128xf32> -> vector<288x128xf32>
    %c0_18 = arith.constant 0 : index
    %c0_19 = arith.constant 0 : index
    %16 = vector.load %arg7[%c0_18, %c0_19] : memref<288x128xf32, #tpu.memory_space<vmem>>, vector<288x128xf32>
    %17 = arith.addf %16, %15 : vector<288x128xf32>
    %c0_20 = arith.constant 0 : index
    %c0_21 = arith.constant 0 : index
    %18 = vector.load %arg7[%c0_20, %c0_21] : memref<288x128xf32, #tpu.memory_space<vmem>>, vector<288x128xf32>
    tpu.vector_store %arg7[%c0_20, %c0_21], %17 {strides = array<i32>} : memref<288x128xf32, #tpu.memory_space<vmem>>, vector<288x128xf32>,
    %c0_22 = arith.constant 0 : index
    %c18 = arith.constant 18 : index
    %c0_23 = arith.constant 0 : index
    %19 = vector.load %arg2[%c0_22, %c18, %c0_23] : memref<1x336x128xbf16, #tpu.memory_space<vmem>>, vector<1x288x128xbf16>
    %20 = vector.shape_cast %19 : vector<1x288x128xbf16> to vector<288x128xbf16>
    %c384 = arith.constant 384 : index
    %c0_24 = arith.constant 0 : index
    %21 = vector.load %arg3[%c384, %c0_24] : memref<1152x128xbf16, #tpu.memory_space<vmem>>, vector<128x128xbf16>
    %cst_25 = arith.constant dense<0.000000e+00> : vector<288x128xf32>
    %22 = tpu.matmul %20, %21, %cst_25 {dimension_numbers = #tpu.dot_dimension_numbers<[1], [0], [0], [1], [0, 0, 1, 1], [], []>} : vector<288x128xbf16>, vector<128x128xbf16>, vector<288x128xf32> -> vector<288x128xf32>
    %c0_26 = arith.constant 0 : index
    %c0_27 = arith.constant 0 : index
    %23 = vector.load %arg7[%c0_26, %c0_27] : memref<288x128xf32, #tpu.memory_space<vmem>>, vector<288x128xf32>
    %24 = arith.addf %23, %22 : vector<288x128xf32>
    %c0_28 = arith.constant 0 : index
    %c0_29 = arith.constant 0 : index
    %25 = vector.load %arg7[%c0_28, %c0_29] : memref<288x128xf32, #tpu.memory_space<vmem>>, vector<288x128xf32>
    tpu.vector_store %arg7[%c0_28, %c0_29], %24 {strides = array<i32>} : memref<288x128xf32, #tpu.memory_space<vmem>>, vector<288x128xf32>,
    %c0_30 = arith.constant 0 : index
    %c19 = arith.constant 19 : index
    %c0_31 = arith.constant 0 : index
    %26 = vector.load %arg2[%c0_30, %c19, %c0_31] : memref<1x336x128xbf16, #tpu.memory_space<vmem>>, vector<1x288x128xbf16>
    %27 = vector.shape_cast %26 : vector<1x288x128xbf16> to vector<288x128xbf16>
    %c512 = arith.constant 512 : index
    %c0_32 = arith.constant 0 : index
    %28 = vector.load %arg3[%c512, %c0_32] : memref<1152x128xbf16, #tpu.memory_space<vmem>>, vector<128x128xbf16>
    %cst_33 = arith.constant dense<0.000000e+00> : vector<288x128xf32>
    %29 = tpu.matmul %27, %28, %cst_33 {dimension_numbers = #tpu.dot_dimension_numbers<[1], [0], [0], [1], [0, 0, 1, 1], [], []>} : vector<288x128xbf16>, vector<128x128xbf16>, vector<288x128xf32> -> vector<288x128xf32>
    %c0_34 = arith.constant 0 : index
    %c0_35 = arith.constant 0 : index
    %30 = vector.load %arg7[%c0_34, %c0_35] : memref<288x128xf32, #tpu.memory_space<vmem>>, vector<288x128xf32>
    %31 = arith.addf %30, %29 : vector<288x128xf32>
    %c0_36 = arith.constant 0 : index
    %c0_37 = arith.constant 0 : index
    %32 = vector.load %arg7[%c0_36, %c0_37] : memref<288x128xf32, #tpu.memory_space<vmem>>, vector<288x128xf32>
    tpu.vector_store %arg7[%c0_36, %c0_37], %31 {strides = array<i32>} : memref<288x128xf32, #tpu.memory_space<vmem>>, vector<288x128xf32>,
    %c0_38 = arith.constant 0 : index
    %c20 = arith.constant 20 : index
    %c0_39 = arith.constant 0 : index
    %33 = vector.load %arg2[%c0_38, %c20, %c0_39] : memref<1x336x128xbf16, #tpu.memory_space<vmem>>, vector<1x288x128xbf16>
    %34 = vector.shape_cast %33 : vector<1x288x128xbf16> to vector<288x128xbf16>
    %c640 = arith.constant 640 : index
    %c0_40 = arith.constant 0 : index
    %35 = vector.load %arg3[%c640, %c0_40] : memref<1152x128xbf16, #tpu.memory_space<vmem>>, vector<128x128xbf16>
    %cst_41 = arith.constant dense<0.000000e+00> : vector<288x128xf32>
    %36 = tpu.matmul %34, %35, %cst_41 {dimension_numbers = #tpu.dot_dimension_numbers<[1], [0], [0], [1], [0, 0, 1, 1], [], []>} : vector<288x128xbf16>, vector<128x128xbf16>, vector<288x128xf32> -> vector<288x128xf32>
    %c0_42 = arith.constant 0 : index
    %c0_43 = arith.constant 0 : index
    %37 = vector.load %arg7[%c0_42, %c0_43] : memref<288x128xf32, #tpu.memory_space<vmem>>, vector<288x128xf32>
    %38 = arith.addf %37, %36 : vector<288x128xf32>
    %c0_44 = arith.constant 0 : index
    %c0_45 = arith.constant 0 : index
    %39 = vector.load %arg7[%c0_44, %c0_45] : memref<288x128xf32, #tpu.memory_space<vmem>>, vector<288x128xf32>
    tpu.vector_store %arg7[%c0_44, %c0_45], %38 {strides = array<i32>} : memref<288x128xf32, #tpu.memory_space<vmem>>, vector<288x128xf32>,
    %c0_46 = arith.constant 0 : index
    %c36 = arith.constant 36 : index
    %c0_47 = arith.constant 0 : index
    %40 = vector.load %arg2[%c0_46, %c36, %c0_47] : memref<1x336x128xbf16, #tpu.memory_space<vmem>>, vector<1x288x128xbf16>
    %41 = vector.shape_cast %40 : vector<1x288x128xbf16> to vector<288x128xbf16>
    %c768 = arith.constant 768 : index
    %c0_48 = arith.constant 0 : index
    %42 = vector.load %arg3[%c768, %c0_48] : memref<1152x128xbf16, #tpu.memory_space<vmem>>, vector<128x128xbf16>
    %cst_49 = arith.constant dense<0.000000e+00> : vector<288x128xf32>
    %43 = tpu.matmul %41, %42, %cst_49 {dimension_numbers = #tpu.dot_dimension_numbers<[1], [0], [0], [1], [0, 0, 1, 1], [], []>} : vector<288x128xbf16>, vector<128x128xbf16>, vector<288x128xf32> -> vector<288x128xf32>
    %c0_50 = arith.constant 0 : index
    %c0_51 = arith.constant 0 : index
    %44 = vector.load %arg7[%c0_50, %c0_51] : memref<288x128xf32, #tpu.memory_space<vmem>>, vector<288x128xf32>
    %45 = arith.addf %44, %43 : vector<288x128xf32>
    %c0_52 = arith.constant 0 : index
    %c0_53 = arith.constant 0 : index
    %46 = vector.load %arg7[%c0_52, %c0_53] : memref<288x128xf32, #tpu.memory_space<vmem>>, vector<288x128xf32>
    tpu.vector_store %arg7[%c0_52, %c0_53], %45 {strides = array<i32>} : memref<288x128xf32, #tpu.memory_space<vmem>>, vector<288x128xf32>,
    %c0_54 = arith.constant 0 : index
    %c37 = arith.constant 37 : index
    %c0_55 = arith.constant 0 : index
    %47 = vector.load %arg2[%c0_54, %c37, %c0_55] : memref<1x336x128xbf16, #tpu.memory_space<vmem>>, vector<1x288x128xbf16>
    %48 = vector.shape_cast %47 : vector<1x288x128xbf16> to vector<288x128xbf16>
    %c896 = arith.constant 896 : index
    %c0_56 = arith.constant 0 : index
    %49 = vector.load %arg3[%c896, %c0_56] : memref<1152x128xbf16, #tpu.memory_space<vmem>>, vector<128x128xbf16>
    %cst_57 = arith.constant dense<0.000000e+00> : vector<288x128xf32>
    %50 = tpu.matmul %48, %49, %cst_57 {dimension_numbers = #tpu.dot_dimension_numbers<[1], [0], [0], [1], [0, 0, 1, 1], [], []>} : vector<288x128xbf16>, vector<128x128xbf16>, vector<288x128xf32> -> vector<288x128xf32>
    %c0_58 = arith.constant 0 : index
    %c0_59 = arith.constant 0 : index
    %51 = vector.load %arg7[%c0_58, %c0_59] : memref<288x128xf32, #tpu.memory_space<vmem>>, vector<288x128xf32>
    %52 = arith.addf %51, %50 : vector<288x128xf32>
    %c0_60 = arith.constant 0 : index
    %c0_61 = arith.constant 0 : index
    %53 = vector.load %arg7[%c0_60, %c0_61] : memref<288x128xf32, #tpu.memory_space<vmem>>, vector<288x128xf32>
    tpu.vector_store %arg7[%c0_60, %c0_61], %52 {strides = array<i32>} : memref<288x128xf32, #tpu.memory_space<vmem>>, vector<288x128xf32>,
    %c0_62 = arith.constant 0 : index
    %c38 = arith.constant 38 : index
    %c0_63 = arith.constant 0 : index
    %54 = vector.load %arg2[%c0_62, %c38, %c0_63] : memref<1x336x128xbf16, #tpu.memory_space<vmem>>, vector<1x288x128xbf16>
    %55 = vector.shape_cast %54 : vector<1x288x128xbf16> to vector<288x128xbf16>
    %c1024 = arith.constant 1024 : index
    %c0_64 = arith.constant 0 : index
    %56 = vector.load %arg3[%c1024, %c0_64] : memref<1152x128xbf16, #tpu.memory_space<vmem>>, vector<128x128xbf16>
    %cst_65 = arith.constant dense<0.000000e+00> : vector<288x128xf32>
    %57 = tpu.matmul %55, %56, %cst_65 {dimension_numbers = #tpu.dot_dimension_numbers<[1], [0], [0], [1], [0, 0, 1, 1], [], []>} : vector<288x128xbf16>, vector<128x128xbf16>, vector<288x128xf32> -> vector<288x128xf32>
    %c0_66 = arith.constant 0 : index
    %c0_67 = arith.constant 0 : index
    %58 = vector.load %arg7[%c0_66, %c0_67] : memref<288x128xf32, #tpu.memory_space<vmem>>, vector<288x128xf32>
    %59 = arith.addf %58, %57 : vector<288x128xf32>
    %c0_68 = arith.constant 0 : index
    %c0_69 = arith.constant 0 : index
    %60 = vector.load %arg7[%c0_68, %c0_69] : memref<288x128xf32, #tpu.memory_space<vmem>>, vector<288x128xf32>
    tpu.vector_store %arg7[%c0_68, %c0_69], %59 {strides = array<i32>} : memref<288x128xf32, #tpu.memory_space<vmem>>, vector<288x128xf32>,
    %c0_70 = arith.constant 0 : index
    %c0_71 = arith.constant 0 : index
    %61 = vector.load %arg7[%c0_70, %c0_71] : memref<288x128xf32, #tpu.memory_space<vmem>>, vector<288x128xf32>
    %c0_72 = arith.constant 0 : index
    %c0_73 = arith.constant 0 : index
    %62 = vector.load %arg4[%c0_72, %c0_73] : memref<288x1xf32, #tpu.memory_space<vmem>>, vector<288x1xf32>
    %63 = vector.broadcast %62 : vector<288x1xf32> to vector<288x128xf32>
    %64 = arith.mulf %61, %63 : vector<288x128xf32>
    %cst_74 = arith.constant dense<0.000000e+00> : vector<128xf32>
    %65 = vector.multi_reduction <add>, %64, %cst_74 [0] : vector<288x128xf32> to vector<128xf32>
    %66 = vector.shape_cast %65 : vector<128xf32> to vector<1x128xf32>
    %cst_75 = arith.constant 3.906250e-03 : f32
    %67 = vector.broadcast %cst_75 : f32 to vector<1x128xf32>
    %68 = arith.mulf %66, %67 : vector<1x128xf32>
    %69 = vector.broadcast %68 : vector<1x128xf32> to vector<288x128xf32>
    %70 = arith.subf %61, %69 : vector<288x128xf32>
    %71 = vector.broadcast %62 : vector<288x1xf32> to vector<288x128xf32>
    %72 = arith.mulf %70, %71 : vector<288x128xf32>
    %73 = arith.mulf %72, %72 : vector<288x128xf32>
    %cst_76 = arith.constant dense<0.000000e+00> : vector<128xf32>
    %74 = vector.multi_reduction <add>, %73, %cst_76 [0] : vector<288x128xf32> to vector<128xf32>
    %75 = vector.shape_cast %74 : vector<128xf32> to vector<1x128xf32>
    %cst_77 = arith.constant 3.906250e-03 : f32
    %76 = vector.broadcast %cst_77 : f32 to vector<1x128xf32>
    %77 = arith.mulf %75, %76 : vector<1x128xf32>
    %78 = vector.broadcast %68 : vector<1x128xf32> to vector<288x128xf32>
    %79 = arith.subf %61, %78 : vector<288x128xf32>
    %cst_78 = arith.constant 9.99999974E-6 : f32
    %80 = vector.broadcast %cst_78 : f32 to vector<1x128xf32>
    %81 = arith.addf %77, %80 : vector<1x128xf32>
    %82 = math.rsqrt %81 : vector<1x128xf32>
    %83 = vector.broadcast %82 : vector<1x128xf32> to vector<288x128xf32>
    %84 = arith.mulf %79, %83 : vector<288x128xf32>
    %c0_79 = arith.constant 0 : index
    %c0_80 = arith.constant 0 : index
    %c0_81 = arith.constant 0 : index
    %85 = vector.load %arg5[%c0_79, %c0_80, %c0_81] : memref<1x288x128xf32, #tpu.memory_space<vmem>>, vector<1x288x128xf32>
    %86 = vector.shape_cast %85 : vector<1x288x128xf32> to vector<288x128xf32>
    %87 = arith.addf %84, %86 : vector<288x128xf32>
    %cst_82 = arith.constant 0.000000e+00 : f32
    %88 = vector.broadcast %cst_82 : f32 to vector<288x128xf32>
    %89 = arith.cmpf oge, %87, %88 : vector<288x128xf32>
    %cst_83 = arith.constant 1.000000e-01 : f32
    %90 = vector.broadcast %cst_83 : f32 to vector<288x128xf32>
    %91 = arith.mulf %90, %87 : vector<288x128xf32>
    %92 = arith.select %89, %87, %91 : vector<288x128xi1>, vector<288x128xf32>
    %c0_84 = arith.constant 0 : index
    %c0_85 = arith.constant 0 : index
    %c0_86 = arith.constant 0 : index
    %93 = vector.load %arg6[%c0_84, %c0_85, %c0_86] : memref<1x288x128xf32, #tpu.memory_space<vmem>>, vector<1x288x128xf32>
    %94 = vector.shape_cast %93 : vector<1x288x128xf32> to vector<288x128xf32>
    %95 = vector.shape_cast %92 : vector<288x128xf32> to vector<1x288x128xf32>
    tpu.vector_store %arg6[%c0_84, %c0_85, %c0_86], %95 {strides = array<i32>} : memref<1x288x128xf32, #tpu.memory_space<vmem>>, vector<1x288x128xf32>,
    return
  }
  func.func @transform_0(%arg0: i32, %arg1: i32) -> (i32, i32, i32) {
    %c0_i32 = arith.constant 0 : i32
    %c0_i32_0 = arith.constant 0 : i32
    %c0_i32_1 = arith.constant 0 : i32
    return %arg0, %c0_i32, %c0_i32_0 : i32, i32, i32
  }
  func.func @transform_1(%arg0: i32, %arg1: i32) -> (i32, i32) {
    %c0_i32 = arith.constant 0 : i32
    %c0_i32_0 = arith.constant 0 : i32
    return %c0_i32, %arg1 : i32, i32
  }
  func.func @transform_2(%arg0: i32, %arg1: i32) -> (i32, i32) {
    %c0_i32 = arith.constant 0 : i32
    %c0_i32_0 = arith.constant 0 : i32
    %c0_i32_1 = arith.constant 0 : i32
    return %c0_i32, %c0_i32_0 : i32, i32
  }
  func.func @transform_3(%arg0: i32, %arg1: i32) -> (i32, i32, i32) {
    %c0_i32 = arith.constant 0 : i32
    %c0_i32_0 = arith.constant 0 : i32
    return %arg0, %c0_i32, %arg1 : i32, i32, i32
  }
  func.func @transform_4(%arg0: i32, %arg1: i32) -> (i32, i32, i32) {
    %c0_i32 = arith.constant 0 : i32
    %c0_i32_0 = arith.constant 0 : i32
    return %arg0, %c0_i32, %arg1 : i32, i32, i32
  }
}

</mosaic_0001>

<bundles_post_ra>
// kernel: bottleneck_forward.2
= control target key start
LH: loop header
LB: loop body
LE: loop exit
PB: predicated region body
PF: predicated region fallthrough
CT: control target
= control target key end

     0   :  { %s6770_s12 = smov 0   ;;  %s6772_s13 = smov 0   ;;  %s8749_s0 = inlined_call_operand.vmem [shape: bf16[2,336,128], index: 0, kind: input, shape index: {}]   ;;  %s8750_s1 = inlined_call_operand.vmem [shape: bf16[1152,128], index: 1, kind: input, shape index: {}]   ;;  %s8751_s2 = inlined_call_operand.vmem [shape: f32[288,1], index: 2, kind: input, shape index: {}]   ;;  %s8752_s3 = inlined_call_operand.vmem [shape: bf16[2,288,128], index: 3, kind: output, shape index: {}]  }
   0x1   :  { %s6774_s14 = smov 0  }
   0x2 LB: > { %s25_s15 = sadd.s32 1, %s6743_s13  ;;  %p5387_p0 = scmp.ge.s32.totalorder %s6747_s14, 1  ;;  %s6747_s14 = sphi %s6774_s14, %s13_s14   ;;  %s6743_s13 = sphi %s6772_s13, %s8916_s13   ;;  %s6739_s12 = sphi %s6770_s12, %s8915_s12  }
   0x3   : > { %p27_p1 = scmp.ge.s32.totalorder %s25_s15, 2  ;;  %p160_p2 = scmp.lt.s32.totalorder %s6747_s14, 3 }
   0x5   : > { %s8918_s15 = smov (%p27_p1, %s25_s15), 0  ;;  %p161_p3 = pnand %p5387_p0, %p160_p2 }
   0x7   : > { %164 = sbr.rel (%p161_p3) target bundleno = 1008 (0x3f0), region = 32 }
   0xc   : > { %v6353_v0 = vld [vmem:[%s8750_s1 + $0x38] sm:$0xff]  ;;  %v6352_v1 = vld [vmem:[%s8750_s1 + $0x30] sm:$0xff]  ;;  %v6351_v2 = vld [vmem:[%s8750_s1 + $0x28] sm:$0xff]  ;;  %p191_p4 = scmp.lt.s32.totalorder %s6739_s12, 1  ;;  %vm1265_vm0 = vcmask 1046528   ;;  %vm2768_vm4 = vcmask 1045504  }
   0xd   : > { %6669 = vmatpush.bf16.msra.mxu1 %v6353_v0  ;;  %6670 = vmatpush.bf16.msra.mxu2 %v6353_v0  ;;  %v6350_v3 = vld [vmem:[%s8750_s1 + $0x20] sm:$0xff]  ;;  %v6349_v4 = vld [vmem:[%s8750_s1 + $0x18] sm:$0xff]  ;;  %v6348_v5 = vld [vmem:[%s8750_s1 + $0x10] sm:$0xff]  ;;  %vm697_vm1 = vsmask.f32 7424  ;;  %vm4271_vm5 = vcmask 1044480  }
   0xe   : > { %416 = vmatpush.bf16.msra.mxu0 %v6353_v0  ;;  %6671 = vmatpush.bf16.msra.mxu3 %v6353_v0  ;;  %s8920_s12 = smov (!%p191_p4, %s6739_s12), 1  ;;  %v6347_v6 = vld [vmem:[%s8750_s1 + $0x8] sm:$0xff]  ;;  %v6346_v7 = vld [vmem:[%s8750_s1] sm:$0xff]  ;;  %v6405_v8 = vld [vmem:[%s8750_s1 + $0xb8] sm:$0xff]  ;;  %vm2178_vm2 = vsmask.f32 6400 }
   0xf   : > { %s6693_s30 = smul.u32 168, %s8920_s12  ;;  %v6379_v9 = vld [vmem:[%s8750_s1 + $0x78] sm:$0xff]  ;;  %v6404_v14 = vld [vmem:[%s8750_s1 + $0xb0] sm:$0xff]  ;;  %v6403_v19 = vld [vmem:[%s8750_s1 + $0xa8] sm:$0xff]  ;;  %vm3681_vm3 = vsmask.f32 5376 }
  0x10   : > { %v6457_v10 = vld [vmem:[%s8750_s1 + $0x138] sm:$0xff]  ;;  %v6378_v15 = vld [vmem:[%s8750_s1 + $0x70] sm:$0xff]  ;;  %v6377_v20 = vld [vmem:[%s8750_s1 + $0x68] sm:$0xff] }
  0x11   : > { %6672 = vmatpush.bf16.msra.mxu1 %v6352_v1  ;;  %6673 = vmatpush.bf16.msra.mxu2 %v6352_v1  ;;  %s6822_s8 = scalar_lea.vmem %s8749_s0, %s6693_s30  ;;  %v6456_v16 = vld [vmem:[%s8750_s1 + $0x130] sm:$0xff]  ;;  %v6431_v18 = vld [vmem:[%s8750_s1 + $0xf8] sm:$0xff]  ;;  %v6455_v21 = vld [vmem:[%s8750_s1 + $0x128] sm:$0xff] }
  0x12   : > { %417 = vmatpush.bf16.msra.mxu0 %v6352_v1  ;;  %6674 = vmatpush.bf16.msra.mxu3 %v6352_v1  ;;  %v6333_v11 = vld [vmem:[%s6822_s8 + $0x28] sm:$0xff]  ;;  %v6338_v12 = vld [vmem:[%s6822_s8 + $0x50] sm:$0xff]  ;;  %v6328_v13 = vld [vmem:[%s6822_s8] sm:$0xff] }
  0x13   : > { %v6343_v17 = vld [vmem:[%s6822_s8 + $0x78] sm:$0xff]  ;;  %v6430_v22 = vld [vmem:[%s8750_s1 + $0xf0] sm:$0xff]  ;;  %v6402_v23 = vld [vmem:[%s8750_s1 + $0xa0] sm:$0xff] }
  0x14   : > { %v6376_v24 = vld [vmem:[%s8750_s1 + $0x60] sm:$0xff]  ;;  %v6429_v26 = vld [vmem:[%s8750_s1 + $0xe8] sm:$0xff]  ;;  %v6401_v27 = vld [vmem:[%s8750_s1 + $0x98] sm:$0xff] }
  0x15   : > { %6675 = vmatpush.bf16.msra.mxu1 %v6351_v2  ;;  %6676 = vmatpush.bf16.msra.mxu2 %v6351_v2  ;;  %v6454_v25 = vld [vmem:[%s8750_s1 + $0x120] sm:$0xff]  ;;  %v6375_v28 = vld [vmem:[%s8750_s1 + $0x58] sm:$0xff]  ;;  %v6334_v29 = vld [vmem:[%s6822_s8 + $0x30] sm:$0xff] }
  0x16   : > { %418 = vmatpush.bf16.msra.mxu0 %v6351_v2  ;;  %6677 = vmatpush.bf16.msra.mxu3 %v6351_v2  ;;  %v6339_v30 = vld [vmem:[%s6822_s8 + $0x58] sm:$0xff]  ;;  %v6329_v31 = vld [vmem:[%s6822_s8 + $0x8] sm:$0xff]  ;;  %v6344_v32 = vld [vmem:[%s6822_s8 + $0x80] sm:$0xff] }
  0x17   : > { %v6400_v33 = vld [vmem:[%s8750_s1 + $0x90] sm:$0xff]  ;;  %v6453_v34 = vld [vmem:[%s8750_s1 + $0x118] sm:$0xff]  ;;  %v6428_v35 = vld [vmem:[%s8750_s1 + $0xe0] sm:$0xff] }
  0x18   : > { %v6374_v36 = vld [vmem:[%s8750_s1 + $0x50] sm:$0xff]  ;;  %v6399_v37 = vld [vmem:[%s8750_s1 + $0x88] sm:$0xff]  ;;  %v6427_v39 = vld [vmem:[%s8750_s1 + $0xd8] sm:$0xff] }
  0x19   : > { %6678 = vmatpush.bf16.msra.mxu1 %v6350_v3  ;;  %6679 = vmatpush.bf16.msra.mxu2 %v6350_v3  ;;  %v6452_v38 = vld [vmem:[%s8750_s1 + $0x110] sm:$0xff]  ;;  %v6335_v41 = vld [vmem:[%s6822_s8 + $0x38] sm:$0xff]  ;;  %v6340_v42 = vld [vmem:[%s6822_s8 + $0x60] sm:$0xff] }
  0x1a   : > { %419 = vmatpush.bf16.msra.mxu0 %v6350_v3  ;;  %6680 = vmatpush.bf16.msra.mxu3 %v6350_v3  ;;  %v6426_v40 = vld [vmem:[%s8750_s1 + $0xd0] sm:$0xff]  ;;  %v6345_v44 = vld [vmem:[%s6822_s8 + $0x88] sm:$0xff]  ;;  %v6398_v47 = vld [vmem:[%s8750_s1 + $0x80] sm:$0xff] }
  0x1b   : > { %v6330_v43 = vld [vmem:[%s6822_s8 + $0x10] sm:$0xff]  ;;  %v6373_v45 = vld [vmem:[%s8750_s1 + $0x48] sm:$0xff]  ;;  %v6372_v49 = vld [vmem:[%s8750_s1 + $0x40] sm:$0xff] }
  0x1c   : > { %v6425_v46 = vld [vmem:[%s8750_s1 + $0xc8] sm:$0xff]  ;;  %v6424_v50 = vld [vmem:[%s8750_s1 + $0xc0] sm:$0xff]  ;;  %v6407_v54 = vld [vmem:[%s6822_s8 + $0x10] sm:$0xff] }
  0x1d   : > { %6681 = vmatpush.bf16.msra.mxu1 %v6349_v4  ;;  %6682 = vmatpush.bf16.msra.mxu2 %v6349_v4  ;;  %v6451_v48 = vld [vmem:[%s8750_s1 + $0x108] sm:$0xff]  ;;  %v6450_v51 = vld [vmem:[%s8750_s1 + $0x100] sm:$0xff]  ;;  %v6331_v58 = vld [vmem:[%s6822_s8 + $0x18] sm:$0xff]  ;;  %v1723_v60 = vrot.slane %v6407_v54, 1 }
  0x1e   : > { %420 = vmatpush.bf16.msra.mxu0 %v6349_v4  ;;  %6683 = vmatpush.bf16.msra.mxu3 %v6349_v4  ;;  %v5704_v52 = vld [vmem:[%s6822_s8 + $0x8] sm:$0xe]  ;;  %v6406_v53 = vld [vmem:[%s6822_s8 + $0x8] sm:$0xf0]  ;;  %v6336_v56 = vld [vmem:[%s6822_s8 + $0x40] sm:$0xff] }
  0x1f   : > { %v5705_v55 = vor.u32 %v6406_v53, %v5704_v52  ;;  %v6341_v57 = vld [vmem:[%s6822_s8 + $0x68] sm:$0xff]  ;;  %v6509_v61 = vld [vmem:[%s8750_s1 + $0x1b8] sm:$0xff] }
  0x20   : > { %v6535_v63 = vld [vmem:[%s8750_s1 + $0x1f8] sm:$0xff]  ;;  %v5808_v3 = vld [vmem:[%s6822_s8 + $0x8] sm:$0xe]  ;;  %v6432_v4 = vld [vmem:[%s6822_s8 + $0x8] sm:$0xf0] }
  0x21   : > { %6684 = vmatpush.bf16.msra.mxu1 %v6348_v5  ;;  %6685 = vmatpush.bf16.msra.mxu2 %v6348_v5  ;;  %v1722_v59 = vrot.slane %v5705_v55, 1  ;;  %v6483_v0 = vld [vmem:[%s8750_s1 + $0x178] sm:$0xff] }
  0x22   : > { %421 = vmatpush.bf16.msra.mxu0 %v6348_v5  ;;  %6686 = vmatpush.bf16.msra.mxu3 %v6348_v5  ;;  %v6561_v1 = vld [vmem:[%s8750_s1 + $0x238] sm:$0xff]  ;;  %v6337_v5 = vld [vmem:[%s6822_s8 + $0x48] sm:$0xff] }
  0x23   : > { %v1724_v62 = vsel %vm1265_vm0, %v1722_v59, %v1723_v60  ;;  %v6408_v2 = vld [vmem:[%s6822_s8 + $0x18] sm:$0xff] }
  0x25   : > { %6687 = vmatpush.bf16.msra.mxu1 %v6347_v6  ;;  %6688 = vmatpush.bf16.msra.mxu2 %v6347_v6 }
  0x26   : > { %422 = vmatpush.bf16.msra.mxu0 %v6347_v6  ;;  %6689 = vmatpush.bf16.msra.mxu3 %v6347_v6  ;;  %v6342_v6 = vld [vmem:[%s6822_s8 + $0x70] sm:$0xff] }
  0x29   : > { %6690 = vmatpush.bf16.msra.mxu1 %v6346_v7  ;;  %6691 = vmatpush.bf16.msra.mxu2 %v6346_v7 }
  0x2a   : > { %423 = vmatpush.bf16.msra.mxu0 %v6346_v7  ;;  %6692 = vmatpush.bf16.msra.mxu3 %v6346_v7  ;;  %v6332_v7 = vld [vmem:[%s6822_s8 + $0x20] sm:$0xff] }
  0x2c   : > { %449 = vmatmul.bf16.vlgmr.msra.gmra.mxu1 %v6333_v11  ;;  %474 = vmatmul.bf16.vlgmr.msra.gmra.mxu2 %v6338_v12  ;;  %v5809_v11 = vor.u32 %v6432_v4, %v5808_v3  ;;  %v6355_v12 = vld [vmem:[%s6822_s8 + $0x8] sm:$0xff] }
  0x2d   : > { %1369 = vmatpush.bf16.msrb.mxu2 %v6405_v8  ;;  %912 = vmatpush.bf16.msrb.mxu1 %v6379_v9  ;;  %v6354_v8 = vld [vmem:[%s6822_s8] sm:$0xff]  ;;  %v1725_v9 = vrot.slane %v6408_v2, 1 }
  0x2e   : > { %2415 = vmatpush.bf16.msrb.mxu0 %v6457_v10  ;;  %499 = vmatmul.bf16.vlgmr.msra.gmra.mxu3 %v6343_v17  ;;  %v6433_v10 = vld [vmem:[%s6822_s8 + $0x10] sm:$0xff]  ;;  %v2180_v17 = vshrl.u32 %v5809_v11, 16 }
  0x2f   : > { %424 = vmatmul.bf16.vlgmr.msra.gmra.mxu0 %v6328_v13  ;;  %1825 = vmatpush.bf16.msrb.mxu3 %v6431_v18  ;;  %v701_v13 = vshll.u32 %v6354_v8, 16  ;;  %v2183_v18 = vshll.u32 %v5809_v11, 16 }
  0x31   : > { %1370 = vmatpush.bf16.msrb.mxu2 %v6404_v14  ;;  %913 = vmatpush.bf16.msrb.mxu1 %v6378_v15  ;;  %v5600_v14 = vld [vmem:[%s6822_s8] sm:$0xe]  ;;  %v1726_v15 = vsel %vm1265_vm0, %v1723_v60, %v1725_v9 }
  0x32   : > { %2416 = vmatpush.bf16.msrb.mxu0 %v6456_v16  ;;  %v6380_v16 = vld [vmem:[%s6822_s8] sm:$0xf0] }
  0x33   : > { %1826 = vmatpush.bf16.msrb.mxu3 %v6430_v22  ;;  %v703_v22 = vrot.slane %v701_v13, 1  ;;  %v6411_v13 = vld [vmem:[%s6822_s8 + $0x30] sm:$0xff] }
  0x35   : > { %1371 = vmatpush.bf16.msrb.mxu2 %v6403_v19  ;;  %914 = vmatpush.bf16.msrb.mxu1 %v6377_v20  ;;  %v2188_v19 = vshrl.u32 %v6433_v10, 16  ;;  %v2191_v20 = vshll.u32 %v6433_v10, 16 }
  0x36   : > { %2417 = vmatpush.bf16.msrb.mxu0 %v6455_v21  ;;  %v699_v21 = vshrl.u32 %v6354_v8, 16 }
  0x37   : > { %1827 = vmatpush.bf16.msrb.mxu3 %v6429_v26  ;;  %v2182_v26 = vrot.slane %v2180_v17, 1  ;;  %v1731_v17 = vrot.slane %v6411_v13, 1 }
  0x39   : > { %1372 = vmatpush.bf16.msrb.mxu2 %v6402_v23  ;;  %915 = vmatpush.bf16.msrb.mxu1 %v6376_v24  ;;  %v706_v23 = vshll.u32 %v6355_v12, 16  ;;  %v6381_v24 = vld [vmem:[%s6822_s8 + $0x8] sm:$0xff] }
  0x3a   : > { %2418 = vmatpush.bf16.msrb.mxu0 %v6454_v25  ;;  %v5601_v25 = vor.u32 %v6380_v16, %v5600_v14 }
  0x3b   : > { %1828 = vmatpush.bf16.msrb.mxu3 %v6428_v35 }
  0x3c   : > { %454 = vmatmul.bf16.gmra.mxu1 %v6334_v29  ;;  %479 = vmatmul.bf16.gmra.mxu2 %v6339_v30  ;;  %v2193_v29 = vrot.slane %v2191_v20, 2  ;;  %v704_v30 = vor.u32 %v703_v22, %v699_v21  ;;  %v6358_v20 = vld [vmem:[%s6822_s8 + $0x20] sm:$0xff] }
  0x3d   : > { %1373 = vmatpush.bf16.msrb.mxu2 %v6401_v27  ;;  %916 = vmatpush.bf16.msrb.mxu1 %v6375_v28  ;;  %v2185_v27 = vrot.slane %v2183_v18, 2  ;;  %v2190_v28 = vrot.slane %v2188_v19, 1  ;;  %v6436_v19 = vld [vmem:[%s6822_s8 + $0x28] sm:$0xff] }
  0x3e   : > { %2419 = vmatpush.bf16.msrb.mxu0 %v6453_v34  ;;  %504 = vmatmul.bf16.gmra.mxu3 %v6344_v32  ;;  %v1266_v32 = vrot.slane %v5601_v25, 1  ;;  %v6409_v34 = vld [vmem:[%s6822_s8 + $0x20] sm:$0xff]  ;;  %v2215_v22 = vshrl.u32 %v6436_v19, 16  ;;  %v730_v25 = vshll.u32 %v6358_v20, 16 }
  0x3f   : > { %429 = vmatmul.bf16.gmra.mxu0 %v6329_v31  ;;  %1829 = vmatpush.bf16.msrb.mxu3 %v6427_v39  ;;  %v708_v31 = vrot.slane %v706_v23, 1  ;;  %v2186_v35 = vor.u32 %v2185_v27, %v2182_v26  ;;  %v1727_v39 = vrot.slane %v6409_v34, 1  ;;  %v2218_v23 = vshll.u32 %v6436_v19, 16  ;;  %v6384_v26 = vld [vmem:[%s6822_s8 + $0x20] sm:$0xff]  ;;  %v6412_v34 = vld [vmem:[%s6822_s8 + $0x38] sm:$0xff] }
  0x40   : > { %v2217_v27 = vrot.slane %v2215_v22, 1 }
  0x41   : > { %1374 = vmatpush.bf16.msrb.mxu2 %v6400_v33  ;;  %917 = vmatpush.bf16.msrb.mxu1 %v6374_v36  ;;  %v1267_v33 = vrot.slane %v6381_v24, 1  ;;  %v2194_v36 = vor.u32 %v2193_v29, %v2190_v28  ;;  %v2220_v28 = vrot.slane %v2218_v23, 2  ;;  %v6507_v29 = vld [vmem:[%s8750_s1 + $0x1a8] sm:$0xff] }
  0x42   : > { %2420 = vmatpush.bf16.msrb.mxu0 %v6452_v38 }
  0x43   : > { %1830 = vmatpush.bf16.msrb.mxu3 %v6426_v40  ;;  %v1268_v38 = vsel %vm1265_vm0, %v1266_v32, %v1267_v33  ;;  %v2195_v40 = vsel %vm2178_vm2, %v2186_v35, %v2194_v36  ;;  %v732_v32 = vrot.slane %v730_v25, 1  ;;  %v2221_v35 = vor.u32 %v2220_v28, %v2217_v27  ;;  %v6506_v27 = vld [vmem:[%s8750_s1 + $0x1a0] sm:$0xff] }
  0x45   : > { %1375 = vmatpush.bf16.msrb.mxu2 %v6399_v37  ;;  %918 = vmatpush.bf16.msrb.mxu1 %v6373_v45  ;;  %v709_v37 = vsel %vm697_vm1, %v704_v30, %v708_v31  ;;  %v6534_v45 = vld [vmem:[%s8750_s1 + $0x1f0] sm:$0xff]  ;;  %v6533_v30 = vld [vmem:[%s8750_s1 + $0x1e8] sm:$0xff] }
  0x46   : > { %2421 = vmatpush.bf16.msrb.mxu0 %v6451_v48 }
  0x47   : > { %1831 = vmatpush.bf16.msrb.mxu3 %v6425_v46  ;;  %v6482_v46 = vld [vmem:[%s8750_s1 + $0x170] sm:$0xff] }
  0x49   : > { %1376 = vmatpush.bf16.msrb.mxu2 %v6398_v47  ;;  %919 = vmatpush.bf16.msrb.mxu1 %v6372_v49  ;;  %v710_v49 = vshrl.u32 %v6355_v12, 16 }
  0x4a   : > { %2422 = vmatpush.bf16.msrb.mxu0 %v6450_v51  ;;  %v6382_v51 = vld [vmem:[%s6822_s8 + $0x10] sm:$0xff] }
  0x4b   : > { %1832 = vmatpush.bf16.msrb.mxu3 %v6424_v50  ;;  %v712_v54 = vor.u32 %v710_v49, %v708_v31 }
  0x4c   : > { %459 = vmatmul.bf16.gmra.mxu1 %v6335_v41  ;;  %484 = vmatmul.bf16.gmra.mxu2 %v6340_v42  ;;  %v6434_v41 = vld [vmem:[%s6822_s8 + $0x18] sm:$0xff]  ;;  %v6356_v42 = vld [vmem:[%s6822_s8 + $0x10] sm:$0xff] }
  0x4d   : > { %3328 = vmatpush.bf16.msra.mxu2 %v6509_v61  ;;  %2872 = vmatpush.bf16.msra.mxu1 %v6483_v0  ;;  %v2197_v47 = vshrl.u32 %v6434_v41, 16  ;;  %v2200_v48 = vshll.u32 %v6434_v41, 16  ;;  %v714_v50 = vshll.u32 %v6356_v42, 16  ;;  %v6435_v0 = vld [vmem:[%s6822_s8 + $0x20] sm:$0xff] }
  0x4e   : > { %509 = vmatmul.bf16.gmra.mxu3 %v6345_v44  ;;  %4375 = vmatpush.bf16.msra.mxu0 %v6561_v1  ;;  %v6508_v44 = vld [vmem:[%s8750_s1 + $0x1b0] sm:$0xff]  ;;  %v6357_v1 = vld [vmem:[%s6822_s8 + $0x18] sm:$0xff]  ;;  %v2206_v3 = vshrl.u32 %v6435_v0, 16  ;;  %v2209_v4 = vshll.u32 %v6435_v0, 16 }
  0x4f   : > { %434 = vmatmul.bf16.gmra.mxu0 %v6330_v43  ;;  %3918 = vmatpush.bf16.msra.mxu3 %v6535_v63  ;;  %v1728_v43 = vsel %vm1265_vm0, %v1725_v9, %v1727_v39  ;;  %v2199_v52 = vrot.slane %v2197_v47, 1  ;;  %v2202_v53 = vrot.slane %v2200_v48, 2  ;;  %v716_v55 = vrot.slane %v714_v50, 1 }
  0x50   : > { %v2208_v8 = vrot.slane %v2206_v3, 1  ;;  %v2211_v9 = vrot.slane %v2209_v4, 2  ;;  %v726_v24 = vshrl.u32 %v6357_v1, 16 }
  0x51   : > { %3329 = vmatpush.bf16.msra.mxu2 %v6508_v44  ;;  %2873 = vmatpush.bf16.msra.mxu1 %v6482_v46  ;;  %v717_v59 = vsel %vm697_vm1, %v712_v54, %v716_v55  ;;  %v6359_v44 = vld [vmem:[%s6822_s8 + $0x28] sm:$0xff] }
  0x52   : > { %v2212_v14 = vor.u32 %v2211_v9, %v2208_v8  ;;  %v6559_v46 = vld [vmem:[%s8750_s1 + $0x228] sm:$0xff]  ;;  %v6360_v8 = vld [vmem:[%s6822_s8 + $0x30] sm:$0xff] }
  0x53   : > { %3919 = vmatpush.bf16.msra.mxu3 %v6534_v45 }
  0x55   : > { %3330 = vmatpush.bf16.msra.mxu2 %v6507_v29 }
  0x57   : > { %3920 = vmatpush.bf16.msra.mxu3 %v6533_v30 }
  0x59   : > { %3331 = vmatpush.bf16.msra.mxu2 %v6506_v27 }
  0x5c   : > { %464 = vmatmul.bf16.gmra.mxu1 %v6336_v56  ;;  %489 = vmatmul.bf16.gmra.mxu2 %v6341_v57  ;;  %v1269_v56 = vrot.slane %v6382_v51, 1  ;;  %v6410_v57 = vld [vmem:[%s6822_s8 + $0x28] sm:$0xff]  ;;  %v734_v51 = vshrl.u32 %v6358_v20, 16 }
  0x5d   : > { %v1729_v61 = vrot.slane %v6410_v57, 1 }
  0x5e   : > { %1833 = vmatmul.bf16.vlgmr.msrb.gmra.mxu3 %v1724_v62  ;;  %v1270_v60 = vsel %vm1265_vm0, %v1267_v33, %v1269_v56  ;;  %v6560_v62 = vld [vmem:[%s8750_s1 + $0x230] sm:$0xff]  ;;  %v1273_v33 = vrot.slane %v6384_v26, 1 }
  0x5f   : > { %439 = vmatmul.bf16.gmra.mxu0 %v6331_v58  ;;  %v2203_v58 = vor.u32 %v2202_v53, %v2199_v52  ;;  %v1730_v2 = vsel %vm1265_vm0, %v1727_v39, %v1729_v61  ;;  %v1732_v21 = vsel %vm1265_vm0, %v1729_v61, %v1731_v17  ;;  %v738_v52 = vshll.u32 %v6359_v44, 16  ;;  %v6385_v53 = vld [vmem:[%s6822_s8 + $0x28] sm:$0xff]  ;;  %v6413_v61 = vld [vmem:[%s6822_s8 + $0x40] sm:$0xff] }
  0x60   : > { %4376 = vmatpush.bf16.msra.mxu0 %v6560_v62  ;;  %v1735_v3 = vrot.slane %v6413_v61, 1  ;;  %v6415_v61 = vld [vmem:[%s6822_s8 + $0x50] sm:$0xff] }
  0x61   : > { %v2204_v63 = vsel %vm2178_vm2, %v2194_v36, %v2203_v58  ;;  %v2213_v18 = vsel %vm2178_vm2, %v2203_v58, %v2212_v14  ;;  %v6481_v36 = vld [vmem:[%s8750_s1 + $0x168] sm:$0xff]  ;;  %v736_v58 = vor.u32 %v734_v51, %v732_v32  ;;  %v6558_v51 = vld [vmem:[%s8750_s1 + $0x220] sm:$0xff] }
  0x62   : > { %2874 = vmatpush.bf16.msra.mxu1 %v6481_v36 }
  0x64   : > { %4377 = vmatpush.bf16.msra.mxu0 %v6559_v46  ;;  %v750_v46 = vshrl.u32 %v6360_v8, 16 }
  0x68   : > { %4378 = vmatpush.bf16.msra.mxu0 %v6558_v51  ;;  %v6441_v51 = vld [vmem:[%s6822_s8 + $0x50] sm:$0xff] }
  0x6c   : > { %469 = vmatmul.bf16.gmra.mxu1 %v6337_v5  ;;  %494 = vmatmul.bf16.gmra.mxu2 %v6342_v6  ;;  %v718_v5 = vshrl.u32 %v6356_v42, 16  ;;  %v722_v6 = vshll.u32 %v6357_v1, 16  ;;  %v2222_v42 = vsel %vm2178_vm2, %v2212_v14, %v2221_v35  ;;  %v742_v14 = vshrl.u32 %v6359_v44, 16 }
  0x6e   : > { %1838 = vmatmul.bf16.gmra.mxu3 %v1726_v15  ;;  %v720_v10 = vor.u32 %v718_v5, %v716_v55  ;;  %v724_v11 = vrot.slane %v722_v6, 1  ;;  %v6438_v6 = vld [vmem:[%s6822_s8 + $0x38] sm:$0xff] }
  0x6f   : > { %444 = vmatmul.bf16.gmra.mxu0 %v6332_v7  ;;  %v6383_v7 = vld [vmem:[%s6822_s8 + $0x18] sm:$0xff] }
  0x70   : > { %v1271_v12 = vrot.slane %v6383_v7, 1  ;;  %v725_v15 = vsel %vm697_vm1, %v720_v10, %v724_v11  ;;  %v728_v31 = vor.u32 %v726_v24, %v724_v11  ;;  %v2233_v10 = vshrl.u32 %v6438_v6, 16  ;;  %v6414_v24 = vld [vmem:[%s6822_s8 + $0x48] sm:$0xff] }
  0x71   : > { %v2236_v11 = vshll.u32 %v6438_v6, 16  ;;  %v1739_v6 = vrot.slane %v6415_v61, 1  ;;  %v2260_v61 = vshrl.u32 %v6441_v51, 16 }
  0x72   : > { %v1272_v16 = vsel %vm1265_vm0, %v1269_v56, %v1271_v12  ;;  %v1274_v39 = vsel %vm1265_vm0, %v1271_v12, %v1273_v33 }
  0x73   : > { %v2238_v19 = vrot.slane %v2236_v11, 2 }
  0x7c   : > { %920 = vmatmul.bf16.vlgmr.msrb.gmra.mxu1 %v709_v37  ;;  %1377 = vmatmul.bf16.vlgmr.msrb.gmra.mxu2 %v1268_v38  ;;  %v733_v38 = vsel %vm697_vm1, %v728_v31, %v732_v32  ;;  %v1737_v31 = vrot.slane %v6414_v24, 1  ;;  %v6532_v32 = vld [vmem:[%s8750_s1 + $0x1e0] sm:$0xff] }
  0x7d   : > { %3921 = vmatpush.bf16.msra.mxu3 %v6532_v32  ;;  %v6388_v24 = vld [vmem:[%s6822_s8 + $0x40] sm:$0xff] }
  0x7e   : > { %1843 = vmatmul.bf16.gmra.mxu3 %v1728_v43  ;;  %v6437_v43 = vld [vmem:[%s6822_s8 + $0x30] sm:$0xff] }
  0x7f   : > { %2423 = vmatmul.bf16.vlgmr.msrb.gmra.mxu0 %v2195_v40  ;;  %v1733_v40 = vrot.slane %v6412_v34, 1  ;;  %v2224_v47 = vshrl.u32 %v6437_v43, 16  ;;  %v2227_v48 = vshll.u32 %v6437_v43, 16 }
  0x81   : > { %v1734_v45 = vsel %vm1265_vm0, %v1731_v17, %v1733_v40  ;;  %v2226_v55 = vrot.slane %v2224_v47, 1  ;;  %v2229_v56 = vrot.slane %v2227_v48, 2  ;;  %v1736_v9 = vsel %vm1265_vm0, %v1733_v40, %v1735_v3  ;;  %v6387_v48 = vld [vmem:[%s6822_s8 + $0x38] sm:$0xff] }
  0x82   : > { %v1738_v40 = vsel %vm1265_vm0, %v1735_v3, %v1737_v31 }
  0x83   : > { %v2230_v62 = vor.u32 %v2229_v56, %v2226_v55 }
  0x85   : > { %v2231_v5 = vsel %vm2178_vm2, %v2221_v35, %v2230_v62  ;;  %v6439_v35 = vld [vmem:[%s6822_s8 + $0x40] sm:$0xff] }
  0x86   : > { %v2245_v43 = vshll.u32 %v6439_v35, 16 }
  0x88   : > { %v2247_v55 = vrot.slane %v2245_v43, 2 }
  0x8c   : > { %925 = vmatmul.bf16.gmra.mxu1 %v717_v59  ;;  %1382 = vmatmul.bf16.gmra.mxu2 %v1270_v60  ;;  %v740_v59 = vrot.slane %v738_v52, 1  ;;  %v1275_v60 = vrot.slane %v6385_v53, 1 }
  0x8e   : > { %1848 = vmatmul.bf16.gmra.mxu3 %v1730_v2  ;;  %v741_v1 = vsel %vm697_vm1, %v736_v58, %v740_v59  ;;  %v1276_v2 = vsel %vm1265_vm0, %v1273_v33, %v1275_v60 }
  0x8f   : > { %2428 = vmatmul.bf16.gmra.mxu0 %v2204_v63 }
  0x9c   : > { %930 = vmatmul.bf16.gmra.mxu1 %v725_v15  ;;  %1387 = vmatmul.bf16.gmra.mxu2 %v1272_v16  ;;  %v746_v15 = vshll.u32 %v6360_v8, 16  ;;  %v6386_v16 = vld [vmem:[%s6822_s8 + $0x30] sm:$0xff] }
  0x9d   : > { %v1277_v23 = vrot.slane %v6386_v16, 1 }
  0x9e   : > { %1853 = vmatmul.bf16.gmra.mxu3 %v1732_v21  ;;  %v744_v21 = vor.u32 %v742_v14, %v740_v59  ;;  %v748_v22 = vrot.slane %v746_v15, 1  ;;  %v6362_v14 = vld [vmem:[%s6822_s8 + $0x40] sm:$0xff]  ;;  %v1740_v15 = vsel %vm1265_vm0, %v1737_v31, %v1739_v6 }
  0x9f   : > { %2433 = vmatmul.bf16.gmra.mxu0 %v2213_v18  ;;  %v2235_v18 = vrot.slane %v2233_v10, 1  ;;  %v1278_v30 = vsel %vm1265_vm0, %v1275_v60, %v1277_v23  ;;  %v1279_v60 = vrot.slane %v6387_v48, 1  ;;  %v6440_v10 = vld [vmem:[%s6822_s8 + $0x48] sm:$0xff] }
  0xa0   : > { %v749_v29 = vsel %vm697_vm1, %v744_v21, %v748_v22  ;;  %v752_v58 = vor.u32 %v750_v46, %v748_v22  ;;  %v2251_v16 = vshrl.u32 %v6440_v10, 16 }
  0xa1   : > { %v2239_v25 = vor.u32 %v2238_v19, %v2235_v18  ;;  %v2254_v18 = vshll.u32 %v6440_v10, 16 }
  0xa2   : > { %v2253_v27 = vrot.slane %v2251_v16, 1 }
  0xa3   : > { %v2240_v34 = vsel %vm2178_vm2, %v2230_v62, %v2239_v25 }
  0xa9   : > { %v7010_v37 = vpop.f32.mrf.mxu1 }
  0xac   : > { %v7014_v41 = vpop.f32.mrf.mxu0  ;;  %935 = vmatmul.bf16.gmra.mxu1 %v733_v38  ;;  %1392 = vmatmul.bf16.gmra.mxu2 %v1274_v39  ;;  %v6480_v38 = vld [vmem:[%s8750_s1 + $0x160] sm:$0xff]  ;;  %v6361_v39 = vld [vmem:[%s6822_s8 + $0x38] sm:$0xff] }
  0xad   : > { %2875 = vmatpush.bf16.msra.mxu1 %v6480_v38  ;;  %v754_v47 = vshll.u32 %v6361_v39, 16  ;;  %v758_v22 = vshrl.u32 %v6361_v39, 16 }
  0xae   : > { %1858 = vmatmul.bf16.gmra.mxu3 %v1734_v45 }
  0xaf   : > { %2438 = vmatmul.bf16.gmra.mxu0 %v2222_v42  ;;  %v7023_v49 = vpop.f32.mrf.mxu2  ;;  %v2242_v42 = vshrl.u32 %v6439_v35, 16  ;;  %v756_v59 = vrot.slane %v754_v47, 1  ;;  %v6416_v35 = vld [vmem:[%s6822_s8 + $0x58] sm:$0xff] }
  0xb0   : > { %v1741_v46 = vrot.slane %v6416_v35, 1 }
  0xb1   : > { %v7025_v50 = vpop.f32.mrf.mxu1  ;;  %v7030_v57 = vpop.f32.mrf.mxu3  ;;  %v2244_v53 = vrot.slane %v2242_v42, 1  ;;  %v757_v3 = vsel %vm697_vm1, %v752_v58, %v756_v59  ;;  %v760_v32 = vor.u32 %v758_v22, %v756_v59  ;;  %v6363_v58 = vld [vmem:[%s6822_s8 + $0x48] sm:$0xff]  ;;  %v6479_v22 = vld [vmem:[%s8750_s1 + $0x158] sm:$0xff] }
  0xb2   : > { %v1742_v59 = vsel %vm1265_vm0, %v1739_v6, %v1741_v46  ;;  %v770_v10 = vshll.u32 %v6363_v58, 16  ;;  %v2262_v6 = vrot.slane %v2260_v61, 1  ;;  %2876 = vmatpush.bf16.msra.mxu1 %v6479_v22  ;;  %v6442_v61 = vld [vmem:[%s6822_s8 + $0x58] sm:$0xff]  ;;  %v774_v22 = vshrl.u32 %v6363_v58, 16 }
  0xb3   : > { %v2248_v62 = vor.u32 %v2247_v55, %v2244_v53  ;;  %v6505_v55 = vld [vmem:[%s8750_s1 + $0x198] sm:$0xff] }
  0xb4   : > { %v7028_v54 = vpop.f32.mrf.mxu0  ;;  %3332 = vmatpush.bf16.msra.mxu2 %v6505_v55 }
  0xb7   : > { %v7033_v63 = vpop.f32.mrf.mxu2 }
  0xb9   : > { %v7035_v0 = vpop.f32.mrf.mxu1  ;;  %v7043_v7 = vpop.f32.mrf.mxu3 }
  0xbc   : > { %v7039_v4 = vpop.f32.mrf.mxu0  ;;  %940 = vmatmul.bf16.gmra.mxu1 %v741_v1  ;;  %1397 = vmatmul.bf16.gmra.mxu2 %v1276_v2 }
  0xbe   : > { %1863 = vmatmul.bf16.gmra.mxu3 %v1736_v9  ;;  %v2249_v9 = vsel %vm2178_vm2, %v2239_v25, %v2248_v62 }
  0xbf   : > { %2443 = vmatmul.bf16.gmra.mxu0 %v2231_v5  ;;  %v7047_v12 = vpop.f32.mrf.mxu2  ;;  %v1280_v5 = vsel %vm1265_vm0, %v1277_v23, %v1279_v60  ;;  %v762_v23 = vshll.u32 %v6362_v14, 16 }
  0xc1   : > { %v7049_v13 = vpop.f32.mrf.mxu1  ;;  %v7054_v20 = vpop.f32.mrf.mxu3  ;;  %v764_v31 = vrot.slane %v762_v23, 1  ;;  %v6557_v23 = vld [vmem:[%s8750_s1 + $0x218] sm:$0xff] }
  0xc2   : > { %4379 = vmatpush.bf16.msra.mxu0 %v6557_v23 }
  0xc3   : > { %v765_v39 = vsel %vm697_vm1, %v760_v32, %v764_v31  ;;  %v6417_v32 = vld [vmem:[%s6822_s8 + $0x60] sm:$0xff] }
  0xc4   : > { %v7052_v17 = vpop.f32.mrf.mxu0  ;;  %v1743_v55 = vrot.slane %v6417_v32, 1 }
  0xc7   : > { %v7057_v26 = vpop.f32.mrf.mxu2 }
  0xc9   : > { %v7062_v28 = vpop.f32.mrf.mxu1  ;;  %v7073_v36 = vpop.f32.mrf.mxu3 }
  0xcc   : > { %v7069_v33 = vpop.f32.mrf.mxu0  ;;  %945 = vmatmul.bf16.gmra.mxu1 %v749_v29  ;;  %1402 = vmatmul.bf16.gmra.mxu2 %v1278_v30  ;;  %v2256_v29 = vrot.slane %v2254_v18, 2 }
  0xce   : > { %1868 = vmatmul.bf16.gmra.mxu3 %v1738_v40  ;;  %v2257_v38 = vor.u32 %v2256_v29, %v2253_v27  ;;  %v772_v27 = vrot.slane %v770_v10, 1 }
  0xcf   : > { %2448 = vmatmul.bf16.gmra.mxu0 %v2240_v34  ;;  %v7080_v44 = vpop.f32.mrf.mxu2  ;;  %v1281_v34 = vrot.slane %v6388_v24, 1 }
  0xd0   : > { %v2258_v48 = vsel %vm2178_vm2, %v2248_v62, %v2257_v38  ;;  %v2263_v62 = vshll.u32 %v6441_v51, 16 }
  0xd1   : > { %v7082_v45 = vpop.f32.mrf.mxu1  ;;  %v7090_v56 = vpop.f32.mrf.mxu3  ;;  %v1282_v43 = vsel %vm1265_vm0, %v1279_v60, %v1281_v34  ;;  %v6531_v60 = vld [vmem:[%s8750_s1 + $0x1d8] sm:$0xff] }
  0xd2   : > { %3922 = vmatpush.bf16.msra.mxu3 %v6531_v60  ;;  %v2265_v18 = vrot.slane %v2263_v62, 2 }
  0xd4   : > { %v7088_v52 = vpop.f32.mrf.mxu0  ;;  %v2266_v35 = vor.u32 %v2265_v18, %v2262_v6  ;;  %v2272_v6 = vshll.u32 %v6442_v61, 16 }
  0xd6   : > { %v2267_v60 = vsel %vm2178_vm2, %v2257_v38, %v2266_v35 }
  0xd7   : > { %v7093_v1 = vpop.f32.mrf.mxu2 }
  0xd9   : > { %v7095_v2 = vpop.f32.mrf.mxu1  ;;  %v7103_v11 = vpop.f32.mrf.mxu3 }
  0xda   : > { %8797 = vst [vmem:[#allocation3_spill] sm:$0xff] %v7103_v11 }
  0xdc   : > { %v7099_v8 = vpop.f32.mrf.mxu0  ;;  %950 = vmatmul.bf16.gmra.mxu1 %v757_v3  ;;  %1407 = vmatmul.bf16.gmra.mxu2 %v1280_v5 }
  0xde   : > { %1873 = vmatmul.bf16.gmra.mxu3 %v1740_v15  ;;  %v6389_v15 = vld [vmem:[%s6822_s8 + $0x48] sm:$0xff] }
  0xdf   : > { %2453 = vmatmul.bf16.gmra.mxu0 %v2249_v9  ;;  %v7107_v19 = vpop.f32.mrf.mxu2  ;;  %v766_v9 = vshrl.u32 %v6362_v14, 16  ;;  %v1283_v29 = vrot.slane %v6389_v15, 1  ;;  %v2269_v15 = vshrl.u32 %v6442_v61, 16 }
  0xe1   : > { %v7109_v21 = vpop.f32.mrf.mxu1  ;;  %v7114_v30 = vpop.f32.mrf.mxu3  ;;  %v768_v14 = vor.u32 %v766_v9, %v764_v31  ;;  %v1284_v51 = vsel %vm1265_vm0, %v1281_v34, %v1283_v29  ;;  %v7162_v31 = vld [vmem:[%s6822_s8 + $0x50] sm:$0xff]  ;;  %v1744_v9 = vsel %vm1265_vm0, %v1741_v46, %v1743_v55 }
  0xe2   : > { %v778_v23 = vshll.u32 %v7162_v31, 16 }
  0xe4   : > { %v7112_v25 = vpop.f32.mrf.mxu0  ;;  %v780_v61 = vrot.slane %v778_v23, 1 }
  0xe7   : > { %v7117_v40 = vpop.f32.mrf.mxu2 }
  0xe9   : > { %v7119_v42 = vpop.f32.mrf.mxu1  ;;  %v7127_v53 = vpop.f32.mrf.mxu3 }
  0xec   : > { %v7123_v47 = vpop.f32.mrf.mxu0  ;;  %955 = vmatmul.bf16.gmra.mxu1 %v765_v39  ;;  %1412 = vmatmul.bf16.gmra.mxu2 %v1282_v43 }
  0xee   : > { %1878 = vmatmul.bf16.gmra.mxu3 %v1742_v59 }
  0xef   : > { %2458 = vmatmul.bf16.gmra.mxu0 %v2258_v48  ;;  %v7137_v3 = vpop.f32.mrf.mxu2  ;;  %v773_v48 = vsel %vm697_vm1, %v768_v14, %v772_v27  ;;  %v7168_v14 = vld [vmem:[%s6822_s8 + $0x50] sm:$0xff] }
  0xf1   : > { %v7139_v5 = vpop.f32.mrf.mxu1  ;;  %v7150_v24 = vpop.f32.mrf.mxu3 }
  0xf4   : > { %v7142_v16 = vpop.f32.mrf.mxu0 }
  0xf7   : > { %v7153_v39 = vpop.f32.mrf.mxu2 }
  0xf9   : > { %v921_v43 = vpop.f32.mrf.mxu1  ;;  %v7159_v62 = vpop.f32.mrf.mxu3 }
  0xfa   : > { %v1047_v10 = vadd.f32 %v921_v43, %v7014_v41  ;;  %v776_v43 = vor.u32 %v774_v22, %v772_v27 }
  0xfc   : > { %v2424_v59 = vpop.f32.mrf.mxu0  ;;  %960 = vmatmul.bf16.gmra.mxu1 %v773_v48  ;;  %1417 = vmatmul.bf16.gmra.mxu2 %v1284_v51  ;;  %v2271_v51 = vrot.slane %v2269_v15, 1  ;;  %v781_v15 = vsel %vm697_vm1, %v776_v43, %v780_v61 }
  0xfe   : > { %1883 = vmatmul.bf16.gmra.mxu3 %v1744_v9  ;;  %v1285_v9 = vrot.slane %v7168_v14, 1  ;;  %v6443_v14 = vld [vmem:[%s6822_s8 + $0x60] sm:$0xff] }
  0xff   : > { %2463 = vmatmul.bf16.gmra.mxu0 %v2267_v60  ;;  %v1378_v34 = vpop.f32.mrf.mxu2  ;;  %v2274_v60 = vrot.slane %v2272_v6, 2 }
 0x100   : > { %v1504_v18 = vadd.f32 %v1378_v34, %v1047_v10  ;;  %v7177_v10 = vld [vmem:[%s6822_s8 + $0x68] sm:$0xff]  ;;  %v1286_v6 = vsel %vm1265_vm0, %v1283_v29, %v1285_v9 }
 0x101   : > { %v923_v38 = vpop.f32.mrf.mxu1  ;;  %v7171_v46 = vpop.f32.mrf.mxu3  ;;  %v2275_v34 = vor.u32 %v2274_v60, %v2271_v51  ;;  %v2278_v51 = vshrl.u32 %v6443_v14, 16 }
 0x102   : > { %v1960_v32 = vadd.f32 %v7114_v30, %v1504_v18  ;;  %v1048_v58 = vadd.f32 %v923_v38, %v7028_v54 }
 0x103   : > { %v2276_v23 = vsel %vm2178_vm2, %v2266_v35, %v2275_v34 }
 0x104   : > { %v2426_v48 = vpop.f32.mrf.mxu0  ;;  %v7173_v41 = vadd.f32 %v2424_v59, %v1960_v32  ;;  %v1745_v59 = vrot.slane %v7177_v10, 1  ;;  %v782_v10 = vshrl.u32 %v7162_v31, 16  ;;  %v6478_v31 = vld [vmem:[%s8750_s1 + $0x150] sm:$0xff] }
 0x105   : > { %2877 = vmatpush.bf16.msra.mxu1 %v6478_v31 }
 0x106   : > { %8798 = vst [vmem:[#allocation4_spill] sm:$0xff] %v7173_v41  ;;  %v1746_v29 = vsel %vm1265_vm0, %v1743_v55, %v1745_v59 }
 0x107   : > { %v1380_v11 = vpop.f32.mrf.mxu2 }
 0x108   : > { %v1505_v30 = vadd.f32 %v1380_v11, %v1048_v58  ;;  %v7191_v11 = vld [vmem:[%s6822_s8 + $0x58] sm:$0xff] }
 0x109   : > { %v926_v18 = vpop.f32.mrf.mxu1  ;;  %v7186_v32 = vpop.f32.mrf.mxu3  ;;  %v786_v58 = vshll.u32 %v7191_v11, 16 }
 0x10a   : > { %v1961_v27 = vadd.f32 %v7127_v53, %v1505_v30  ;;  %v1049_v38 = vadd.f32 %v926_v18, %v7039_v4  ;;  %v2281_v53 = vshll.u32 %v6443_v14, 16  ;;  %v7198_v30 = vld [vmem:[%s6822_s8 + $0x58] sm:$0xff]  ;;  %v6504_v4 = vld [vmem:[%s8750_s1 + $0x190] sm:$0xff] }
 0x10b   : > { %v6530_v18 = vld [vmem:[%s8750_s1 + $0x1d0] sm:$0xff]  ;;  %3333 = vmatpush.bf16.msra.mxu2 %v6504_v4  ;;  %v788_v14 = vrot.slane %v786_v58, 1 }
 0x10c   : > { %v2429_v22 = vpop.f32.mrf.mxu0  ;;  %965 = vmatmul.bf16.gmra.mxu1 %v781_v15  ;;  %1422 = vmatmul.bf16.gmra.mxu2 %v1286_v6  ;;  %v7188_v54 = vadd.f32 %v2426_v48, %v1961_v27  ;;  %v2280_v6 = vrot.slane %v2278_v51, 1  ;;  %v2283_v55 = vrot.slane %v2281_v53, 2 }
 0x10d   : > { %3923 = vmatpush.bf16.msra.mxu3 %v6530_v18 }
 0x10e   : > { %8799 = vst [vmem:[#allocation5_spill] sm:$0xff] %v7188_v54  ;;  %1888 = vmatmul.bf16.gmra.mxu3 %v1746_v29  ;;  %v1287_v29 = vrot.slane %v7198_v30, 1  ;;  %v2284_v53 = vor.u32 %v2283_v55, %v2280_v6  ;;  %v6444_v30 = vld [vmem:[%s6822_s8 + $0x68] sm:$0xff] }
 0x10f   : > { %2468 = vmatmul.bf16.gmra.mxu0 %v2276_v23  ;;  %v1383_v60 = vpop.f32.mrf.mxu2  ;;  %v784_v23 = vor.u32 %v782_v10, %v780_v61  ;;  %v2290_v55 = vshll.u32 %v6444_v30, 16 }
 0x110   : > { %v1506_v43 = vadd.f32 %v1383_v60, %v1049_v38  ;;  %v6419_v38 = vld [vmem:[%s6822_s8 + $0x70] sm:$0xff]  ;;  %v1288_v4 = vsel %vm1265_vm0, %v1285_v9, %v1287_v29  ;;  %v2285_v58 = vsel %vm2178_vm2, %v2275_v34, %v2284_v53  ;;  %v7230_v9 = vld [vmem:[%s6822_s8 + $0x60] sm:$0xff]  ;;  %v2287_v34 = vshrl.u32 %v6444_v30, 16  ;;  %v7243_v30 = vld [vmem:[%s6822_s8 + $0x78] sm:$0xff] }
 0x111   : > { %v928_v35 = vpop.f32.mrf.mxu1  ;;  %v7210_v27 = vpop.f32.mrf.mxu3  ;;  %v789_v41 = vsel %vm697_vm1, %v784_v23, %v788_v14 }
 0x112   : > { %v1962_v48 = vadd.f32 %v7150_v24, %v1506_v43  ;;  %v1050_v51 = vadd.f32 %v928_v35, %v7052_v17  ;;  %v6556_v17 = vld [vmem:[%s8750_s1 + $0x210] sm:$0xff] }
 0x113   : > { %4380 = vmatpush.bf16.msra.mxu0 %v6556_v17 }
 0x114   : > { %v2431_v15 = vpop.f32.mrf.mxu0  ;;  %v7212_v24 = vadd.f32 %v2429_v22, %v1962_v48  ;;  %v1747_v22 = vrot.slane %v6419_v38, 1  ;;  %v6392_v38 = vld [vmem:[%s6822_s8 + $0x60] sm:$0xff] }
 0x117   : > { %v1385_v60 = vpop.f32.mrf.mxu2 }
 0x118   : > { %v1507_v43 = vadd.f32 %v1385_v60, %v1050_v51 }
 0x119   : > { %v931_v54 = vpop.f32.mrf.mxu1  ;;  %v7225_v35 = vpop.f32.mrf.mxu3 }
 0x11a   : > { %v1963_v61 = vadd.f32 %v7159_v62, %v1507_v43  ;;  %v1748_v62 = vsel %vm1265_vm0, %v1745_v59, %v1747_v22  ;;  %v1051_v6 = vadd.f32 %v931_v54, %v7069_v33  ;;  %v2289_v43 = vrot.slane %v2287_v34, 1 }
 0x11b   : > { %v2292_v59 = vrot.slane %v2290_v55, 2 }
 0x11c   : > { %v2434_v10 = vpop.f32.mrf.mxu0  ;;  %970 = vmatmul.bf16.gmra.mxu1 %v789_v41  ;;  %1427 = vmatmul.bf16.gmra.mxu2 %v1288_v4  ;;  %v7227_v48 = vadd.f32 %v2431_v15, %v1963_v61  ;;  %v790_v41 = vshrl.u32 %v7191_v11, 16  ;;  %v794_v15 = vshll.u32 %v7230_v9, 16 }
 0x11d   : > { %v2293_v17 = vor.u32 %v2292_v59, %v2289_v43 }
 0x11e   : > { %1893 = vmatmul.bf16.gmra.mxu3 %v1748_v62  ;;  %v792_v54 = vor.u32 %v790_v41, %v788_v14  ;;  %v796_v61 = vrot.slane %v794_v15, 1  ;;  %v6445_v41 = vld [vmem:[%s6822_s8 + $0x70] sm:$0xff] }
 0x11f   : > { %2473 = vmatmul.bf16.gmra.mxu0 %v2285_v58  ;;  %v1388_v18 = vpop.f32.mrf.mxu2  ;;  %v1289_v58 = vrot.slane %v6392_v38, 1 }
 0x120   : > { %v1508_v31 = vadd.f32 %v1388_v18, %v1051_v6  ;;  %v797_v34 = vsel %vm697_vm1, %v792_v54, %v796_v61  ;;  %v798_v54 = vshrl.u32 %v7230_v9, 16 }
 0x121   : > { %v933_v23 = vpop.f32.mrf.mxu1  ;;  %v7238_v4 = vpop.f32.mrf.mxu3  ;;  %v1290_v55 = vsel %vm1265_vm0, %v1287_v29, %v1289_v58 }
 0x122   : > { %v1964_v51 = vadd.f32 %v7171_v46, %v1508_v31  ;;  %v1052_v11 = vadd.f32 %v933_v23, %v7088_v52  ;;  %v2294_v31 = vsel %vm2178_vm2, %v2284_v53, %v2293_v17  ;;  %v7257_v23 = vld [vmem:[%s6822_s8 + $0x68] sm:$0xff] }
 0x124   : > { %v2436_v60 = vpop.f32.mrf.mxu0  ;;  %v7240_v33 = vadd.f32 %v2434_v10, %v1964_v51  ;;  %v1749_v10 = vrot.slane %v7243_v30, 1  ;;  %v2296_v51 = vshrl.u32 %v6445_v41, 16  ;;  %v802_v30 = vshll.u32 %v7257_v23, 16 }
 0x126   : > { %v1750_v29 = vsel %vm1265_vm0, %v1747_v22, %v1749_v10 }
 0x127   : > { %v1390_v62 = vpop.f32.mrf.mxu2 }
 0x128   : > { %v1509_v6 = vadd.f32 %v1390_v62, %v1052_v11 }
 0x129   : > { %v936_v46 = vpop.f32.mrf.mxu1  ;;  %v7252_v15 = vpop.f32.mrf.mxu3 }
 0x12a   : > { %v1965_v18 = vadd.f32 %v7186_v32, %v1509_v6  ;;  %v1053_v38 = vadd.f32 %v936_v46, %v7099_v8  ;;  %v2299_v32 = vshll.u32 %v6445_v41, 16  ;;  %v2298_v6 = vrot.slane %v2296_v51, 1  ;;  %v6503_v8 = vld [vmem:[%s8750_s1 + $0x188] sm:$0xff] }
 0x12b   : > { %v6529_v46 = vld [vmem:[%s8750_s1 + $0x1c8] sm:$0xff]  ;;  %3334 = vmatpush.bf16.msra.mxu2 %v6503_v8 }
 0x12c   : > { %v2439_v14 = vpop.f32.mrf.mxu0  ;;  %975 = vmatmul.bf16.gmra.mxu1 %v797_v34  ;;  %1432 = vmatmul.bf16.gmra.mxu2 %v1290_v55  ;;  %v7254_v52 = vadd.f32 %v2436_v60, %v1965_v18  ;;  %v7264_v60 = vld [vmem:[%s6822_s8 + $0x68] sm:$0xff]  ;;  %v2301_v22 = vrot.slane %v2299_v32, 2  ;;  %v800_v55 = vor.u32 %v798_v54, %v796_v61 }
 0x12d   : > { %3924 = vmatpush.bf16.msra.mxu3 %v6529_v46  ;;  %v1291_v18 = vrot.slane %v7264_v60, 1  ;;  %v6446_v60 = vld [vmem:[%s6822_s8 + $0x78] sm:$0xff] }
 0x12e   : > { %1898 = vmatmul.bf16.gmra.mxu3 %v1750_v29  ;;  %v2302_v29 = vor.u32 %v2301_v22, %v2298_v6  ;;  %v2305_v22 = vshrl.u32 %v6446_v60, 16  ;;  %v2308_v8 = vshll.u32 %v6446_v60, 16 }
 0x12f   : > { %2478 = vmatmul.bf16.gmra.mxu0 %v2294_v31  ;;  %v1393_v43 = vpop.f32.mrf.mxu2  ;;  %v7279_v31 = vld [vmem:[%s6822_s8 + $0x80] sm:$0xff] }
 0x130   : > { %v1510_v59 = vadd.f32 %v1393_v43, %v1053_v38 }
 0x131   : > { %v938_v53 = vpop.f32.mrf.mxu1  ;;  %v7273_v34 = vpop.f32.mrf.mxu3 }
 0x132   : > { %v1966_v11 = vadd.f32 %v7210_v27, %v1510_v59  ;;  %v804_v27 = vrot.slane %v802_v30, 1  ;;  %v1054_v41 = vadd.f32 %v938_v53, %v7112_v25  ;;  %v1292_v59 = vsel %vm1265_vm0, %v1289_v58, %v1291_v18  ;;  %v6477_v25 = vld [vmem:[%s8750_s1 + $0x148] sm:$0xff]  ;;  %v6368_v58 = vld [vmem:[%s6822_s8 + $0x70] sm:$0xff] }
 0x133   : > { %v2303_v30 = vsel %vm2178_vm2, %v2293_v17, %v2302_v29  ;;  %2878 = vmatpush.bf16.msra.mxu1 %v6477_v25  ;;  %v7309_v25 = vld [vmem:[%s6822_s8 + $0x88] sm:$0xff] }
 0x134   : > { %v2441_v62 = vpop.f32.mrf.mxu0  ;;  %v7275_v9 = vadd.f32 %v2439_v14, %v1966_v11  ;;  %v805_v43 = vsel %vm697_vm1, %v800_v55, %v804_v27  ;;  %v1751_v14 = vrot.slane %v7279_v31, 1  ;;  %v806_v31 = vshrl.u32 %v7257_v23, 16 }
 0x136   : > { %v1752_v6 = vsel %vm1265_vm0, %v1749_v10, %v1751_v14 }
 0x137   : > { %v1395_v38 = vpop.f32.mrf.mxu2 }
 0x138   : > { %v1511_v51 = vadd.f32 %v1395_v38, %v1054_v41  ;;  %v810_v41 = vshll.u32 %v6368_v58, 16  ;;  %v6394_v38 = vld [vmem:[%s6822_s8 + $0x70] sm:$0xff] }
 0x139   : > { %v941_v32 = vpop.f32.mrf.mxu1  ;;  %v7291_v53 = vpop.f32.mrf.mxu3  ;;  %v1293_v60 = vrot.slane %v6394_v38, 1 }
 0x13a   : > { %v1967_v61 = vadd.f32 %v7225_v35, %v1511_v51  ;;  %v6555_v35 = vld [vmem:[%s8750_s1 + $0x208] sm:$0xff]  ;;  %v1055_v17 = vadd.f32 %v941_v32, %v7123_v47  ;;  %v808_v32 = vor.u32 %v806_v31, %v804_v27  ;;  %v6447_v31 = vld [vmem:[%s6822_s8 + $0x80] sm:$0xff] }
 0x13b   : > { %4381 = vmatpush.bf16.msra.mxu0 %v6555_v35 }
 0x13c   : > { %v2444_v54 = vpop.f32.mrf.mxu0  ;;  %980 = vmatmul.bf16.gmra.mxu1 %v805_v43  ;;  %1437 = vmatmul.bf16.gmra.mxu2 %v1292_v59  ;;  %v7293_v11 = vadd.f32 %v2441_v62, %v1967_v61  ;;  %v2307_v43 = vrot.slane %v2305_v22, 1  ;;  %v2310_v59 = vrot.slane %v2308_v8, 2  ;;  %v1294_v8 = vsel %vm1265_vm0, %v1291_v18, %v1293_v60 }
 0x13e   : > { %1903 = vmatmul.bf16.gmra.mxu3 %v1752_v6  ;;  %v2311_v23 = vor.u32 %v2310_v59, %v2307_v43 }
 0x13f   : > { %2483 = vmatmul.bf16.gmra.mxu0 %v2303_v30  ;;  %v1398_v46 = vpop.f32.mrf.mxu2  ;;  %v812_v30 = vrot.slane %v810_v41, 1 }
 0x140   : > { %v1512_v55 = vadd.f32 %v1398_v46, %v1055_v17 }
 0x141   : > { %v943_v62 = vpop.f32.mrf.mxu1  ;;  %v7304_v61 = vpop.f32.mrf.mxu3  ;;  %v813_v22 = vsel %vm697_vm1, %v808_v32, %v812_v30  ;;  %v814_v32 = vshrl.u32 %v6368_v58, 16 }
 0x142   : > { %v1968_v10 = vadd.f32 %v7238_v4, %v1512_v55  ;;  %v1056_v6 = vadd.f32 %v943_v62, %v7142_v16  ;;  %v2312_v55 = vsel %vm2178_vm2, %v2302_v29, %v2311_v23  ;;  %v7323_v62 = vld [vmem:[%s6822_s8 + $0x78] sm:$0xff] }
 0x144   : > { %v2446_v51 = vpop.f32.mrf.mxu0  ;;  %v7306_v47 = vadd.f32 %v2444_v54, %v1968_v10  ;;  %v1753_v54 = vrot.slane %v7309_v25, 1  ;;  %v2314_v10 = vshrl.u32 %v6447_v31, 16  ;;  %v818_v25 = vshll.u32 %v7323_v62, 16 }
 0x146   : > { %v1754_v18 = vsel %vm1265_vm0, %v1751_v14, %v1753_v54 }
 0x147   : > { %v1400_v35 = vpop.f32.mrf.mxu2 }
 0x148   : > { %v1513_v17 = vadd.f32 %v1400_v35, %v1056_v6  ;;  %v7329_v6 = vld [vmem:[%s6822_s8 + $0x78] sm:$0xff] }
 0x149   : > { %v946_v4 = vpop.f32.mrf.mxu1  ;;  %v7318_v41 = vpop.f32.mrf.mxu3 }
 0x14a   : > { %v1969_v46 = vadd.f32 %v7252_v15, %v1513_v17  ;;  %v1057_v38 = vadd.f32 %v946_v4, %v7010_v37  ;;  %v2317_v15 = vshll.u32 %v6447_v31, 16  ;;  %v2316_v17 = vrot.slane %v2314_v10, 1 }
 0x14b   : > { %v816_v4 = vor.u32 %v814_v32, %v812_v30  ;;  %v6448_v32 = vld [vmem:[%s6822_s8 + $0x88] sm:$0xff] }
 0x14c   : > { %v2449_v27 = vpop.f32.mrf.mxu0  ;;  %985 = vmatmul.bf16.gmra.mxu1 %v813_v22  ;;  %1442 = vmatmul.bf16.gmra.mxu2 %v1294_v8  ;;  %v7320_v16 = vadd.f32 %v2446_v51, %v1969_v46  ;;  %v2319_v22 = vrot.slane %v2317_v15, 2  ;;  %v820_v8 = vrot.slane %v818_v25, 1  ;;  %v1295_v46 = vrot.slane %v7329_v6, 1 }
 0x14e   : > { %8800 = vst [vmem:[#allocation6_spill] sm:$0xff] %v7320_v16  ;;  %1908 = vmatmul.bf16.gmra.mxu3 %v1754_v18  ;;  %v2320_v31 = vor.u32 %v2319_v22, %v2316_v17  ;;  %v821_v10 = vsel %vm697_vm1, %v816_v4, %v820_v8  ;;  %v1296_v15 = vsel %vm1265_vm0, %v1293_v60, %v1295_v46  ;;  %v2323_v17 = vshrl.u32 %v6448_v32, 16  ;;  %v1612_v4 = vld [vmem:[%s6822_s8 + $0x98] sm:$0x1] }
 0x14f   : > { %2488 = vmatmul.bf16.gmra.mxu0 %v2312_v55  ;;  %v1403_v43 = vpop.f32.mrf.mxu2  ;;  %v7338_v55 = vld [vmem:[%s6822_s8 + $0x90] sm:$0xff]  ;;  %v2326_v22 = vshll.u32 %v6448_v32, 16  ;;  %v6554_v32 = vld [vmem:[%s8750_s1 + $0x200] sm:$0xff] }
 0x150   : > { %v1514_v29 = vadd.f32 %v1403_v43, %v1057_v38  ;;  %4382 = vmatpush.bf16.msra.mxu0 %v6554_v32 }
 0x151   : > { %v948_v59 = vpop.f32.mrf.mxu1  ;;  %v7332_v14 = vpop.f32.mrf.mxu3 }
 0x152   : > { %v1970_v51 = vadd.f32 %v7273_v34, %v1514_v29  ;;  %v1058_v58 = vadd.f32 %v948_v59, %v7025_v50  ;;  %v2321_v29 = vsel %vm2178_vm2, %v2311_v23, %v2320_v31  ;;  %v6502_v50 = vld [vmem:[%s8750_s1 + $0x180] sm:$0xff] }
 0x153   : > { %v6528_v59 = vld [vmem:[%s8750_s1 + $0x1c0] sm:$0xff]  ;;  %3335 = vmatpush.bf16.msra.mxu2 %v6502_v50 }
 0x154   : > { %v2451_v35 = vpop.f32.mrf.mxu0  ;;  %v7334_v37 = vadd.f32 %v2449_v27, %v1970_v51  ;;  %v1755_v27 = vrot.slane %v7338_v55, 1  ;;  %v7361_v23 = vld [vmem:[%s6822_s8 + $0x80] sm:$0xff]  ;;  %3925 = vmatpush.bf16.msra.mxu3 %v6528_v59 }
 0x156   : > { %8801 = vst [vmem:[#allocation7_spill] sm:$0xff] %v7334_v37  ;;  %v1756_v6 = vsel %vm1265_vm0, %v1753_v54, %v1755_v27 }
 0x157   : > { %v1405_v18 = vpop.f32.mrf.mxu2 }
 0x158   : > { %v1515_v38 = vadd.f32 %v1405_v18, %v1058_v58 }
 0x159   : > { %v951_v34 = vpop.f32.mrf.mxu1  ;;  %v7353_v25 = vpop.f32.mrf.mxu3 }
 0x15a   : > { %v1971_v30 = vadd.f32 %v7291_v53, %v1515_v38  ;;  %v6476_v53 = vld [vmem:[%s8750_s1 + $0x140] sm:$0xff]  ;;  %v1059_v51 = vadd.f32 %v951_v34, %v7035_v0  ;;  %v822_v38 = vshrl.u32 %v7323_v62, 16  ;;  %v2325_v0 = vrot.slane %v2323_v17, 1 }
 0x15b   : > { %2879 = vmatpush.bf16.msra.mxu1 %v6476_v53  ;;  %v2328_v34 = vrot.slane %v2326_v22, 2 }
 0x15c   : > { %v2454_v43 = vpop.f32.mrf.mxu0  ;;  %990 = vmatmul.bf16.gmra.mxu1 %v821_v10  ;;  %1447 = vmatmul.bf16.gmra.mxu2 %v1296_v15  ;;  %v7358_v60 = vadd.f32 %v2451_v35, %v1971_v30  ;;  %v826_v10 = vshll.u32 %v7361_v23, 16  ;;  %v7371_v15 = vld [vmem:[%s6822_s8 + $0x80] sm:$0xff]  ;;  %v1702_v30 = vunpack.c.l.b16 %v1612_v4  ;;  %v824_v62 = vor.u32 %v822_v38, %v820_v8 }
 0x15d   : > { %v7383_v17 = vor.u32 %v2328_v34, %v2325_v0  ;;  %v6510_v0 = vld [vmem:[%s6822_s8 + $0x10] sm:$0xf0] }
 0x15e   : > { %8802 = vst [vmem:[#allocation8_spill] sm:$0xff] %v7358_v60  ;;  %1913 = vmatmul.bf16.gmra.mxu3 %v1756_v6  ;;  %v828_v53 = vrot.slane %v826_v10, 1  ;;  %v1297_v6 = vrot.slane %v7371_v15, 1 }
 0x15f   : > { %2493 = vmatmul.bf16.gmra.mxu0 %v2321_v29  ;;  %v1408_v58 = vpop.f32.mrf.mxu2  ;;  %v2330_v15 = vsel %vm2178_vm2, %v2320_v31, %v7383_v17 }
 0x160   : > { %v1516_v18 = vadd.f32 %v1408_v58, %v1059_v51  ;;  %v1721_v51 = vpack.c.b16 %v1702_v30, %v1702_v30  ;;  %v7394_v30 = vld [vmem:[%s6822_s8 + $0x88] sm:$0xff] }
 0x161   : > { %v953_v35 = vpop.f32.mrf.mxu1  ;;  %v7377_v50 = vpop.f32.mrf.mxu3 }
 0x162   : > { %v1972_v54 = vadd.f32 %v7304_v61, %v1516_v18  ;;  %v1060_v61 = vadd.f32 %v953_v35, %v7049_v13  ;;  %v829_v18 = vsel %vm697_vm1, %v824_v62, %v828_v53  ;;  %v1757_v8 = vrot.slane %v1721_v51, 1  ;;  %v6449_v13 = vld [vmem:[%s6822_s8 + $0x90] sm:$0xff] }
 0x163   : > { %v2332_v62 = vshrl.u32 %v6449_v13, 16  ;;  %v2335_v51 = vshll.u32 %v6449_v13, 16 }
 0x164   : > { %v2456_v29 = vpop.f32.mrf.mxu0  ;;  %v7379_v59 = vadd.f32 %v2454_v43, %v1972_v54  ;;  %v1298_v43 = vsel %vm1265_vm0, %v1295_v46, %v1297_v6  ;;  %v6120_v54 = vld [vmem:[%s6822_s8 + $0x10] sm:$0xc]  ;;  %v6511_v46 = vld [vmem:[%s6822_s8 + $0x18] sm:$0xff] }
 0x165   : > { %v6121_v32 = vor.u32 %v6510_v0, %v6120_v54  ;;  %v2337_v13 = vrot.slane %v2335_v51, 2  ;;  %v2068_v0 = vld [vmem:[%s6822_s8 + $0x98] sm:$0x3] }
 0x166   : > { %8803 = vst [vmem:[#allocation9_spill] sm:$0xff] %v7379_v59 }
 0x167   : > { %v1410_v22 = vpop.f32.mrf.mxu2  ;;  %v3683_v55 = vshrl.u32 %v6121_v32, 16 }
 0x168   : > { %v1517_v4 = vadd.f32 %v1410_v22, %v1060_v61 }
 0x169   : > { %v956_v58 = vpop.f32.mrf.mxu1  ;;  %v7391_v35 = vpop.f32.mrf.mxu3 }
 0x16a   : > { %v1973_v38 = vadd.f32 %v7318_v41, %v1517_v4  ;;  %v1758_v41 = vsel %vm1265_vm0, %v1755_v27, %v1757_v8  ;;  %v1061_v31 = vadd.f32 %v956_v58, %v7062_v28  ;;  %v830_v4 = vshrl.u32 %v7361_v23, 16 }
 0x16b   : > { %v3691_v27 = vshrl.u32 %v6511_v46, 16  ;;  %v3694_v8 = vshll.u32 %v6511_v46, 16  ;;  %v2334_v58 = vrot.slane %v2332_v62, 1  ;;  %v2158_v62 = vunpack.c.l.b16 %v2068_v0 }
 0x16c   : > { %v2459_v10 = vpop.f32.mrf.mxu0  ;;  %995 = vmatmul.bf16.gmra.mxu1 %v829_v18  ;;  %1452 = vmatmul.bf16.gmra.mxu2 %v1298_v43  ;;  %v7398_v34 = vadd.f32 %v2456_v29, %v1973_v38  ;;  %v834_v18 = vshll.u32 %v7394_v30, 16  ;;  %v7408_v29 = vld [vmem:[%s6822_s8 + $0x88] sm:$0xff]  ;;  %v3686_v38 = vshll.u32 %v6121_v32, 16  ;;  %v832_v23 = vor.u32 %v830_v4, %v828_v53 }
 0x16d   : > { %v3693_v32 = vrot.slane %v3691_v27, 2  ;;  %v3696_v60 = vrot.slane %v3694_v8, 3  ;;  %v2338_v46 = vor.u32 %v2337_v13, %v2334_v58  ;;  %v2177_v8 = vpack.c.b16 %v2158_v62, %v2158_v62  ;;  %v6512_v13 = vld [vmem:[%s6822_s8 + $0x20] sm:$0xff] }
 0x16e   : > { %8804 = vst [vmem:[#allocation10_spill] sm:$0xff] %v7398_v34  ;;  %1918 = vmatmul.bf16.gmra.mxu3 %v1758_v41  ;;  %v3685_v41 = vrot.slane %v3683_v55, 2  ;;  %v3688_v59 = vrot.slane %v3686_v38, 3 }
 0x16f   : > { %2498 = vmatmul.bf16.gmra.mxu0 %v2330_v15  ;;  %v1413_v61 = vpop.f32.mrf.mxu2  ;;  %v3697_v55 = vor.u32 %v3696_v60, %v3693_v32  ;;  %v2344_v0 = vshll.u32 %v2177_v8, 16 }
 0x170   : > { %v1518_v22 = vadd.f32 %v1413_v61, %v1061_v31  ;;  %v836_v31 = vrot.slane %v834_v18, 1  ;;  %v1299_v61 = vrot.slane %v7408_v29, 1  ;;  %v3689_v18 = vor.u32 %v3688_v59, %v3685_v41  ;;  %v5912_v29 = vld [vmem:[%s6822_s8 + $0x8] sm:$0xc] }
 0x171   : > { %v958_v43 = vpop.f32.mrf.mxu1  ;;  %v7411_v54 = vpop.f32.mrf.mxu3  ;;  %v838_v41 = vshrl.u32 %v7394_v30, 16 }
 0x172   : > { %v1974_v15 = vadd.f32 %v7332_v14, %v1518_v22  ;;  %v1062_v14 = vadd.f32 %v958_v43, %v7082_v45  ;;  %v587_v22 = vld [vmem:[%s6822_s8 + $0x90] sm:$0x1]  ;;  %v837_v16 = vsel %vm697_vm1, %v832_v23, %v836_v31  ;;  %v2339_v45 = vsel %vm2178_vm2, %v7383_v17, %v2338_v46 }
 0x173   : > { %v677_v4 = vunpack.c.l.b16 %v587_v22  ;;  %v1155_v43 = vld [vmem:[%s6822_s8 + $0x90] sm:$0x1]  ;;  %v3698_v60 = vsel %vm3681_vm3, %v3689_v18, %v3697_v55  ;;  %v3703_v22 = vshll.u32 %v6512_v13, 16 }
 0x174   : > { %v2461_v28 = vpop.f32.mrf.mxu0  ;;  %v7415_v34 = vadd.f32 %v2459_v10, %v1974_v15  ;;  %v1300_v10 = vsel %vm1265_vm0, %v1297_v6, %v1299_v61  ;;  %v1245_v59 = vunpack.c.l.b16 %v1155_v43 }
 0x175   : > { %v696_v6 = vpack.c.b16 %v677_v4, %v677_v4  ;;  %v2346_v4 = vrot.slane %v2344_v0, 2  ;;  %v3705_v30 = vrot.slane %v3703_v22, 3 }
 0x177   : > { %v1415_v51 = vpop.f32.mrf.mxu2 }
 0x178   : > { %v1519_v37 = vadd.f32 %v1415_v51, %v1062_v14  ;;  %v1264_v14 = vpack.c.b16 %v1245_v59, %v1245_v59 }
 0x179   : > { %v961_v53 = vpop.f32.mrf.mxu1  ;;  %v7427_v15 = vpop.f32.mrf.mxu3 }
 0x17a   : > { %v1975_v38 = vadd.f32 %v7353_v25, %v1519_v37  ;;  %v1063_v37 = vadd.f32 %v961_v53, %v7095_v2  ;;  %v2341_v25 = vshrl.u32 %v2177_v8, 16  ;;  %v840_v2 = vor.u32 %v838_v41, %v836_v31 }
 0x17c   : > { %v2464_v27 = vpop.f32.mrf.mxu0  ;;  %1000 = vmatmul.bf16.gmra.mxu1 %v837_v16  ;;  %1457 = vmatmul.bf16.gmra.mxu2 %v1300_v10  ;;  %v7429_v58 = vadd.f32 %v2461_v28, %v1975_v38  ;;  %v842_v16 = vshll.u32 %v696_v6, 16  ;;  %v3700_v28 = vshrl.u32 %v6512_v13, 16  ;;  %v2343_v10 = vrot.slane %v2341_v25, 1 }
 0x17e   : > { %3926 = vmatmul.bf16.vlgmr.msra.gmra.mxu3 %v3698_v60  ;;  %v844_v38 = vrot.slane %v842_v16, 1  ;;  %v3702_v43 = vrot.slane %v3700_v28, 2  ;;  %v2347_v6 = vor.u32 %v2346_v4, %v2343_v10  ;;  %v6536_v28 = vld [vmem:[%s6822_s8 + $0x10] sm:$0xf0]  ;;  %v7467_v4 = vld [vmem:[%s6822_s8 + $0x18] sm:$0xff] }
 0x17f   : > { %2503 = vmatmul.bf16.gmra.mxu0 %v2339_v45  ;;  %v1418_v17 = vpop.f32.mrf.mxu2  ;;  %v1301_v45 = vrot.slane %v1264_v14, 1  ;;  %v6224_v14 = vld [vmem:[%s6822_s8 + $0x10] sm:$0x8] }
 0x180   : > { %v1520_v23 = vadd.f32 %v1418_v17, %v1063_v37  ;;  %v845_v13 = vsel %vm697_vm1, %v840_v2, %v844_v38  ;;  %v2348_v25 = vsel %vm2178_vm2, %v2338_v46, %v2347_v6  ;;  %v6484_v46 = vld [vmem:[%s6822_s8 + $0x10] sm:$0xf0]  ;;  %v4618_v6 = vld [vmem:[%s8751_s2] sm:$0xff] }
 0x181   : > { %v963_v32 = vpop.f32.mrf.mxu1  ;;  %v7436_v18 = vpop.f32.mrf.mxu3  ;;  %v1302_v31 = vsel %vm1265_vm0, %v1299_v61, %v1301_v45  ;;  %v6458_v61 = vld [vmem:[%s6822_s8 + $0x8] sm:$0xf0] }
 0x182   : > { %v1976_v62 = vadd.f32 %v7377_v50, %v1520_v23  ;;  %v1064_v8 = vadd.f32 %v963_v32, %v7109_v21  ;;  %v6016_v32 = vld [vmem:[%s6822_s8 + $0x10] sm:$0xc] }
 0x183   : > { %v6017_v2 = vor.u32 %v6484_v46, %v6016_v32 }
 0x184   : > { %v2466_v51 = vpop.f32.mrf.mxu0  ;;  %v7438_v53 = vadd.f32 %v2464_v27, %v1976_v62  ;;  %v7445_v27 = vor.u32 %v3705_v30, %v3702_v43  ;;  %v7464_v62 = vld [vmem:[%s6822_s8 + $0x10] sm:$0xff]  ;;  %v7471_v43 = vld [vmem:[%s6822_s8 + $0x18] sm:$0xff]  ;;  %v6225_v30 = vor.u32 %v6536_v28, %v6224_v14 }
 0x186   : > { %v3707_v23 = vsel %vm3681_vm3, %v3697_v55, %v7445_v27 }
 0x187   : > { %v1420_v59 = vpop.f32.mrf.mxu2 }
 0x188   : > { %v1521_v60 = vadd.f32 %v1420_v59, %v1064_v8  ;;  %v6749_v8 = vmov 0  }
 0x189   : > { %v966_v50 = vpop.f32.mrf.mxu1  ;;  %v7449_v0 = vpop.f32.mrf.mxu3  ;;  %6720 = vset.pattern.permute.xlu0 %v6749_v8  ;;  %6721 = vset.pattern.permute.xlu1 %v6749_v8 }
 0x18a   : > { %v1977_v37 = vadd.f32 %v7391_v35, %v1521_v60  ;;  %v6513_v35 = vld [vmem:[%s6822_s8 + $0x28] sm:$0xff]  ;;  %v1065_v41 = vadd.f32 %v966_v50, %v7119_v42  ;;  %4656 = vperm.xlu0 %6720, %v4618_v6   ;;  %6722 = vset.pattern.permute.xlu2 %v6749_v8  ;;  %v2770_v50 = vrot.slane %v7464_v62, 2 }
 0x18b   : > { %v3709_v38 = vshrl.u32 %v6513_v35, 16  ;;  %v3712_v55 = vshll.u32 %v6513_v35, 16 }
 0x18c   : > { %v2469_v21 = vpop.f32.mrf.mxu0  ;;  %1005 = vmatmul.bf16.gmra.mxu1 %v845_v13  ;;  %1462 = vmatmul.bf16.gmra.mxu2 %v1302_v31  ;;  %v7451_v17 = vadd.f32 %v2466_v51, %v1977_v37  ;;  %v5913_v51 = vor.u32 %v6458_v61, %v5912_v29  ;;  %v3226_v31 = vrot.slane %v7467_v4, 2  ;;  %v4272_v61 = vrot.slane %v6225_v30, 3 }
 0x18d   : > { %v3711_v37 = vrot.slane %v3709_v38, 2 }
 0x18e   : > { %3931 = vmatmul.bf16.gmra.mxu3 %v3707_v23  ;;  %v2769_v60 = vrot.slane %v5913_v51, 2  ;;  %v4273_v23 = vrot.slane %v7471_v43, 3  ;;  %v6486_v43 = vld [vmem:[%s6822_s8 + $0x20] sm:$0xff] }
 0x18f   : > { %2508 = vmatmul.bf16.gmra.mxu0 %v2348_v25  ;;  %v1423_v16 = vpop.f32.mrf.mxu2  ;;  %v3714_v25 = vrot.slane %v3712_v55, 3 }
 0x190   : > { %v1522_v22 = vadd.f32 %v1423_v16, %v1065_v41  ;;  %v2771_v46 = vsel %vm2768_vm4, %v2769_v60, %v2770_v50 }
 0x191   : > { %v968_v10 = vpop.f32.mrf.mxu1  ;;  %v7476_v59 = vpop.f32.mrf.mxu3  ;;  %v3715_v16 = vor.u32 %v3714_v25, %v3711_v37  ;;  %v3228_v25 = vrot.slane %v6486_v43, 2 }
 0x192   : > { %v1978_v45 = vadd.f32 %v7411_v54, %v1522_v22  ;;  %v3225_v54 = vrot.slane %v6017_v2, 2  ;;  %v1066_v29 = vadd.f32 %v968_v10, %v7139_v5  ;;  %v4274_v5 = vsel %vm4271_vm5, %v4272_v61, %v4273_v23  ;;  %v4619_v22 = vld [vmem:[%s8751_s2 + $0x8] sm:$0xff]  ;;  %v6514_v10 = vld [vmem:[%s6822_s8 + $0x30] sm:$0xff] }
 0x193   : > { %4661 = vperm.xlu0 %6720, %v4619_v22   ;;  %v3718_v30 = vshrl.u32 %v6514_v10, 16  ;;  %v3721_v8 = vshll.u32 %v6514_v10, 16 }
 0x194   : > { %v2471_v42 = vpop.f32.mrf.mxu0  ;;  %v7479_v13 = vadd.f32 %v2469_v21, %v1978_v45  ;;  %v3227_v21 = vsel %vm2768_vm4, %v3225_v54, %v3226_v31  ;;  %v6460_v45 = vld [vmem:[%s6822_s8 + $0x18] sm:$0xff]  ;;  %v4620_v54 = vld [vmem:[%s8751_s2 + $0x10] sm:$0xff] }
 0x195   : > { %4666 = vperm.xlu1 %6721, %v4620_v54   ;;  %v2772_v37 = vrot.slane %v6460_v45, 2  ;;  %v3723_v61 = vrot.slane %v3721_v8, 3  ;;  %v6487_v45 = vld [vmem:[%s6822_s8 + $0x28] sm:$0xff] }
 0x197   : > { %v1425_v35 = vpop.f32.mrf.mxu2 }
 0x198   : > { %v1523_v41 = vadd.f32 %v1425_v35, %v1066_v29  ;;  %v3720_v29 = vrot.slane %v3718_v30, 2 }
 0x199   : > { %v971_v32 = vpop.f32.mrf.mxu1  ;;  %v7491_v62 = vpop.f32.mrf.mxu3 }
 0x19a   : > { %v1979_v14 = vadd.f32 %v7427_v15, %v1523_v41  ;;  %v3716_v15 = vsel %vm3681_vm3, %v7445_v27, %v3715_v16  ;;  %v1067_v4 = vadd.f32 %v971_v32, %v7023_v49 }
 0x19c   : > { %v2474_v28 = vpop.f32.mrf.mxu0  ;;  %2880 = vmatmul.bf16.vlgmr.msra.gmra.mxu1 %v2771_v46  ;;  %3336 = vmatmul.bf16.vlgmr.msra.gmra.mxu2 %v3227_v21  ;;  %v7493_v51 = vadd.f32 %v2471_v42, %v1979_v14  ;;  %v6538_v42 = vld [vmem:[%s6822_s8 + $0x20] sm:$0xff]  ;;  %v2773_v21 = vsel %vm2768_vm4, %v2770_v50, %v2772_v37  ;;  %v3229_v14 = vsel %vm2768_vm4, %v3226_v31, %v3228_v25  ;;  %v6515_v31 = vld [vmem:[%s6822_s8 + $0x38] sm:$0xff] }
 0x19d   : > { %v4275_v41 = vrot.slane %v6538_v42, 3  ;;  %v3727_v43 = vshrl.u32 %v6515_v31, 16  ;;  %v3730_v30 = vshll.u32 %v6515_v31, 16  ;;  %v6539_v42 = vld [vmem:[%s6822_s8 + $0x28] sm:$0xff]  ;;  %v6516_v31 = vld [vmem:[%s6822_s8 + $0x40] sm:$0xff] }
 0x19e   : > { %3936 = vmatmul.bf16.gmra.mxu3 %v3716_v15 }
 0x19f   : > { %4383 = vmatmul.bf16.vlgmr.msra.gmra.mxu0 %v4274_v5  ;;  %v1428_v2 = vpop.f32.mrf.mxu2  ;;  %v3724_v5 = vor.u32 %v3723_v61, %v3720_v29  ;;  %v4276_v15 = vsel %vm4271_vm5, %v4273_v23, %v4275_v41  ;;  %v3230_v29 = vrot.slane %v6487_v45, 2  ;;  %v3729_v61 = vrot.slane %v3727_v43, 2 }
 0x1a0   : > { %v1524_v38 = vadd.f32 %v1428_v2, %v1067_v4 }
 0x1a1   : > { %v973_v55 = vpop.f32.mrf.mxu1  ;;  %v7506_v27 = vpop.f32.mrf.mxu3 }
 0x1a2   : > { %v1980_v6 = vadd.f32 %v7436_v18, %v1524_v38  ;;  %v1068_v35 = vadd.f32 %v973_v55, %v7033_v63  ;;  %v4621_v63 = vld [vmem:[%s8751_s2 + $0x18] sm:$0xff]  ;;  %v6461_v55 = vld [vmem:[%s6822_s8 + $0x20] sm:$0xff] }
 0x1a3   : > { %4671 = vperm.xlu1 %6721, %v4621_v63  }
 0x1a4   : > { %v2476_v60 = vpop.f32.mrf.mxu0  ;;  %v7508_v49 = vadd.f32 %v2474_v28, %v1980_v6 }
 0x1a7   : > { %v1430_v32 = vpop.f32.mrf.mxu2 }
 0x1a8   : > { %v1525_v18 = vadd.f32 %v1430_v32, %v1068_v35  ;;  %v4277_v32 = vrot.slane %v6539_v42, 3 }
 0x1a9   : > { %v976_v46 = vpop.f32.mrf.mxu1  ;;  %v7518_v10 = vpop.f32.mrf.mxu3 }
 0x1aa   : > { %v1981_v22 = vadd.f32 %v7449_v0, %v1525_v18  ;;  %v3725_v0 = vsel %vm3681_vm3, %v3715_v16, %v3724_v5  ;;  %v1069_v4 = vadd.f32 %v976_v46, %v7047_v12  ;;  %v2774_v16 = vrot.slane %v6461_v55, 2 }
 0x1ab   : > { %v3732_v12 = vrot.slane %v3730_v30, 3  ;;  %v4278_v63 = vsel %vm4271_vm5, %v4275_v41, %v4277_v32  ;;  %v7549_v41 = vld [vmem:[%s6822_s8 + $0x30] sm:$0xff]  ;;  %v3739_v55 = vshll.u32 %v6516_v31, 16 }
 0x1ac   : > { %v2479_v28 = vpop.f32.mrf.mxu0  ;;  %2885 = vmatmul.bf16.gmra.mxu1 %v2773_v21  ;;  %3341 = vmatmul.bf16.gmra.mxu2 %v3229_v14  ;;  %v7520_v50 = vadd.f32 %v2476_v60, %v1981_v22  ;;  %v2775_v14 = vsel %vm2768_vm4, %v2772_v37, %v2774_v16  ;;  %v7553_v30 = vld [vmem:[%s6822_s8 + $0x30] sm:$0xff]  ;;  %v3232_v42 = vrot.slane %v7549_v41, 2  ;;  %v6489_v41 = vld [vmem:[%s6822_s8 + $0x38] sm:$0xff] }
 0x1ad   : > { %v3733_v22 = vor.u32 %v3732_v12, %v3729_v61  ;;  %v3741_v12 = vrot.slane %v3739_v55, 3 }
 0x1ae   : > { %3941 = vmatmul.bf16.gmra.mxu3 %v3725_v0 }
 0x1af   : > { %4388 = vmatmul.bf16.gmra.mxu0 %v4276_v15  ;;  %v1433_v23 = vpop.f32.mrf.mxu2  ;;  %v3734_v37 = vsel %vm3681_vm3, %v3724_v5, %v3733_v22  ;;  %v4624_v5 = vld [vmem:[%s8751_s2 + $0x30] sm:$0xff] }
 0x1b0   : > { %v1526_v2 = vadd.f32 %v1433_v23, %v1069_v4  ;;  %4686 = vperm.xlu0 %6720, %v4624_v5   ;;  %v6541_v5 = vld [vmem:[%s6822_s8 + $0x38] sm:$0xff] }
 0x1b1   : > { %v978_v38 = vpop.f32.mrf.mxu1  ;;  %v7529_v60 = vpop.f32.mrf.mxu3 }
 0x1b2   : > { %v1982_v8 = vadd.f32 %v7476_v59, %v1526_v2  ;;  %v1070_v35 = vadd.f32 %v978_v38, %v7057_v26  ;;  %v3231_v59 = vsel %vm2768_vm4, %v3228_v25, %v3230_v29  ;;  %v7546_v2 = vld [vmem:[%s6822_s8 + $0x28] sm:$0xff]  ;;  %v3736_v38 = vshrl.u32 %v6516_v31, 16  ;;  %v4625_v31 = vld [vmem:[%s8751_s2 + $0x38] sm:$0xff] }
 0x1b3   : > { %4691 = vperm.xlu1 %6721, %v4625_v31  }
 0x1b4   : > { %v2481_v6 = vpop.f32.mrf.mxu0  ;;  %v7531_v54 = vadd.f32 %v2479_v28, %v1982_v8  ;;  %v3738_v61 = vrot.slane %v3736_v38, 2 }
 0x1b7   : > { %v1435_v18 = vpop.f32.mrf.mxu2 }
 0x1b8   : > { %v1527_v46 = vadd.f32 %v1435_v18, %v1070_v35  ;;  %v4279_v35 = vrot.slane %v7553_v30, 3 }
 0x1b9   : > { %v981_v21 = vpop.f32.mrf.mxu1  ;;  %v7538_v0 = vpop.f32.mrf.mxu3 }
 0x1ba   : > { %v1983_v28 = vadd.f32 %v7491_v62, %v1527_v46  ;;  %v1071_v25 = vadd.f32 %v981_v21, %v7080_v44 }
 0x1bc   : > { %v2484_v15 = vpop.f32.mrf.mxu0  ;;  %2890 = vmatmul.bf16.gmra.mxu1 %v2775_v14  ;;  %3346 = vmatmul.bf16.gmra.mxu2 %v3231_v59  ;;  %v7540_v26 = vadd.f32 %v2481_v6, %v1983_v28  ;;  %v2776_v6 = vrot.slane %v7546_v2, 2  ;;  %v3233_v59 = vsel %vm2768_vm4, %v3230_v29, %v3232_v42  ;;  %v3742_v28 = vor.u32 %v3741_v12, %v3738_v61  ;;  %v6463_v2 = vld [vmem:[%s6822_s8 + $0x30] sm:$0xff] }
 0x1bd   : > { %v2778_v61 = vrot.slane %v6463_v2, 2  ;;  %v3234_v12 = vrot.slane %v6489_v41, 2  ;;  %v6490_v2 = vld [vmem:[%s6822_s8 + $0x40] sm:$0xff] }
 0x1be   : > { %3946 = vmatmul.bf16.gmra.mxu3 %v3734_v37  ;;  %v2777_v14 = vsel %vm2768_vm4, %v2774_v16, %v2776_v6  ;;  %v4280_v37 = vsel %vm4271_vm5, %v4277_v32, %v4279_v35  ;;  %v3743_v29 = vsel %vm3681_vm3, %v3733_v22, %v3742_v28  ;;  %v6517_v32 = vld [vmem:[%s6822_s8 + $0x48] sm:$0xff] }
 0x1bf   : > { %4393 = vmatmul.bf16.gmra.mxu0 %v4278_v63  ;;  %v1438_v4 = vpop.f32.mrf.mxu2  ;;  %v3745_v38 = vshrl.u32 %v6517_v32, 16  ;;  %v3748_v55 = vshll.u32 %v6517_v32, 16 }
 0x1c0   : > { %v1528_v23 = vadd.f32 %v1438_v4, %v1071_v25 }
 0x1c1   : > { %v983_v62 = vpop.f32.mrf.mxu1  ;;  %v7558_v44 = vpop.f32.mrf.mxu3 }
 0x1c2   : > { %v1984_v45 = vadd.f32 %v7506_v27, %v1528_v23  ;;  %v1072_v27 = vadd.f32 %v983_v62, %v7093_v1  ;;  %v4622_v1 = vld [vmem:[%s8751_s2 + $0x20] sm:$0xff] }
 0x1c3   : > { %4676 = vperm.xlu2 %6722, %v4622_v1  }
 0x1c4   : > { %v2486_v43 = vpop.f32.mrf.mxu0  ;;  %v7560_v8 = vadd.f32 %v2484_v15, %v1984_v45 }
 0x1c7   : > { %v1440_v18 = vpop.f32.mrf.mxu2 }
 0x1c8   : > { %v1529_v46 = vadd.f32 %v1440_v18, %v1072_v27  ;;  %v3747_v27 = vrot.slane %v3745_v38, 2  ;;  %v3750_v18 = vrot.slane %v3748_v55, 3 }
 0x1c9   : > { %v986_v21 = vpop.f32.mrf.mxu1  ;;  %v7576_v16 = vpop.f32.mrf.mxu3 }
 0x1ca   : > { %v1985_v15 = vadd.f32 %v7518_v10, %v1529_v46  ;;  %v1073_v25 = vadd.f32 %v986_v21, %v7107_v19  ;;  %v4281_v21 = vrot.slane %v6541_v5, 3  ;;  %v3751_v1 = vor.u32 %v3750_v18, %v3747_v27  ;;  %v6542_v5 = vld [vmem:[%s6822_s8 + $0x40] sm:$0xff] }
 0x1cb   : > { %v3236_v27 = vrot.slane %v6490_v2, 2 }
 0x1cc   : > { %v2489_v63 = vpop.f32.mrf.mxu0  ;;  %2895 = vmatmul.bf16.gmra.mxu1 %v2777_v14  ;;  %3351 = vmatmul.bf16.gmra.mxu2 %v3233_v59  ;;  %v7578_v10 = vadd.f32 %v2486_v43, %v1985_v15  ;;  %v4623_v43 = vld [vmem:[%s8751_s2 + $0x28] sm:$0xff]  ;;  %v2779_v15 = vsel %vm2768_vm4, %v2776_v6, %v2778_v61 }
 0x1cd   : > { %4681 = vperm.xlu2 %6722, %v4623_v43  }
 0x1ce   : > { %3951 = vmatmul.bf16.gmra.mxu3 %v3743_v29  ;;  %v4282_v29 = vsel %vm4271_vm5, %v4279_v35, %v4281_v21 }
 0x1cf   : > { %4398 = vmatmul.bf16.gmra.mxu0 %v4280_v37  ;;  %v1443_v4 = vpop.f32.mrf.mxu2  ;;  %v3235_v37 = vsel %vm2768_vm4, %v3232_v42, %v3234_v12  ;;  %v6518_v42 = vld [vmem:[%s6822_s8 + $0x50] sm:$0xff] }
 0x1d0   : > { %v1530_v23 = vadd.f32 %v1443_v4, %v1073_v25  ;;  %v3754_v41 = vshrl.u32 %v6518_v42, 16  ;;  %v3757_v38 = vshll.u32 %v6518_v42, 16 }
 0x1d1   : > { %v988_v62 = vpop.f32.mrf.mxu1  ;;  %v7590_v22 = vpop.f32.mrf.mxu3 }
 0x1d2   : > { %v1986_v45 = vadd.f32 %v7529_v60, %v1530_v23  ;;  %v1074_v46 = vadd.f32 %v988_v62, %v7117_v40  ;;  %v4627_v40 = vld [vmem:[%s8751_s2 + $0x48] sm:$0xff]  ;;  %v6464_v62 = vld [vmem:[%s6822_s8 + $0x38] sm:$0xff]  ;;  %v3756_v18 = vrot.slane %v3754_v41, 2 }
 0x1d3   : > { %4701 = vperm.xlu0 %6720, %v4627_v40   ;;  %v2780_v43 = vrot.slane %v6464_v62, 2  ;;  %v6491_v62 = vld [vmem:[%s6822_s8 + $0x48] sm:$0xff] }
 0x1d4   : > { %v2491_v30 = vpop.f32.mrf.mxu0  ;;  %v7592_v19 = vadd.f32 %v2489_v63, %v1986_v45 }
 0x1d7   : > { %v1445_v14 = vpop.f32.mrf.mxu2 }
 0x1d8   : > { %v1531_v60 = vadd.f32 %v1445_v14, %v1074_v46  ;;  %v3759_v46 = vrot.slane %v3757_v38, 3 }
 0x1d9   : > { %v991_v59 = vpop.f32.mrf.mxu1  ;;  %v7602_v32 = vpop.f32.mrf.mxu3 }
 0x1da   : > { %v1987_v31 = vadd.f32 %v7538_v0, %v1531_v60  ;;  %v3752_v0 = vsel %vm3681_vm3, %v3742_v28, %v3751_v1  ;;  %v1075_v25 = vadd.f32 %v991_v59, %v7137_v3  ;;  %v4283_v60 = vrot.slane %v6542_v5, 3  ;;  %v6543_v5 = vld [vmem:[%s6822_s8 + $0x48] sm:$0xff] }
 0x1dc   : > { %v2494_v63 = vpop.f32.mrf.mxu0  ;;  %2900 = vmatmul.bf16.gmra.mxu1 %v2779_v15  ;;  %3356 = vmatmul.bf16.gmra.mxu2 %v3235_v37  ;;  %v7604_v6 = vadd.f32 %v2491_v30, %v1987_v31  ;;  %v4628_v30 = vld [vmem:[%s8751_s2 + $0x50] sm:$0xff]  ;;  %v2781_v37 = vsel %vm2768_vm4, %v2778_v61, %v2780_v43  ;;  %v3237_v31 = vsel %vm2768_vm4, %v3234_v12, %v3236_v27  ;;  %v6519_v12 = vld [vmem:[%s6822_s8 + $0x58] sm:$0xff] }
 0x1dd   : > { %4706 = vperm.xlu1 %6721, %v4628_v30   ;;  %v3763_v2 = vshrl.u32 %v6519_v12, 16  ;;  %v3766_v41 = vshll.u32 %v6519_v12, 16 }
 0x1de   : > { %3956 = vmatmul.bf16.gmra.mxu3 %v3752_v0  ;;  %v4284_v0 = vsel %vm4271_vm5, %v4281_v21, %v4283_v60 }
 0x1df   : > { %4403 = vmatmul.bf16.gmra.mxu0 %v4282_v29  ;;  %v1448_v35 = vpop.f32.mrf.mxu2  ;;  %v3760_v29 = vor.u32 %v3759_v46, %v3756_v18  ;;  %v3238_v18 = vrot.slane %v6491_v62, 2  ;;  %v3765_v46 = vrot.slane %v3763_v2, 2 }
 0x1e0   : > { %v1532_v4 = vadd.f32 %v1448_v35, %v1075_v25 }
 0x1e1   : > { %v993_v23 = vpop.f32.mrf.mxu1  ;;  %v7616_v28 = vpop.f32.mrf.mxu3 }
 0x1e2   : > { %v1988_v55 = vadd.f32 %v7558_v44, %v1532_v4  ;;  %v1076_v14 = vadd.f32 %v993_v23, %v7153_v39  ;;  %v4626_v39 = vld [vmem:[%s8751_s2 + $0x40] sm:$0xff] }
 0x1e3   : > { %4696 = vperm.xlu2 %6722, %v4626_v39   ;;  %v6465_v23 = vld [vmem:[%s6822_s8 + $0x40] sm:$0xff] }
 0x1e4   : > { %v2496_v45 = vpop.f32.mrf.mxu0  ;;  %v7618_v3 = vadd.f32 %v2494_v63, %v1988_v55  ;;  %v2782_v30 = vrot.slane %v6465_v23, 2  ;;  %v6492_v23 = vld [vmem:[%s6822_s8 + $0x50] sm:$0xff] }
 0x1e7   : > { %v1450_v59 = vpop.f32.mrf.mxu2 }
 0x1e8   : > { %v1533_v44 = vadd.f32 %v1450_v59, %v1076_v14  ;;  %v3768_v14 = vrot.slane %v3766_v41, 3 }
 0x1e9   : > { %v996_v15 = vpop.f32.mrf.mxu1  ;;  %v7628_v42 = vpop.f32.mrf.mxu3 }
 0x1ea   : > { %v1989_v40 = vadd.f32 %v7576_v16, %v1533_v44  ;;  %v3761_v16 = vsel %vm3681_vm3, %v3751_v1, %v3760_v29  ;;  %v1077_v25 = vadd.f32 %v996_v15, %v7030_v57  ;;  %v4285_v44 = vrot.slane %v6543_v5, 3  ;;  %v6544_v5 = vld [vmem:[%s6822_s8 + $0x50] sm:$0xff] }
 0x1ec   : > { %v2499_v63 = vpop.f32.mrf.mxu0  ;;  %2905 = vmatmul.bf16.gmra.mxu1 %v2781_v37  ;;  %3361 = vmatmul.bf16.gmra.mxu2 %v3237_v31  ;;  %v7630_v61 = vadd.f32 %v2496_v45, %v1989_v40  ;;  %v4630_v45 = vld [vmem:[%s8751_s2 + $0x60] sm:$0xff]  ;;  %v2783_v31 = vsel %vm2768_vm4, %v2780_v43, %v2782_v30  ;;  %v3239_v40 = vsel %vm2768_vm4, %v3236_v27, %v3238_v18 }
 0x1ed   : > { %4716 = vperm.xlu0 %6720, %v4630_v45   ;;  %v6520_v27 = vld [vmem:[%s6822_s8 + $0x60] sm:$0xff] }
 0x1ee   : > { %3961 = vmatmul.bf16.gmra.mxu3 %v3761_v16  ;;  %v4286_v16 = vsel %vm4271_vm5, %v4283_v60, %v4285_v44  ;;  %v3772_v62 = vshrl.u32 %v6520_v27, 16  ;;  %v3775_v2 = vshll.u32 %v6520_v27, 16 }
 0x1ef   : > { %4408 = vmatmul.bf16.gmra.mxu0 %v4284_v0  ;;  %v1453_v21 = vpop.f32.mrf.mxu2  ;;  %v3769_v0 = vor.u32 %v3768_v14, %v3765_v46  ;;  %v3240_v46 = vrot.slane %v6492_v23, 2 }
 0x1f0   : > { %v1534_v35 = vadd.f32 %v1453_v21, %v1077_v25  ;;  %v3774_v14 = vrot.slane %v3772_v62, 2 }
 0x1f1   : > { %v998_v4 = vpop.f32.mrf.mxu1  ;;  %v7642_v1 = vpop.f32.mrf.mxu3 }
 0x1f2   : > { %v1990_v38 = vadd.f32 %v7590_v22, %v1534_v35  ;;  %v1078_v59 = vadd.f32 %v998_v4, %v7043_v7  ;;  %v4631_v7 = vld [vmem:[%s8751_s2 + $0x68] sm:$0xff] }
 0x1f3   : > { %4721 = vperm.xlu1 %6721, %v4631_v7   ;;  %v6466_v4 = vld [vmem:[%s6822_s8 + $0x48] sm:$0xff] }
 0x1f4   : > { %v2501_v55 = vpop.f32.mrf.mxu0  ;;  %v7644_v57 = vadd.f32 %v2499_v63, %v1990_v38  ;;  %v2784_v45 = vrot.slane %v6466_v4, 2  ;;  %v7691_v4 = vld [vmem:[%s6822_s8 + $0x58] sm:$0xff] }
 0x1f7   : > { %v1455_v15 = vpop.f32.mrf.mxu2 }
 0x1f8   : > { %v1535_v22 = vadd.f32 %v1455_v15, %v1078_v59  ;;  %v3777_v59 = vrot.slane %v3775_v2, 3 }
 0x1f9   : > { %v1001_v37 = vpop.f32.mrf.mxu1  ;;  %v7654_v12 = vpop.f32.mrf.mxu3 }
 0x1fa   : > { %v1991_v39 = vadd.f32 %v7602_v32, %v1535_v22  ;;  %v3770_v32 = vsel %vm3681_vm3, %v3760_v29, %v3769_v0  ;;  %v1079_v25 = vadd.f32 %v1001_v37, %v7054_v20  ;;  %v4287_v22 = vrot.slane %v6544_v5, 3 }
 0x1fc   : > { %v2504_v63 = vpop.f32.mrf.mxu0  ;;  %2910 = vmatmul.bf16.gmra.mxu1 %v2783_v31  ;;  %3366 = vmatmul.bf16.gmra.mxu2 %v3239_v40  ;;  %v7656_v43 = vadd.f32 %v2501_v55, %v1991_v39  ;;  %v4629_v55 = vld [vmem:[%s8751_s2 + $0x58] sm:$0xff]  ;;  %v2785_v40 = vsel %vm2768_vm4, %v2782_v30, %v2784_v45  ;;  %v3241_v39 = vsel %vm2768_vm4, %v3238_v18, %v3240_v46  ;;  %v6521_v18 = vld [vmem:[%s6822_s8 + $0x68] sm:$0xff] }
 0x1fd   : > { %4711 = vperm.xlu2 %6722, %v4629_v55   ;;  %v3781_v23 = vshrl.u32 %v6521_v18, 16  ;;  %v3784_v62 = vshll.u32 %v6521_v18, 16 }
 0x1fe   : > { %3966 = vmatmul.bf16.gmra.mxu3 %v3770_v32  ;;  %v4288_v32 = vsel %vm4271_vm5, %v4285_v44, %v4287_v22 }
 0x1ff   : > { %4413 = vmatmul.bf16.gmra.mxu0 %v4286_v16  ;;  %v1458_v60 = vpop.f32.mrf.mxu2  ;;  %v3778_v16 = vor.u32 %v3777_v59, %v3774_v14  ;;  %v3242_v14 = vrot.slane %v7691_v4, 2  ;;  %v3783_v59 = vrot.slane %v3781_v23, 2  ;;  %v7723_v23 = vld [vmem:[%s6822_s8 + $0x58] sm:$0xff] }
 0x200   : > { %v1536_v21 = vadd.f32 %v1458_v60, %v1079_v25 }
 0x201   : > { %v1003_v35 = vpop.f32.mrf.mxu1  ;;  %v7668_v29 = vpop.f32.mrf.mxu3 }
 0x202   : > { %v1992_v41 = vadd.f32 %v7616_v28, %v1536_v21  ;;  %v1080_v15 = vadd.f32 %v1003_v35, %v7073_v36  ;;  %v4633_v36 = vld [vmem:[%s8751_s2 + $0x78] sm:$0xff]  ;;  %v7688_v35 = vld [vmem:[%s6822_s8 + $0x50] sm:$0xff] }
 0x203   : > { %4731 = vperm.xlu0 %6720, %v4633_v36   ;;  %v2786_v55 = vrot.slane %v7688_v35, 2 }
 0x204   : > { %v2506_v38 = vpop.f32.mrf.mxu0  ;;  %v7670_v20 = vadd.f32 %v2504_v63, %v1992_v41 }
 0x207   : > { %v1460_v37 = vpop.f32.mrf.mxu2 }
 0x208   : > { %v1537_v28 = vadd.f32 %v1460_v37, %v1080_v15  ;;  %v3786_v15 = vrot.slane %v3784_v62, 3  ;;  %v8805_v37 = vld [vmem:[#allocation3_spill] sm:$0xff] }
 0x209   : > { %v1006_v31 = vpop.f32.mrf.mxu1  ;;  %v7680_v27 = vpop.f32.mrf.mxu3  ;;  %v7726_v62 = vld [vmem:[%s6822_s8 + $0x60] sm:$0xff] }
 0x20a   : > { %v1993_v7 = vadd.f32 %v7628_v42, %v1537_v28  ;;  %v3779_v42 = vsel %vm3681_vm3, %v3769_v0, %v3778_v16  ;;  %v1081_v25 = vadd.f32 %v1006_v31, %v7090_v56  ;;  %v4634_v0 = vld [vmem:[%s8751_s2 + $0x80] sm:$0xff] }
 0x20b   : > { %4736 = vperm.xlu1 %6721, %v4634_v0  }
 0x20c   : > { %v2509_v63 = vpop.f32.mrf.mxu0  ;;  %2915 = vmatmul.bf16.gmra.mxu1 %v2785_v40  ;;  %3371 = vmatmul.bf16.gmra.mxu2 %v3241_v39  ;;  %v7682_v30 = vadd.f32 %v2506_v38, %v1993_v7  ;;  %v7695_v38 = vld [vmem:[%s6822_s8 + $0x58] sm:$0xff]  ;;  %v2787_v7 = vsel %vm2768_vm4, %v2784_v45, %v2786_v55 }
 0x20d   : > { %v4289_v28 = vrot.slane %v7695_v38, 3 }
 0x20e   : > { %3971 = vmatmul.bf16.gmra.mxu3 %v3779_v42  ;;  %v8806_v42 = vld [vmem:[#allocation4_spill] sm:$0xff] }
 0x20f   : > { %4418 = vmatmul.bf16.gmra.mxu0 %v4288_v32  ;;  %v1463_v44 = vpop.f32.mrf.mxu2  ;;  %v3243_v32 = vsel %vm2768_vm4, %v3240_v46, %v3242_v14  ;;  %v6522_v46 = vld [vmem:[%s6822_s8 + $0x70] sm:$0xff] }
 0x210   : > { %v1538_v60 = vadd.f32 %v1463_v44, %v1081_v25  ;;  %v4290_v44 = vsel %vm4271_vm5, %v4287_v22, %v4289_v28  ;;  %v3793_v38 = vshll.u32 %v6522_v46, 16 }
 0x211   : > { %v1008_v21 = vpop.f32.mrf.mxu1  ;;  %v7700_v56 = vpop.f32.mrf.mxu3 }
 0x212   : > { %v1994_v2 = vadd.f32 %v7642_v1, %v1538_v60  ;;  %v1082_v1 = vadd.f32 %v1008_v21, %v8805_v37  ;;  %v4632_v60 = vld [vmem:[%s8751_s2 + $0x70] sm:$0xff]  ;;  %v7731_v37 = vld [vmem:[%s6822_s8 + $0x60] sm:$0xff] }
 0x213   : > { %4726 = vperm.xlu2 %6722, %v4632_v60  }
 0x214   : > { %v2511_v41 = vpop.f32.mrf.mxu0  ;;  %v7702_v5 = vadd.f32 %v2509_v63, %v1994_v2  ;;  %v3787_v63 = vor.u32 %v3786_v15, %v3783_v59  ;;  %v3790_v2 = vshrl.u32 %v6522_v46, 16  ;;  %v8808_v59 = vld [vmem:[#allocation5_spill] sm:$0xff] }
 0x217   : > { %v1465_v31 = vpop.f32.mrf.mxu2 }
 0x218   : > { %v1539_v40 = vadd.f32 %v1465_v31, %v1082_v1 }
 0x219   : > { %v2881_v39 = vpop.f32.mrf.mxu1  ;;  %v7716_v21 = vpop.f32.mrf.mxu3 }
 0x21a   : > { %v1995_v36 = vadd.f32 %v7654_v12, %v1539_v40  ;;  %v3007_v18 = vadd.f32 %v2881_v39, %v8806_v42  ;;  %v3788_v12 = vsel %vm3681_vm3, %v3778_v16, %v3787_v63  ;;  %v4636_v16 = vld [vmem:[%s8751_s2 + $0x90] sm:$0xff]  ;;  %v2788_v40 = vrot.slane %v7723_v23, 2 }
 0x21b   : > { %4746 = vperm.xlu0 %6720, %v4636_v16   ;;  %v3244_v39 = vrot.slane %v7726_v62, 2 }
 0x21c   : > { %v4384_v25 = vpop.f32.mrf.mxu0  ;;  %2920 = vmatmul.bf16.gmra.mxu1 %v2787_v7  ;;  %3376 = vmatmul.bf16.gmra.mxu2 %v3243_v32  ;;  %v7718_v45 = vadd.f32 %v2511_v41, %v1995_v36  ;;  %v3792_v7 = vrot.slane %v3790_v2, 2  ;;  %v4291_v32 = vrot.slane %v7731_v37, 3  ;;  %v2789_v60 = vsel %vm2768_vm4, %v2786_v55, %v2788_v40 }
 0x21e   : > { %8807 = vst [vmem:[#allocation3_spill] sm:$0xff] %v7718_v45  ;;  %3976 = vmatmul.bf16.gmra.mxu3 %v3788_v12 }
 0x21f   : > { %4423 = vmatmul.bf16.gmra.mxu0 %v4290_v44  ;;  %v3337_v35 = vpop.f32.mrf.mxu2 }
 0x220   : > { %v3463_v4 = vadd.f32 %v3337_v35, %v3007_v18  ;;  %v4637_v18 = vld [vmem:[%s8751_s2 + $0x98] sm:$0xff] }
 0x221   : > { %v2883_v22 = vpop.f32.mrf.mxu1  ;;  %v7736_v1 = vpop.f32.mrf.mxu3  ;;  %4751 = vperm.xlu1 %6721, %v4637_v18  }
 0x222   : > { %v4053_v0 = vadd.f32 %v7668_v29, %v3463_v4  ;;  %v3008_v15 = vadd.f32 %v2883_v22, %v8808_v59  ;;  %v3795_v29 = vrot.slane %v3793_v38, 3  ;;  %v4292_v22 = vsel %vm4271_vm5, %v4289_v28, %v4291_v32  ;;  %v4640_v28 = vld [vmem:[%s8751_s2 + $0xb0] sm:$0xff]  ;;  %v7767_v59 = vld [vmem:[%s6822_s8 + $0x68] sm:$0xff] }
 0x224   : > { %v4386_v41 = vpop.f32.mrf.mxu0  ;;  %v7738_v31 = vadd.f32 %v4384_v25, %v4053_v0  ;;  %v3245_v25 = vsel %vm2768_vm4, %v3242_v14, %v3244_v39  ;;  %v3796_v12 = vor.u32 %v3795_v29, %v3792_v7  ;;  %v6523_v14 = vld [vmem:[%s6822_s8 + $0x78] sm:$0xff]  ;;  %v7764_v0 = vld [vmem:[%s6822_s8 + $0x60] sm:$0xff]  ;;  %v7772_v7 = vld [vmem:[%s6822_s8 + $0x68] sm:$0xff] }
 0x225   : > { %v4635_v29 = vld [vmem:[%s8751_s2 + $0x88] sm:$0xff]  ;;  %v2790_v18 = vrot.slane %v7764_v0, 2 }
 0x226   : > { %v3797_v55 = vsel %vm3681_vm3, %v3787_v63, %v3796_v12  ;;  %v3799_v63 = vshrl.u32 %v6523_v14, 16  ;;  %4741 = vperm.xlu2 %6722, %v4635_v29  }
 0x227   : > { %v3339_v36 = vpop.f32.mrf.mxu2 }
 0x228   : > { %v3464_v42 = vadd.f32 %v3339_v36, %v3008_v15  ;;  %v3802_v15 = vshll.u32 %v6523_v14, 16 }
 0x229   : > { %v2886_v44 = vpop.f32.mrf.mxu1  ;;  %v7751_v23 = vpop.f32.mrf.mxu3  ;;  %4766 = vperm.xlu1 %6721, %v4640_v28  }
 0x22a   : > { %v4054_v46 = vadd.f32 %v7680_v27, %v3464_v42  ;;  %v3009_v35 = vadd.f32 %v2886_v44, %v7212_v24  ;;  %v4639_v24 = vld [vmem:[%s8751_s2 + $0xa8] sm:$0xff]  ;;  %v3246_v44 = vrot.slane %v7767_v59, 2 }
 0x22b   : > { %4761 = vperm.xlu0 %6720, %v4639_v24  }
 0x22c   : > { %v4389_v4 = vpop.f32.mrf.mxu0  ;;  %2925 = vmatmul.bf16.gmra.mxu1 %v2789_v60  ;;  %3381 = vmatmul.bf16.gmra.mxu2 %v3245_v25  ;;  %v7753_v62 = vadd.f32 %v4386_v41, %v4054_v46  ;;  %v3801_v60 = vrot.slane %v3799_v63, 2  ;;  %v4642_v25 = vld [vmem:[%s8751_s2 + $0xc0] sm:$0xff]  ;;  %v3247_v14 = vsel %vm2768_vm4, %v3244_v39, %v3246_v44 }
 0x22d   : > { %v6524_v39 = vld [vmem:[%s6822_s8 + $0x80] sm:$0xff] }
 0x22e   : > { %3981 = vmatmul.bf16.gmra.mxu3 %v3797_v55  ;;  %v2791_v55 = vsel %vm2768_vm4, %v2788_v40, %v2790_v18 }
 0x22f   : > { %4428 = vmatmul.bf16.gmra.mxu0 %v4292_v22  ;;  %v3342_v27 = vpop.f32.mrf.mxu2 }
 0x230   : > { %v3465_v2 = vadd.f32 %v3342_v27, %v3009_v35 }
 0x231   : > { %v2888_v38 = vpop.f32.mrf.mxu1  ;;  %v7777_v36 = vpop.f32.mrf.mxu3 }
 0x232   : > { %v4055_v41 = vadd.f32 %v7700_v56, %v3465_v2  ;;  %v3010_v37 = vadd.f32 %v2888_v38, %v7227_v48  ;;  %v3804_v56 = vrot.slane %v3802_v15, 3  ;;  %v4293_v48 = vrot.slane %v7772_v7, 3 }
 0x233   : > { %4776 = vperm.xlu0 %6720, %v4642_v25   ;;  %v4638_v25 = vld [vmem:[%s8751_s2 + $0xa0] sm:$0xff] }
 0x234   : > { %v4391_v16 = vpop.f32.mrf.mxu0  ;;  %v7779_v42 = vadd.f32 %v4389_v4, %v4055_v41  ;;  %v4643_v4 = vld [vmem:[%s8751_s2 + $0xc8] sm:$0xff]  ;;  %v3805_v24 = vor.u32 %v3804_v56, %v3801_v60  ;;  %v4294_v38 = vsel %vm4271_vm5, %v4291_v32, %v4293_v48  ;;  %v4646_v32 = vld [vmem:[%s8751_s2 + $0xe0] sm:$0xff]  ;;  %v7816_v56 = vld [vmem:[%s6822_s8 + $0x70] sm:$0xff]  ;;  %4756 = vperm.xlu2 %6722, %v4638_v25  }
 0x235   : > { %4781 = vperm.xlu1 %6721, %v4643_v4   ;;  %v7808_v41 = vld [vmem:[%s6822_s8 + $0x68] sm:$0xff] }
 0x236   : > { %8809 = vst [vmem:[#allocation4_spill] sm:$0xff] %v7779_v42  ;;  %v3806_v40 = vsel %vm3681_vm3, %v3796_v12, %v3805_v24  ;;  %v3808_v12 = vshrl.u32 %v6524_v39, 16  ;;  %v2792_v4 = vrot.slane %v7808_v41, 2  ;;  %v4641_v41 = vld [vmem:[%s8751_s2 + $0xb8] sm:$0xff] }
 0x237   : > { %v3344_v46 = vpop.f32.mrf.mxu2 }
 0x238   : > { %v3466_v35 = vadd.f32 %v3344_v46, %v3010_v37  ;;  %v7811_v37 = vld [vmem:[%s6822_s8 + $0x70] sm:$0xff] }
 0x239   : > { %v2891_v22 = vpop.f32.mrf.mxu1  ;;  %v7795_v0 = vpop.f32.mrf.mxu3 }
 0x23a   : > { %v4056_v27 = vadd.f32 %v7716_v21, %v3466_v35  ;;  %v3011_v2 = vadd.f32 %v2891_v22, %v7240_v33  ;;  %v4645_v33 = vld [vmem:[%s8751_s2 + $0xd8] sm:$0xff]  ;;  %v3248_v22 = vrot.slane %v7811_v37, 2 }
 0x23b   : > { %4791 = vperm.xlu0 %6720, %v4645_v33  }
 0x23c   : > { %v4394_v28 = vpop.f32.mrf.mxu0  ;;  %2930 = vmatmul.bf16.gmra.mxu1 %v2791_v55  ;;  %3386 = vmatmul.bf16.gmra.mxu2 %v3247_v14  ;;  %v7797_v59 = vadd.f32 %v4391_v16, %v4056_v27  ;;  %v3811_v16 = vshll.u32 %v6524_v39, 16  ;;  %v3810_v55 = vrot.slane %v3808_v12, 2  ;;  %v4648_v14 = vld [vmem:[%s8751_s2 + $0xf0] sm:$0xff]  ;;  %v3249_v39 = vsel %vm2768_vm4, %v3246_v44, %v3248_v22  ;;  %v4651_v44 = vld [vmem:[%s8751_s2 + $0x108] sm:$0xff] }
 0x23d   : > { %4796 = vperm.xlu1 %6721, %v4646_v32   ;;  %4771 = vperm.xlu2 %6722, %v4641_v41  }
 0x23e   : > { %8810 = vst [vmem:[#allocation5_spill] sm:$0xff] %v7797_v59  ;;  %3986 = vmatmul.bf16.gmra.mxu3 %v3806_v40  ;;  %v2793_v40 = vsel %vm2768_vm4, %v2790_v18, %v2792_v4 }
 0x23f   : > { %4433 = vmatmul.bf16.gmra.mxu0 %v4294_v38  ;;  %v3347_v21 = vpop.f32.mrf.mxu2 }
 0x240   : > { %v3467_v63 = vadd.f32 %v3347_v21, %v3011_v2 }
 0x241   : > { %v2893_v15 = vpop.f32.mrf.mxu1  ;;  %v7821_v46 = vpop.f32.mrf.mxu3 }
 0x242   : > { %v4057_v7 = vadd.f32 %v7736_v1, %v3467_v63  ;;  %v3012_v29 = vadd.f32 %v2893_v15, %v7254_v52  ;;  %v3813_v1 = vrot.slane %v3811_v16, 3  ;;  %v4295_v52 = vrot.slane %v7816_v56, 3  ;;  %v4652_v16 = vld [vmem:[%s8751_s2 + $0x110] sm:$0xff] }
 0x243   : > { %4806 = vperm.xlu0 %6720, %v4648_v14   ;;  %v6549_v14 = vld [vmem:[%s6822_s8 + $0x78] sm:$0xff] }
 0x244   : > { %v4396_v60 = vpop.f32.mrf.mxu0  ;;  %v7823_v35 = vadd.f32 %v4394_v28, %v4057_v7  ;;  %v4649_v28 = vld [vmem:[%s8751_s2 + $0xf8] sm:$0xff]  ;;  %v3814_v33 = vor.u32 %v3813_v1, %v3810_v55  ;;  %v4296_v15 = vsel %vm4271_vm5, %v4293_v48, %v4295_v52 }
 0x245   : > { %4811 = vperm.xlu1 %6721, %v4649_v28  }
 0x246   : > { %8811 = vst [vmem:[#allocation11_spill] sm:$0xff] %v7823_v35 }
 0x247   : > { %v3349_v27 = vpop.f32.mrf.mxu2 }
 0x248   : > { %v3468_v2 = vadd.f32 %v3349_v27, %v3012_v29  ;;  %v7855_v29 = vld [vmem:[%s6822_s8 + $0x70] sm:$0xff] }
 0x249   : > { %v2896_v38 = vpop.f32.mrf.mxu1  ;;  %v7842_v37 = vpop.f32.mrf.mxu3  ;;  %v4644_v27 = vld [vmem:[%s8751_s2 + $0xd0] sm:$0xff] }
 0x24a   : > { %v4058_v21 = vadd.f32 %v7751_v23, %v3468_v2  ;;  %v3013_v63 = vadd.f32 %v2896_v38, %v7275_v9  ;;  %v3815_v23 = vsel %vm3681_vm3, %v3805_v24, %v3814_v33  ;;  %v6525_v9 = vld [vmem:[%s6822_s8 + $0x88] sm:$0xff]  ;;  %4786 = vperm.xlu2 %6722, %v4644_v27   ;;  %v2794_v38 = vrot.slane %v7855_v29, 2 }
 0x24b   : > { %4821 = vperm.xlu0 %6720, %v4651_v44   ;;  %v3817_v24 = vshrl.u32 %v6525_v9, 16  ;;  %v3820_v56 = vshll.u32 %v6525_v9, 16 }
 0x24c   : > { %v4399_v32 = vpop.f32.mrf.mxu0  ;;  %2935 = vmatmul.bf16.gmra.mxu1 %v2793_v40  ;;  %3391 = vmatmul.bf16.gmra.mxu2 %v3249_v39  ;;  %v7844_v18 = vadd.f32 %v4396_v60, %v4058_v21  ;;  %v7858_v60 = vld [vmem:[%s6822_s8 + $0x78] sm:$0xff]  ;;  %v2795_v41 = vsel %vm2768_vm4, %v2792_v4, %v2794_v38 }
 0x24d   : > { %4826 = vperm.xlu1 %6721, %v4652_v16   ;;  %v3250_v40 = vrot.slane %v7858_v60, 2  ;;  %v3819_v39 = vrot.slane %v3817_v24, 2  ;;  %v3822_v21 = vrot.slane %v3820_v56, 3  ;;  %v4647_v16 = vld [vmem:[%s8751_s2 + $0xe8] sm:$0xff]  ;;  %v6472_v60 = vld [vmem:[%s6822_s8 + $0x78] sm:$0xff]  ;;  %v6498_v24 = vld [vmem:[%s6822_s8 + $0x80] sm:$0xff] }
 0x24e   : > { %3991 = vmatmul.bf16.gmra.mxu3 %v3815_v23 }
 0x24f   : > { %4438 = vmatmul.bf16.gmra.mxu0 %v4296_v15  ;;  %v3352_v48 = vpop.f32.mrf.mxu2  ;;  %v3251_v23 = vsel %vm2768_vm4, %v3248_v22, %v3250_v40  ;;  %v3823_v9 = vor.u32 %v3822_v21, %v3819_v39  ;;  %v6550_v21 = vld [vmem:[%s6822_s8 + $0x80] sm:$0xff] }
 0x250   : > { %v3469_v12 = vadd.f32 %v3352_v48, %v3013_v63 }
 0x251   : > { %v2898_v7 = vpop.f32.mrf.mxu1  ;;  %v7866_v2 = vpop.f32.mrf.mxu3 }
 0x252   : > { %v4059_v25 = vadd.f32 %v7777_v36, %v3469_v12  ;;  %v3014_v55 = vadd.f32 %v2898_v7, %v7293_v11  ;;  %v4297_v36 = vrot.slane %v6549_v14, 3  ;;  %4801 = vperm.xlu2 %6722, %v4647_v16   ;;  %v8814_v14 = vld [vmem:[#allocation6_spill] sm:$0xff] }
 0x254   : > { %v4401_v1 = vpop.f32.mrf.mxu0  ;;  %v7868_v28 = vadd.f32 %v4399_v32, %v4059_v25  ;;  %v4298_v12 = vsel %vm4271_vm5, %v4295_v52, %v4297_v36 }
 0x256   : > { %8812 = vst [vmem:[#allocation12_spill] sm:$0xff] %v7868_v28 }
 0x257   : > { %v3354_v63 = vpop.f32.mrf.mxu2 }
 0x258   : > { %v3470_v11 = vadd.f32 %v3354_v63, %v3014_v55 }
 0x259   : > { %v2901_v15 = vpop.f32.mrf.mxu1  ;;  %v7880_v7 = vpop.f32.mrf.mxu3 }
 0x25a   : > { %v4060_v44 = vadd.f32 %v7795_v0, %v3470_v11  ;;  %v3015_v32 = vadd.f32 %v2901_v15, %v7306_v47  ;;  %v3824_v47 = vsel %vm3681_vm3, %v3814_v33, %v3823_v9  ;;  %v6526_v0 = vld [vmem:[%s6822_s8 + $0x90] sm:$0xff]  ;;  %v2796_v11 = vrot.slane %v6472_v60, 2 }
 0x25b   : > { %v3826_v56 = vshrl.u32 %v6526_v0, 16  ;;  %v3829_v25 = vshll.u32 %v6526_v0, 16  ;;  %v3252_v15 = vrot.slane %v6498_v24, 2  ;;  %v4653_v24 = vld [vmem:[%s8751_s2 + $0x118] sm:$0xff] }
 0x25c   : > { %v4404_v48 = vpop.f32.mrf.mxu0  ;;  %2940 = vmatmul.bf16.gmra.mxu1 %v2795_v41  ;;  %3396 = vmatmul.bf16.gmra.mxu2 %v3251_v23  ;;  %v7882_v4 = vadd.f32 %v4401_v1, %v4060_v44  ;;  %v4650_v1 = vld [vmem:[%s8751_s2 + $0x100] sm:$0xff]  ;;  %v4299_v44 = vrot.slane %v6550_v21, 3  ;;  %v2797_v16 = vsel %vm2768_vm4, %v2794_v38, %v2796_v11 }
 0x25d   : > { %4816 = vperm.xlu2 %6722, %v4650_v1   ;;  %v3828_v41 = vrot.slane %v3826_v56, 2  ;;  %v3831_v23 = vrot.slane %v3829_v25, 3 }
 0x25e   : > { %8813 = vst [vmem:[#allocation13_spill] sm:$0xff] %v7882_v4  ;;  %3996 = vmatmul.bf16.gmra.mxu3 %v3824_v47  ;;  %v3253_v47 = vsel %vm2768_vm4, %v3250_v40, %v3252_v15  ;;  %v4300_v60 = vsel %vm4271_vm5, %v4297_v36, %v4299_v44  ;;  %v6527_v40 = vld [vmem:[%s6822_s8 + $0x98] sm:$0xff] }
 0x25f   : > { %4443 = vmatmul.bf16.gmra.mxu0 %v4298_v12  ;;  %v3357_v22 = vpop.f32.mrf.mxu2  ;;  %v3832_v0 = vor.u32 %v3831_v23, %v3828_v41  ;;  %v3835_v21 = vshrl.u32 %v6527_v40, 16  ;;  %v3838_v1 = vshll.u32 %v6527_v40, 16  ;;  %v8817_v23 = vld [vmem:[#allocation8_spill] sm:$0xff] }
 0x260   : > { %v3471_v29 = vadd.f32 %v3357_v22, %v3015_v32 }
 0x261   : > { %v2903_v52 = vpop.f32.mrf.mxu1  ;;  %v7894_v33 = vpop.f32.mrf.mxu3 }
 0x262   : > { %v4061_v55 = vadd.f32 %v7821_v46, %v3471_v29  ;;  %v3016_v27 = vadd.f32 %v2903_v52, %v8814_v14  ;;  %v8816_v29 = vld [vmem:[#allocation7_spill] sm:$0xff] }
 0x263   : > { %v6473_v14 = vld [vmem:[%s6822_s8 + $0x80] sm:$0xff] }
 0x264   : > { %v4406_v39 = vpop.f32.mrf.mxu0  ;;  %v7896_v63 = vadd.f32 %v4404_v48, %v4061_v55 }
 0x265   : > { %4831 = vperm.xlu2 %6722, %v4653_v24  }
 0x266   : > { %8815 = vst [vmem:[#allocation6_spill] sm:$0xff] %v7896_v63 }
 0x267   : > { %v3359_v32 = vpop.f32.mrf.mxu2 }
 0x268   : > { %v3472_v46 = vadd.f32 %v3359_v32, %v3016_v27  ;;  %v6499_v27 = vld [vmem:[%s6822_s8 + $0x88] sm:$0xff] }
 0x269   : > { %v2906_v12 = vpop.f32.mrf.mxu1  ;;  %v7906_v56 = vpop.f32.mrf.mxu3 }
 0x26a   : > { %v4062_v22 = vadd.f32 %v7842_v37, %v3472_v46  ;;  %v3017_v52 = vadd.f32 %v2906_v12, %v8816_v29  ;;  %v3833_v37 = vsel %vm3681_vm3, %v3823_v9, %v3832_v0  ;;  %v6551_v12 = vld [vmem:[%s6822_s8 + $0x88] sm:$0xff]  ;;  %v2798_v9 = vrot.slane %v6473_v14, 2 }
 0x26b   : > { %v3840_v29 = vrot.slane %v3838_v1, 3 }
 0x26c   : > { %v4409_v48 = vpop.f32.mrf.mxu0  ;;  %2945 = vmatmul.bf16.gmra.mxu1 %v2797_v16  ;;  %3401 = vmatmul.bf16.gmra.mxu2 %v3253_v47  ;;  %v7908_v38 = vadd.f32 %v4406_v39, %v4062_v22  ;;  %v3254_v47 = vrot.slane %v6499_v27, 2  ;;  %v3837_v22 = vrot.slane %v3835_v21, 2  ;;  %v2799_v40 = vsel %vm2768_vm4, %v2796_v11, %v2798_v9  ;;  %v3571_v27 = vld [vmem:[%s6822_s8 + $0xa0] sm:$0x7] }
 0x26d   : > { %v3661_v1 = vunpack.c.l.b16 %v3571_v27 }
 0x26e   : > { %4001 = vmatmul.bf16.gmra.mxu3 %v3833_v37 }
 0x26f   : > { %4448 = vmatmul.bf16.gmra.mxu0 %v4300_v60  ;;  %v3362_v25 = vpop.f32.mrf.mxu2 }
 0x270   : > { %v3473_v55 = vadd.f32 %v3362_v25, %v3017_v52  ;;  %v4301_v52 = vrot.slane %v6551_v12, 3  ;;  %v3841_v25 = vor.u32 %v3840_v29, %v3837_v22  ;;  %v6474_v22 = vld [vmem:[%s6822_s8 + $0x88] sm:$0xff]  ;;  %v6500_v29 = vld [vmem:[%s6822_s8 + $0x90] sm:$0xff] }
 0x271   : > { %v2908_v36 = vpop.f32.mrf.mxu1  ;;  %v7917_v39 = vpop.f32.mrf.mxu3 }
 0x272   : > { %v4063_v41 = vadd.f32 %v7866_v2, %v3473_v55  ;;  %v3018_v32 = vadd.f32 %v2908_v36, %v8817_v23  ;;  %v3255_v2 = vsel %vm2768_vm4, %v3252_v15, %v3254_v47  ;;  %v8819_v36 = vld [vmem:[#allocation9_spill] sm:$0xff]  ;;  %v4302_v14 = vsel %vm4271_vm5, %v4299_v44, %v4301_v52 }
 0x273   : > { %v3842_v15 = vsel %vm3681_vm3, %v3832_v0, %v3841_v25  ;;  %v2800_v0 = vrot.slane %v6474_v22, 2 }
 0x274   : > { %v4411_v46 = vpop.f32.mrf.mxu0  ;;  %v7919_v16 = vadd.f32 %v4409_v48, %v4063_v41 }
 0x276   : > { %8818 = vst [vmem:[#allocation7_spill] sm:$0xff] %v7919_v16 }
 0x277   : > { %v3364_v60 = vpop.f32.mrf.mxu2 }
 0x278   : > { %v3474_v24 = vadd.f32 %v3364_v60, %v3018_v32 }
 0x279   : > { %v2911_v37 = vpop.f32.mrf.mxu1  ;;  %v7927_v21 = vpop.f32.mrf.mxu3 }
 0x27a   : > { %v4064_v55 = vadd.f32 %v7880_v7, %v3474_v24  ;;  %v3019_v23 = vadd.f32 %v2911_v37, %v8819_v36  ;;  %v3680_v7 = vpack.c.b16 %v3661_v1, %v3661_v1  ;;  %v8821_v37 = vld [vmem:[#allocation10_spill] sm:$0xff]  ;;  %v6552_v36 = vld [vmem:[%s6822_s8 + $0x90] sm:$0xff] }
 0x27b   : > { %v4303_v1 = vrot.slane %v6552_v36, 3  ;;  %v6553_v36 = vld [vmem:[%s6822_s8 + $0x98] sm:$0xff] }
 0x27c   : > { %v4414_v48 = vpop.f32.mrf.mxu0  ;;  %2950 = vmatmul.bf16.gmra.mxu1 %v2799_v40  ;;  %3406 = vmatmul.bf16.gmra.mxu2 %v3255_v2  ;;  %v7929_v11 = vadd.f32 %v4411_v46, %v4064_v55  ;;  %v3844_v44 = vshrl.u32 %v3680_v7, 16  ;;  %v3847_v60 = vshll.u32 %v3680_v7, 16  ;;  %v2801_v7 = vsel %vm2768_vm4, %v2798_v9, %v2800_v0 }
 0x27d   : > { %v4304_v22 = vsel %vm4271_vm5, %v4301_v52, %v4303_v1 }
 0x27e   : > { %8820 = vst [vmem:[#allocation8_spill] sm:$0xff] %v7929_v11  ;;  %4006 = vmatmul.bf16.gmra.mxu3 %v3842_v15  ;;  %v3846_v27 = vrot.slane %v3844_v44, 2 }
 0x27f   : > { %4453 = vmatmul.bf16.gmra.mxu0 %v4302_v14  ;;  %v3367_v41 = vpop.f32.mrf.mxu2  ;;  %v3256_v14 = vrot.slane %v6500_v29, 2 }
 0x280   : > { %v3475_v32 = vadd.f32 %v3367_v41, %v3019_v23  ;;  %v3849_v23 = vrot.slane %v3847_v60, 3 }
 0x281   : > { %v2913_v12 = vpop.f32.mrf.mxu1  ;;  %v7937_v46 = vpop.f32.mrf.mxu3 }
 0x282   : > { %v4065_v24 = vadd.f32 %v7894_v33, %v3475_v32  ;;  %v3020_v40 = vadd.f32 %v2913_v12, %v8821_v37  ;;  %v3257_v33 = vsel %vm2768_vm4, %v3254_v47, %v3256_v14  ;;  %v3850_v32 = vor.u32 %v3849_v23, %v3846_v27 }
 0x284   : > { %v4416_v2 = vpop.f32.mrf.mxu0  ;;  %v7939_v55 = vadd.f32 %v4414_v48, %v4065_v24  ;;  %v3851_v9 = vsel %vm3681_vm3, %v3841_v25, %v3850_v32 }
 0x286   : > { %8822 = vst [vmem:[#allocation9_spill] sm:$0xff] %v7939_v55 }
 0x287   : > { %v3369_v15 = vpop.f32.mrf.mxu2 }
 0x288   : > { %v3476_v41 = vadd.f32 %v3369_v15, %v3020_v40  ;;  %v6475_v40 = vld [vmem:[%s6822_s8 + $0x90] sm:$0xff]  ;;  %v4305_v15 = vrot.slane %v6553_v36, 3 }
 0x289   : > { %v2916_v45 = vpop.f32.mrf.mxu1  ;;  %v3969_v29 = vpop.f32.mrf.mxu3  ;;  %v2802_v23 = vrot.slane %v6475_v40, 2 }
 0x28a   : > { %v4066_v12 = vadd.f32 %v7906_v56, %v3476_v41  ;;  %v3021_v48 = vadd.f32 %v2916_v45, %v7415_v34  ;;  %v6501_v56 = vld [vmem:[%s6822_s8 + $0x98] sm:$0xff] }
 0x28b   : > { %v3258_v25 = vrot.slane %v6501_v56, 2  ;;  %v2803_v32 = vsel %vm2768_vm4, %v2800_v0, %v2802_v23 }
 0x28c   : > { %v4419_v24 = vpop.f32.mrf.mxu0  ;;  %2955 = vmatmul.bf16.gmra.mxu1 %v2801_v7  ;;  %3411 = vmatmul.bf16.gmra.mxu2 %v3257_v33  ;;  %v7946_v44 = vadd.f32 %v4416_v2, %v4066_v12 }
 0x28e   : > { %4011 = vmatmul.bf16.gmra.mxu3 %v3851_v9  ;;  %v2658_v9 = vld [vmem:[%s6822_s8 + $0x98] sm:$0x3] }
 0x28f   : > { %4458 = vmatmul.bf16.gmra.mxu0 %v4304_v22  ;;  %v3372_v47 = vpop.f32.mrf.mxu2  ;;  %v4306_v22 = vsel %vm4271_vm5, %v4303_v1, %v4305_v15  ;;  %v2748_v40 = vunpack.c.l.b16 %v2658_v9 }
 0x290   : > { %v3477_v60 = vadd.f32 %v3372_v47, %v3021_v48  ;;  %v4161_v47 = vld [vmem:[%s6822_s8 + $0xa0] sm:$0x7] }
 0x291   : > { %v2918_v37 = vpop.f32.mrf.mxu1  ;;  %v3972_v27 = vpop.f32.mrf.mxu3  ;;  %v4251_v56 = vunpack.c.l.b16 %v4161_v47 }
 0x292   : > { %v4067_v34 = vadd.f32 %v7917_v39, %v3477_v60  ;;  %v3022_v45 = vadd.f32 %v2918_v37, %v7429_v58  ;;  %v3259_v39 = vsel %vm2768_vm4, %v3256_v14, %v3258_v25 }
 0x294   : > { %v4421_v52 = vpop.f32.mrf.mxu0  ;;  %v7954_v2 = vadd.f32 %v4419_v24, %v4067_v34  ;;  %v3115_v24 = vld [vmem:[%s6822_s8 + $0xa0] sm:$0x3]  ;;  %s6694_s8 = smul.u32 144, %s8920_s12 }
 0x295   : > { %v3205_v0 = vunpack.c.l.b16 %v3115_v24 }
 0x296   : > { %s8640_s17 = scalar_lea.vmem %s8752_s3, %s6694_s8 }
 0x297   : > { %v3374_v41 = vpop.f32.mrf.mxu2 }
 0x298   : > { %v3478_v7 = vadd.f32 %v3374_v41, %v3022_v45  ;;  %v2767_v45 = vpack.c.b16 %v2748_v40, %v2748_v40 }
 0x299   : > { %v2921_v33 = vpop.f32.mrf.mxu1  ;;  %v3974_v60 = vpop.f32.mrf.mxu3 }
 0x29a   : > { %v4068_v58 = vadd.f32 %v7927_v21, %v3478_v7  ;;  %v3023_v12 = vadd.f32 %v2921_v33, %v7438_v53  ;;  %v3224_v53 = vpack.c.b16 %v3205_v0, %v3205_v0  ;;  %v4270_v7 = vpack.c.b16 %v4251_v56, %v4251_v56 }
 0x29c   : > { %v4424_v48 = vpop.f32.mrf.mxu0  ;;  %2960 = vmatmul.bf16.gmra.mxu1 %v2803_v32  ;;  %3416 = vmatmul.bf16.gmra.mxu2 %v3259_v39  ;;  %v7964_v37 = vadd.f32 %v4421_v52, %v4068_v58  ;;  %v2804_v52 = vrot.slane %v2767_v45, 2  ;;  %v3260_v39 = vrot.slane %v3224_v53, 2  ;;  %v4307_v58 = vrot.slane %v4270_v7, 3 }
 0x29e   : > { %v3261_v47 = vsel %vm2768_vm4, %v3258_v25, %v3260_v39 }
 0x29f   : > { %4463 = vmatmul.bf16.gmra.mxu0 %v4306_v22  ;;  %v3377_v14 = vpop.f32.mrf.mxu2 }
 0x2a0   : > { %v3479_v34 = vadd.f32 %v3377_v14, %v3023_v12  ;;  %v2805_v12 = vsel %vm2768_vm4, %v2802_v23, %v2804_v52 }
 0x2a1   : > { %v2923_v21 = vpop.f32.mrf.mxu1  ;;  %v3977_v33 = vpop.f32.mrf.mxu3 }
 0x2a2   : > { %v4069_v36 = vadd.f32 %v7937_v46, %v3479_v34  ;;  %v3024_v1 = vadd.f32 %v2923_v21, %v7451_v17  ;;  %v4308_v17 = vsel %vm4271_vm5, %v4305_v15, %v4307_v58 }
 0x2a4   : > { %v4426_v41 = vpop.f32.mrf.mxu0  ;;  %v7968_v32 = vadd.f32 %v4424_v48, %v4069_v36 }
 0x2a6   : > { %8823 = vst [vmem:[#allocation10_spill] sm:$0xff] %v7968_v32 }
 0x2a7   : > { %v3379_v22 = vpop.f32.mrf.mxu2 }
 0x2a8   : > { %v3480_v9 = vadd.f32 %v3379_v22, %v3024_v1 }
 0x2a9   : > { %v2926_v24 = vpop.f32.mrf.mxu1  ;;  %v3979_v56 = vpop.f32.mrf.mxu3 }
 0x2aa   : > { %v4070_v40 = vadd.f32 %v3969_v29, %v3480_v9  ;;  %v3025_v46 = vadd.f32 %v2926_v24, %v7479_v13 }
 0x2ac   : > { %v4429_v0 = vpop.f32.mrf.mxu0  ;;  %2965 = vmatmul.bf16.gmra.mxu1 %v2805_v12  ;;  %3421 = vmatmul.bf16.gmra.mxu2 %v3261_v47  ;;  %v7974_v48 = vadd.f32 %v4426_v41, %v4070_v40  ;;  %v7985_v47 = vpop.permute.xlu0 %4656 }
 0x2ad   : > { %8826 = vst [vmem:[#allocation16_spill] sm:$0xff] %v7985_v47  ;;  %v7987_v40 = vpop.permute.xlu1 %4666 }
 0x2ae   : > { %8824 = vst [vmem:[#allocation14_spill] sm:$0xff] %v7974_v48 }
 0x2af   : > { %4468 = vmatmul.bf16.gmra.mxu0 %v4308_v17  ;;  %v3382_v14 = vpop.f32.mrf.mxu2  ;;  %8827 = vst [vmem:[#allocation17_spill] sm:$0xff] %v7987_v40 }
 0x2b0   : > { %v3481_v34 = vadd.f32 %v3382_v14, %v3025_v46 }
 0x2b1   : > { %v2928_v21 = vpop.f32.mrf.mxu1  ;;  %v3982_v13 = vpop.f32.mrf.mxu3 }
 0x2b2   : > { %v4071_v45 = vadd.f32 %v3972_v27, %v3481_v34  ;;  %v3026_v23 = vadd.f32 %v2928_v21, %v7493_v51 }
 0x2b4   : > { %v4431_v53 = vpop.f32.mrf.mxu0  ;;  %v7977_v25 = vadd.f32 %v4429_v0, %v4071_v45  ;;  %v7989_v0 = vpop.permute.xlu2 %4676 }
 0x2b5   : > { %8828 = vst [vmem:[#allocation18_spill] sm:$0xff] %v7989_v0  ;;  %v7994_v45 = vpop.permute.xlu0 %4661 }
 0x2b6   : > { %8825 = vst [vmem:[#allocation15_spill] sm:$0xff] %v7977_v25 }
 0x2b7   : > { %v3384_v29 = vpop.f32.mrf.mxu2  ;;  %8829 = vst [vmem:[#allocation19_spill] sm:$0xff] %v7994_v45 }
 0x2b8   : > { %v3482_v36 = vadd.f32 %v3384_v29, %v3026_v23  ;;  %v7996_v23 = vpop.permute.xlu1 %4671 }
 0x2b9   : > { %v2931_v1 = vpop.f32.mrf.mxu1  ;;  %v3984_v9 = vpop.f32.mrf.mxu3  ;;  %8830 = vst [vmem:[#allocation20_spill] sm:$0xff] %v7996_v23 }
 0x2ba   : > { %v4072_v15 = vadd.f32 %v3974_v60, %v3482_v36  ;;  %v3027_v7 = vadd.f32 %v2931_v1, %v7508_v49 }
 0x2bc   : > { %v4434_v41 = vpop.f32.mrf.mxu0  ;;  %v7980_v52 = vadd.f32 %v4431_v53, %v4072_v15 }
 0x2bf   : > { %v3387_v39 = vpop.f32.mrf.mxu2 }
 0x2c0   : > { %v3483_v58 = vadd.f32 %v3387_v39, %v3027_v7  ;;  %v7999_v7 = vpop.permute.xlu2 %4681  ;;  %v8005_v39 = vpop.permute.xlu0 %4686 }
 0x2c1   : > { %v2933_v22 = vpop.f32.mrf.mxu1  ;;  %v3987_v21 = vpop.f32.mrf.mxu3  ;;  %8831 = vst [vmem:[#allocation21_spill] sm:$0xff] %v7999_v7 }
 0x2c2   : > { %v4073_v27 = vadd.f32 %v3977_v33, %v3483_v58  ;;  %v3028_v51 = vadd.f32 %v2933_v22, %v7520_v50  ;;  %8832 = vst [vmem:[#allocation22_spill] sm:$0xff] %v8005_v39  ;;  %v8007_v58 = vpop.permute.xlu1 %4691 }
 0x2c3   : > { %8833 = vst [vmem:[#allocation23_spill] sm:$0xff] %v8007_v58 }
 0x2c4   : > { %v4436_v24 = vpop.f32.mrf.mxu0  ;;  %v7983_v12 = vadd.f32 %v4434_v41, %v4073_v27 }
 0x2c7   : > { %v3389_v60 = vpop.f32.mrf.mxu2 }
 0x2c8   : > { %v3484_v46 = vadd.f32 %v3389_v60, %v3028_v51  ;;  %v8010_v60 = vpop.permute.xlu2 %4696 }
 0x2c9   : > { %v2936_v49 = vpop.f32.mrf.mxu1  ;;  %8834 = vst [vmem:[#allocation24_spill] sm:$0xff] %v8010_v60 }
 0x2ca   : > { %v4074_v17 = vadd.f32 %v3979_v56, %v3484_v46  ;;  %v3029_v14 = vadd.f32 %v2936_v49, %v7531_v54  ;;  %v8003_v54 = vpop.f32.mrf.mxu3 }
 0x2cc   : > { %v4439_v34 = vpop.f32.mrf.mxu0  ;;  %v7992_v33 = vadd.f32 %v4436_v24, %v4074_v17  ;;  %v8016_v17 = vpop.permute.xlu0 %4701 }
 0x2cd   : > { %8835 = vst [vmem:[#allocation25_spill] sm:$0xff] %v8016_v17 }
 0x2cf   : > { %v3392_v50 = vpop.f32.mrf.mxu2 }
 0x2d0   : > { %v3485_v53 = vadd.f32 %v3392_v50, %v3029_v14  ;;  %v8018_v14 = vpop.permute.xlu1 %4706 }
 0x2d1   : > { %v2938_v29 = vpop.f32.mrf.mxu1  ;;  %8836 = vst [vmem:[#allocation26_spill] sm:$0xff] %v8018_v14 }
 0x2d2   : > { %v4075_v36 = vadd.f32 %v3982_v13, %v3485_v53  ;;  %v3030_v1 = vadd.f32 %v2938_v29, %v7540_v26  ;;  %v8014_v49 = vpop.f32.mrf.mxu3 }
 0x2d4   : > { %v4441_v15 = vpop.f32.mrf.mxu0  ;;  %v8001_v56 = vadd.f32 %v4439_v34, %v4075_v36  ;;  %v4835_v36 = vmul.f32 %v7994_v45, %v7753_v62 }
 0x2d7   : > { %v3394_v41 = vpop.f32.mrf.mxu2 }
 0x2d8   : > { %v3486_v22 = vadd.f32 %v3394_v41, %v3030_v1  ;;  %v4834_v1 = vmul.f32 %v7985_v47, %v7738_v31  ;;  %v4839_v47 = vmul.f32 %v7999_v7, %v7844_v18 }
 0x2d9   : > { %v2941_v27 = vpop.f32.mrf.mxu1 }
 0x2da   : > { %v4076_v51 = vadd.f32 %v3984_v9, %v3486_v22  ;;  %v3031_v24 = vadd.f32 %v2941_v27, %v7560_v8  ;;  %v8024_v9 = vpop.permute.xlu2 %4711  ;;  %v8036_v22 = vpop.permute.xlu0 %4716  ;;  %v4870_v27 = vadd.f32 %v4835_v36, %v4834_v1  ;;  %v4840_v36 = vmul.f32 %v8005_v39, %v7868_v28 }
 0x2db   : > { %8837 = vst [vmem:[#allocation27_spill] sm:$0xff] %v8024_v9 }
 0x2dc   : > { %v4444_v13 = vpop.f32.mrf.mxu0  ;;  %v8012_v26 = vadd.f32 %v4441_v15, %v4076_v51  ;;  %v4836_v15 = vmul.f32 %v7987_v40, %v7779_v42  ;;  %8838 = vst [vmem:[#allocation28_spill] sm:$0xff] %v8036_v22  ;;  %v4837_v51 = vmul.f32 %v7996_v23, %v7797_v59 }
 0x2df   : > { %v3397_v46 = vpop.f32.mrf.mxu2 }
 0x2e0   : > { %v3487_v34 = vadd.f32 %v3397_v46, %v3031_v24 }
 0x2e1   : > { %v8020_v50 = vpop.f32.mrf.mxu1 }
 0x2e2   : > { %v4077_v53 = vadd.f32 %v3987_v21, %v3487_v34  ;;  %v8038_v21 = vpop.permute.xlu1 %4721  ;;  %v4871_v34 = vadd.f32 %v4870_v27, %v4836_v15  ;;  %v8048_v40 = vpop.permute.xlu2 %4726  ;;  %v4841_v15 = vmul.f32 %v8007_v58, %v7882_v4  ;;  %v4844_v58 = vmul.f32 %v8018_v14, %v7919_v16 }
 0x2e3   : > { %8839 = vst [vmem:[#allocation29_spill] sm:$0xff] %v8038_v21  ;;  %v8054_v23 = vpop.permute.xlu0 %4731  ;;  %v4847_v14 = vmul.f32 %v8038_v21, %v7946_v44 }
 0x2e4   : > { %v8022_v29 = vpop.f32.mrf.mxu0  ;;  %v8026_v8 = vadd.f32 %v4444_v13, %v4077_v53  ;;  %v8042_v13 = vpop.f32.mrf.mxu3  ;;  %v4838_v53 = vmul.f32 %v7989_v0, %v7823_v35  ;;  %8840 = vst [vmem:[#allocation30_spill] sm:$0xff] %v8048_v40  ;;  %v4872_v45 = vadd.f32 %v4871_v34, %v4837_v51  ;;  %v4842_v34 = vmul.f32 %v8010_v60, %v7896_v63 }
 0x2e5   : > { %8841 = vst [vmem:[#allocation31_spill] sm:$0xff] %v8054_v23  ;;  %v4849_v16 = vmul.f32 %v8054_v23, %v7964_v37 }
 0x2e6   : > { %v4873_v42 = vadd.f32 %v4872_v45, %v4838_v53 }
 0x2e7   : > { %v8034_v41 = vpop.f32.mrf.mxu2 }
 0x2e8   : > { %v4874_v59 = vadd.f32 %v4873_v42, %v4839_v47  ;;  %v4843_v42 = vmul.f32 %v8016_v17, %v7908_v38 }
 0x2e9   : > { %v2946_v24 = vpop.f32.mrf.mxu1 }
 0x2ea   : > { %v8058_v27 = vpop.permute.xlu1 %4736  ;;  %v4875_v51 = vadd.f32 %v4874_v59, %v4840_v36  ;;  %v8066_v53 = vpop.permute.xlu2 %4741  ;;  %v4845_v59 = vmul.f32 %v8024_v9, %v7929_v11 }
 0x2eb   : > { %8842 = vst [vmem:[#allocation32_spill] sm:$0xff] %v8058_v27  ;;  %v8072_v4 = vpop.permute.xlu0 %4746 }
 0x2ec   : > { %v8044_v46 = vpop.f32.mrf.mxu0  ;;  %v8064_v45 = vpop.f32.mrf.mxu3  ;;  %8843 = vst [vmem:[#allocation33_spill] sm:$0xff] %v8066_v53  ;;  %v4876_v39 = vadd.f32 %v4875_v51, %v4841_v15  ;;  %v4846_v51 = vmul.f32 %v8036_v22, %v7939_v55 }
 0x2ed   : > { %8844 = vst [vmem:[#allocation34_spill] sm:$0xff] %v8072_v4 }
 0x2ee   : > { %v4877_v47 = vadd.f32 %v4876_v39, %v4842_v34 }
 0x2ef   : > { %v3402_v1 = vpop.f32.mrf.mxu2 }
 0x2f0   : > { %v4878_v28 = vadd.f32 %v4877_v47, %v4843_v42  ;;  %v4848_v47 = vmul.f32 %v8048_v40, %v7954_v2 }
 0x2f1   : > { %v2948_v0 = vpop.f32.mrf.mxu1 }
 0x2f2   : > { %v8076_v36 = vpop.permute.xlu1 %4751  ;;  %v4879_v15 = vadd.f32 %v4878_v28, %v4844_v58  ;;  %v8082_v39 = vpop.permute.xlu2 %4756 }
 0x2f3   : > { %v8090_v28 = vpop.permute.xlu0 %4761 }
 0x2f4   : > { %v8060_v35 = vpop.f32.mrf.mxu0  ;;  %v4880_v34 = vadd.f32 %v4879_v15, %v4845_v59  ;;  %v3999_v17 = vpop.f32.mrf.mxu3  ;;  %v4850_v59 = vmul.f32 %v8058_v27, %v7968_v32  ;;  %v4853_v27 = vmul.f32 %v8076_v36, %v7980_v52 }
 0x2f6   : > { %v4881_v42 = vadd.f32 %v4880_v34, %v4846_v51  ;;  %v4851_v34 = vmul.f32 %v8066_v53, %v7974_v48 }
 0x2f7   : > { %v3404_v7 = vpop.f32.mrf.mxu2 }
 0x2f8   : > { %v4882_v11 = vadd.f32 %v4881_v42, %v4847_v14  ;;  %v4852_v42 = vmul.f32 %v8072_v4, %v7977_v25  ;;  %v3034_v25 = vadd.f32 %v2948_v0, %v7604_v6 }
 0x2f9   : > { %v2951_v60 = vpop.f32.mrf.mxu1 }
 0x2fa   : > { %v4883_v55 = vadd.f32 %v4882_v11, %v4848_v47  ;;  %v8096_v15 = vpop.permute.xlu1 %4766  ;;  %v8100_v40 = vpop.permute.xlu2 %4771  ;;  %v3032_v11 = vadd.f32 %v8020_v50, %v7578_v10  ;;  %v4855_v50 = vmul.f32 %v8090_v28, %v7992_v33 }
 0x2fc   : > { %v8078_v63 = vpop.f32.mrf.mxu0  ;;  %v4884_v51 = vadd.f32 %v4883_v55, %v4849_v16  ;;  %v4002_v21 = vpop.f32.mrf.mxu3  ;;  %v3488_v16 = vadd.f32 %v8034_v41, %v3032_v11  ;;  %v3033_v55 = vadd.f32 %v2946_v24, %v7592_v19  ;;  %v3035_v19 = vadd.f32 %v2951_v60, %v7618_v3 }
 0x2fe   : > { %v4885_v14 = vadd.f32 %v4884_v51, %v4850_v59  ;;  %v4854_v59 = vmul.f32 %v8082_v39, %v7983_v12  ;;  %v8112_v51 = vpop.permute.xlu0 %4776  ;;  %v3489_v4 = vadd.f32 %v3402_v1, %v3033_v55  ;;  %v4078_v41 = vadd.f32 %v8003_v54, %v3488_v16 }
 0x2ff   : > { %v3407_v9 = vpop.f32.mrf.mxu2 }
 0x300   : > { %v4886_v47 = vadd.f32 %v4885_v14, %v4851_v34  ;;  %v3490_v14 = vadd.f32 %v3404_v7, %v3034_v25  ;;  %v4079_v6 = vadd.f32 %v8014_v49, %v3489_v4  ;;  %v8130_v3 = vadd.f32 %v8022_v29, %v4078_v41 }
 0x301   : > { %v2953_v58 = vpop.f32.mrf.mxu1  ;;  %v4858_v4 = vmul.f32 %v8112_v51, %v8026_v8 }
 0x302   : > { %v4887_v48 = vadd.f32 %v4886_v47, %v4852_v42  ;;  %v8117_v34 = vpop.permute.xlu1 %4781  ;;  %v4856_v42 = vmul.f32 %v8096_v15, %v8001_v56  ;;  %v8123_v47 = vpop.permute.xlu2 %4786  ;;  %v3036_v0 = vadd.f32 %v2953_v58, %v7630_v61  ;;  %v4080_v7 = vadd.f32 %v8042_v13, %v3490_v14 }
 0x303   : > { %v8137_v61 = vadd.f32 %v8044_v46, %v4079_v6  ;;  %v4859_v13 = vmul.f32 %v8117_v34, %v8130_v3 }
 0x304   : > { %v8092_v22 = vpop.f32.mrf.mxu0  ;;  %v4888_v10 = vadd.f32 %v4887_v48, %v4853_v27  ;;  %v3491_v48 = vadd.f32 %v3407_v9, %v3035_v19  ;;  %v4857_v27 = vmul.f32 %v8100_v40, %v8012_v26  ;;  %v4004_v25 = vpop.f32.mrf.mxu3 }
 0x306   : > { %v4889_v24 = vadd.f32 %v4888_v10, %v4854_v59  ;;  %v4081_v9 = vadd.f32 %v8064_v45, %v3491_v48  ;;  %v8140_v59 = vpop.permute.xlu0 %4791  ;;  %v4860_v45 = vmul.f32 %v8123_v47, %v8137_v61 }
 0x307   : > { %v3409_v23 = vpop.f32.mrf.mxu2 }
 0x308   : > { %v4890_v1 = vadd.f32 %v4889_v24, %v4855_v50  ;;  %v3492_v60 = vadd.f32 %v3409_v23, %v3036_v0  ;;  %v8145_v23 = vadd.f32 %v8060_v35, %v4080_v7  ;;  %v8153_v41 = vadd.f32 %v8078_v63, %v4081_v9 }
 0x309   : > { %v2956_v32 = vpop.f32.mrf.mxu1 }
 0x30a   : > { %v3037_v16 = vadd.f32 %v2956_v32, %v7644_v57  ;;  %v4891_v55 = vadd.f32 %v4890_v1, %v4856_v42  ;;  %v4082_v57 = vadd.f32 %v3999_v17, %v3492_v60  ;;  %v8148_v10 = vpop.permute.xlu1 %4796  ;;  %v4861_v35 = vmul.f32 %v8140_v59, %v8145_v23 }
 0x30b   : > { %v4862_v0 = vmul.f32 %v8148_v10, %v8153_v41 }
 0x30c   : > { %v4459_v53 = vpop.f32.mrf.mxu0  ;;  %v4892_v29 = vadd.f32 %v4891_v55, %v4857_v27  ;;  %v8158_v17 = vadd.f32 %v8092_v22, %v4082_v57  ;;  %v4007_v6 = vpop.f32.mrf.mxu3 }
 0x30e   : > { %v4893_v50 = vadd.f32 %v4892_v29, %v4858_v4  ;;  %v8169_v22 = vpop.permute.xlu0 %4806 }
 0x30f   : > { %v3412_v11 = vpop.f32.mrf.mxu2 }
 0x310   : > { %v3493_v58 = vadd.f32 %v3412_v11, %v3037_v16  ;;  %v4894_v42 = vadd.f32 %v4893_v50, %v4859_v13  ;;  %v8160_v11 = vpop.permute.xlu2 %4801 }
 0x311   : > { %v2958_v54 = vpop.f32.mrf.mxu1  ;;  %v4863_v27 = vmul.f32 %v8160_v11, %v8158_v17 }
 0x312   : > { %v3038_v32 = vadd.f32 %v2958_v54, %v7656_v43  ;;  %v4083_v14 = vadd.f32 %v4002_v21, %v3493_v58  ;;  %v4895_v48 = vadd.f32 %v4894_v42, %v4860_v45  ;;  %v8173_v4 = vpop.permute.xlu1 %4811 }
 0x314   : > { %v4461_v49 = vpop.f32.mrf.mxu0  ;;  %v8164_v63 = vadd.f32 %v4459_v53, %v4083_v14  ;;  %v4896_v1 = vadd.f32 %v4895_v48, %v4861_v35 }
 0x316   : > { %v4897_v60 = vadd.f32 %v4896_v1, %v4862_v0  ;;  %v4864_v16 = vmul.f32 %v8169_v22, %v8164_v63  ;;  %v4822_v48 = vpop.permute.xlu0 %4821 }
 0x317   : > { %v3414_v46 = vpop.f32.mrf.mxu2 }
 0x318   : > { %v3494_v19 = vadd.f32 %v3414_v46, %v3038_v32  ;;  %v4898_v9 = vadd.f32 %v4897_v60, %v4863_v27 }
 0x319   : > { %v2961_v24 = vpop.f32.mrf.mxu1 }
 0x31a   : > { %v4084_v43 = vadd.f32 %v4004_v25, %v3494_v19  ;;  %v3039_v7 = vadd.f32 %v2961_v24, %v7670_v20  ;;  %v4899_v13 = vadd.f32 %v4898_v9, %v4864_v16  ;;  %v4009_v20 = vpop.f32.mrf.mxu3  ;;  %v8845_v9 = vld [vmem:[#allocation3_spill] sm:$0xff] }
 0x31c   : > { %v4464_v21 = vpop.f32.mrf.mxu0  ;;  %v4541_v54 = vadd.f32 %v4461_v49, %v4084_v43  ;;  %v8176_v49 = vpop.permute.xlu2 %4816 }
 0x31e   : > { %v4865_v58 = vmul.f32 %v8173_v4, %v4541_v54 }
 0x31f   : > { %v3417_v25 = vpop.f32.mrf.mxu2 }
 0x320   : > { %v3495_v55 = vadd.f32 %v3417_v25, %v3039_v7  ;;  %v4900_v32 = vadd.f32 %v4899_v13, %v4865_v58 }
 0x321   : > { %v2963_v53 = vpop.f32.mrf.mxu1 }
 0x322   : > { %v4085_v29 = vadd.f32 %v4007_v6, %v3495_v55  ;;  %v3040_v46 = vadd.f32 %v2963_v53, %v7682_v30  ;;  %v4827_v30 = vpop.permute.xlu1 %4826 }
 0x324   : > { %v4542_v57 = vadd.f32 %v4464_v21, %v4085_v29  ;;  %v4466_v45 = vpop.f32.mrf.mxu0  ;;  %v4012_v21 = vpop.f32.mrf.mxu3 }
 0x326   : > { %v4866_v50 = vmul.f32 %v8176_v49, %v4542_v57 }
 0x327   : > { %v3419_v14 = vpop.f32.mrf.mxu2 }
 0x328   : > { %v4901_v19 = vadd.f32 %v4900_v32, %v4866_v50  ;;  %v3496_v24 = vadd.f32 %v3419_v14, %v3040_v46 }
 0x329   : > { %v2966_v42 = vpop.f32.mrf.mxu1 }
 0x32a   : > { %v4086_v35 = vadd.f32 %v4009_v20, %v3496_v24  ;;  %v3041_v6 = vadd.f32 %v2966_v42, %v7702_v5  ;;  %v4832_v5 = vpop.permute.xlu2 %4831 }
 0x32c   : > { %v4543_v43 = vadd.f32 %v4466_v45, %v4086_v35  ;;  %v4469_v25 = vpop.f32.mrf.mxu0  ;;  %v4014_v32 = vpop.f32.mrf.mxu3 }
 0x32e   : > { %v4867_v0 = vmul.f32 %v4822_v48, %v4543_v43 }
 0x32f   : > { %v3422_v1 = vpop.f32.mrf.mxu2 }
 0x330   : > { %v4902_v27 = vadd.f32 %v4901_v19, %v4867_v0  ;;  %v3497_v7 = vadd.f32 %v3422_v1, %v3041_v6 }
 0x331   : > { %v2968_v16 = vpop.f32.mrf.mxu1 }
 0x332   : > { %v4087_v60 = vadd.f32 %v4012_v21, %v3497_v7  ;;  %v3042_v58 = vadd.f32 %v2968_v16, %v8845_v9  ;;  %v8846_v9 = vld [vmem:[#allocation4_spill] sm:$0xff] }
 0x334   : > { %v4544_v55 = vadd.f32 %v4469_v25, %v4087_v60  ;;  %v4471_v46 = vpop.f32.mrf.mxu0 }
 0x336   : > { %v4868_v53 = vmul.f32 %v4827_v30, %v4544_v55 }
 0x337   : > { %v3424_v29 = vpop.f32.mrf.mxu2 }
 0x338   : > { %v4903_v13 = vadd.f32 %v4902_v27, %v4868_v53  ;;  %v3498_v20 = vadd.f32 %v3424_v29, %v3042_v58  ;;  %v8847_v29 = vld [vmem:[#allocation16_spill] sm:$0xff] }
 0x33a   : > { %v4088_v50 = vadd.f32 %v4014_v32, %v3498_v20  ;;  %v8849_v20 = vld [vmem:[#allocation5_spill] sm:$0xff] }
 0x33c   : > { %v4545_v45 = vadd.f32 %v4471_v46, %v4088_v50  ;;  %v8852_v50 = vld [vmem:[#allocation17_spill] sm:$0xff] }
 0x33e   : > { %v4869_v14 = vmul.f32 %v4832_v5, %v4545_v45 }
 0x340   : > { %v4904_v24 = vadd.f32 %v4903_v13, %v4869_v14  ;;  %v8848_v13 = vld [vmem:[#allocation19_spill] sm:$0xff] }
 0x342   : > { %v4905_v19 = vrot.slane %v4904_v24, 4 }
 0x344   : > { %v4906_v42 = vadd.f32 %v4905_v19, %v4904_v24  ;;  %v8854_v24 = vld [vmem:[#allocation20_spill] sm:$0xff] }
 0x346   : > { %v4907_v35 = vrot.slane %v4906_v42, 2 }
 0x348   : > { %v4908_v0 = vadd.f32 %v4907_v35, %v4906_v42  ;;  %v8855_v42 = vld [vmem:[#allocation12_spill] sm:$0xff] }
 0x34a   : > { %v4909_v6 = vrot.slane %v4908_v0, 1 }
 0x34c   : > { %v4910_v21 = vadd.f32 %v4909_v6, %v4908_v0  ;;  %v8857_v0 = vld [vmem:[#allocation18_spill] sm:$0xff] }
 0x34e   : > { %v8182_v1 = vmul.f32 0.00390625, %v4910_v21 }
 0x350   : > { %v8185_v7 = vsub.f32 %v4541_v54, %v8182_v1  ;;  %v8188_v27 = vsub.f32 %v4542_v57, %v8182_v1  ;;  %v8191_v25 = vsub.f32 %v4543_v43, %v8182_v1  ;;  %v8194_v60 = vsub.f32 %v4544_v55, %v8182_v1 }
 0x351   : > { %v8197_v16 = vsub.f32 %v4545_v45, %v8182_v1  ;;  %v8201_v53 = vsub.f32 %v7738_v31, %v8182_v1  ;;  %v8205_v54 = vsub.f32 %v7753_v62, %v8182_v1  ;;  %v8218_v58 = vsub.f32 %v8846_v9, %v8182_v1 }
 0x352   : > { %v8208_v57 = vmul.f32 %v8191_v25, %v4822_v48  ;;  %v8211_v43 = vmul.f32 %v8194_v60, %v4827_v30  ;;  %v8226_v48 = vsub.f32 %v8849_v20, %v8182_v1  ;;  %v8851_v30 = vld [vmem:[#allocation11_spill] sm:$0xff]  ;;  %v8236_v14 = vsub.f32 %v7844_v18, %v8182_v1 }
 0x353   : > { %v8214_v55 = vmul.f32 %v8197_v16, %v4832_v5  ;;  %v4948_v31 = vmul.f32 %v8201_v53, %v8847_v29  ;;  %v4949_v62 = vmul.f32 %v8205_v54, %v8848_v13  ;;  %v8230_v32 = vsub.f32 %v8851_v30, %v8182_v1  ;;  %v8858_v29 = vld [vmem:[#allocation13_spill] sm:$0xff]  ;;  %v8861_v30 = vld [vmem:[#allocation6_spill] sm:$0xff] }
 0x354   : > { %8850 = vst [vmem:[#allocation3_spill] sm:$0xff] %v8226_v48  ;;  %v4950_v46 = vmul.f32 %v8218_v58, %v8852_v50  ;;  %v4951_v19 = vmul.f32 %v8226_v48, %v8854_v24  ;;  %v8242_v35 = vsub.f32 %v8855_v42, %v8182_v1  ;;  %v8860_v13 = vld [vmem:[#allocation21_spill] sm:$0xff]  ;;  %v8254_v50 = vsub.f32 %v8861_v30, %v8182_v1  ;;  %v8862_v24 = vld [vmem:[#allocation22_spill] sm:$0xff] }
 0x355   : > { %v4984_v45 = vmul.f32 %v4948_v31, %v4948_v31  ;;  %v4985_v5 = vmul.f32 %v4949_v62, %v4949_v62  ;;  %8853 = vst [vmem:[#allocation4_spill] sm:$0xff] %v8236_v14  ;;  %v4952_v6 = vmul.f32 %v8230_v32, %v8857_v0  ;;  %v8248_v31 = vsub.f32 %v8858_v29, %v8182_v1 }
 0x356   : > { %8856 = vst [vmem:[#allocation16_spill] sm:$0xff] %v8242_v35  ;;  %v4986_v21 = vmul.f32 %v4950_v46, %v4950_v46  ;;  %v4953_v18 = vmul.f32 %v8236_v14, %v8860_v13  ;;  %v4987_v62 = vmul.f32 %v4951_v19, %v4951_v19  ;;  %v4954_v42 = vmul.f32 %v8242_v35, %v8862_v24  ;;  %v8864_v19 = vld [vmem:[#allocation7_spill] sm:$0xff] }
 0x357   : > { %v5020_v9 = vadd.f32 %v4985_v5, %v4984_v45  ;;  %8859 = vst [vmem:[#allocation19_spill] sm:$0xff] %v8248_v31  ;;  %v4988_v48 = vmul.f32 %v4952_v6, %v4952_v6  ;;  %v8260_v46 = vsub.f32 %v7908_v38, %v8182_v1  ;;  %v8863_v45 = vld [vmem:[#allocation23_spill] sm:$0xff]  ;;  %v8866_v6 = vld [vmem:[#allocation8_spill] sm:$0xff]  ;;  %v8868_v38 = vld [vmem:[#allocation25_spill] sm:$0xff] }
 0x358   : > { %v4955_v5 = vmul.f32 %v8248_v31, %v8863_v45  ;;  %v4989_v29 = vmul.f32 %v4953_v18, %v4953_v18  ;;  %v4990_v14 = vmul.f32 %v4954_v42, %v4954_v42  ;;  %v8284_v42 = vsub.f32 %v7946_v44, %v8182_v1  ;;  %v8875_v44 = vld [vmem:[#allocation29_spill] sm:$0xff] }
 0x359   : > { %v5021_v20 = vadd.f32 %v5020_v9, %v4986_v21  ;;  %v8266_v21 = vsub.f32 %v8864_v19, %v8182_v1  ;;  %v8865_v9 = vld [vmem:[#allocation24_spill] sm:$0xff] }
 0x35a   : > { %v4956_v30 = vmul.f32 %v8254_v50, %v8865_v9  ;;  %v4991_v35 = vmul.f32 %v4955_v5, %v4955_v5  ;;  %8872 = vst [vmem:[#allocation17_spill] sm:$0xff] %v8284_v42  ;;  %v8874_v5 = vld [vmem:[#allocation28_spill] sm:$0xff] }
 0x35b   : > { %v5022_v0 = vadd.f32 %v5021_v20, %v4987_v62  ;;  %v8272_v62 = vsub.f32 %v8866_v6, %v8182_v1  ;;  %v4957_v20 = vmul.f32 %v8260_v46, %v8868_v38 }
 0x35c   : > { %v4992_v31 = vmul.f32 %v4956_v30, %v4956_v30  ;;  %v4961_v30 = vmul.f32 %v8284_v42, %v8875_v44 }
 0x35d   : > { %v5023_v13 = vadd.f32 %v5022_v0, %v4988_v48  ;;  %8867 = vst [vmem:[#allocation5_spill] sm:$0xff] %v8272_v62  ;;  %v8869_v48 = vld [vmem:[#allocation9_spill] sm:$0xff]  ;;  %v8871_v0 = vld [vmem:[#allocation26_spill] sm:$0xff]  ;;  %v4993_v6 = vmul.f32 %v4957_v20, %v4957_v20 }
 0x35e   : > { %v8278_v18 = vsub.f32 %v8869_v48, %v8182_v1  ;;  %v4958_v19 = vmul.f32 %v8266_v21, %v8871_v0 }
 0x35f   : > { %v5024_v24 = vadd.f32 %v5023_v13, %v4989_v29  ;;  %v8873_v29 = vld [vmem:[#allocation27_spill] sm:$0xff] }
 0x360   : > { %8870 = vst [vmem:[#allocation11_spill] sm:$0xff] %v8278_v18  ;;  %v4959_v13 = vmul.f32 %v8272_v62, %v8873_v29  ;;  %v4994_v48 = vmul.f32 %v4958_v19, %v4958_v19  ;;  %v8878_v19 = vld [vmem:[#allocation14_spill] sm:$0xff] }
 0x361   : > { %v5025_v45 = vadd.f32 %v5024_v24, %v4990_v14  ;;  %v8290_v14 = vsub.f32 %v7954_v2, %v8182_v1  ;;  %v4960_v24 = vmul.f32 %v8278_v18, %v8874_v5  ;;  %v8877_v2 = vld [vmem:[#allocation30_spill] sm:$0xff]  ;;  %v4997_v18 = vmul.f32 %v4961_v30, %v4961_v30 }
 0x362   : > { %v8883_v30 = vld [vmem:[#allocation34_spill] sm:$0xff] }
 0x363   : > { %v5026_v9 = vadd.f32 %v5025_v45, %v4991_v35  ;;  %v8296_v35 = vsub.f32 %v7964_v37, %v8182_v1  ;;  %v4995_v45 = vmul.f32 %v4959_v13, %v4959_v13  ;;  %v4996_v62 = vmul.f32 %v4960_v24, %v4960_v24  ;;  %v8879_v37 = vld [vmem:[#allocation31_spill] sm:$0xff] }
 0x364   : > { %v8880_v13 = vld [vmem:[#allocation15_spill] sm:$0xff]  ;;  %v8320_v24 = vsub.f32 %v7980_v52, %v8182_v1 }
 0x365   : > { %v5027_v38 = vadd.f32 %v5026_v9, %v4992_v31  ;;  %v8876_v31 = vld [vmem:[#allocation10_spill] sm:$0xff]  ;;  %v4962_v9 = vmul.f32 %v8290_v14, %v8877_v2 }
 0x366   : > { %v8302_v20 = vsub.f32 %v8876_v31, %v8182_v1  ;;  %v4967_v52 = vmul.f32 %v8320_v24, %v8076_v36 }
 0x367   : > { %v5028_v0 = vadd.f32 %v5027_v38, %v4993_v6  ;;  %v8308_v6 = vsub.f32 %v8878_v19, %v8182_v1  ;;  %v4963_v38 = vmul.f32 %v8296_v35, %v8879_v37  ;;  %v4998_v42 = vmul.f32 %v4962_v9, %v4962_v9 }
 0x369   : > { %v5029_v29 = vadd.f32 %v5028_v0, %v4994_v48  ;;  %v8314_v48 = vsub.f32 %v8880_v13, %v8182_v1  ;;  %v8881_v0 = vld [vmem:[#allocation32_spill] sm:$0xff]  ;;  %v4999_v19 = vmul.f32 %v4963_v38, %v4963_v38 }
 0x36a   : > { %v4964_v31 = vmul.f32 %v8302_v20, %v8881_v0 }
 0x36b   : > { %v5030_v5 = vadd.f32 %v5029_v29, %v4995_v45  ;;  %v8882_v45 = vld [vmem:[#allocation33_spill] sm:$0xff] }
 0x36c   : > { %v4965_v29 = vmul.f32 %v8308_v6, %v8882_v45  ;;  %v5000_v13 = vmul.f32 %v4964_v31, %v4964_v31  ;;  %v8344_v31 = vsub.f32 %v8012_v26, %v8182_v1  ;;  %v5003_v45 = vmul.f32 %v4967_v52, %v4967_v52 }
 0x36d   : > { %v5031_v44 = vadd.f32 %v5030_v5, %v4996_v62  ;;  %v8326_v62 = vsub.f32 %v7983_v12, %v8182_v1  ;;  %v4966_v5 = vmul.f32 %v8314_v48, %v8883_v30 }
 0x36e   : > { %v5001_v9 = vmul.f32 %v4965_v29, %v4965_v29  ;;  %v8350_v29 = vsub.f32 %v8026_v8, %v8182_v1  ;;  %v4971_v26 = vmul.f32 %v8344_v31, %v8100_v40 }
 0x36f   : > { %v5032_v2 = vadd.f32 %v5031_v44, %v4997_v18  ;;  %v8332_v18 = vsub.f32 %v7992_v33, %v8182_v1  ;;  %v4968_v12 = vmul.f32 %v8326_v62, %v8082_v39  ;;  %v5002_v38 = vmul.f32 %v4966_v5, %v4966_v5 }
 0x370   : > { %v8362_v5 = vsub.f32 %v8137_v61, %v8182_v1  ;;  %v4972_v8 = vmul.f32 %v8350_v29, %v8112_v51  ;;  %v5007_v52 = vmul.f32 %v4971_v26, %v4971_v26 }
 0x371   : > { %v5033_v37 = vadd.f32 %v5032_v2, %v4998_v42  ;;  %v8338_v42 = vsub.f32 %v8001_v56, %v8182_v1  ;;  %v4969_v33 = vmul.f32 %v8332_v18, %v8090_v28 }
 0x372   : > { %v4974_v61 = vmul.f32 %v8362_v5, %v8123_v47 }
 0x373   : > { %v5034_v0 = vadd.f32 %v5033_v37, %v4999_v19  ;;  %v4970_v56 = vmul.f32 %v8338_v42, %v8096_v15  ;;  %v5004_v19 = vmul.f32 %v4968_v12, %v4968_v12  ;;  %v8356_v37 = vsub.f32 %v8130_v3, %v8182_v1 }
 0x374   : > { %v5005_v30 = vmul.f32 %v4969_v33, %v4969_v33  ;;  %v8380_v12 = vsub.f32 %v8158_v17, %v8182_v1  ;;  %v5010_v33 = vmul.f32 %v4974_v61, %v4974_v61 }
 0x375   : > { %v5035_v44 = vadd.f32 %v5034_v0, %v5000_v13  ;;  %v5006_v13 = vmul.f32 %v4970_v56, %v4970_v56  ;;  %v8368_v0 = vsub.f32 %v8145_v23, %v8182_v1  ;;  %v4973_v3 = vmul.f32 %v8356_v37, %v8117_v34 }
 0x377   : > { %v5036_v2 = vadd.f32 %v5035_v44, %v5001_v9  ;;  %v8374_v9 = vsub.f32 %v8153_v41, %v8182_v1  ;;  %v5008_v44 = vmul.f32 %v4972_v8, %v4972_v8  ;;  %v4975_v23 = vmul.f32 %v8368_v0, %v8140_v59 }
 0x379   : > { %v5037_v36 = vadd.f32 %v5036_v2, %v5002_v38  ;;  %v5009_v38 = vmul.f32 %v4973_v3, %v4973_v3  ;;  %v8386_v2 = vsub.f32 %v8164_v63, %v8182_v1  ;;  %v4976_v41 = vmul.f32 %v8374_v9, %v8148_v10 }
 0x37a   : > { %v4980_v10 = vmul.f32 %v8188_v27, %v8176_v49  ;;  %v5018_v3 = vmul.f32 %v8211_v43, %v8211_v43 }
 0x37b   : > { %v5038_v39 = vadd.f32 %v5037_v36, %v5003_v45  ;;  %v4977_v45 = vmul.f32 %v8380_v12, %v8160_v11  ;;  %v5011_v36 = vmul.f32 %v4975_v23, %v4975_v23  ;;  %v4978_v56 = vmul.f32 %v8386_v2, %v8169_v22 }
 0x37c   : > { %v5012_v59 = vmul.f32 %v4976_v41, %v4976_v41  ;;  %v5016_v11 = vmul.f32 %v4980_v10, %v4980_v10 }
 0x37d   : > { %v5039_v28 = vadd.f32 %v5038_v39, %v5004_v19  ;;  %v4979_v39 = vmul.f32 %v8185_v7, %v8173_v4  ;;  %v5013_v63 = vmul.f32 %v4977_v45, %v4977_v45  ;;  %v5014_v26 = vmul.f32 %v4978_v56, %v4978_v56 }
 0x37e   : > { %v5019_v4 = vmul.f32 %v8214_v55, %v8214_v55 }
 0x37f   : > { %v5040_v15 = vadd.f32 %v5039_v28, %v5005_v30  ;;  %v5015_v28 = vmul.f32 %v4979_v39, %v4979_v39 }
 0x381   : > { %v5041_v40 = vadd.f32 %v5040_v15, %v5006_v13  ;;  %v5017_v15 = vmul.f32 %v8208_v57, %v8208_v57 }
 0x383   : > { %v5042_v51 = vadd.f32 %v5041_v40, %v5007_v52 }
 0x385   : > { %v5043_v34 = vadd.f32 %v5042_v51, %v5008_v44 }
 0x387   : > { %v5044_v47 = vadd.f32 %v5043_v34, %v5009_v38 }
 0x389   : > { %v5045_v17 = vadd.f32 %v5044_v47, %v5010_v33 }
 0x38b   : > { %v5046_v19 = vadd.f32 %v5045_v17, %v5011_v36 }
 0x38d   : > { %v5047_v1 = vadd.f32 %v5046_v19, %v5012_v59 }
 0x38f   : > { %v5048_v30 = vadd.f32 %v5047_v1, %v5013_v63 }
 0x391   : > { %v5049_v8 = vadd.f32 %v5048_v30, %v5014_v26 }
 0x393   : > { %v5050_v13 = vadd.f32 %v5049_v8, %v5015_v28 }
 0x395   : > { %v5051_v22 = vadd.f32 %v5050_v13, %v5016_v11 }
 0x397   : > { %v5052_v52 = vadd.f32 %v5051_v22, %v5017_v15  ;;  %v8889_v15 = vld [vmem:[#allocation11_spill] sm:$0xff] }
 0x399   : > { %v5053_v40 = vadd.f32 %v5052_v52, %v5018_v3  ;;  %v8890_v3 = vld [vmem:[#allocation17_spill] sm:$0xff] }
 0x39b   : > { %v5054_v61 = vadd.f32 %v5053_v40, %v5019_v4 }
 0x39d   : > { %v5055_v49 = vrot.slane %v5054_v61, 4 }
 0x39f   : > { %v5056_v44 = vadd.f32 %v5055_v49, %v5054_v61 }
 0x3a1   : > { %v5057_v51 = vrot.slane %v5056_v44, 2 }
 0x3a3   : > { %v5058_v23 = vadd.f32 %v5057_v51, %v5056_v44 }
 0x3a5   : > { %v5059_v38 = vrot.slane %v5058_v23, 1 }
 0x3a7   : > { %v5060_v34 = vadd.f32 %v5059_v38, %v5058_v23 }
 0x3a9   : > { %v5061_v41 = vmul.f32 0.00390625, %v5060_v34 }
 0x3ab   : > { %v5062_v33 = vadd.f32 1e-05, %v5061_v41 }
 0x3ad   : > { %6723 = vrsqrt.f32 %v5062_v33  ;;  %vm5069_vm7 = vweird.f32 %v5062_v33 }
 0x3b3   : > { %v6724_v57 = vpop.eup %6723 }
 0x3b4   : > { %v5064_v47 = vmul.f32 %v6724_v57, %v5062_v33  ;;  %vm5070_vm6 = vweird.f32 %v6724_v57 }
 0x3b5   : > { %vm5071_vm8 = vmor %vm5069_vm7, %vm5070_vm6 }
 0x3b6   : > { %v5065_v45 = vmul.f32 %v6724_v57, %v5064_v47 }
 0x3b8   : > { %v5066_v36 = vmul.f32 0.5, %v5065_v45 }
 0x3ba   : > { %v5067_v43 = vsub.f32 1.5, %v5066_v36 }
 0x3bc   : > { %v5068_v17 = vmul.f32 %v6724_v57, %v5067_v43 }
 0x3be   : > { %v5072_v55 = vsel %vm5071_vm8, %v6724_v57, %v5068_v17 }
 0x3bf   : > { %v8405_v56 = vmul.f32 %v5072_v55, %v8185_v7  ;;  %v8408_v59 = vmul.f32 %v5072_v55, %v8188_v27  ;;  %v8411_v19 = vmul.f32 %v5072_v55, %v8191_v25  ;;  %v8414_v39 = vmul.f32 %v5072_v55, %v8194_v60  ;;  %v8884_v27 = vld [vmem:[#allocation3_spill] sm:$0xff]  ;;  %v8885_v60 = vld [vmem:[#allocation4_spill] sm:$0xff] }
 0x3c0   : > { %v8417_v63 = vmul.f32 %v5072_v55, %v8197_v16  ;;  %v8420_v1 = vmul.f32 %v5072_v55, %v8201_v53  ;;  %v8423_v10 = vmul.f32 %v5072_v55, %v8205_v54  ;;  %v8426_v7 = vmul.f32 %v5072_v55, %v8218_v58  ;;  %v8886_v16 = vld [vmem:[#allocation16_spill] sm:$0xff]  ;;  %v8887_v53 = vld [vmem:[#allocation19_spill] sm:$0xff] }
 0x3c1   : > { %v8429_v26 = vmul.f32 %v5072_v55, %v8884_v27  ;;  %v8432_v25 = vmul.f32 %v5072_v55, %v8230_v32  ;;  %v8435_v30 = vmul.f32 %v5072_v55, %v8885_v60  ;;  %v8438_v28 = vmul.f32 %v5072_v55, %v8886_v16  ;;  %v8888_v32 = vld [vmem:[#allocation5_spill] sm:$0xff] }
 0x3c2   : > { %v8441_v8 = vmul.f32 %v5072_v55, %v8887_v53  ;;  %v8444_v54 = vmul.f32 %v5072_v55, %v8254_v50  ;;  %v8447_v58 = vmul.f32 %v5072_v55, %v8260_v46  ;;  %v8450_v11 = vmul.f32 %v5072_v55, %v8266_v21 }
 0x3c3   : > { %v8453_v13 = vmul.f32 %v5072_v55, %v8888_v32  ;;  %v8456_v22 = vmul.f32 %v5072_v55, %v8889_v15  ;;  %v8459_v52 = vmul.f32 %v5072_v55, %v8890_v3  ;;  %v8462_v4 = vmul.f32 %v5072_v55, %v8290_v14 }
 0x3c4   : > { %v8465_v50 = vmul.f32 %v5072_v55, %v8296_v35  ;;  %v8468_v46 = vmul.f32 %v5072_v55, %v8302_v20  ;;  %v8471_v21 = vmul.f32 %v5072_v55, %v8308_v6  ;;  %v8474_v40 = vmul.f32 %v5072_v55, %v8314_v48 }
 0x3c5   : > { %v8477_v61 = vmul.f32 %v5072_v55, %v8320_v24  ;;  %v8480_v49 = vmul.f32 %v5072_v55, %v8326_v62  ;;  %v8483_v14 = vmul.f32 %v5072_v55, %v8332_v18  ;;  %v8486_v35 = vmul.f32 %v5072_v55, %v8338_v42 }
 0x3c6   : > { %v8489_v20 = vmul.f32 %v5072_v55, %v8344_v31  ;;  %v8492_v6 = vmul.f32 %v5072_v55, %v8350_v29  ;;  %v8495_v48 = vmul.f32 %v5072_v55, %v8356_v37  ;;  %v8498_v24 = vmul.f32 %v5072_v55, %v8362_v5 }
 0x3c7   : > { %v8501_v62 = vmul.f32 %v5072_v55, %v8386_v2  ;;  %vm5109_vm9 = vcmp.ge.f32.partialorder %v8420_v1, 0.0  ;;  %vm5110_vm10 = vcmp.ge.f32.partialorder %v8423_v10, 0.0  ;;  %vm5111_vm11 = vcmp.ge.f32.partialorder %v8426_v7, 0.0 }
 0x3c8   : > { %8891 = vst [vmem:[#allocation20_spill] sm:$0xff] %v8495_v48  ;;  %vm5112_vm12 = vcmp.ge.f32.partialorder %v8429_v26, 0.0  ;;  %vm5113_vm13 = vcmp.ge.f32.partialorder %v8432_v25, 0.0  ;;  %vm5114_vm14 = vcmp.ge.f32.partialorder %v8435_v30, 0.0  ;;  %vm5115_vm15 = vcmp.ge.f32.partialorder %v8438_v28, 0.0 }
 0x3c9   : > { %8892 = vst [vmem:[#allocation12_spill] sm:$0xff] %v8498_v24  ;;  %vm5116_vm0 = vcmp.ge.f32.partialorder %v8441_v8, 0.0  ;;  %v5145_v18 = vmul.f32 0.1, %v8420_v1  ;;  %v5146_v42 = vmul.f32 0.1, %v8423_v10  ;;  %v8515_v31 = vmul.f32 %v5072_v55, %v8368_v0 }
 0x3ca   : > { %vm5117_vm1 = vcmp.ge.f32.partialorder %v8444_v54, 0.0  ;;  %vm5118_vm2 = vcmp.ge.f32.partialorder %v8447_v58, 0.0  ;;  %v5147_v29 = vmul.f32 0.1, %v8426_v7  ;;  %v5148_v37 = vmul.f32 0.1, %v8429_v26 }
 0x3cb   : > { %8893 = vst [vmem:[#allocation18_spill] sm:$0xff] %v8515_v31  ;;  %v5149_v5 = vmul.f32 0.1, %v8432_v25  ;;  %v8525_v2 = vmul.f32 %v5072_v55, %v8374_v9  ;;  %vm5121_vm5 = vcmp.ge.f32.partialorder %v8456_v22, 0.0  ;;  %v5150_v0 = vmul.f32 0.1, %v8435_v30 }
 0x3cc   : > { %v5151_v44 = vmul.f32 0.1, %v8438_v28  ;;  %v5152_v51 = vmul.f32 0.1, %v8441_v8  ;;  %v8535_v23 = vmul.f32 %v5072_v55, %v8380_v12  ;;  %v5153_v9 = vmul.f32 0.1, %v8444_v54 }
 0x3cd   : > { %v5154_v38 = vmul.f32 0.1, %v8447_v58  ;;  %v5155_v34 = vmul.f32 0.1, %v8450_v11  ;;  %vm5143_vm8 = vcmp.ge.f32.partialorder %v8414_v39, 0.0  ;;  %v8550_v57 = vsel %vm5109_vm9, %v8420_v1, %v5145_v18 }
 0x3ce   : > { %v5156_v41 = vmul.f32 0.1, %v8453_v13  ;;  %v5157_v33 = vmul.f32 0.1, %v8456_v22  ;;  %v5158_v12 = vmul.f32 0.1, %v8459_v52  ;;  %v5182_v43 = vsel %vm5110_vm10, %v8423_v10, %v5146_v42 }
 0x3cf   : > { %vm5124_vm4 = vcmp.ge.f32.partialorder %v8465_v50, 0.0  ;;  %vm5125_vm6 = vcmp.ge.f32.partialorder %v8468_v46, 0.0  ;;  %v5159_v47 = vmul.f32 0.1, %v8462_v4  ;;  %v5160_v45 = vmul.f32 0.1, %v8465_v50 }
 0x3d0   : > { %v5161_v36 = vmul.f32 0.1, %v8468_v46  ;;  %vm5126_vm7 = vcmp.ge.f32.partialorder %v8471_v21, 0.0  ;;  %vm5127_vm9 = vcmp.ge.f32.partialorder %v8474_v40, 0.0  ;;  %v5162_v17 = vmul.f32 0.1, %v8471_v21 }
 0x3d1   : > { %v5163_v55 = vmul.f32 0.1, %v8474_v40  ;;  %v5164_v1 = vmul.f32 0.1, %v8477_v61  ;;  %v5183_v27 = vsel %vm5111_vm11, %v8426_v7, %v5147_v29  ;;  %v8571_v60 = vmul.f32 0.1, %v8480_v49 }
 0x3d2   : > { %v8574_v10 = vmul.f32 0.1, %v8483_v14  ;;  %v8577_v16 = vmul.f32 0.1, %v8486_v35  ;;  %v5184_v53 = vsel %vm5112_vm12, %v8429_v26, %v5148_v37  ;;  %v8585_v32 = vmul.f32 0.1, %v8489_v20 }
 0x3d3   : > { %v8588_v7 = vmul.f32 0.1, %v8492_v6  ;;  %v8591_v15 = vmul.f32 0.1, %v8495_v48  ;;  %v5185_v3 = vsel %vm5113_vm13, %v8432_v25, %v5149_v5  ;;  %vm5131_vm11 = vcmp.ge.f32.partialorder %v8486_v35, 0.0 }
 0x3d4   : > { %v8599_v26 = vmul.f32 0.1, %v8498_v24  ;;  %v5175_v18 = vmul.f32 0.1, %v8501_v62  ;;  %v5176_v42 = vmul.f32 0.1, %v8405_v56  ;;  %v5186_v29 = vsel %vm5114_vm14, %v8435_v30, %v5150_v0 }
 0x3d5   : > { %8894 = vst [vmem:[#allocation13_spill] sm:$0xff] %v8591_v15  ;;  %vm5133_vm3 = vcmp.ge.f32.partialorder %v8492_v6, 0.0  ;;  %vm5134_vm10 = vcmp.ge.f32.partialorder %v8495_v48, 0.0  ;;  %v5172_v25 = vmul.f32 0.1, %v8515_v31  ;;  %vm5135_vm13 = vcmp.ge.f32.partialorder %v8498_v24, 0.0 }
 0x3d6   : > { %8895 = vst [vmem:[#allocation21_spill] sm:$0xff] %v8599_v26  ;;  %v5177_v37 = vmul.f32 0.1, %v8408_v59  ;;  %v5178_v5 = vmul.f32 0.1, %v8411_v19  ;;  %v5187_v26 = vsel %vm5115_vm15, %v8438_v28, %v5151_v44  ;;  %v5188_v15 = vsel %vm5116_vm0, %v8441_v8, %v5152_v51 }
 0x3d7   : > { %v5173_v30 = vmul.f32 0.1, %v8525_v2  ;;  %v5179_v0 = vmul.f32 0.1, %v8414_v39  ;;  %v5180_v48 = vmul.f32 0.1, %v8417_v63  ;;  %v5189_v28 = vsel %vm5117_vm1, %v8444_v54, %v5153_v9 }
 0x3d8   : > { %vm5137_vm14 = vcmp.ge.f32.partialorder %v8525_v2, 0.0  ;;  %v5190_v44 = vsel %vm5118_vm2, %v8447_v58, %v5154_v38  ;;  %vm8896_vm15 = vcmp.ge.f32.partialorder %v8450_v11, 0.0  ;;  %vm8897_vm12 = vcmp.ge.f32.partialorder %v8453_v13, 0.0 }
 0x3d9   : > { %v5191_v31 = vsel %vm8896_vm15, %v8450_v11, %v5155_v34  ;;  %v5192_v24 = vsel %vm8897_vm12, %v8453_v13, %v5156_v41  ;;  %v5193_v8 = vsel %vm5121_vm5, %v8456_v22, %v5157_v33  ;;  %vm8898_vm0 = vcmp.ge.f32.partialorder %v8459_v52, 0.0 }
 0x3da   : > { %v5194_v54 = vsel %vm8898_vm0, %v8459_v52, %v5158_v12  ;;  %vm8899_vm1 = vcmp.ge.f32.partialorder %v8501_v62, 0.0  ;;  %vm8900_vm2 = vcmp.ge.f32.partialorder %v8405_v56, 0.0  ;;  %vm8901_vm12 = vcmp.ge.f32.partialorder %v8408_v59, 0.0 }
 0x3db   : > { %v5211_v58 = vsel %vm8899_vm1, %v8501_v62, %v5175_v18  ;;  %v5212_v11 = vsel %vm8900_vm2, %v8405_v56, %v5176_v42  ;;  %v5213_v13 = vsel %vm8901_vm12, %v8408_v59, %v5177_v37  ;;  %vm8902_vm15 = vcmp.ge.f32.partialorder %v8411_v19, 0.0 }
 0x3dc   : > { %v5214_v22 = vsel %vm8902_vm15, %v8411_v19, %v5178_v5  ;;  %v6565_v51 = vpack.c.bf16 %v5182_v43, %v8550_v57  ;;  %v6570_v52 = vpack.c.bf16 %v5184_v53, %v5183_v27  ;;  %v5215_v62 = vsel %vm5143_vm8, %v8414_v39, %v5179_v0 }
 0x3dd   : > { %vm8903_vm5 = vcmp.ge.f32.partialorder %v8417_v63, 0.0  ;;  %v6575_v9 = vpack.c.bf16 %v5186_v29, %v5185_v3  ;;  %v6580_v38 = vpack.c.bf16 %v5188_v15, %v5187_v26  ;;  %vm8904_vm0 = vcmp.ge.f32.partialorder %v8462_v4, 0.0  ;;  %v8911_v43 = vld [vmem:[#allocation21_spill] sm:$0xff] }
 0x3de   : > { %v5216_v56 = vsel %vm8903_vm5, %v8417_v63, %v5180_v48  ;;  %v5195_v59 = vsel %vm8904_vm0, %v8462_v4, %v5159_v47  ;;  %v5196_v19 = vsel %vm5124_vm4, %v8465_v50, %v5160_v45  ;;  %v5197_v34 = vsel %vm5125_vm6, %v8468_v46, %v5161_v36  ;;  %6566 = vst [vmem:[%s8640_s17] sm:$0xff] %v6565_v51   ;;  %v8909_v47 = vld [vmem:[#allocation13_spill] sm:$0xff]  ;;  %v8910_v45 = vld [vmem:[#allocation20_spill] sm:$0xff] }
 0x3df   : > { %v6585_v39 = vpack.c.bf16 %v5190_v44, %v5189_v28  ;;  %v5198_v63 = vsel %vm5126_vm7, %v8471_v21, %v5162_v17  ;;  %v5199_v48 = vsel %vm5127_vm9, %v8474_v40, %v5163_v55  ;;  %vm8905_vm8 = vcmp.ge.f32.partialorder %v8477_v61, 0.0  ;;  %6652 = vst [vmem:[%s8640_s17 + $0x8] sm:$0xff] %v6570_v52   ;;  %v8912_v17 = vld [vmem:[#allocation12_spill] sm:$0xff]  ;;  %v8913_v55 = vld [vmem:[#allocation18_spill] sm:$0xff] }
 0x3e0   : > { %v5200_v4 = vsel %vm8905_vm8, %v8477_v61, %v5164_v1  ;;  %v6590_v50 = vpack.c.bf16 %v5192_v24, %v5191_v31  ;;  %6653 = vst [vmem:[%s8640_s17 + $0x10] sm:$0xff] %v6575_v9   ;;  %v6595_v46 = vpack.c.bf16 %v5194_v54, %v5193_v8  ;;  %v6640_v41 = vpack.c.bf16 %v5212_v11, %v5211_v58 }
 0x3e1   : > { %v6645_v33 = vpack.c.bf16 %v5214_v22, %v5213_v13  ;;  %v6650_v12 = vpack.c.bf16 %v5216_v56, %v5215_v62  ;;  %v5174_v57 = vmul.f32 0.1, %v8535_v23  ;;  %vm8906_vm4 = vcmp.ge.f32.partialorder %v8480_v49, 0.0  ;;  %6654 = vst [vmem:[%s8640_s17 + $0x18] sm:$0xff] %v6580_v38  }
 0x3e2   : > { %v5201_v21 = vsel %vm8906_vm4, %v8480_v49, %v8571_v60  ;;  %vm8907_vm6 = vcmp.ge.f32.partialorder %v8483_v14, 0.0  ;;  %v6600_v61 = vpack.c.bf16 %v5196_v19, %v5195_v59  ;;  %vm5138_vm7 = vcmp.ge.f32.partialorder %v8535_v23, 0.0  ;;  %6655 = vst [vmem:[%s8640_s17 + $0x20] sm:$0xff] %v6585_v39  }
 0x3e3   : > { %v5202_v40 = vsel %vm8907_vm6, %v8483_v14, %v8574_v10  ;;  %v5203_v24 = vsel %vm5131_vm11, %v8486_v35, %v8577_v16  ;;  %vm8908_vm9 = vcmp.ge.f32.partialorder %v8489_v20, 0.0  ;;  %v6605_v31 = vpack.c.bf16 %v5198_v63, %v5197_v34  ;;  %6656 = vst [vmem:[%s8640_s17 + $0x28] sm:$0xff] %v6590_v50  }
 0x3e4   : > { %v5204_v49 = vsel %vm8908_vm9, %v8489_v20, %v8585_v32  ;;  %v5205_v14 = vsel %vm5133_vm3, %v8492_v6, %v8588_v7  ;;  %v5206_v35 = vsel %vm5134_vm10, %v8910_v45, %v8909_v47  ;;  %v6610_v36 = vpack.c.bf16 %v5200_v4, %v5199_v48  ;;  %6657 = vst [vmem:[%s8640_s17 + $0x30] sm:$0xff] %v6595_v46  }
 0x3e5   : > { %v5207_v20 = vsel %vm5135_vm13, %v8912_v17, %v8911_v43  ;;  %vm8914_vm11 = vcmp.ge.f32.partialorder %v8913_v55, 0.0  ;;  %v6615_v1 = vpack.c.bf16 %v5202_v40, %v5201_v21  ;;  %v5209_v27 = vsel %vm5137_vm14, %v8525_v2, %v5173_v30  ;;  %6658 = vst [vmem:[%s8640_s17 + $0x38] sm:$0xff] %v6600_v61  }
 0x3e6   : > { %v5208_v6 = vsel %vm8914_vm11, %v8913_v55, %v5172_v25  ;;  %v5210_v60 = vsel %vm5138_vm7, %v8535_v23, %v5174_v57  ;;  %v6620_v10 = vpack.c.bf16 %v5204_v49, %v5203_v24  ;;  %6659 = vst [vmem:[%s8640_s17 + $0x40] sm:$0xff] %v6605_v31   ;;  %v6625_v16 = vpack.c.bf16 %v5206_v35, %v5205_v14 }
 0x3e7   : > { %6660 = vst [vmem:[%s8640_s17 + $0x48] sm:$0xff] %v6610_v36   ;;  %v6630_v53 = vpack.c.bf16 %v5208_v6, %v5207_v20  ;;  %v6635_v32 = vpack.c.bf16 %v5210_v60, %v5209_v27 }
 0x3e8   : > { %6661 = vst [vmem:[%s8640_s17 + $0x50] sm:$0xff] %v6615_v1  }
 0x3e9   : > { %6662 = vst [vmem:[%s8640_s17 + $0x58] sm:$0xff] %v6620_v10  }
 0x3ea   : > { %6663 = vst [vmem:[%s8640_s17 + $0x60] sm:$0xff] %v6625_v16  }
 0x3eb   : > { %6664 = vst [vmem:[%s8640_s17 + $0x68] sm:$0xff] %v6630_v53  }
 0x3ec   : > { %6665 = vst [vmem:[%s8640_s17 + $0x70] sm:$0xff] %v6635_v32  }
 0x3ed   : > { %6666 = vst [vmem:[%s8640_s17 + $0x78] sm:$0xff] %v6640_v41  }
 0x3ee   : > { %6667 = vst [vmem:[%s8640_s17 + $0x80] sm:$0xff] %v6645_v33  }
 0x3ef   : > { %6668 = vst [vmem:[%s8640_s17 + $0x88] sm:$0xff] %v6650_v12  }
 0x3f0 PF: > { %s13_s14 = sadd.s32 1, %s6747_s14   ;;  %s8915_s12 = smov %s6743_s13 }
 0x3f1   : > { %p10_p5 = scmp.ge.s32.totalorder %s13_s14, 4   ;;  %s8916_s13 = smov %s8918_s15 }
 0x3f3   :  { %12 = sbr.rel (!%p10_p5) target bundleno = 2 (0x2), region = 65 }

// kernel: bottleneck_forward.3
= control target key start
LH: loop header
LB: loop body
LE: loop exit
PB: predicated region body
PF: predicated region fallthrough
CT: control target
= control target key end

     0   :  { %s6781_s15 = smov 0   ;;  %s6783_s16 = smov 0   ;;  %s8688_s0 = inlined_call_operand.vmem [shape: bf16[2,336,128], index: 0, kind: input, shape index: {}]   ;;  %s8689_s1 = inlined_call_operand.vmem [shape: bf16[1152,128], index: 1, kind: input, shape index: {}]   ;;  %s8690_s2 = inlined_call_operand.vmem [shape: f32[288,1], index: 2, kind: input, shape index: {}]   ;;  %s8691_s3 = inlined_call_operand.vmem [shape: f32[2,288,128], index: 3, kind: input, shape index: {}]   ;;  %s8692_s4 = inlined_call_operand.vmem [shape: f32[2,288,128], index: 4, kind: output, shape index: {}]  }
   0x1   :  { %s6785_s17 = smov 0  }
   0x2 LB: > { %s26_s18 = sadd.s32 1, %s6749_s16  ;;  %p5499_p0 = scmp.ge.s32.totalorder %s6753_s17, 1  ;;  %s6753_s17 = sphi %s6785_s17, %s14_s17   ;;  %s6749_s16 = sphi %s6783_s16, %s8826_s16   ;;  %s6745_s15 = sphi %s6781_s15, %s8825_s15  }
   0x3   : > { %p28_p1 = scmp.ge.s32.totalorder %s26_s18, 2  ;;  %p200_p2 = scmp.lt.s32.totalorder %s6753_s17, 3 }
   0x5   : > { %s8828_s18 = smov (%p28_p1, %s26_s18), 0  ;;  %p201_p3 = pnand %p5499_p0, %p200_p2 }
   0x7   : > { %204 = sbr.rel (%p201_p3) target bundleno = 1009 (0x3f1), region = 36 }
   0xc   : > { %v6466_v0 = vld [vmem:[%s8689_s1 + $0x38] sm:$0xff]  ;;  %v6465_v1 = vld [vmem:[%s8689_s1 + $0x30] sm:$0xff]  ;;  %v6464_v2 = vld [vmem:[%s8689_s1 + $0x28] sm:$0xff]  ;;  %p241_p4 = scmp.lt.s32.totalorder %s6745_s15, 1  ;;  %vm1323_vm0 = vcmask 1046528   ;;  %vm2826_vm4 = vcmask 1045504  }
   0xd   : > { %6675 = vmatpush.bf16.msra.mxu1 %v6466_v0  ;;  %6676 = vmatpush.bf16.msra.mxu2 %v6466_v0  ;;  %v6463_v3 = vld [vmem:[%s8689_s1 + $0x20] sm:$0xff]  ;;  %v6462_v4 = vld [vmem:[%s8689_s1 + $0x18] sm:$0xff]  ;;  %v6461_v5 = vld [vmem:[%s8689_s1 + $0x10] sm:$0xff]  ;;  %vm755_vm1 = vsmask.f32 7424  ;;  %vm4329_vm5 = vcmask 1044480  }
   0xe   : > { %474 = vmatpush.bf16.msra.mxu0 %v6466_v0  ;;  %6677 = vmatpush.bf16.msra.mxu3 %v6466_v0  ;;  %s8830_s15 = smov (!%p241_p4, %s6745_s15), 1  ;;  %v6460_v6 = vld [vmem:[%s8689_s1 + $0x8] sm:$0xff]  ;;  %v6459_v7 = vld [vmem:[%s8689_s1] sm:$0xff]  ;;  %v6518_v8 = vld [vmem:[%s8689_s1 + $0xb8] sm:$0xff]  ;;  %vm2236_vm2 = vsmask.f32 6400 }
   0xf   : > { %s6699_s7 = smul.u32 168, %s8830_s15  ;;  %v6492_v9 = vld [vmem:[%s8689_s1 + $0x78] sm:$0xff]  ;;  %v6517_v14 = vld [vmem:[%s8689_s1 + $0xb0] sm:$0xff]  ;;  %v6516_v19 = vld [vmem:[%s8689_s1 + $0xa8] sm:$0xff]  ;;  %vm3739_vm3 = vsmask.f32 5376 }
  0x10   : > { %v6570_v10 = vld [vmem:[%s8689_s1 + $0x138] sm:$0xff]  ;;  %v6491_v15 = vld [vmem:[%s8689_s1 + $0x70] sm:$0xff]  ;;  %v6490_v20 = vld [vmem:[%s8689_s1 + $0x68] sm:$0xff] }
  0x11   : > { %6678 = vmatpush.bf16.msra.mxu1 %v6465_v1  ;;  %6679 = vmatpush.bf16.msra.mxu2 %v6465_v1  ;;  %s6833_s12 = scalar_lea.vmem %s8688_s0, %s6699_s7  ;;  %v6569_v16 = vld [vmem:[%s8689_s1 + $0x130] sm:$0xff]  ;;  %v6544_v18 = vld [vmem:[%s8689_s1 + $0xf8] sm:$0xff]  ;;  %v6568_v21 = vld [vmem:[%s8689_s1 + $0x128] sm:$0xff] }
  0x12   : > { %475 = vmatpush.bf16.msra.mxu0 %v6465_v1  ;;  %6680 = vmatpush.bf16.msra.mxu3 %v6465_v1  ;;  %v6446_v11 = vld [vmem:[%s6833_s12 + $0x28] sm:$0xff]  ;;  %v6451_v12 = vld [vmem:[%s6833_s12 + $0x50] sm:$0xff]  ;;  %v6441_v13 = vld [vmem:[%s6833_s12] sm:$0xff] }
  0x13   : > { %v6456_v17 = vld [vmem:[%s6833_s12 + $0x78] sm:$0xff]  ;;  %v6543_v22 = vld [vmem:[%s8689_s1 + $0xf0] sm:$0xff]  ;;  %v6515_v23 = vld [vmem:[%s8689_s1 + $0xa0] sm:$0xff] }
  0x14   : > { %v6489_v24 = vld [vmem:[%s8689_s1 + $0x60] sm:$0xff]  ;;  %v6542_v26 = vld [vmem:[%s8689_s1 + $0xe8] sm:$0xff]  ;;  %v6514_v27 = vld [vmem:[%s8689_s1 + $0x98] sm:$0xff] }
  0x15   : > { %6681 = vmatpush.bf16.msra.mxu1 %v6464_v2  ;;  %6682 = vmatpush.bf16.msra.mxu2 %v6464_v2  ;;  %v6567_v25 = vld [vmem:[%s8689_s1 + $0x120] sm:$0xff]  ;;  %v6488_v28 = vld [vmem:[%s8689_s1 + $0x58] sm:$0xff]  ;;  %v6447_v29 = vld [vmem:[%s6833_s12 + $0x30] sm:$0xff] }
  0x16   : > { %476 = vmatpush.bf16.msra.mxu0 %v6464_v2  ;;  %6683 = vmatpush.bf16.msra.mxu3 %v6464_v2  ;;  %v6452_v30 = vld [vmem:[%s6833_s12 + $0x58] sm:$0xff]  ;;  %v6442_v31 = vld [vmem:[%s6833_s12 + $0x8] sm:$0xff]  ;;  %v6457_v32 = vld [vmem:[%s6833_s12 + $0x80] sm:$0xff] }
  0x17   : > { %v6513_v33 = vld [vmem:[%s8689_s1 + $0x90] sm:$0xff]  ;;  %v6566_v34 = vld [vmem:[%s8689_s1 + $0x118] sm:$0xff]  ;;  %v6541_v35 = vld [vmem:[%s8689_s1 + $0xe0] sm:$0xff] }
  0x18   : > { %v6487_v36 = vld [vmem:[%s8689_s1 + $0x50] sm:$0xff]  ;;  %v6512_v37 = vld [vmem:[%s8689_s1 + $0x88] sm:$0xff]  ;;  %v6540_v39 = vld [vmem:[%s8689_s1 + $0xd8] sm:$0xff] }
  0x19   : > { %6684 = vmatpush.bf16.msra.mxu1 %v6463_v3  ;;  %6685 = vmatpush.bf16.msra.mxu2 %v6463_v3  ;;  %v6565_v38 = vld [vmem:[%s8689_s1 + $0x110] sm:$0xff]  ;;  %v6448_v41 = vld [vmem:[%s6833_s12 + $0x38] sm:$0xff]  ;;  %v6453_v42 = vld [vmem:[%s6833_s12 + $0x60] sm:$0xff] }
  0x1a   : > { %477 = vmatpush.bf16.msra.mxu0 %v6463_v3  ;;  %6686 = vmatpush.bf16.msra.mxu3 %v6463_v3  ;;  %v6539_v40 = vld [vmem:[%s8689_s1 + $0xd0] sm:$0xff]  ;;  %v6458_v44 = vld [vmem:[%s6833_s12 + $0x88] sm:$0xff]  ;;  %v6511_v47 = vld [vmem:[%s8689_s1 + $0x80] sm:$0xff] }
  0x1b   : > { %v6443_v43 = vld [vmem:[%s6833_s12 + $0x10] sm:$0xff]  ;;  %v6486_v45 = vld [vmem:[%s8689_s1 + $0x48] sm:$0xff]  ;;  %v6485_v49 = vld [vmem:[%s8689_s1 + $0x40] sm:$0xff] }
  0x1c   : > { %v6538_v46 = vld [vmem:[%s8689_s1 + $0xc8] sm:$0xff]  ;;  %v6537_v50 = vld [vmem:[%s8689_s1 + $0xc0] sm:$0xff]  ;;  %v6520_v54 = vld [vmem:[%s6833_s12 + $0x10] sm:$0xff] }
  0x1d   : > { %6687 = vmatpush.bf16.msra.mxu1 %v6462_v4  ;;  %6688 = vmatpush.bf16.msra.mxu2 %v6462_v4  ;;  %v6564_v48 = vld [vmem:[%s8689_s1 + $0x108] sm:$0xff]  ;;  %v6563_v51 = vld [vmem:[%s8689_s1 + $0x100] sm:$0xff]  ;;  %v6444_v58 = vld [vmem:[%s6833_s12 + $0x18] sm:$0xff]  ;;  %v1781_v60 = vrot.slane %v6520_v54, 1 }
  0x1e   : > { %478 = vmatpush.bf16.msra.mxu0 %v6462_v4  ;;  %6689 = vmatpush.bf16.msra.mxu3 %v6462_v4  ;;  %v5817_v52 = vld [vmem:[%s6833_s12 + $0x8] sm:$0xe]  ;;  %v6519_v53 = vld [vmem:[%s6833_s12 + $0x8] sm:$0xf0]  ;;  %v6449_v56 = vld [vmem:[%s6833_s12 + $0x40] sm:$0xff] }
  0x1f   : > { %v5818_v55 = vor.u32 %v6519_v53, %v5817_v52  ;;  %v6454_v57 = vld [vmem:[%s6833_s12 + $0x68] sm:$0xff]  ;;  %v6622_v61 = vld [vmem:[%s8689_s1 + $0x1b8] sm:$0xff] }
  0x20   : > { %v6648_v63 = vld [vmem:[%s8689_s1 + $0x1f8] sm:$0xff]  ;;  %v5921_v3 = vld [vmem:[%s6833_s12 + $0x8] sm:$0xe]  ;;  %v6545_v4 = vld [vmem:[%s6833_s12 + $0x8] sm:$0xf0] }
  0x21   : > { %6690 = vmatpush.bf16.msra.mxu1 %v6461_v5  ;;  %6691 = vmatpush.bf16.msra.mxu2 %v6461_v5  ;;  %v1780_v59 = vrot.slane %v5818_v55, 1  ;;  %v6596_v0 = vld [vmem:[%s8689_s1 + $0x178] sm:$0xff] }
  0x22   : > { %479 = vmatpush.bf16.msra.mxu0 %v6461_v5  ;;  %6692 = vmatpush.bf16.msra.mxu3 %v6461_v5  ;;  %v6674_v1 = vld [vmem:[%s8689_s1 + $0x238] sm:$0xff]  ;;  %v6450_v5 = vld [vmem:[%s6833_s12 + $0x48] sm:$0xff] }
  0x23   : > { %v1782_v62 = vsel %vm1323_vm0, %v1780_v59, %v1781_v60  ;;  %v6521_v2 = vld [vmem:[%s6833_s12 + $0x18] sm:$0xff] }
  0x25   : > { %6693 = vmatpush.bf16.msra.mxu1 %v6460_v6  ;;  %6694 = vmatpush.bf16.msra.mxu2 %v6460_v6 }
  0x26   : > { %480 = vmatpush.bf16.msra.mxu0 %v6460_v6  ;;  %6695 = vmatpush.bf16.msra.mxu3 %v6460_v6  ;;  %v6455_v6 = vld [vmem:[%s6833_s12 + $0x70] sm:$0xff] }
  0x29   : > { %6696 = vmatpush.bf16.msra.mxu1 %v6459_v7  ;;  %6697 = vmatpush.bf16.msra.mxu2 %v6459_v7 }
  0x2a   : > { %481 = vmatpush.bf16.msra.mxu0 %v6459_v7  ;;  %6698 = vmatpush.bf16.msra.mxu3 %v6459_v7  ;;  %v6445_v7 = vld [vmem:[%s6833_s12 + $0x20] sm:$0xff] }
  0x2c   : > { %507 = vmatmul.bf16.vlgmr.msra.gmra.mxu1 %v6446_v11  ;;  %532 = vmatmul.bf16.vlgmr.msra.gmra.mxu2 %v6451_v12  ;;  %v5922_v11 = vor.u32 %v6545_v4, %v5921_v3  ;;  %v6468_v12 = vld [vmem:[%s6833_s12 + $0x8] sm:$0xff] }
  0x2d   : > { %1427 = vmatpush.bf16.msrb.mxu2 %v6518_v8  ;;  %970 = vmatpush.bf16.msrb.mxu1 %v6492_v9  ;;  %v6467_v8 = vld [vmem:[%s6833_s12] sm:$0xff]  ;;  %v1783_v9 = vrot.slane %v6521_v2, 1 }
  0x2e   : > { %2473 = vmatpush.bf16.msrb.mxu0 %v6570_v10  ;;  %557 = vmatmul.bf16.vlgmr.msra.gmra.mxu3 %v6456_v17  ;;  %v6546_v10 = vld [vmem:[%s6833_s12 + $0x10] sm:$0xff]  ;;  %v2238_v17 = vshrl.u32 %v5922_v11, 16 }
  0x2f   : > { %482 = vmatmul.bf16.vlgmr.msra.gmra.mxu0 %v6441_v13  ;;  %1883 = vmatpush.bf16.msrb.mxu3 %v6544_v18  ;;  %v759_v13 = vshll.u32 %v6467_v8, 16  ;;  %v2241_v18 = vshll.u32 %v5922_v11, 16 }
  0x31   : > { %1428 = vmatpush.bf16.msrb.mxu2 %v6517_v14  ;;  %971 = vmatpush.bf16.msrb.mxu1 %v6491_v15  ;;  %v5713_v14 = vld [vmem:[%s6833_s12] sm:$0xe]  ;;  %v1784_v15 = vsel %vm1323_vm0, %v1781_v60, %v1783_v9 }
  0x32   : > { %2474 = vmatpush.bf16.msrb.mxu0 %v6569_v16  ;;  %v6493_v16 = vld [vmem:[%s6833_s12] sm:$0xf0] }
  0x33   : > { %1884 = vmatpush.bf16.msrb.mxu3 %v6543_v22  ;;  %v761_v22 = vrot.slane %v759_v13, 1  ;;  %v6524_v13 = vld [vmem:[%s6833_s12 + $0x30] sm:$0xff] }
  0x35   : > { %1429 = vmatpush.bf16.msrb.mxu2 %v6516_v19  ;;  %972 = vmatpush.bf16.msrb.mxu1 %v6490_v20  ;;  %v2246_v19 = vshrl.u32 %v6546_v10, 16  ;;  %v2249_v20 = vshll.u32 %v6546_v10, 16 }
  0x36   : > { %2475 = vmatpush.bf16.msrb.mxu0 %v6568_v21  ;;  %v757_v21 = vshrl.u32 %v6467_v8, 16 }
  0x37   : > { %1885 = vmatpush.bf16.msrb.mxu3 %v6542_v26  ;;  %v2240_v26 = vrot.slane %v2238_v17, 1  ;;  %v1789_v17 = vrot.slane %v6524_v13, 1 }
  0x39   : > { %1430 = vmatpush.bf16.msrb.mxu2 %v6515_v23  ;;  %973 = vmatpush.bf16.msrb.mxu1 %v6489_v24  ;;  %v764_v23 = vshll.u32 %v6468_v12, 16  ;;  %v6494_v24 = vld [vmem:[%s6833_s12 + $0x8] sm:$0xff] }
  0x3a   : > { %2476 = vmatpush.bf16.msrb.mxu0 %v6567_v25  ;;  %v5714_v25 = vor.u32 %v6493_v16, %v5713_v14 }
  0x3b   : > { %1886 = vmatpush.bf16.msrb.mxu3 %v6541_v35 }
  0x3c   : > { %512 = vmatmul.bf16.gmra.mxu1 %v6447_v29  ;;  %537 = vmatmul.bf16.gmra.mxu2 %v6452_v30  ;;  %v2251_v29 = vrot.slane %v2249_v20, 2  ;;  %v762_v30 = vor.u32 %v761_v22, %v757_v21  ;;  %v6471_v20 = vld [vmem:[%s6833_s12 + $0x20] sm:$0xff] }
  0x3d   : > { %1431 = vmatpush.bf16.msrb.mxu2 %v6514_v27  ;;  %974 = vmatpush.bf16.msrb.mxu1 %v6488_v28  ;;  %v2243_v27 = vrot.slane %v2241_v18, 2  ;;  %v2248_v28 = vrot.slane %v2246_v19, 1  ;;  %v6549_v19 = vld [vmem:[%s6833_s12 + $0x28] sm:$0xff] }
  0x3e   : > { %2477 = vmatpush.bf16.msrb.mxu0 %v6566_v34  ;;  %562 = vmatmul.bf16.gmra.mxu3 %v6457_v32  ;;  %v1324_v32 = vrot.slane %v5714_v25, 1  ;;  %v6522_v34 = vld [vmem:[%s6833_s12 + $0x20] sm:$0xff]  ;;  %v2273_v22 = vshrl.u32 %v6549_v19, 16  ;;  %v788_v25 = vshll.u32 %v6471_v20, 16 }
  0x3f   : > { %487 = vmatmul.bf16.gmra.mxu0 %v6442_v31  ;;  %1887 = vmatpush.bf16.msrb.mxu3 %v6540_v39  ;;  %v766_v31 = vrot.slane %v764_v23, 1  ;;  %v2244_v35 = vor.u32 %v2243_v27, %v2240_v26  ;;  %v1785_v39 = vrot.slane %v6522_v34, 1  ;;  %v2276_v23 = vshll.u32 %v6549_v19, 16  ;;  %v6497_v26 = vld [vmem:[%s6833_s12 + $0x20] sm:$0xff]  ;;  %v6525_v34 = vld [vmem:[%s6833_s12 + $0x38] sm:$0xff] }
  0x40   : > { %v2275_v27 = vrot.slane %v2273_v22, 1 }
  0x41   : > { %1432 = vmatpush.bf16.msrb.mxu2 %v6513_v33  ;;  %975 = vmatpush.bf16.msrb.mxu1 %v6487_v36  ;;  %v1325_v33 = vrot.slane %v6494_v24, 1  ;;  %v2252_v36 = vor.u32 %v2251_v29, %v2248_v28  ;;  %v2278_v28 = vrot.slane %v2276_v23, 2  ;;  %v6620_v29 = vld [vmem:[%s8689_s1 + $0x1a8] sm:$0xff] }
  0x42   : > { %2478 = vmatpush.bf16.msrb.mxu0 %v6565_v38 }
  0x43   : > { %1888 = vmatpush.bf16.msrb.mxu3 %v6539_v40  ;;  %v1326_v38 = vsel %vm1323_vm0, %v1324_v32, %v1325_v33  ;;  %v2253_v40 = vsel %vm2236_vm2, %v2244_v35, %v2252_v36  ;;  %v790_v32 = vrot.slane %v788_v25, 1  ;;  %v2279_v35 = vor.u32 %v2278_v28, %v2275_v27  ;;  %v6619_v27 = vld [vmem:[%s8689_s1 + $0x1a0] sm:$0xff] }
  0x45   : > { %1433 = vmatpush.bf16.msrb.mxu2 %v6512_v37  ;;  %976 = vmatpush.bf16.msrb.mxu1 %v6486_v45  ;;  %v767_v37 = vsel %vm755_vm1, %v762_v30, %v766_v31  ;;  %v6647_v45 = vld [vmem:[%s8689_s1 + $0x1f0] sm:$0xff]  ;;  %v6646_v30 = vld [vmem:[%s8689_s1 + $0x1e8] sm:$0xff] }
  0x46   : > { %2479 = vmatpush.bf16.msrb.mxu0 %v6564_v48 }
  0x47   : > { %1889 = vmatpush.bf16.msrb.mxu3 %v6538_v46  ;;  %v6595_v46 = vld [vmem:[%s8689_s1 + $0x170] sm:$0xff] }
  0x49   : > { %1434 = vmatpush.bf16.msrb.mxu2 %v6511_v47  ;;  %977 = vmatpush.bf16.msrb.mxu1 %v6485_v49  ;;  %v768_v49 = vshrl.u32 %v6468_v12, 16 }
  0x4a   : > { %2480 = vmatpush.bf16.msrb.mxu0 %v6563_v51  ;;  %v6495_v51 = vld [vmem:[%s6833_s12 + $0x10] sm:$0xff] }
  0x4b   : > { %1890 = vmatpush.bf16.msrb.mxu3 %v6537_v50  ;;  %v770_v54 = vor.u32 %v768_v49, %v766_v31 }
  0x4c   : > { %517 = vmatmul.bf16.gmra.mxu1 %v6448_v41  ;;  %542 = vmatmul.bf16.gmra.mxu2 %v6453_v42  ;;  %v6547_v41 = vld [vmem:[%s6833_s12 + $0x18] sm:$0xff]  ;;  %v6469_v42 = vld [vmem:[%s6833_s12 + $0x10] sm:$0xff] }
  0x4d   : > { %3386 = vmatpush.bf16.msra.mxu2 %v6622_v61  ;;  %2930 = vmatpush.bf16.msra.mxu1 %v6596_v0  ;;  %v2255_v47 = vshrl.u32 %v6547_v41, 16  ;;  %v2258_v48 = vshll.u32 %v6547_v41, 16  ;;  %v772_v50 = vshll.u32 %v6469_v42, 16  ;;  %v6548_v0 = vld [vmem:[%s6833_s12 + $0x20] sm:$0xff] }
  0x4e   : > { %567 = vmatmul.bf16.gmra.mxu3 %v6458_v44  ;;  %4433 = vmatpush.bf16.msra.mxu0 %v6674_v1  ;;  %v6621_v44 = vld [vmem:[%s8689_s1 + $0x1b0] sm:$0xff]  ;;  %v6470_v1 = vld [vmem:[%s6833_s12 + $0x18] sm:$0xff]  ;;  %v2264_v3 = vshrl.u32 %v6548_v0, 16  ;;  %v2267_v4 = vshll.u32 %v6548_v0, 16 }
  0x4f   : > { %492 = vmatmul.bf16.gmra.mxu0 %v6443_v43  ;;  %3976 = vmatpush.bf16.msra.mxu3 %v6648_v63  ;;  %v1786_v43 = vsel %vm1323_vm0, %v1783_v9, %v1785_v39  ;;  %v2257_v52 = vrot.slane %v2255_v47, 1  ;;  %v2260_v53 = vrot.slane %v2258_v48, 2  ;;  %v774_v55 = vrot.slane %v772_v50, 1 }
  0x50   : > { %v2266_v8 = vrot.slane %v2264_v3, 1  ;;  %v2269_v9 = vrot.slane %v2267_v4, 2  ;;  %v784_v24 = vshrl.u32 %v6470_v1, 16 }
  0x51   : > { %3387 = vmatpush.bf16.msra.mxu2 %v6621_v44  ;;  %2931 = vmatpush.bf16.msra.mxu1 %v6595_v46  ;;  %v775_v59 = vsel %vm755_vm1, %v770_v54, %v774_v55  ;;  %v6472_v44 = vld [vmem:[%s6833_s12 + $0x28] sm:$0xff] }
  0x52   : > { %v2270_v14 = vor.u32 %v2269_v9, %v2266_v8  ;;  %v6672_v46 = vld [vmem:[%s8689_s1 + $0x228] sm:$0xff]  ;;  %v6473_v8 = vld [vmem:[%s6833_s12 + $0x30] sm:$0xff] }
  0x53   : > { %3977 = vmatpush.bf16.msra.mxu3 %v6647_v45 }
  0x55   : > { %3388 = vmatpush.bf16.msra.mxu2 %v6620_v29 }
  0x57   : > { %3978 = vmatpush.bf16.msra.mxu3 %v6646_v30 }
  0x59   : > { %3389 = vmatpush.bf16.msra.mxu2 %v6619_v27 }
  0x5c   : > { %522 = vmatmul.bf16.gmra.mxu1 %v6449_v56  ;;  %547 = vmatmul.bf16.gmra.mxu2 %v6454_v57  ;;  %v1327_v56 = vrot.slane %v6495_v51, 1  ;;  %v6523_v57 = vld [vmem:[%s6833_s12 + $0x28] sm:$0xff]  ;;  %v792_v51 = vshrl.u32 %v6471_v20, 16 }
  0x5d   : > { %v1787_v61 = vrot.slane %v6523_v57, 1 }
  0x5e   : > { %1891 = vmatmul.bf16.vlgmr.msrb.gmra.mxu3 %v1782_v62  ;;  %v1328_v60 = vsel %vm1323_vm0, %v1325_v33, %v1327_v56  ;;  %v6673_v62 = vld [vmem:[%s8689_s1 + $0x230] sm:$0xff]  ;;  %v1331_v33 = vrot.slane %v6497_v26, 1 }
  0x5f   : > { %497 = vmatmul.bf16.gmra.mxu0 %v6444_v58  ;;  %v2261_v58 = vor.u32 %v2260_v53, %v2257_v52  ;;  %v1788_v2 = vsel %vm1323_vm0, %v1785_v39, %v1787_v61  ;;  %v1790_v21 = vsel %vm1323_vm0, %v1787_v61, %v1789_v17  ;;  %v796_v52 = vshll.u32 %v6472_v44, 16  ;;  %v6498_v53 = vld [vmem:[%s6833_s12 + $0x28] sm:$0xff]  ;;  %v6526_v61 = vld [vmem:[%s6833_s12 + $0x40] sm:$0xff] }
  0x60   : > { %4434 = vmatpush.bf16.msra.mxu0 %v6673_v62  ;;  %v1793_v3 = vrot.slane %v6526_v61, 1  ;;  %v6528_v61 = vld [vmem:[%s6833_s12 + $0x50] sm:$0xff] }
  0x61   : > { %v2262_v63 = vsel %vm2236_vm2, %v2252_v36, %v2261_v58  ;;  %v2271_v18 = vsel %vm2236_vm2, %v2261_v58, %v2270_v14  ;;  %v6594_v36 = vld [vmem:[%s8689_s1 + $0x168] sm:$0xff]  ;;  %v794_v58 = vor.u32 %v792_v51, %v790_v32  ;;  %v6671_v51 = vld [vmem:[%s8689_s1 + $0x220] sm:$0xff] }
  0x62   : > { %2932 = vmatpush.bf16.msra.mxu1 %v6594_v36 }
  0x64   : > { %4435 = vmatpush.bf16.msra.mxu0 %v6672_v46  ;;  %v808_v46 = vshrl.u32 %v6473_v8, 16 }
  0x68   : > { %4436 = vmatpush.bf16.msra.mxu0 %v6671_v51  ;;  %v6554_v51 = vld [vmem:[%s6833_s12 + $0x50] sm:$0xff] }
  0x6c   : > { %527 = vmatmul.bf16.gmra.mxu1 %v6450_v5  ;;  %552 = vmatmul.bf16.gmra.mxu2 %v6455_v6  ;;  %v776_v5 = vshrl.u32 %v6469_v42, 16  ;;  %v780_v6 = vshll.u32 %v6470_v1, 16  ;;  %v2280_v42 = vsel %vm2236_vm2, %v2270_v14, %v2279_v35  ;;  %v800_v14 = vshrl.u32 %v6472_v44, 16 }
  0x6e   : > { %1896 = vmatmul.bf16.gmra.mxu3 %v1784_v15  ;;  %v778_v10 = vor.u32 %v776_v5, %v774_v55  ;;  %v782_v11 = vrot.slane %v780_v6, 1  ;;  %v6551_v6 = vld [vmem:[%s6833_s12 + $0x38] sm:$0xff] }
  0x6f   : > { %502 = vmatmul.bf16.gmra.mxu0 %v6445_v7  ;;  %v6496_v7 = vld [vmem:[%s6833_s12 + $0x18] sm:$0xff] }
  0x70   : > { %v1329_v12 = vrot.slane %v6496_v7, 1  ;;  %v783_v15 = vsel %vm755_vm1, %v778_v10, %v782_v11  ;;  %v786_v31 = vor.u32 %v784_v24, %v782_v11  ;;  %v2291_v10 = vshrl.u32 %v6551_v6, 16  ;;  %v6527_v24 = vld [vmem:[%s6833_s12 + $0x48] sm:$0xff] }
  0x71   : > { %v2294_v11 = vshll.u32 %v6551_v6, 16  ;;  %v1797_v6 = vrot.slane %v6528_v61, 1  ;;  %v2318_v61 = vshrl.u32 %v6554_v51, 16 }
  0x72   : > { %v1330_v16 = vsel %vm1323_vm0, %v1327_v56, %v1329_v12  ;;  %v1332_v39 = vsel %vm1323_vm0, %v1329_v12, %v1331_v33 }
  0x73   : > { %v2296_v19 = vrot.slane %v2294_v11, 2 }
  0x7c   : > { %978 = vmatmul.bf16.vlgmr.msrb.gmra.mxu1 %v767_v37  ;;  %1435 = vmatmul.bf16.vlgmr.msrb.gmra.mxu2 %v1326_v38  ;;  %v791_v38 = vsel %vm755_vm1, %v786_v31, %v790_v32  ;;  %v1795_v31 = vrot.slane %v6527_v24, 1  ;;  %v6645_v32 = vld [vmem:[%s8689_s1 + $0x1e0] sm:$0xff] }
  0x7d   : > { %3979 = vmatpush.bf16.msra.mxu3 %v6645_v32  ;;  %v6501_v24 = vld [vmem:[%s6833_s12 + $0x40] sm:$0xff] }
  0x7e   : > { %1901 = vmatmul.bf16.gmra.mxu3 %v1786_v43  ;;  %v6550_v43 = vld [vmem:[%s6833_s12 + $0x30] sm:$0xff] }
  0x7f   : > { %2481 = vmatmul.bf16.vlgmr.msrb.gmra.mxu0 %v2253_v40  ;;  %v1791_v40 = vrot.slane %v6525_v34, 1  ;;  %v2282_v47 = vshrl.u32 %v6550_v43, 16  ;;  %v2285_v48 = vshll.u32 %v6550_v43, 16 }
  0x81   : > { %v1792_v45 = vsel %vm1323_vm0, %v1789_v17, %v1791_v40  ;;  %v2284_v55 = vrot.slane %v2282_v47, 1  ;;  %v2287_v56 = vrot.slane %v2285_v48, 2  ;;  %v1794_v9 = vsel %vm1323_vm0, %v1791_v40, %v1793_v3  ;;  %v6500_v48 = vld [vmem:[%s6833_s12 + $0x38] sm:$0xff] }
  0x82   : > { %v1796_v40 = vsel %vm1323_vm0, %v1793_v3, %v1795_v31 }
  0x83   : > { %v2288_v62 = vor.u32 %v2287_v56, %v2284_v55 }
  0x85   : > { %v2289_v5 = vsel %vm2236_vm2, %v2279_v35, %v2288_v62  ;;  %v6552_v35 = vld [vmem:[%s6833_s12 + $0x40] sm:$0xff] }
  0x86   : > { %v2303_v43 = vshll.u32 %v6552_v35, 16 }
  0x88   : > { %v2305_v55 = vrot.slane %v2303_v43, 2 }
  0x8c   : > { %983 = vmatmul.bf16.gmra.mxu1 %v775_v59  ;;  %1440 = vmatmul.bf16.gmra.mxu2 %v1328_v60  ;;  %v798_v59 = vrot.slane %v796_v52, 1  ;;  %v1333_v60 = vrot.slane %v6498_v53, 1 }
  0x8e   : > { %1906 = vmatmul.bf16.gmra.mxu3 %v1788_v2  ;;  %v799_v1 = vsel %vm755_vm1, %v794_v58, %v798_v59  ;;  %v1334_v2 = vsel %vm1323_vm0, %v1331_v33, %v1333_v60 }
  0x8f   : > { %2486 = vmatmul.bf16.gmra.mxu0 %v2262_v63 }
  0x9c   : > { %988 = vmatmul.bf16.gmra.mxu1 %v783_v15  ;;  %1445 = vmatmul.bf16.gmra.mxu2 %v1330_v16  ;;  %v804_v15 = vshll.u32 %v6473_v8, 16  ;;  %v6499_v16 = vld [vmem:[%s6833_s12 + $0x30] sm:$0xff] }
  0x9d   : > { %v1335_v23 = vrot.slane %v6499_v16, 1 }
  0x9e   : > { %1911 = vmatmul.bf16.gmra.mxu3 %v1790_v21  ;;  %v802_v21 = vor.u32 %v800_v14, %v798_v59  ;;  %v806_v22 = vrot.slane %v804_v15, 1  ;;  %v6475_v14 = vld [vmem:[%s6833_s12 + $0x40] sm:$0xff]  ;;  %v1798_v15 = vsel %vm1323_vm0, %v1795_v31, %v1797_v6 }
  0x9f   : > { %2491 = vmatmul.bf16.gmra.mxu0 %v2271_v18  ;;  %v2293_v18 = vrot.slane %v2291_v10, 1  ;;  %v1336_v30 = vsel %vm1323_vm0, %v1333_v60, %v1335_v23  ;;  %v1337_v60 = vrot.slane %v6500_v48, 1  ;;  %v6553_v10 = vld [vmem:[%s6833_s12 + $0x48] sm:$0xff] }
  0xa0   : > { %v807_v29 = vsel %vm755_vm1, %v802_v21, %v806_v22  ;;  %v810_v58 = vor.u32 %v808_v46, %v806_v22  ;;  %v2309_v16 = vshrl.u32 %v6553_v10, 16 }
  0xa1   : > { %v2297_v25 = vor.u32 %v2296_v19, %v2293_v18  ;;  %v2312_v18 = vshll.u32 %v6553_v10, 16 }
  0xa2   : > { %v2311_v27 = vrot.slane %v2309_v16, 1 }
  0xa3   : > { %v2298_v34 = vsel %vm2236_vm2, %v2288_v62, %v2297_v25 }
  0xa9   : > { %v7021_v37 = vpop.f32.mrf.mxu1 }
  0xac   : > { %v7025_v41 = vpop.f32.mrf.mxu0  ;;  %993 = vmatmul.bf16.gmra.mxu1 %v791_v38  ;;  %1450 = vmatmul.bf16.gmra.mxu2 %v1332_v39  ;;  %v6593_v38 = vld [vmem:[%s8689_s1 + $0x160] sm:$0xff]  ;;  %v6474_v39 = vld [vmem:[%s6833_s12 + $0x38] sm:$0xff] }
  0xad   : > { %2933 = vmatpush.bf16.msra.mxu1 %v6593_v38  ;;  %v812_v47 = vshll.u32 %v6474_v39, 16  ;;  %v816_v22 = vshrl.u32 %v6474_v39, 16 }
  0xae   : > { %1916 = vmatmul.bf16.gmra.mxu3 %v1792_v45 }
  0xaf   : > { %2496 = vmatmul.bf16.gmra.mxu0 %v2280_v42  ;;  %v7034_v49 = vpop.f32.mrf.mxu2  ;;  %v2300_v42 = vshrl.u32 %v6552_v35, 16  ;;  %v814_v59 = vrot.slane %v812_v47, 1  ;;  %v6529_v35 = vld [vmem:[%s6833_s12 + $0x58] sm:$0xff] }
  0xb0   : > { %v1799_v46 = vrot.slane %v6529_v35, 1 }
  0xb1   : > { %v7036_v50 = vpop.f32.mrf.mxu1  ;;  %v7041_v57 = vpop.f32.mrf.mxu3  ;;  %v2302_v53 = vrot.slane %v2300_v42, 1  ;;  %v815_v3 = vsel %vm755_vm1, %v810_v58, %v814_v59  ;;  %v818_v32 = vor.u32 %v816_v22, %v814_v59  ;;  %v6476_v58 = vld [vmem:[%s6833_s12 + $0x48] sm:$0xff]  ;;  %v6592_v22 = vld [vmem:[%s8689_s1 + $0x158] sm:$0xff] }
  0xb2   : > { %v1800_v59 = vsel %vm1323_vm0, %v1797_v6, %v1799_v46  ;;  %v828_v10 = vshll.u32 %v6476_v58, 16  ;;  %v2320_v6 = vrot.slane %v2318_v61, 1  ;;  %2934 = vmatpush.bf16.msra.mxu1 %v6592_v22  ;;  %v6555_v61 = vld [vmem:[%s6833_s12 + $0x58] sm:$0xff]  ;;  %v832_v22 = vshrl.u32 %v6476_v58, 16 }
  0xb3   : > { %v2306_v62 = vor.u32 %v2305_v55, %v2302_v53  ;;  %v6618_v55 = vld [vmem:[%s8689_s1 + $0x198] sm:$0xff] }
  0xb4   : > { %v7039_v54 = vpop.f32.mrf.mxu0  ;;  %3390 = vmatpush.bf16.msra.mxu2 %v6618_v55 }
  0xb7   : > { %v7044_v63 = vpop.f32.mrf.mxu2 }
  0xb9   : > { %v7046_v0 = vpop.f32.mrf.mxu1  ;;  %v7054_v7 = vpop.f32.mrf.mxu3 }
  0xbc   : > { %v7050_v4 = vpop.f32.mrf.mxu0  ;;  %998 = vmatmul.bf16.gmra.mxu1 %v799_v1  ;;  %1455 = vmatmul.bf16.gmra.mxu2 %v1334_v2 }
  0xbe   : > { %1921 = vmatmul.bf16.gmra.mxu3 %v1794_v9  ;;  %v2307_v9 = vsel %vm2236_vm2, %v2297_v25, %v2306_v62 }
  0xbf   : > { %2501 = vmatmul.bf16.gmra.mxu0 %v2289_v5  ;;  %v7058_v12 = vpop.f32.mrf.mxu2  ;;  %v1338_v5 = vsel %vm1323_vm0, %v1335_v23, %v1337_v60  ;;  %v820_v23 = vshll.u32 %v6475_v14, 16 }
  0xc1   : > { %v7060_v13 = vpop.f32.mrf.mxu1  ;;  %v7065_v20 = vpop.f32.mrf.mxu3  ;;  %v822_v31 = vrot.slane %v820_v23, 1  ;;  %v6670_v23 = vld [vmem:[%s8689_s1 + $0x218] sm:$0xff] }
  0xc2   : > { %4437 = vmatpush.bf16.msra.mxu0 %v6670_v23 }
  0xc3   : > { %v823_v39 = vsel %vm755_vm1, %v818_v32, %v822_v31  ;;  %v6530_v32 = vld [vmem:[%s6833_s12 + $0x60] sm:$0xff] }
  0xc4   : > { %v7063_v17 = vpop.f32.mrf.mxu0  ;;  %v1801_v55 = vrot.slane %v6530_v32, 1 }
  0xc7   : > { %v7068_v26 = vpop.f32.mrf.mxu2 }
  0xc9   : > { %v7073_v28 = vpop.f32.mrf.mxu1  ;;  %v7084_v36 = vpop.f32.mrf.mxu3 }
  0xcc   : > { %v7080_v33 = vpop.f32.mrf.mxu0  ;;  %1003 = vmatmul.bf16.gmra.mxu1 %v807_v29  ;;  %1460 = vmatmul.bf16.gmra.mxu2 %v1336_v30  ;;  %v2314_v29 = vrot.slane %v2312_v18, 2 }
  0xce   : > { %1926 = vmatmul.bf16.gmra.mxu3 %v1796_v40  ;;  %v2315_v38 = vor.u32 %v2314_v29, %v2311_v27  ;;  %v830_v27 = vrot.slane %v828_v10, 1 }
  0xcf   : > { %2506 = vmatmul.bf16.gmra.mxu0 %v2298_v34  ;;  %v7091_v44 = vpop.f32.mrf.mxu2  ;;  %v1339_v34 = vrot.slane %v6501_v24, 1 }
  0xd0   : > { %v2316_v48 = vsel %vm2236_vm2, %v2306_v62, %v2315_v38  ;;  %v2321_v62 = vshll.u32 %v6554_v51, 16 }
  0xd1   : > { %v7093_v45 = vpop.f32.mrf.mxu1  ;;  %v7101_v56 = vpop.f32.mrf.mxu3  ;;  %v1340_v43 = vsel %vm1323_vm0, %v1337_v60, %v1339_v34  ;;  %v6644_v60 = vld [vmem:[%s8689_s1 + $0x1d8] sm:$0xff] }
  0xd2   : > { %3980 = vmatpush.bf16.msra.mxu3 %v6644_v60  ;;  %v2323_v18 = vrot.slane %v2321_v62, 2 }
  0xd4   : > { %v7099_v52 = vpop.f32.mrf.mxu0  ;;  %v2324_v35 = vor.u32 %v2323_v18, %v2320_v6  ;;  %v2330_v6 = vshll.u32 %v6555_v61, 16 }
  0xd6   : > { %v2325_v60 = vsel %vm2236_vm2, %v2315_v38, %v2324_v35 }
  0xd7   : > { %v7104_v1 = vpop.f32.mrf.mxu2 }
  0xd9   : > { %v7106_v2 = vpop.f32.mrf.mxu1  ;;  %v7114_v11 = vpop.f32.mrf.mxu3 }
  0xda   : > { %8731 = vst [vmem:[#allocation3_spill] sm:$0xff] %v7114_v11 }
  0xdc   : > { %v7110_v8 = vpop.f32.mrf.mxu0  ;;  %1008 = vmatmul.bf16.gmra.mxu1 %v815_v3  ;;  %1465 = vmatmul.bf16.gmra.mxu2 %v1338_v5 }
  0xde   : > { %1931 = vmatmul.bf16.gmra.mxu3 %v1798_v15  ;;  %v6502_v15 = vld [vmem:[%s6833_s12 + $0x48] sm:$0xff] }
  0xdf   : > { %2511 = vmatmul.bf16.gmra.mxu0 %v2307_v9  ;;  %v7118_v19 = vpop.f32.mrf.mxu2  ;;  %v824_v9 = vshrl.u32 %v6475_v14, 16  ;;  %v1341_v29 = vrot.slane %v6502_v15, 1  ;;  %v2327_v15 = vshrl.u32 %v6555_v61, 16 }
  0xe1   : > { %v7120_v21 = vpop.f32.mrf.mxu1  ;;  %v7125_v30 = vpop.f32.mrf.mxu3  ;;  %v826_v14 = vor.u32 %v824_v9, %v822_v31  ;;  %v1342_v51 = vsel %vm1323_vm0, %v1339_v34, %v1341_v29  ;;  %v7173_v31 = vld [vmem:[%s6833_s12 + $0x50] sm:$0xff]  ;;  %v1802_v9 = vsel %vm1323_vm0, %v1799_v46, %v1801_v55 }
  0xe2   : > { %v836_v23 = vshll.u32 %v7173_v31, 16 }
  0xe4   : > { %v7123_v25 = vpop.f32.mrf.mxu0  ;;  %v838_v61 = vrot.slane %v836_v23, 1 }
  0xe7   : > { %v7128_v40 = vpop.f32.mrf.mxu2 }
  0xe9   : > { %v7130_v42 = vpop.f32.mrf.mxu1  ;;  %v7138_v53 = vpop.f32.mrf.mxu3 }
  0xec   : > { %v7134_v47 = vpop.f32.mrf.mxu0  ;;  %1013 = vmatmul.bf16.gmra.mxu1 %v823_v39  ;;  %1470 = vmatmul.bf16.gmra.mxu2 %v1340_v43 }
  0xee   : > { %1936 = vmatmul.bf16.gmra.mxu3 %v1800_v59 }
  0xef   : > { %2516 = vmatmul.bf16.gmra.mxu0 %v2316_v48  ;;  %v7148_v3 = vpop.f32.mrf.mxu2  ;;  %v831_v48 = vsel %vm755_vm1, %v826_v14, %v830_v27  ;;  %v7179_v14 = vld [vmem:[%s6833_s12 + $0x50] sm:$0xff] }
  0xf1   : > { %v7150_v5 = vpop.f32.mrf.mxu1  ;;  %v7161_v24 = vpop.f32.mrf.mxu3 }
  0xf4   : > { %v7153_v16 = vpop.f32.mrf.mxu0 }
  0xf7   : > { %v7164_v39 = vpop.f32.mrf.mxu2 }
  0xf9   : > { %v979_v43 = vpop.f32.mrf.mxu1  ;;  %v7170_v62 = vpop.f32.mrf.mxu3 }
  0xfa   : > { %v1105_v10 = vadd.f32 %v979_v43, %v7025_v41  ;;  %v834_v43 = vor.u32 %v832_v22, %v830_v27 }
  0xfc   : > { %v2482_v59 = vpop.f32.mrf.mxu0  ;;  %1018 = vmatmul.bf16.gmra.mxu1 %v831_v48  ;;  %1475 = vmatmul.bf16.gmra.mxu2 %v1342_v51  ;;  %v2329_v51 = vrot.slane %v2327_v15, 1  ;;  %v839_v15 = vsel %vm755_vm1, %v834_v43, %v838_v61 }
  0xfe   : > { %1941 = vmatmul.bf16.gmra.mxu3 %v1802_v9  ;;  %v1343_v9 = vrot.slane %v7179_v14, 1  ;;  %v6556_v14 = vld [vmem:[%s6833_s12 + $0x60] sm:$0xff] }
  0xff   : > { %2521 = vmatmul.bf16.gmra.mxu0 %v2325_v60  ;;  %v1436_v34 = vpop.f32.mrf.mxu2  ;;  %v2332_v60 = vrot.slane %v2330_v6, 2 }
 0x100   : > { %v1562_v18 = vadd.f32 %v1436_v34, %v1105_v10  ;;  %v7188_v10 = vld [vmem:[%s6833_s12 + $0x68] sm:$0xff]  ;;  %v1344_v6 = vsel %vm1323_vm0, %v1341_v29, %v1343_v9 }
 0x101   : > { %v981_v38 = vpop.f32.mrf.mxu1  ;;  %v7182_v46 = vpop.f32.mrf.mxu3  ;;  %v2333_v34 = vor.u32 %v2332_v60, %v2329_v51  ;;  %v2336_v51 = vshrl.u32 %v6556_v14, 16 }
 0x102   : > { %v2018_v32 = vadd.f32 %v7125_v30, %v1562_v18  ;;  %v1106_v58 = vadd.f32 %v981_v38, %v7039_v54 }
 0x103   : > { %v2334_v23 = vsel %vm2236_vm2, %v2324_v35, %v2333_v34 }
 0x104   : > { %v2484_v48 = vpop.f32.mrf.mxu0  ;;  %v7184_v41 = vadd.f32 %v2482_v59, %v2018_v32  ;;  %v1803_v59 = vrot.slane %v7188_v10, 1  ;;  %v840_v10 = vshrl.u32 %v7173_v31, 16  ;;  %v6591_v31 = vld [vmem:[%s8689_s1 + $0x150] sm:$0xff] }
 0x105   : > { %2935 = vmatpush.bf16.msra.mxu1 %v6591_v31 }
 0x106   : > { %8732 = vst [vmem:[#allocation4_spill] sm:$0xff] %v7184_v41  ;;  %v1804_v29 = vsel %vm1323_vm0, %v1801_v55, %v1803_v59 }
 0x107   : > { %v1438_v11 = vpop.f32.mrf.mxu2 }
 0x108   : > { %v1563_v30 = vadd.f32 %v1438_v11, %v1106_v58  ;;  %v7202_v11 = vld [vmem:[%s6833_s12 + $0x58] sm:$0xff] }
 0x109   : > { %v984_v18 = vpop.f32.mrf.mxu1  ;;  %v7197_v32 = vpop.f32.mrf.mxu3  ;;  %v844_v58 = vshll.u32 %v7202_v11, 16 }
 0x10a   : > { %v2019_v27 = vadd.f32 %v7138_v53, %v1563_v30  ;;  %v1107_v38 = vadd.f32 %v984_v18, %v7050_v4  ;;  %v2339_v53 = vshll.u32 %v6556_v14, 16  ;;  %v7209_v30 = vld [vmem:[%s6833_s12 + $0x58] sm:$0xff]  ;;  %v6617_v4 = vld [vmem:[%s8689_s1 + $0x190] sm:$0xff] }
 0x10b   : > { %v6643_v18 = vld [vmem:[%s8689_s1 + $0x1d0] sm:$0xff]  ;;  %3391 = vmatpush.bf16.msra.mxu2 %v6617_v4  ;;  %v846_v14 = vrot.slane %v844_v58, 1 }
 0x10c   : > { %v2487_v22 = vpop.f32.mrf.mxu0  ;;  %1023 = vmatmul.bf16.gmra.mxu1 %v839_v15  ;;  %1480 = vmatmul.bf16.gmra.mxu2 %v1344_v6  ;;  %v7199_v54 = vadd.f32 %v2484_v48, %v2019_v27  ;;  %v2338_v6 = vrot.slane %v2336_v51, 1  ;;  %v2341_v55 = vrot.slane %v2339_v53, 2 }
 0x10d   : > { %3981 = vmatpush.bf16.msra.mxu3 %v6643_v18 }
 0x10e   : > { %8733 = vst [vmem:[#allocation5_spill] sm:$0xff] %v7199_v54  ;;  %1946 = vmatmul.bf16.gmra.mxu3 %v1804_v29  ;;  %v1345_v29 = vrot.slane %v7209_v30, 1  ;;  %v2342_v53 = vor.u32 %v2341_v55, %v2338_v6  ;;  %v6557_v30 = vld [vmem:[%s6833_s12 + $0x68] sm:$0xff] }
 0x10f   : > { %2526 = vmatmul.bf16.gmra.mxu0 %v2334_v23  ;;  %v1441_v60 = vpop.f32.mrf.mxu2  ;;  %v842_v23 = vor.u32 %v840_v10, %v838_v61  ;;  %v2348_v55 = vshll.u32 %v6557_v30, 16 }
 0x110   : > { %v1564_v43 = vadd.f32 %v1441_v60, %v1107_v38  ;;  %v6532_v38 = vld [vmem:[%s6833_s12 + $0x70] sm:$0xff]  ;;  %v1346_v4 = vsel %vm1323_vm0, %v1343_v9, %v1345_v29  ;;  %v2343_v58 = vsel %vm2236_vm2, %v2333_v34, %v2342_v53  ;;  %v7241_v9 = vld [vmem:[%s6833_s12 + $0x60] sm:$0xff]  ;;  %v2345_v34 = vshrl.u32 %v6557_v30, 16  ;;  %v7254_v30 = vld [vmem:[%s6833_s12 + $0x78] sm:$0xff] }
 0x111   : > { %v986_v35 = vpop.f32.mrf.mxu1  ;;  %v7221_v27 = vpop.f32.mrf.mxu3  ;;  %v847_v41 = vsel %vm755_vm1, %v842_v23, %v846_v14 }
 0x112   : > { %v2020_v48 = vadd.f32 %v7161_v24, %v1564_v43  ;;  %v1108_v51 = vadd.f32 %v986_v35, %v7063_v17  ;;  %v6669_v17 = vld [vmem:[%s8689_s1 + $0x210] sm:$0xff] }
 0x113   : > { %4438 = vmatpush.bf16.msra.mxu0 %v6669_v17 }
 0x114   : > { %v2489_v15 = vpop.f32.mrf.mxu0  ;;  %v7223_v24 = vadd.f32 %v2487_v22, %v2020_v48  ;;  %v1805_v22 = vrot.slane %v6532_v38, 1  ;;  %v6505_v38 = vld [vmem:[%s6833_s12 + $0x60] sm:$0xff] }
 0x117   : > { %v1443_v60 = vpop.f32.mrf.mxu2 }
 0x118   : > { %v1565_v43 = vadd.f32 %v1443_v60, %v1108_v51 }
 0x119   : > { %v989_v54 = vpop.f32.mrf.mxu1  ;;  %v7236_v35 = vpop.f32.mrf.mxu3 }
 0x11a   : > { %v2021_v61 = vadd.f32 %v7170_v62, %v1565_v43  ;;  %v1806_v62 = vsel %vm1323_vm0, %v1803_v59, %v1805_v22  ;;  %v1109_v6 = vadd.f32 %v989_v54, %v7080_v33  ;;  %v2347_v43 = vrot.slane %v2345_v34, 1 }
 0x11b   : > { %v2350_v59 = vrot.slane %v2348_v55, 2 }
 0x11c   : > { %v2492_v10 = vpop.f32.mrf.mxu0  ;;  %1028 = vmatmul.bf16.gmra.mxu1 %v847_v41  ;;  %1485 = vmatmul.bf16.gmra.mxu2 %v1346_v4  ;;  %v7238_v48 = vadd.f32 %v2489_v15, %v2021_v61  ;;  %v848_v41 = vshrl.u32 %v7202_v11, 16  ;;  %v852_v15 = vshll.u32 %v7241_v9, 16 }
 0x11d   : > { %v2351_v17 = vor.u32 %v2350_v59, %v2347_v43 }
 0x11e   : > { %1951 = vmatmul.bf16.gmra.mxu3 %v1806_v62  ;;  %v850_v54 = vor.u32 %v848_v41, %v846_v14  ;;  %v854_v61 = vrot.slane %v852_v15, 1  ;;  %v6558_v41 = vld [vmem:[%s6833_s12 + $0x70] sm:$0xff] }
 0x11f   : > { %2531 = vmatmul.bf16.gmra.mxu0 %v2343_v58  ;;  %v1446_v18 = vpop.f32.mrf.mxu2  ;;  %v1347_v58 = vrot.slane %v6505_v38, 1 }
 0x120   : > { %v1566_v31 = vadd.f32 %v1446_v18, %v1109_v6  ;;  %v855_v34 = vsel %vm755_vm1, %v850_v54, %v854_v61  ;;  %v856_v54 = vshrl.u32 %v7241_v9, 16 }
 0x121   : > { %v991_v23 = vpop.f32.mrf.mxu1  ;;  %v7249_v4 = vpop.f32.mrf.mxu3  ;;  %v1348_v55 = vsel %vm1323_vm0, %v1345_v29, %v1347_v58 }
 0x122   : > { %v2022_v51 = vadd.f32 %v7182_v46, %v1566_v31  ;;  %v1110_v11 = vadd.f32 %v991_v23, %v7099_v52  ;;  %v2352_v31 = vsel %vm2236_vm2, %v2342_v53, %v2351_v17  ;;  %v7268_v23 = vld [vmem:[%s6833_s12 + $0x68] sm:$0xff] }
 0x124   : > { %v2494_v60 = vpop.f32.mrf.mxu0  ;;  %v7251_v33 = vadd.f32 %v2492_v10, %v2022_v51  ;;  %v1807_v10 = vrot.slane %v7254_v30, 1  ;;  %v2354_v51 = vshrl.u32 %v6558_v41, 16  ;;  %v860_v30 = vshll.u32 %v7268_v23, 16 }
 0x126   : > { %v1808_v29 = vsel %vm1323_vm0, %v1805_v22, %v1807_v10 }
 0x127   : > { %v1448_v62 = vpop.f32.mrf.mxu2 }
 0x128   : > { %v1567_v6 = vadd.f32 %v1448_v62, %v1110_v11 }
 0x129   : > { %v994_v46 = vpop.f32.mrf.mxu1  ;;  %v7263_v15 = vpop.f32.mrf.mxu3 }
 0x12a   : > { %v2023_v18 = vadd.f32 %v7197_v32, %v1567_v6  ;;  %v1111_v38 = vadd.f32 %v994_v46, %v7110_v8  ;;  %v2357_v32 = vshll.u32 %v6558_v41, 16  ;;  %v2356_v6 = vrot.slane %v2354_v51, 1  ;;  %v6616_v8 = vld [vmem:[%s8689_s1 + $0x188] sm:$0xff] }
 0x12b   : > { %v6642_v46 = vld [vmem:[%s8689_s1 + $0x1c8] sm:$0xff]  ;;  %3392 = vmatpush.bf16.msra.mxu2 %v6616_v8 }
 0x12c   : > { %v2497_v14 = vpop.f32.mrf.mxu0  ;;  %1033 = vmatmul.bf16.gmra.mxu1 %v855_v34  ;;  %1490 = vmatmul.bf16.gmra.mxu2 %v1348_v55  ;;  %v7265_v52 = vadd.f32 %v2494_v60, %v2023_v18  ;;  %v7275_v60 = vld [vmem:[%s6833_s12 + $0x68] sm:$0xff]  ;;  %v2359_v22 = vrot.slane %v2357_v32, 2  ;;  %v858_v55 = vor.u32 %v856_v54, %v854_v61 }
 0x12d   : > { %3982 = vmatpush.bf16.msra.mxu3 %v6642_v46  ;;  %v1349_v18 = vrot.slane %v7275_v60, 1  ;;  %v6559_v60 = vld [vmem:[%s6833_s12 + $0x78] sm:$0xff] }
 0x12e   : > { %1956 = vmatmul.bf16.gmra.mxu3 %v1808_v29  ;;  %v2360_v29 = vor.u32 %v2359_v22, %v2356_v6  ;;  %v2363_v22 = vshrl.u32 %v6559_v60, 16  ;;  %v2366_v8 = vshll.u32 %v6559_v60, 16 }
 0x12f   : > { %2536 = vmatmul.bf16.gmra.mxu0 %v2352_v31  ;;  %v1451_v43 = vpop.f32.mrf.mxu2  ;;  %v7290_v31 = vld [vmem:[%s6833_s12 + $0x80] sm:$0xff] }
 0x130   : > { %v1568_v59 = vadd.f32 %v1451_v43, %v1111_v38 }
 0x131   : > { %v996_v53 = vpop.f32.mrf.mxu1  ;;  %v7284_v34 = vpop.f32.mrf.mxu3 }
 0x132   : > { %v2024_v11 = vadd.f32 %v7221_v27, %v1568_v59  ;;  %v862_v27 = vrot.slane %v860_v30, 1  ;;  %v1112_v41 = vadd.f32 %v996_v53, %v7123_v25  ;;  %v1350_v59 = vsel %vm1323_vm0, %v1347_v58, %v1349_v18  ;;  %v6590_v25 = vld [vmem:[%s8689_s1 + $0x148] sm:$0xff]  ;;  %v6481_v58 = vld [vmem:[%s6833_s12 + $0x70] sm:$0xff] }
 0x133   : > { %v2361_v30 = vsel %vm2236_vm2, %v2351_v17, %v2360_v29  ;;  %2936 = vmatpush.bf16.msra.mxu1 %v6590_v25  ;;  %v7320_v25 = vld [vmem:[%s6833_s12 + $0x88] sm:$0xff] }
 0x134   : > { %v2499_v62 = vpop.f32.mrf.mxu0  ;;  %v7286_v9 = vadd.f32 %v2497_v14, %v2024_v11  ;;  %v863_v43 = vsel %vm755_vm1, %v858_v55, %v862_v27  ;;  %v1809_v14 = vrot.slane %v7290_v31, 1  ;;  %v864_v31 = vshrl.u32 %v7268_v23, 16 }
 0x136   : > { %v1810_v6 = vsel %vm1323_vm0, %v1807_v10, %v1809_v14 }
 0x137   : > { %v1453_v38 = vpop.f32.mrf.mxu2 }
 0x138   : > { %v1569_v51 = vadd.f32 %v1453_v38, %v1112_v41  ;;  %v868_v41 = vshll.u32 %v6481_v58, 16  ;;  %v6507_v38 = vld [vmem:[%s6833_s12 + $0x70] sm:$0xff] }
 0x139   : > { %v999_v32 = vpop.f32.mrf.mxu1  ;;  %v7302_v53 = vpop.f32.mrf.mxu3  ;;  %v1351_v60 = vrot.slane %v6507_v38, 1 }
 0x13a   : > { %v2025_v61 = vadd.f32 %v7236_v35, %v1569_v51  ;;  %v6668_v35 = vld [vmem:[%s8689_s1 + $0x208] sm:$0xff]  ;;  %v1113_v17 = vadd.f32 %v999_v32, %v7134_v47  ;;  %v866_v32 = vor.u32 %v864_v31, %v862_v27  ;;  %v6560_v31 = vld [vmem:[%s6833_s12 + $0x80] sm:$0xff] }
 0x13b   : > { %4439 = vmatpush.bf16.msra.mxu0 %v6668_v35 }
 0x13c   : > { %v2502_v54 = vpop.f32.mrf.mxu0  ;;  %1038 = vmatmul.bf16.gmra.mxu1 %v863_v43  ;;  %1495 = vmatmul.bf16.gmra.mxu2 %v1350_v59  ;;  %v7304_v11 = vadd.f32 %v2499_v62, %v2025_v61  ;;  %v2365_v43 = vrot.slane %v2363_v22, 1  ;;  %v2368_v59 = vrot.slane %v2366_v8, 2  ;;  %v1352_v8 = vsel %vm1323_vm0, %v1349_v18, %v1351_v60 }
 0x13e   : > { %1961 = vmatmul.bf16.gmra.mxu3 %v1810_v6  ;;  %v2369_v23 = vor.u32 %v2368_v59, %v2365_v43 }
 0x13f   : > { %2541 = vmatmul.bf16.gmra.mxu0 %v2361_v30  ;;  %v1456_v46 = vpop.f32.mrf.mxu2  ;;  %v870_v30 = vrot.slane %v868_v41, 1 }
 0x140   : > { %v1570_v55 = vadd.f32 %v1456_v46, %v1113_v17 }
 0x141   : > { %v1001_v62 = vpop.f32.mrf.mxu1  ;;  %v7315_v61 = vpop.f32.mrf.mxu3  ;;  %v871_v22 = vsel %vm755_vm1, %v866_v32, %v870_v30  ;;  %v872_v32 = vshrl.u32 %v6481_v58, 16 }
 0x142   : > { %v2026_v10 = vadd.f32 %v7249_v4, %v1570_v55  ;;  %v1114_v6 = vadd.f32 %v1001_v62, %v7153_v16  ;;  %v2370_v55 = vsel %vm2236_vm2, %v2360_v29, %v2369_v23  ;;  %v7334_v62 = vld [vmem:[%s6833_s12 + $0x78] sm:$0xff] }
 0x144   : > { %v2504_v51 = vpop.f32.mrf.mxu0  ;;  %v7317_v47 = vadd.f32 %v2502_v54, %v2026_v10  ;;  %v1811_v54 = vrot.slane %v7320_v25, 1  ;;  %v2372_v10 = vshrl.u32 %v6560_v31, 16  ;;  %v876_v25 = vshll.u32 %v7334_v62, 16 }
 0x146   : > { %v1812_v18 = vsel %vm1323_vm0, %v1809_v14, %v1811_v54 }
 0x147   : > { %v1458_v35 = vpop.f32.mrf.mxu2 }
 0x148   : > { %v1571_v17 = vadd.f32 %v1458_v35, %v1114_v6  ;;  %v7340_v6 = vld [vmem:[%s6833_s12 + $0x78] sm:$0xff] }
 0x149   : > { %v1004_v4 = vpop.f32.mrf.mxu1  ;;  %v7329_v41 = vpop.f32.mrf.mxu3 }
 0x14a   : > { %v2027_v46 = vadd.f32 %v7263_v15, %v1571_v17  ;;  %v1115_v38 = vadd.f32 %v1004_v4, %v7021_v37  ;;  %v2375_v15 = vshll.u32 %v6560_v31, 16  ;;  %v2374_v17 = vrot.slane %v2372_v10, 1 }
 0x14b   : > { %v874_v4 = vor.u32 %v872_v32, %v870_v30  ;;  %v6561_v32 = vld [vmem:[%s6833_s12 + $0x88] sm:$0xff] }
 0x14c   : > { %v2507_v27 = vpop.f32.mrf.mxu0  ;;  %1043 = vmatmul.bf16.gmra.mxu1 %v871_v22  ;;  %1500 = vmatmul.bf16.gmra.mxu2 %v1352_v8  ;;  %v7331_v16 = vadd.f32 %v2504_v51, %v2027_v46  ;;  %v2377_v22 = vrot.slane %v2375_v15, 2  ;;  %v878_v8 = vrot.slane %v876_v25, 1  ;;  %v1353_v46 = vrot.slane %v7340_v6, 1 }
 0x14e   : > { %8734 = vst [vmem:[#allocation6_spill] sm:$0xff] %v7331_v16  ;;  %1966 = vmatmul.bf16.gmra.mxu3 %v1812_v18  ;;  %v2378_v31 = vor.u32 %v2377_v22, %v2374_v17  ;;  %v879_v10 = vsel %vm755_vm1, %v874_v4, %v878_v8  ;;  %v1354_v15 = vsel %vm1323_vm0, %v1351_v60, %v1353_v46  ;;  %v2381_v17 = vshrl.u32 %v6561_v32, 16  ;;  %v1670_v4 = vld [vmem:[%s6833_s12 + $0x98] sm:$0x1] }
 0x14f   : > { %2546 = vmatmul.bf16.gmra.mxu0 %v2370_v55  ;;  %v1461_v43 = vpop.f32.mrf.mxu2  ;;  %v7349_v55 = vld [vmem:[%s6833_s12 + $0x90] sm:$0xff]  ;;  %v2384_v22 = vshll.u32 %v6561_v32, 16  ;;  %v6667_v32 = vld [vmem:[%s8689_s1 + $0x200] sm:$0xff] }
 0x150   : > { %v1572_v29 = vadd.f32 %v1461_v43, %v1115_v38  ;;  %4440 = vmatpush.bf16.msra.mxu0 %v6667_v32 }
 0x151   : > { %v1006_v59 = vpop.f32.mrf.mxu1  ;;  %v7343_v14 = vpop.f32.mrf.mxu3 }
 0x152   : > { %v2028_v51 = vadd.f32 %v7284_v34, %v1572_v29  ;;  %v1116_v58 = vadd.f32 %v1006_v59, %v7036_v50  ;;  %v2379_v29 = vsel %vm2236_vm2, %v2369_v23, %v2378_v31  ;;  %v6615_v50 = vld [vmem:[%s8689_s1 + $0x180] sm:$0xff] }
 0x153   : > { %v6641_v59 = vld [vmem:[%s8689_s1 + $0x1c0] sm:$0xff]  ;;  %3393 = vmatpush.bf16.msra.mxu2 %v6615_v50 }
 0x154   : > { %v2509_v35 = vpop.f32.mrf.mxu0  ;;  %v7345_v37 = vadd.f32 %v2507_v27, %v2028_v51  ;;  %v1813_v27 = vrot.slane %v7349_v55, 1  ;;  %v7372_v23 = vld [vmem:[%s6833_s12 + $0x80] sm:$0xff]  ;;  %3983 = vmatpush.bf16.msra.mxu3 %v6641_v59 }
 0x156   : > { %8735 = vst [vmem:[#allocation7_spill] sm:$0xff] %v7345_v37  ;;  %v1814_v6 = vsel %vm1323_vm0, %v1811_v54, %v1813_v27 }
 0x157   : > { %v1463_v18 = vpop.f32.mrf.mxu2 }
 0x158   : > { %v1573_v38 = vadd.f32 %v1463_v18, %v1116_v58 }
 0x159   : > { %v1009_v34 = vpop.f32.mrf.mxu1  ;;  %v7364_v25 = vpop.f32.mrf.mxu3 }
 0x15a   : > { %v2029_v30 = vadd.f32 %v7302_v53, %v1573_v38  ;;  %v6589_v53 = vld [vmem:[%s8689_s1 + $0x140] sm:$0xff]  ;;  %v1117_v51 = vadd.f32 %v1009_v34, %v7046_v0  ;;  %v880_v38 = vshrl.u32 %v7334_v62, 16  ;;  %v2383_v0 = vrot.slane %v2381_v17, 1 }
 0x15b   : > { %2937 = vmatpush.bf16.msra.mxu1 %v6589_v53  ;;  %v2386_v34 = vrot.slane %v2384_v22, 2 }
 0x15c   : > { %v2512_v43 = vpop.f32.mrf.mxu0  ;;  %1048 = vmatmul.bf16.gmra.mxu1 %v879_v10  ;;  %1505 = vmatmul.bf16.gmra.mxu2 %v1354_v15  ;;  %v7369_v60 = vadd.f32 %v2509_v35, %v2029_v30  ;;  %v884_v10 = vshll.u32 %v7372_v23, 16  ;;  %v7382_v15 = vld [vmem:[%s6833_s12 + $0x80] sm:$0xff]  ;;  %v1760_v30 = vunpack.c.l.b16 %v1670_v4  ;;  %v882_v62 = vor.u32 %v880_v38, %v878_v8 }
 0x15d   : > { %v7394_v17 = vor.u32 %v2386_v34, %v2383_v0  ;;  %v6623_v0 = vld [vmem:[%s6833_s12 + $0x10] sm:$0xf0] }
 0x15e   : > { %8736 = vst [vmem:[#allocation8_spill] sm:$0xff] %v7369_v60  ;;  %1971 = vmatmul.bf16.gmra.mxu3 %v1814_v6  ;;  %v886_v53 = vrot.slane %v884_v10, 1  ;;  %v1355_v6 = vrot.slane %v7382_v15, 1 }
 0x15f   : > { %2551 = vmatmul.bf16.gmra.mxu0 %v2379_v29  ;;  %v1466_v58 = vpop.f32.mrf.mxu2  ;;  %v2388_v15 = vsel %vm2236_vm2, %v2378_v31, %v7394_v17 }
 0x160   : > { %v1574_v18 = vadd.f32 %v1466_v58, %v1117_v51  ;;  %v1779_v51 = vpack.c.b16 %v1760_v30, %v1760_v30  ;;  %v7405_v30 = vld [vmem:[%s6833_s12 + $0x88] sm:$0xff] }
 0x161   : > { %v1011_v35 = vpop.f32.mrf.mxu1  ;;  %v7388_v50 = vpop.f32.mrf.mxu3 }
 0x162   : > { %v2030_v54 = vadd.f32 %v7315_v61, %v1574_v18  ;;  %v1118_v61 = vadd.f32 %v1011_v35, %v7060_v13  ;;  %v887_v18 = vsel %vm755_vm1, %v882_v62, %v886_v53  ;;  %v1815_v8 = vrot.slane %v1779_v51, 1  ;;  %v6562_v13 = vld [vmem:[%s6833_s12 + $0x90] sm:$0xff] }
 0x163   : > { %v2390_v62 = vshrl.u32 %v6562_v13, 16  ;;  %v2393_v51 = vshll.u32 %v6562_v13, 16 }
 0x164   : > { %v2514_v29 = vpop.f32.mrf.mxu0  ;;  %v7390_v59 = vadd.f32 %v2512_v43, %v2030_v54  ;;  %v1356_v43 = vsel %vm1323_vm0, %v1353_v46, %v1355_v6  ;;  %v6233_v54 = vld [vmem:[%s6833_s12 + $0x10] sm:$0xc]  ;;  %v6624_v46 = vld [vmem:[%s6833_s12 + $0x18] sm:$0xff] }
 0x165   : > { %v6234_v32 = vor.u32 %v6623_v0, %v6233_v54  ;;  %v2395_v13 = vrot.slane %v2393_v51, 2  ;;  %v2126_v0 = vld [vmem:[%s6833_s12 + $0x98] sm:$0x3] }
 0x166   : > { %8737 = vst [vmem:[#allocation9_spill] sm:$0xff] %v7390_v59 }
 0x167   : > { %v1468_v22 = vpop.f32.mrf.mxu2  ;;  %v3741_v55 = vshrl.u32 %v6234_v32, 16 }
 0x168   : > { %v1575_v4 = vadd.f32 %v1468_v22, %v1118_v61 }
 0x169   : > { %v1014_v58 = vpop.f32.mrf.mxu1  ;;  %v7402_v35 = vpop.f32.mrf.mxu3 }
 0x16a   : > { %v2031_v38 = vadd.f32 %v7329_v41, %v1575_v4  ;;  %v1816_v41 = vsel %vm1323_vm0, %v1813_v27, %v1815_v8  ;;  %v1119_v31 = vadd.f32 %v1014_v58, %v7073_v28  ;;  %v888_v4 = vshrl.u32 %v7372_v23, 16 }
 0x16b   : > { %v3749_v27 = vshrl.u32 %v6624_v46, 16  ;;  %v3752_v8 = vshll.u32 %v6624_v46, 16  ;;  %v2392_v58 = vrot.slane %v2390_v62, 1  ;;  %v2216_v62 = vunpack.c.l.b16 %v2126_v0 }
 0x16c   : > { %v2517_v10 = vpop.f32.mrf.mxu0  ;;  %1053 = vmatmul.bf16.gmra.mxu1 %v887_v18  ;;  %1510 = vmatmul.bf16.gmra.mxu2 %v1356_v43  ;;  %v7409_v34 = vadd.f32 %v2514_v29, %v2031_v38  ;;  %v892_v18 = vshll.u32 %v7405_v30, 16  ;;  %v7419_v29 = vld [vmem:[%s6833_s12 + $0x88] sm:$0xff]  ;;  %v3744_v38 = vshll.u32 %v6234_v32, 16  ;;  %v890_v23 = vor.u32 %v888_v4, %v886_v53 }
 0x16d   : > { %v3751_v32 = vrot.slane %v3749_v27, 2  ;;  %v3754_v60 = vrot.slane %v3752_v8, 3  ;;  %v2396_v46 = vor.u32 %v2395_v13, %v2392_v58  ;;  %v2235_v8 = vpack.c.b16 %v2216_v62, %v2216_v62  ;;  %v6625_v13 = vld [vmem:[%s6833_s12 + $0x20] sm:$0xff] }
 0x16e   : > { %8738 = vst [vmem:[#allocation10_spill] sm:$0xff] %v7409_v34  ;;  %1976 = vmatmul.bf16.gmra.mxu3 %v1816_v41  ;;  %v3743_v41 = vrot.slane %v3741_v55, 2  ;;  %v3746_v59 = vrot.slane %v3744_v38, 3 }
 0x16f   : > { %2556 = vmatmul.bf16.gmra.mxu0 %v2388_v15  ;;  %v1471_v61 = vpop.f32.mrf.mxu2  ;;  %v3755_v55 = vor.u32 %v3754_v60, %v3751_v32  ;;  %v2402_v0 = vshll.u32 %v2235_v8, 16 }
 0x170   : > { %v1576_v22 = vadd.f32 %v1471_v61, %v1119_v31  ;;  %v894_v31 = vrot.slane %v892_v18, 1  ;;  %v1357_v61 = vrot.slane %v7419_v29, 1  ;;  %v3747_v18 = vor.u32 %v3746_v59, %v3743_v41  ;;  %v6025_v29 = vld [vmem:[%s6833_s12 + $0x8] sm:$0xc] }
 0x171   : > { %v1016_v43 = vpop.f32.mrf.mxu1  ;;  %v7422_v54 = vpop.f32.mrf.mxu3  ;;  %v896_v41 = vshrl.u32 %v7405_v30, 16 }
 0x172   : > { %v2032_v15 = vadd.f32 %v7343_v14, %v1576_v22  ;;  %v1120_v14 = vadd.f32 %v1016_v43, %v7093_v45  ;;  %v645_v22 = vld [vmem:[%s6833_s12 + $0x90] sm:$0x1]  ;;  %v895_v16 = vsel %vm755_vm1, %v890_v23, %v894_v31  ;;  %v2397_v45 = vsel %vm2236_vm2, %v7394_v17, %v2396_v46 }
 0x173   : > { %v735_v4 = vunpack.c.l.b16 %v645_v22  ;;  %v1213_v43 = vld [vmem:[%s6833_s12 + $0x90] sm:$0x1]  ;;  %v3756_v60 = vsel %vm3739_vm3, %v3747_v18, %v3755_v55  ;;  %v3761_v22 = vshll.u32 %v6625_v13, 16 }
 0x174   : > { %v2519_v28 = vpop.f32.mrf.mxu0  ;;  %v7426_v34 = vadd.f32 %v2517_v10, %v2032_v15  ;;  %v1358_v10 = vsel %vm1323_vm0, %v1355_v6, %v1357_v61  ;;  %v1303_v59 = vunpack.c.l.b16 %v1213_v43 }
 0x175   : > { %v754_v6 = vpack.c.b16 %v735_v4, %v735_v4  ;;  %v2404_v4 = vrot.slane %v2402_v0, 2  ;;  %v3763_v30 = vrot.slane %v3761_v22, 3 }
 0x177   : > { %v1473_v51 = vpop.f32.mrf.mxu2 }
 0x178   : > { %v1577_v37 = vadd.f32 %v1473_v51, %v1120_v14  ;;  %v1322_v14 = vpack.c.b16 %v1303_v59, %v1303_v59 }
 0x179   : > { %v1019_v53 = vpop.f32.mrf.mxu1  ;;  %v7438_v15 = vpop.f32.mrf.mxu3 }
 0x17a   : > { %v2033_v38 = vadd.f32 %v7364_v25, %v1577_v37  ;;  %v1121_v37 = vadd.f32 %v1019_v53, %v7106_v2  ;;  %v2399_v25 = vshrl.u32 %v2235_v8, 16  ;;  %v898_v2 = vor.u32 %v896_v41, %v894_v31 }
 0x17c   : > { %v2522_v27 = vpop.f32.mrf.mxu0  ;;  %1058 = vmatmul.bf16.gmra.mxu1 %v895_v16  ;;  %1515 = vmatmul.bf16.gmra.mxu2 %v1358_v10  ;;  %v7440_v58 = vadd.f32 %v2519_v28, %v2033_v38  ;;  %v900_v16 = vshll.u32 %v754_v6, 16  ;;  %v3758_v28 = vshrl.u32 %v6625_v13, 16  ;;  %v2401_v10 = vrot.slane %v2399_v25, 1 }
 0x17e   : > { %3984 = vmatmul.bf16.vlgmr.msra.gmra.mxu3 %v3756_v60  ;;  %v902_v38 = vrot.slane %v900_v16, 1  ;;  %v3760_v43 = vrot.slane %v3758_v28, 2  ;;  %v2405_v6 = vor.u32 %v2404_v4, %v2401_v10  ;;  %v6649_v28 = vld [vmem:[%s6833_s12 + $0x10] sm:$0xf0]  ;;  %v7478_v4 = vld [vmem:[%s6833_s12 + $0x18] sm:$0xff] }
 0x17f   : > { %2561 = vmatmul.bf16.gmra.mxu0 %v2397_v45  ;;  %v1476_v17 = vpop.f32.mrf.mxu2  ;;  %v1359_v45 = vrot.slane %v1322_v14, 1  ;;  %v6337_v14 = vld [vmem:[%s6833_s12 + $0x10] sm:$0x8] }
 0x180   : > { %v1578_v23 = vadd.f32 %v1476_v17, %v1121_v37  ;;  %v903_v13 = vsel %vm755_vm1, %v898_v2, %v902_v38  ;;  %v2406_v25 = vsel %vm2236_vm2, %v2396_v46, %v2405_v6  ;;  %v6597_v46 = vld [vmem:[%s6833_s12 + $0x10] sm:$0xf0]  ;;  %v4676_v6 = vld [vmem:[%s8690_s2] sm:$0xff] }
 0x181   : > { %v1021_v32 = vpop.f32.mrf.mxu1  ;;  %v7447_v18 = vpop.f32.mrf.mxu3  ;;  %v1360_v31 = vsel %vm1323_vm0, %v1357_v61, %v1359_v45  ;;  %v6571_v61 = vld [vmem:[%s6833_s12 + $0x8] sm:$0xf0] }
 0x182   : > { %v2034_v62 = vadd.f32 %v7388_v50, %v1578_v23  ;;  %v1122_v8 = vadd.f32 %v1021_v32, %v7120_v21  ;;  %v6129_v32 = vld [vmem:[%s6833_s12 + $0x10] sm:$0xc] }
 0x183   : > { %v6130_v2 = vor.u32 %v6597_v46, %v6129_v32 }
 0x184   : > { %v2524_v51 = vpop.f32.mrf.mxu0  ;;  %v7449_v53 = vadd.f32 %v2522_v27, %v2034_v62  ;;  %v7456_v27 = vor.u32 %v3763_v30, %v3760_v43  ;;  %v7475_v62 = vld [vmem:[%s6833_s12 + $0x10] sm:$0xff]  ;;  %v7482_v43 = vld [vmem:[%s6833_s12 + $0x18] sm:$0xff]  ;;  %v6338_v30 = vor.u32 %v6649_v28, %v6337_v14 }
 0x186   : > { %v3765_v23 = vsel %vm3739_vm3, %v3755_v55, %v7456_v27 }
 0x187   : > { %v1478_v59 = vpop.f32.mrf.mxu2 }
 0x188   : > { %v1579_v60 = vadd.f32 %v1478_v59, %v1122_v8  ;;  %v6755_v8 = vmov 0  }
 0x189   : > { %v1024_v50 = vpop.f32.mrf.mxu1  ;;  %v7460_v0 = vpop.f32.mrf.mxu3  ;;  %6726 = vset.pattern.permute.xlu0 %v6755_v8  ;;  %6727 = vset.pattern.permute.xlu1 %v6755_v8 }
 0x18a   : > { %v2035_v37 = vadd.f32 %v7402_v35, %v1579_v60  ;;  %v6626_v35 = vld [vmem:[%s6833_s12 + $0x28] sm:$0xff]  ;;  %v1123_v41 = vadd.f32 %v1024_v50, %v7130_v42  ;;  %4714 = vperm.xlu0 %6726, %v4676_v6   ;;  %6728 = vset.pattern.permute.xlu2 %v6755_v8  ;;  %v2828_v50 = vrot.slane %v7475_v62, 2 }
 0x18b   : > { %v3767_v38 = vshrl.u32 %v6626_v35, 16  ;;  %v3770_v55 = vshll.u32 %v6626_v35, 16 }
 0x18c   : > { %v2527_v21 = vpop.f32.mrf.mxu0  ;;  %1063 = vmatmul.bf16.gmra.mxu1 %v903_v13  ;;  %1520 = vmatmul.bf16.gmra.mxu2 %v1360_v31  ;;  %v7462_v17 = vadd.f32 %v2524_v51, %v2035_v37  ;;  %v6026_v51 = vor.u32 %v6571_v61, %v6025_v29  ;;  %v3284_v31 = vrot.slane %v7478_v4, 2  ;;  %v4330_v61 = vrot.slane %v6338_v30, 3 }
 0x18d   : > { %v3769_v37 = vrot.slane %v3767_v38, 2 }
 0x18e   : > { %3989 = vmatmul.bf16.gmra.mxu3 %v3765_v23  ;;  %v2827_v60 = vrot.slane %v6026_v51, 2  ;;  %v4331_v23 = vrot.slane %v7482_v43, 3  ;;  %v6599_v43 = vld [vmem:[%s6833_s12 + $0x20] sm:$0xff] }
 0x18f   : > { %2566 = vmatmul.bf16.gmra.mxu0 %v2406_v25  ;;  %v1481_v16 = vpop.f32.mrf.mxu2  ;;  %v3772_v25 = vrot.slane %v3770_v55, 3 }
 0x190   : > { %v1580_v22 = vadd.f32 %v1481_v16, %v1123_v41  ;;  %v2829_v46 = vsel %vm2826_vm4, %v2827_v60, %v2828_v50 }
 0x191   : > { %v1026_v10 = vpop.f32.mrf.mxu1  ;;  %v7487_v59 = vpop.f32.mrf.mxu3  ;;  %v3773_v16 = vor.u32 %v3772_v25, %v3769_v37  ;;  %v3286_v25 = vrot.slane %v6599_v43, 2 }
 0x192   : > { %v2036_v45 = vadd.f32 %v7422_v54, %v1580_v22  ;;  %v3283_v54 = vrot.slane %v6130_v2, 2  ;;  %v1124_v29 = vadd.f32 %v1026_v10, %v7150_v5  ;;  %v4332_v5 = vsel %vm4329_vm5, %v4330_v61, %v4331_v23  ;;  %v4677_v22 = vld [vmem:[%s8690_s2 + $0x8] sm:$0xff]  ;;  %v6627_v10 = vld [vmem:[%s6833_s12 + $0x30] sm:$0xff] }
 0x193   : > { %4719 = vperm.xlu0 %6726, %v4677_v22   ;;  %v3776_v30 = vshrl.u32 %v6627_v10, 16  ;;  %v3779_v8 = vshll.u32 %v6627_v10, 16 }
 0x194   : > { %v2529_v42 = vpop.f32.mrf.mxu0  ;;  %v7490_v13 = vadd.f32 %v2527_v21, %v2036_v45  ;;  %v3285_v21 = vsel %vm2826_vm4, %v3283_v54, %v3284_v31  ;;  %v6573_v45 = vld [vmem:[%s6833_s12 + $0x18] sm:$0xff]  ;;  %v4678_v54 = vld [vmem:[%s8690_s2 + $0x10] sm:$0xff] }
 0x195   : > { %4724 = vperm.xlu1 %6727, %v4678_v54   ;;  %v2830_v37 = vrot.slane %v6573_v45, 2  ;;  %v3781_v61 = vrot.slane %v3779_v8, 3  ;;  %v6600_v45 = vld [vmem:[%s6833_s12 + $0x28] sm:$0xff] }
 0x197   : > { %v1483_v35 = vpop.f32.mrf.mxu2 }
 0x198   : > { %v1581_v41 = vadd.f32 %v1483_v35, %v1124_v29  ;;  %v3778_v29 = vrot.slane %v3776_v30, 2 }
 0x199   : > { %v1029_v32 = vpop.f32.mrf.mxu1  ;;  %v7502_v62 = vpop.f32.mrf.mxu3 }
 0x19a   : > { %v2037_v14 = vadd.f32 %v7438_v15, %v1581_v41  ;;  %v3774_v15 = vsel %vm3739_vm3, %v7456_v27, %v3773_v16  ;;  %v1125_v4 = vadd.f32 %v1029_v32, %v7034_v49 }
 0x19c   : > { %v2532_v28 = vpop.f32.mrf.mxu0  ;;  %2938 = vmatmul.bf16.vlgmr.msra.gmra.mxu1 %v2829_v46  ;;  %3394 = vmatmul.bf16.vlgmr.msra.gmra.mxu2 %v3285_v21  ;;  %v7504_v51 = vadd.f32 %v2529_v42, %v2037_v14  ;;  %v6651_v42 = vld [vmem:[%s6833_s12 + $0x20] sm:$0xff]  ;;  %v2831_v21 = vsel %vm2826_vm4, %v2828_v50, %v2830_v37  ;;  %v3287_v14 = vsel %vm2826_vm4, %v3284_v31, %v3286_v25  ;;  %v6628_v31 = vld [vmem:[%s6833_s12 + $0x38] sm:$0xff] }
 0x19d   : > { %v4333_v41 = vrot.slane %v6651_v42, 3  ;;  %v3785_v43 = vshrl.u32 %v6628_v31, 16  ;;  %v3788_v30 = vshll.u32 %v6628_v31, 16  ;;  %v6652_v42 = vld [vmem:[%s6833_s12 + $0x28] sm:$0xff]  ;;  %v6629_v31 = vld [vmem:[%s6833_s12 + $0x40] sm:$0xff] }
 0x19e   : > { %3994 = vmatmul.bf16.gmra.mxu3 %v3774_v15 }
 0x19f   : > { %4441 = vmatmul.bf16.vlgmr.msra.gmra.mxu0 %v4332_v5  ;;  %v1486_v2 = vpop.f32.mrf.mxu2  ;;  %v3782_v5 = vor.u32 %v3781_v61, %v3778_v29  ;;  %v4334_v15 = vsel %vm4329_vm5, %v4331_v23, %v4333_v41  ;;  %v3288_v29 = vrot.slane %v6600_v45, 2  ;;  %v3787_v61 = vrot.slane %v3785_v43, 2 }
 0x1a0   : > { %v1582_v38 = vadd.f32 %v1486_v2, %v1125_v4 }
 0x1a1   : > { %v1031_v55 = vpop.f32.mrf.mxu1  ;;  %v7517_v27 = vpop.f32.mrf.mxu3 }
 0x1a2   : > { %v2038_v6 = vadd.f32 %v7447_v18, %v1582_v38  ;;  %v1126_v35 = vadd.f32 %v1031_v55, %v7044_v63  ;;  %v4679_v63 = vld [vmem:[%s8690_s2 + $0x18] sm:$0xff]  ;;  %v6574_v55 = vld [vmem:[%s6833_s12 + $0x20] sm:$0xff] }
 0x1a3   : > { %4729 = vperm.xlu1 %6727, %v4679_v63  }
 0x1a4   : > { %v2534_v60 = vpop.f32.mrf.mxu0  ;;  %v7519_v49 = vadd.f32 %v2532_v28, %v2038_v6 }
 0x1a7   : > { %v1488_v32 = vpop.f32.mrf.mxu2 }
 0x1a8   : > { %v1583_v18 = vadd.f32 %v1488_v32, %v1126_v35  ;;  %v4335_v32 = vrot.slane %v6652_v42, 3 }
 0x1a9   : > { %v1034_v46 = vpop.f32.mrf.mxu1  ;;  %v7529_v10 = vpop.f32.mrf.mxu3 }
 0x1aa   : > { %v2039_v22 = vadd.f32 %v7460_v0, %v1583_v18  ;;  %v3783_v0 = vsel %vm3739_vm3, %v3773_v16, %v3782_v5  ;;  %v1127_v4 = vadd.f32 %v1034_v46, %v7058_v12  ;;  %v2832_v16 = vrot.slane %v6574_v55, 2 }
 0x1ab   : > { %v3790_v12 = vrot.slane %v3788_v30, 3  ;;  %v4336_v63 = vsel %vm4329_vm5, %v4333_v41, %v4335_v32  ;;  %v7560_v41 = vld [vmem:[%s6833_s12 + $0x30] sm:$0xff]  ;;  %v3797_v55 = vshll.u32 %v6629_v31, 16 }
 0x1ac   : > { %v2537_v28 = vpop.f32.mrf.mxu0  ;;  %2943 = vmatmul.bf16.gmra.mxu1 %v2831_v21  ;;  %3399 = vmatmul.bf16.gmra.mxu2 %v3287_v14  ;;  %v7531_v50 = vadd.f32 %v2534_v60, %v2039_v22  ;;  %v2833_v14 = vsel %vm2826_vm4, %v2830_v37, %v2832_v16  ;;  %v7564_v30 = vld [vmem:[%s6833_s12 + $0x30] sm:$0xff]  ;;  %v3290_v42 = vrot.slane %v7560_v41, 2  ;;  %v6602_v41 = vld [vmem:[%s6833_s12 + $0x38] sm:$0xff] }
 0x1ad   : > { %v3791_v22 = vor.u32 %v3790_v12, %v3787_v61  ;;  %v3799_v12 = vrot.slane %v3797_v55, 3 }
 0x1ae   : > { %3999 = vmatmul.bf16.gmra.mxu3 %v3783_v0 }
 0x1af   : > { %4446 = vmatmul.bf16.gmra.mxu0 %v4334_v15  ;;  %v1491_v23 = vpop.f32.mrf.mxu2  ;;  %v3792_v37 = vsel %vm3739_vm3, %v3782_v5, %v3791_v22  ;;  %v4682_v5 = vld [vmem:[%s8690_s2 + $0x30] sm:$0xff] }
 0x1b0   : > { %v1584_v2 = vadd.f32 %v1491_v23, %v1127_v4  ;;  %4744 = vperm.xlu0 %6726, %v4682_v5   ;;  %v6654_v5 = vld [vmem:[%s6833_s12 + $0x38] sm:$0xff] }
 0x1b1   : > { %v1036_v38 = vpop.f32.mrf.mxu1  ;;  %v7540_v60 = vpop.f32.mrf.mxu3 }
 0x1b2   : > { %v2040_v8 = vadd.f32 %v7487_v59, %v1584_v2  ;;  %v1128_v35 = vadd.f32 %v1036_v38, %v7068_v26  ;;  %v3289_v59 = vsel %vm2826_vm4, %v3286_v25, %v3288_v29  ;;  %v7557_v2 = vld [vmem:[%s6833_s12 + $0x28] sm:$0xff]  ;;  %v3794_v38 = vshrl.u32 %v6629_v31, 16  ;;  %v4683_v31 = vld [vmem:[%s8690_s2 + $0x38] sm:$0xff] }
 0x1b3   : > { %4749 = vperm.xlu1 %6727, %v4683_v31  }
 0x1b4   : > { %v2539_v6 = vpop.f32.mrf.mxu0  ;;  %v7542_v54 = vadd.f32 %v2537_v28, %v2040_v8  ;;  %v3796_v61 = vrot.slane %v3794_v38, 2 }
 0x1b7   : > { %v1493_v18 = vpop.f32.mrf.mxu2 }
 0x1b8   : > { %v1585_v46 = vadd.f32 %v1493_v18, %v1128_v35  ;;  %v4337_v35 = vrot.slane %v7564_v30, 3 }
 0x1b9   : > { %v1039_v21 = vpop.f32.mrf.mxu1  ;;  %v7549_v0 = vpop.f32.mrf.mxu3 }
 0x1ba   : > { %v2041_v28 = vadd.f32 %v7502_v62, %v1585_v46  ;;  %v1129_v25 = vadd.f32 %v1039_v21, %v7091_v44 }
 0x1bc   : > { %v2542_v15 = vpop.f32.mrf.mxu0  ;;  %2948 = vmatmul.bf16.gmra.mxu1 %v2833_v14  ;;  %3404 = vmatmul.bf16.gmra.mxu2 %v3289_v59  ;;  %v7551_v26 = vadd.f32 %v2539_v6, %v2041_v28  ;;  %v2834_v6 = vrot.slane %v7557_v2, 2  ;;  %v3291_v59 = vsel %vm2826_vm4, %v3288_v29, %v3290_v42  ;;  %v3800_v28 = vor.u32 %v3799_v12, %v3796_v61  ;;  %v6576_v2 = vld [vmem:[%s6833_s12 + $0x30] sm:$0xff] }
 0x1bd   : > { %v2836_v61 = vrot.slane %v6576_v2, 2  ;;  %v3292_v12 = vrot.slane %v6602_v41, 2  ;;  %v6603_v2 = vld [vmem:[%s6833_s12 + $0x40] sm:$0xff] }
 0x1be   : > { %4004 = vmatmul.bf16.gmra.mxu3 %v3792_v37  ;;  %v2835_v14 = vsel %vm2826_vm4, %v2832_v16, %v2834_v6  ;;  %v4338_v37 = vsel %vm4329_vm5, %v4335_v32, %v4337_v35  ;;  %v3801_v29 = vsel %vm3739_vm3, %v3791_v22, %v3800_v28  ;;  %v6630_v32 = vld [vmem:[%s6833_s12 + $0x48] sm:$0xff] }
 0x1bf   : > { %4451 = vmatmul.bf16.gmra.mxu0 %v4336_v63  ;;  %v1496_v4 = vpop.f32.mrf.mxu2  ;;  %v3803_v38 = vshrl.u32 %v6630_v32, 16  ;;  %v3806_v55 = vshll.u32 %v6630_v32, 16 }
 0x1c0   : > { %v1586_v23 = vadd.f32 %v1496_v4, %v1129_v25 }
 0x1c1   : > { %v1041_v62 = vpop.f32.mrf.mxu1  ;;  %v7569_v44 = vpop.f32.mrf.mxu3 }
 0x1c2   : > { %v2042_v45 = vadd.f32 %v7517_v27, %v1586_v23  ;;  %v1130_v27 = vadd.f32 %v1041_v62, %v7104_v1  ;;  %v4680_v1 = vld [vmem:[%s8690_s2 + $0x20] sm:$0xff] }
 0x1c3   : > { %4734 = vperm.xlu2 %6728, %v4680_v1  }
 0x1c4   : > { %v2544_v43 = vpop.f32.mrf.mxu0  ;;  %v7571_v8 = vadd.f32 %v2542_v15, %v2042_v45 }
 0x1c7   : > { %v1498_v18 = vpop.f32.mrf.mxu2 }
 0x1c8   : > { %v1587_v46 = vadd.f32 %v1498_v18, %v1130_v27  ;;  %v3805_v27 = vrot.slane %v3803_v38, 2  ;;  %v3808_v18 = vrot.slane %v3806_v55, 3 }
 0x1c9   : > { %v1044_v21 = vpop.f32.mrf.mxu1  ;;  %v7587_v16 = vpop.f32.mrf.mxu3 }
 0x1ca   : > { %v2043_v15 = vadd.f32 %v7529_v10, %v1587_v46  ;;  %v1131_v25 = vadd.f32 %v1044_v21, %v7118_v19  ;;  %v4339_v21 = vrot.slane %v6654_v5, 3  ;;  %v3809_v1 = vor.u32 %v3808_v18, %v3805_v27  ;;  %v6655_v5 = vld [vmem:[%s6833_s12 + $0x40] sm:$0xff] }
 0x1cb   : > { %v3294_v27 = vrot.slane %v6603_v2, 2 }
 0x1cc   : > { %v2547_v63 = vpop.f32.mrf.mxu0  ;;  %2953 = vmatmul.bf16.gmra.mxu1 %v2835_v14  ;;  %3409 = vmatmul.bf16.gmra.mxu2 %v3291_v59  ;;  %v7589_v10 = vadd.f32 %v2544_v43, %v2043_v15  ;;  %v4681_v43 = vld [vmem:[%s8690_s2 + $0x28] sm:$0xff]  ;;  %v2837_v15 = vsel %vm2826_vm4, %v2834_v6, %v2836_v61 }
 0x1cd   : > { %4739 = vperm.xlu2 %6728, %v4681_v43  }
 0x1ce   : > { %4009 = vmatmul.bf16.gmra.mxu3 %v3801_v29  ;;  %v4340_v29 = vsel %vm4329_vm5, %v4337_v35, %v4339_v21 }
 0x1cf   : > { %4456 = vmatmul.bf16.gmra.mxu0 %v4338_v37  ;;  %v1501_v4 = vpop.f32.mrf.mxu2  ;;  %v3293_v37 = vsel %vm2826_vm4, %v3290_v42, %v3292_v12  ;;  %v6631_v42 = vld [vmem:[%s6833_s12 + $0x50] sm:$0xff] }
 0x1d0   : > { %v1588_v23 = vadd.f32 %v1501_v4, %v1131_v25  ;;  %v3812_v41 = vshrl.u32 %v6631_v42, 16  ;;  %v3815_v38 = vshll.u32 %v6631_v42, 16 }
 0x1d1   : > { %v1046_v62 = vpop.f32.mrf.mxu1  ;;  %v7601_v22 = vpop.f32.mrf.mxu3 }
 0x1d2   : > { %v2044_v45 = vadd.f32 %v7540_v60, %v1588_v23  ;;  %v1132_v46 = vadd.f32 %v1046_v62, %v7128_v40  ;;  %v4685_v40 = vld [vmem:[%s8690_s2 + $0x48] sm:$0xff]  ;;  %v6577_v62 = vld [vmem:[%s6833_s12 + $0x38] sm:$0xff]  ;;  %v3814_v18 = vrot.slane %v3812_v41, 2 }
 0x1d3   : > { %4759 = vperm.xlu0 %6726, %v4685_v40   ;;  %v2838_v43 = vrot.slane %v6577_v62, 2  ;;  %v6604_v62 = vld [vmem:[%s6833_s12 + $0x48] sm:$0xff] }
 0x1d4   : > { %v2549_v30 = vpop.f32.mrf.mxu0  ;;  %v7603_v19 = vadd.f32 %v2547_v63, %v2044_v45 }
 0x1d7   : > { %v1503_v14 = vpop.f32.mrf.mxu2 }
 0x1d8   : > { %v1589_v60 = vadd.f32 %v1503_v14, %v1132_v46  ;;  %v3817_v46 = vrot.slane %v3815_v38, 3 }
 0x1d9   : > { %v1049_v59 = vpop.f32.mrf.mxu1  ;;  %v7613_v32 = vpop.f32.mrf.mxu3 }
 0x1da   : > { %v2045_v31 = vadd.f32 %v7549_v0, %v1589_v60  ;;  %v3810_v0 = vsel %vm3739_vm3, %v3800_v28, %v3809_v1  ;;  %v1133_v25 = vadd.f32 %v1049_v59, %v7148_v3  ;;  %v4341_v60 = vrot.slane %v6655_v5, 3  ;;  %v6656_v5 = vld [vmem:[%s6833_s12 + $0x48] sm:$0xff] }
 0x1dc   : > { %v2552_v63 = vpop.f32.mrf.mxu0  ;;  %2958 = vmatmul.bf16.gmra.mxu1 %v2837_v15  ;;  %3414 = vmatmul.bf16.gmra.mxu2 %v3293_v37  ;;  %v7615_v6 = vadd.f32 %v2549_v30, %v2045_v31  ;;  %v4686_v30 = vld [vmem:[%s8690_s2 + $0x50] sm:$0xff]  ;;  %v2839_v37 = vsel %vm2826_vm4, %v2836_v61, %v2838_v43  ;;  %v3295_v31 = vsel %vm2826_vm4, %v3292_v12, %v3294_v27  ;;  %v6632_v12 = vld [vmem:[%s6833_s12 + $0x58] sm:$0xff] }
 0x1dd   : > { %4764 = vperm.xlu1 %6727, %v4686_v30   ;;  %v3821_v2 = vshrl.u32 %v6632_v12, 16  ;;  %v3824_v41 = vshll.u32 %v6632_v12, 16 }
 0x1de   : > { %4014 = vmatmul.bf16.gmra.mxu3 %v3810_v0  ;;  %v4342_v0 = vsel %vm4329_vm5, %v4339_v21, %v4341_v60 }
 0x1df   : > { %4461 = vmatmul.bf16.gmra.mxu0 %v4340_v29  ;;  %v1506_v35 = vpop.f32.mrf.mxu2  ;;  %v3818_v29 = vor.u32 %v3817_v46, %v3814_v18  ;;  %v3296_v18 = vrot.slane %v6604_v62, 2  ;;  %v3823_v46 = vrot.slane %v3821_v2, 2 }
 0x1e0   : > { %v1590_v4 = vadd.f32 %v1506_v35, %v1133_v25 }
 0x1e1   : > { %v1051_v23 = vpop.f32.mrf.mxu1  ;;  %v7627_v28 = vpop.f32.mrf.mxu3 }
 0x1e2   : > { %v2046_v55 = vadd.f32 %v7569_v44, %v1590_v4  ;;  %v1134_v14 = vadd.f32 %v1051_v23, %v7164_v39  ;;  %v4684_v39 = vld [vmem:[%s8690_s2 + $0x40] sm:$0xff] }
 0x1e3   : > { %4754 = vperm.xlu2 %6728, %v4684_v39   ;;  %v6578_v23 = vld [vmem:[%s6833_s12 + $0x40] sm:$0xff] }
 0x1e4   : > { %v2554_v45 = vpop.f32.mrf.mxu0  ;;  %v7629_v3 = vadd.f32 %v2552_v63, %v2046_v55  ;;  %v2840_v30 = vrot.slane %v6578_v23, 2  ;;  %v6605_v23 = vld [vmem:[%s6833_s12 + $0x50] sm:$0xff] }
 0x1e7   : > { %v1508_v59 = vpop.f32.mrf.mxu2 }
 0x1e8   : > { %v1591_v44 = vadd.f32 %v1508_v59, %v1134_v14  ;;  %v3826_v14 = vrot.slane %v3824_v41, 3 }
 0x1e9   : > { %v1054_v15 = vpop.f32.mrf.mxu1  ;;  %v7639_v42 = vpop.f32.mrf.mxu3 }
 0x1ea   : > { %v2047_v40 = vadd.f32 %v7587_v16, %v1591_v44  ;;  %v3819_v16 = vsel %vm3739_vm3, %v3809_v1, %v3818_v29  ;;  %v1135_v25 = vadd.f32 %v1054_v15, %v7041_v57  ;;  %v4343_v44 = vrot.slane %v6656_v5, 3  ;;  %v6657_v5 = vld [vmem:[%s6833_s12 + $0x50] sm:$0xff] }
 0x1ec   : > { %v2557_v63 = vpop.f32.mrf.mxu0  ;;  %2963 = vmatmul.bf16.gmra.mxu1 %v2839_v37  ;;  %3419 = vmatmul.bf16.gmra.mxu2 %v3295_v31  ;;  %v7641_v61 = vadd.f32 %v2554_v45, %v2047_v40  ;;  %v4688_v45 = vld [vmem:[%s8690_s2 + $0x60] sm:$0xff]  ;;  %v2841_v31 = vsel %vm2826_vm4, %v2838_v43, %v2840_v30  ;;  %v3297_v40 = vsel %vm2826_vm4, %v3294_v27, %v3296_v18 }
 0x1ed   : > { %4774 = vperm.xlu0 %6726, %v4688_v45   ;;  %v6633_v27 = vld [vmem:[%s6833_s12 + $0x60] sm:$0xff] }
 0x1ee   : > { %4019 = vmatmul.bf16.gmra.mxu3 %v3819_v16  ;;  %v4344_v16 = vsel %vm4329_vm5, %v4341_v60, %v4343_v44  ;;  %v3830_v62 = vshrl.u32 %v6633_v27, 16  ;;  %v3833_v2 = vshll.u32 %v6633_v27, 16 }
 0x1ef   : > { %4466 = vmatmul.bf16.gmra.mxu0 %v4342_v0  ;;  %v1511_v21 = vpop.f32.mrf.mxu2  ;;  %v3827_v0 = vor.u32 %v3826_v14, %v3823_v46  ;;  %v3298_v46 = vrot.slane %v6605_v23, 2 }
 0x1f0   : > { %v1592_v35 = vadd.f32 %v1511_v21, %v1135_v25  ;;  %v3832_v14 = vrot.slane %v3830_v62, 2 }
 0x1f1   : > { %v1056_v4 = vpop.f32.mrf.mxu1  ;;  %v7653_v1 = vpop.f32.mrf.mxu3 }
 0x1f2   : > { %v2048_v38 = vadd.f32 %v7601_v22, %v1592_v35  ;;  %v1136_v59 = vadd.f32 %v1056_v4, %v7054_v7  ;;  %v4689_v7 = vld [vmem:[%s8690_s2 + $0x68] sm:$0xff] }
 0x1f3   : > { %4779 = vperm.xlu1 %6727, %v4689_v7   ;;  %v6579_v4 = vld [vmem:[%s6833_s12 + $0x48] sm:$0xff] }
 0x1f4   : > { %v2559_v55 = vpop.f32.mrf.mxu0  ;;  %v7655_v57 = vadd.f32 %v2557_v63, %v2048_v38  ;;  %v2842_v45 = vrot.slane %v6579_v4, 2  ;;  %v7702_v4 = vld [vmem:[%s6833_s12 + $0x58] sm:$0xff] }
 0x1f7   : > { %v1513_v15 = vpop.f32.mrf.mxu2 }
 0x1f8   : > { %v1593_v22 = vadd.f32 %v1513_v15, %v1136_v59  ;;  %v3835_v59 = vrot.slane %v3833_v2, 3 }
 0x1f9   : > { %v1059_v37 = vpop.f32.mrf.mxu1  ;;  %v7665_v12 = vpop.f32.mrf.mxu3 }
 0x1fa   : > { %v2049_v39 = vadd.f32 %v7613_v32, %v1593_v22  ;;  %v3828_v32 = vsel %vm3739_vm3, %v3818_v29, %v3827_v0  ;;  %v1137_v25 = vadd.f32 %v1059_v37, %v7065_v20  ;;  %v4345_v22 = vrot.slane %v6657_v5, 3 }
 0x1fc   : > { %v2562_v63 = vpop.f32.mrf.mxu0  ;;  %2968 = vmatmul.bf16.gmra.mxu1 %v2841_v31  ;;  %3424 = vmatmul.bf16.gmra.mxu2 %v3297_v40  ;;  %v7667_v43 = vadd.f32 %v2559_v55, %v2049_v39  ;;  %v4687_v55 = vld [vmem:[%s8690_s2 + $0x58] sm:$0xff]  ;;  %v2843_v40 = vsel %vm2826_vm4, %v2840_v30, %v2842_v45  ;;  %v3299_v39 = vsel %vm2826_vm4, %v3296_v18, %v3298_v46  ;;  %v6634_v18 = vld [vmem:[%s6833_s12 + $0x68] sm:$0xff] }
 0x1fd   : > { %4769 = vperm.xlu2 %6728, %v4687_v55   ;;  %v3839_v23 = vshrl.u32 %v6634_v18, 16  ;;  %v3842_v62 = vshll.u32 %v6634_v18, 16 }
 0x1fe   : > { %4024 = vmatmul.bf16.gmra.mxu3 %v3828_v32  ;;  %v4346_v32 = vsel %vm4329_vm5, %v4343_v44, %v4345_v22 }
 0x1ff   : > { %4471 = vmatmul.bf16.gmra.mxu0 %v4344_v16  ;;  %v1516_v60 = vpop.f32.mrf.mxu2  ;;  %v3836_v16 = vor.u32 %v3835_v59, %v3832_v14  ;;  %v3300_v14 = vrot.slane %v7702_v4, 2  ;;  %v3841_v59 = vrot.slane %v3839_v23, 2  ;;  %v7734_v23 = vld [vmem:[%s6833_s12 + $0x58] sm:$0xff] }
 0x200   : > { %v1594_v21 = vadd.f32 %v1516_v60, %v1137_v25 }
 0x201   : > { %v1061_v35 = vpop.f32.mrf.mxu1  ;;  %v7679_v29 = vpop.f32.mrf.mxu3 }
 0x202   : > { %v2050_v41 = vadd.f32 %v7627_v28, %v1594_v21  ;;  %v1138_v15 = vadd.f32 %v1061_v35, %v7084_v36  ;;  %v4691_v36 = vld [vmem:[%s8690_s2 + $0x78] sm:$0xff]  ;;  %v7699_v35 = vld [vmem:[%s6833_s12 + $0x50] sm:$0xff] }
 0x203   : > { %4789 = vperm.xlu0 %6726, %v4691_v36   ;;  %v2844_v55 = vrot.slane %v7699_v35, 2 }
 0x204   : > { %v2564_v38 = vpop.f32.mrf.mxu0  ;;  %v7681_v20 = vadd.f32 %v2562_v63, %v2050_v41 }
 0x207   : > { %v1518_v37 = vpop.f32.mrf.mxu2 }
 0x208   : > { %v1595_v28 = vadd.f32 %v1518_v37, %v1138_v15  ;;  %v3844_v15 = vrot.slane %v3842_v62, 3  ;;  %v8739_v37 = vld [vmem:[#allocation3_spill] sm:$0xff] }
 0x209   : > { %v1064_v31 = vpop.f32.mrf.mxu1  ;;  %v7691_v27 = vpop.f32.mrf.mxu3  ;;  %v7737_v62 = vld [vmem:[%s6833_s12 + $0x60] sm:$0xff] }
 0x20a   : > { %v2051_v7 = vadd.f32 %v7639_v42, %v1595_v28  ;;  %v3837_v42 = vsel %vm3739_vm3, %v3827_v0, %v3836_v16  ;;  %v1139_v25 = vadd.f32 %v1064_v31, %v7101_v56  ;;  %v4692_v0 = vld [vmem:[%s8690_s2 + $0x80] sm:$0xff] }
 0x20b   : > { %4794 = vperm.xlu1 %6727, %v4692_v0  }
 0x20c   : > { %v2567_v63 = vpop.f32.mrf.mxu0  ;;  %2973 = vmatmul.bf16.gmra.mxu1 %v2843_v40  ;;  %3429 = vmatmul.bf16.gmra.mxu2 %v3299_v39  ;;  %v7693_v30 = vadd.f32 %v2564_v38, %v2051_v7  ;;  %v7706_v38 = vld [vmem:[%s6833_s12 + $0x58] sm:$0xff]  ;;  %v2845_v7 = vsel %vm2826_vm4, %v2842_v45, %v2844_v55 }
 0x20d   : > { %v4347_v28 = vrot.slane %v7706_v38, 3 }
 0x20e   : > { %4029 = vmatmul.bf16.gmra.mxu3 %v3837_v42  ;;  %v8740_v42 = vld [vmem:[#allocation4_spill] sm:$0xff] }
 0x20f   : > { %4476 = vmatmul.bf16.gmra.mxu0 %v4346_v32  ;;  %v1521_v44 = vpop.f32.mrf.mxu2  ;;  %v3301_v32 = vsel %vm2826_vm4, %v3298_v46, %v3300_v14  ;;  %v6635_v46 = vld [vmem:[%s6833_s12 + $0x70] sm:$0xff] }
 0x210   : > { %v1596_v60 = vadd.f32 %v1521_v44, %v1139_v25  ;;  %v4348_v44 = vsel %vm4329_vm5, %v4345_v22, %v4347_v28  ;;  %v3851_v38 = vshll.u32 %v6635_v46, 16 }
 0x211   : > { %v1066_v21 = vpop.f32.mrf.mxu1  ;;  %v7711_v56 = vpop.f32.mrf.mxu3 }
 0x212   : > { %v2052_v2 = vadd.f32 %v7653_v1, %v1596_v60  ;;  %v1140_v1 = vadd.f32 %v1066_v21, %v8739_v37  ;;  %v4690_v60 = vld [vmem:[%s8690_s2 + $0x70] sm:$0xff]  ;;  %v7742_v37 = vld [vmem:[%s6833_s12 + $0x60] sm:$0xff] }
 0x213   : > { %4784 = vperm.xlu2 %6728, %v4690_v60  }
 0x214   : > { %v2569_v41 = vpop.f32.mrf.mxu0  ;;  %v7713_v5 = vadd.f32 %v2567_v63, %v2052_v2  ;;  %v3845_v63 = vor.u32 %v3844_v15, %v3841_v59  ;;  %v3848_v2 = vshrl.u32 %v6635_v46, 16  ;;  %v8742_v59 = vld [vmem:[#allocation5_spill] sm:$0xff] }
 0x217   : > { %v1523_v31 = vpop.f32.mrf.mxu2 }
 0x218   : > { %v1597_v40 = vadd.f32 %v1523_v31, %v1140_v1 }
 0x219   : > { %v2939_v39 = vpop.f32.mrf.mxu1  ;;  %v7727_v21 = vpop.f32.mrf.mxu3 }
 0x21a   : > { %v2053_v36 = vadd.f32 %v7665_v12, %v1597_v40  ;;  %v3065_v18 = vadd.f32 %v2939_v39, %v8740_v42  ;;  %v3846_v12 = vsel %vm3739_vm3, %v3836_v16, %v3845_v63  ;;  %v4694_v16 = vld [vmem:[%s8690_s2 + $0x90] sm:$0xff]  ;;  %v2846_v40 = vrot.slane %v7734_v23, 2 }
 0x21b   : > { %4804 = vperm.xlu0 %6726, %v4694_v16   ;;  %v3302_v39 = vrot.slane %v7737_v62, 2 }
 0x21c   : > { %v4442_v25 = vpop.f32.mrf.mxu0  ;;  %2978 = vmatmul.bf16.gmra.mxu1 %v2845_v7  ;;  %3434 = vmatmul.bf16.gmra.mxu2 %v3301_v32  ;;  %v7729_v45 = vadd.f32 %v2569_v41, %v2053_v36  ;;  %v3850_v7 = vrot.slane %v3848_v2, 2  ;;  %v4349_v32 = vrot.slane %v7742_v37, 3  ;;  %v2847_v60 = vsel %vm2826_vm4, %v2844_v55, %v2846_v40 }
 0x21e   : > { %8741 = vst [vmem:[#allocation3_spill] sm:$0xff] %v7729_v45  ;;  %4034 = vmatmul.bf16.gmra.mxu3 %v3846_v12 }
 0x21f   : > { %4481 = vmatmul.bf16.gmra.mxu0 %v4348_v44  ;;  %v3395_v35 = vpop.f32.mrf.mxu2 }
 0x220   : > { %v3521_v4 = vadd.f32 %v3395_v35, %v3065_v18  ;;  %v4695_v18 = vld [vmem:[%s8690_s2 + $0x98] sm:$0xff] }
 0x221   : > { %v2941_v22 = vpop.f32.mrf.mxu1  ;;  %v7747_v1 = vpop.f32.mrf.mxu3  ;;  %4809 = vperm.xlu1 %6727, %v4695_v18  }
 0x222   : > { %v4111_v0 = vadd.f32 %v7679_v29, %v3521_v4  ;;  %v3066_v15 = vadd.f32 %v2941_v22, %v8742_v59  ;;  %v3853_v29 = vrot.slane %v3851_v38, 3  ;;  %v4350_v22 = vsel %vm4329_vm5, %v4347_v28, %v4349_v32  ;;  %v4698_v28 = vld [vmem:[%s8690_s2 + $0xb0] sm:$0xff]  ;;  %v7778_v59 = vld [vmem:[%s6833_s12 + $0x68] sm:$0xff] }
 0x224   : > { %v4444_v41 = vpop.f32.mrf.mxu0  ;;  %v7749_v31 = vadd.f32 %v4442_v25, %v4111_v0  ;;  %v3303_v25 = vsel %vm2826_vm4, %v3300_v14, %v3302_v39  ;;  %v3854_v12 = vor.u32 %v3853_v29, %v3850_v7  ;;  %v6636_v14 = vld [vmem:[%s6833_s12 + $0x78] sm:$0xff]  ;;  %v7775_v0 = vld [vmem:[%s6833_s12 + $0x60] sm:$0xff]  ;;  %v7783_v7 = vld [vmem:[%s6833_s12 + $0x68] sm:$0xff] }
 0x225   : > { %v4693_v29 = vld [vmem:[%s8690_s2 + $0x88] sm:$0xff]  ;;  %v2848_v18 = vrot.slane %v7775_v0, 2 }
 0x226   : > { %v3855_v55 = vsel %vm3739_vm3, %v3845_v63, %v3854_v12  ;;  %v3857_v63 = vshrl.u32 %v6636_v14, 16  ;;  %4799 = vperm.xlu2 %6728, %v4693_v29  }
 0x227   : > { %v3397_v36 = vpop.f32.mrf.mxu2 }
 0x228   : > { %v3522_v42 = vadd.f32 %v3397_v36, %v3066_v15  ;;  %v3860_v15 = vshll.u32 %v6636_v14, 16 }
 0x229   : > { %v2944_v44 = vpop.f32.mrf.mxu1  ;;  %v7762_v23 = vpop.f32.mrf.mxu3  ;;  %4824 = vperm.xlu1 %6727, %v4698_v28  }
 0x22a   : > { %v4112_v46 = vadd.f32 %v7691_v27, %v3522_v42  ;;  %v3067_v35 = vadd.f32 %v2944_v44, %v7223_v24  ;;  %v4697_v24 = vld [vmem:[%s8690_s2 + $0xa8] sm:$0xff]  ;;  %v3304_v44 = vrot.slane %v7778_v59, 2 }
 0x22b   : > { %4819 = vperm.xlu0 %6726, %v4697_v24  }
 0x22c   : > { %v4447_v4 = vpop.f32.mrf.mxu0  ;;  %2983 = vmatmul.bf16.gmra.mxu1 %v2847_v60  ;;  %3439 = vmatmul.bf16.gmra.mxu2 %v3303_v25  ;;  %v7764_v62 = vadd.f32 %v4444_v41, %v4112_v46  ;;  %v3859_v60 = vrot.slane %v3857_v63, 2  ;;  %v4700_v25 = vld [vmem:[%s8690_s2 + $0xc0] sm:$0xff]  ;;  %v3305_v14 = vsel %vm2826_vm4, %v3302_v39, %v3304_v44 }
 0x22d   : > { %v6637_v39 = vld [vmem:[%s6833_s12 + $0x80] sm:$0xff] }
 0x22e   : > { %4039 = vmatmul.bf16.gmra.mxu3 %v3855_v55  ;;  %v2849_v55 = vsel %vm2826_vm4, %v2846_v40, %v2848_v18 }
 0x22f   : > { %4486 = vmatmul.bf16.gmra.mxu0 %v4350_v22  ;;  %v3400_v27 = vpop.f32.mrf.mxu2 }
 0x230   : > { %v3523_v2 = vadd.f32 %v3400_v27, %v3067_v35 }
 0x231   : > { %v2946_v38 = vpop.f32.mrf.mxu1  ;;  %v7788_v36 = vpop.f32.mrf.mxu3 }
 0x232   : > { %v4113_v41 = vadd.f32 %v7711_v56, %v3523_v2  ;;  %v3068_v37 = vadd.f32 %v2946_v38, %v7238_v48  ;;  %v3862_v56 = vrot.slane %v3860_v15, 3  ;;  %v4351_v48 = vrot.slane %v7783_v7, 3 }
 0x233   : > { %4834 = vperm.xlu0 %6726, %v4700_v25   ;;  %v4696_v25 = vld [vmem:[%s8690_s2 + $0xa0] sm:$0xff] }
 0x234   : > { %v4449_v16 = vpop.f32.mrf.mxu0  ;;  %v7790_v42 = vadd.f32 %v4447_v4, %v4113_v41  ;;  %v4701_v4 = vld [vmem:[%s8690_s2 + $0xc8] sm:$0xff]  ;;  %v3863_v24 = vor.u32 %v3862_v56, %v3859_v60  ;;  %v4352_v38 = vsel %vm4329_vm5, %v4349_v32, %v4351_v48  ;;  %v4704_v32 = vld [vmem:[%s8690_s2 + $0xe0] sm:$0xff]  ;;  %v7827_v56 = vld [vmem:[%s6833_s12 + $0x70] sm:$0xff]  ;;  %4814 = vperm.xlu2 %6728, %v4696_v25  }
 0x235   : > { %4839 = vperm.xlu1 %6727, %v4701_v4   ;;  %v7819_v41 = vld [vmem:[%s6833_s12 + $0x68] sm:$0xff] }
 0x236   : > { %8743 = vst [vmem:[#allocation4_spill] sm:$0xff] %v7790_v42  ;;  %v3864_v40 = vsel %vm3739_vm3, %v3854_v12, %v3863_v24  ;;  %v3866_v12 = vshrl.u32 %v6637_v39, 16  ;;  %v2850_v4 = vrot.slane %v7819_v41, 2  ;;  %v4699_v41 = vld [vmem:[%s8690_s2 + $0xb8] sm:$0xff] }
 0x237   : > { %v3402_v46 = vpop.f32.mrf.mxu2 }
 0x238   : > { %v3524_v35 = vadd.f32 %v3402_v46, %v3068_v37  ;;  %v7822_v37 = vld [vmem:[%s6833_s12 + $0x70] sm:$0xff] }
 0x239   : > { %v2949_v22 = vpop.f32.mrf.mxu1  ;;  %v7806_v0 = vpop.f32.mrf.mxu3 }
 0x23a   : > { %v4114_v27 = vadd.f32 %v7727_v21, %v3524_v35  ;;  %v3069_v2 = vadd.f32 %v2949_v22, %v7251_v33  ;;  %v4703_v33 = vld [vmem:[%s8690_s2 + $0xd8] sm:$0xff]  ;;  %v3306_v22 = vrot.slane %v7822_v37, 2 }
 0x23b   : > { %4849 = vperm.xlu0 %6726, %v4703_v33  }
 0x23c   : > { %v4452_v28 = vpop.f32.mrf.mxu0  ;;  %2988 = vmatmul.bf16.gmra.mxu1 %v2849_v55  ;;  %3444 = vmatmul.bf16.gmra.mxu2 %v3305_v14  ;;  %v7808_v59 = vadd.f32 %v4449_v16, %v4114_v27  ;;  %v3869_v16 = vshll.u32 %v6637_v39, 16  ;;  %v3868_v55 = vrot.slane %v3866_v12, 2  ;;  %v4706_v14 = vld [vmem:[%s8690_s2 + $0xf0] sm:$0xff]  ;;  %v3307_v39 = vsel %vm2826_vm4, %v3304_v44, %v3306_v22  ;;  %v4709_v44 = vld [vmem:[%s8690_s2 + $0x108] sm:$0xff] }
 0x23d   : > { %4854 = vperm.xlu1 %6727, %v4704_v32   ;;  %4829 = vperm.xlu2 %6728, %v4699_v41  }
 0x23e   : > { %8744 = vst [vmem:[#allocation5_spill] sm:$0xff] %v7808_v59  ;;  %4044 = vmatmul.bf16.gmra.mxu3 %v3864_v40  ;;  %v2851_v40 = vsel %vm2826_vm4, %v2848_v18, %v2850_v4 }
 0x23f   : > { %4491 = vmatmul.bf16.gmra.mxu0 %v4352_v38  ;;  %v3405_v21 = vpop.f32.mrf.mxu2 }
 0x240   : > { %v3525_v63 = vadd.f32 %v3405_v21, %v3069_v2 }
 0x241   : > { %v2951_v15 = vpop.f32.mrf.mxu1  ;;  %v7832_v46 = vpop.f32.mrf.mxu3 }
 0x242   : > { %v4115_v7 = vadd.f32 %v7747_v1, %v3525_v63  ;;  %v3070_v29 = vadd.f32 %v2951_v15, %v7265_v52  ;;  %v3871_v1 = vrot.slane %v3869_v16, 3  ;;  %v4353_v52 = vrot.slane %v7827_v56, 3  ;;  %v4710_v16 = vld [vmem:[%s8690_s2 + $0x110] sm:$0xff] }
 0x243   : > { %4864 = vperm.xlu0 %6726, %v4706_v14   ;;  %v6662_v14 = vld [vmem:[%s6833_s12 + $0x78] sm:$0xff] }
 0x244   : > { %v4454_v60 = vpop.f32.mrf.mxu0  ;;  %v7834_v35 = vadd.f32 %v4452_v28, %v4115_v7  ;;  %v4707_v28 = vld [vmem:[%s8690_s2 + $0xf8] sm:$0xff]  ;;  %v3872_v33 = vor.u32 %v3871_v1, %v3868_v55  ;;  %v4354_v15 = vsel %vm4329_vm5, %v4351_v48, %v4353_v52 }
 0x245   : > { %4869 = vperm.xlu1 %6727, %v4707_v28  }
 0x246   : > { %8745 = vst [vmem:[#allocation11_spill] sm:$0xff] %v7834_v35 }
 0x247   : > { %v3407_v27 = vpop.f32.mrf.mxu2 }
 0x248   : > { %v3526_v2 = vadd.f32 %v3407_v27, %v3070_v29  ;;  %v7866_v29 = vld [vmem:[%s6833_s12 + $0x70] sm:$0xff] }
 0x249   : > { %v2954_v38 = vpop.f32.mrf.mxu1  ;;  %v7853_v37 = vpop.f32.mrf.mxu3  ;;  %v4702_v27 = vld [vmem:[%s8690_s2 + $0xd0] sm:$0xff] }
 0x24a   : > { %v4116_v21 = vadd.f32 %v7762_v23, %v3526_v2  ;;  %v3071_v63 = vadd.f32 %v2954_v38, %v7286_v9  ;;  %v3873_v23 = vsel %vm3739_vm3, %v3863_v24, %v3872_v33  ;;  %v6638_v9 = vld [vmem:[%s6833_s12 + $0x88] sm:$0xff]  ;;  %4844 = vperm.xlu2 %6728, %v4702_v27   ;;  %v2852_v38 = vrot.slane %v7866_v29, 2 }
 0x24b   : > { %4879 = vperm.xlu0 %6726, %v4709_v44   ;;  %v3875_v24 = vshrl.u32 %v6638_v9, 16  ;;  %v3878_v56 = vshll.u32 %v6638_v9, 16 }
 0x24c   : > { %v4457_v32 = vpop.f32.mrf.mxu0  ;;  %2993 = vmatmul.bf16.gmra.mxu1 %v2851_v40  ;;  %3449 = vmatmul.bf16.gmra.mxu2 %v3307_v39  ;;  %v7855_v18 = vadd.f32 %v4454_v60, %v4116_v21  ;;  %v7869_v60 = vld [vmem:[%s6833_s12 + $0x78] sm:$0xff]  ;;  %v2853_v41 = vsel %vm2826_vm4, %v2850_v4, %v2852_v38 }
 0x24d   : > { %4884 = vperm.xlu1 %6727, %v4710_v16   ;;  %v3308_v40 = vrot.slane %v7869_v60, 2  ;;  %v3877_v39 = vrot.slane %v3875_v24, 2  ;;  %v3880_v21 = vrot.slane %v3878_v56, 3  ;;  %v4705_v16 = vld [vmem:[%s8690_s2 + $0xe8] sm:$0xff]  ;;  %v6585_v60 = vld [vmem:[%s6833_s12 + $0x78] sm:$0xff]  ;;  %v6611_v24 = vld [vmem:[%s6833_s12 + $0x80] sm:$0xff] }
 0x24e   : > { %4049 = vmatmul.bf16.gmra.mxu3 %v3873_v23 }
 0x24f   : > { %4496 = vmatmul.bf16.gmra.mxu0 %v4354_v15  ;;  %v3410_v48 = vpop.f32.mrf.mxu2  ;;  %v3309_v23 = vsel %vm2826_vm4, %v3306_v22, %v3308_v40  ;;  %v3881_v9 = vor.u32 %v3880_v21, %v3877_v39  ;;  %v6663_v21 = vld [vmem:[%s6833_s12 + $0x80] sm:$0xff] }
 0x250   : > { %v3527_v12 = vadd.f32 %v3410_v48, %v3071_v63 }
 0x251   : > { %v2956_v7 = vpop.f32.mrf.mxu1  ;;  %v7877_v2 = vpop.f32.mrf.mxu3 }
 0x252   : > { %v4117_v25 = vadd.f32 %v7788_v36, %v3527_v12  ;;  %v3072_v55 = vadd.f32 %v2956_v7, %v7304_v11  ;;  %v4355_v36 = vrot.slane %v6662_v14, 3  ;;  %4859 = vperm.xlu2 %6728, %v4705_v16   ;;  %v8748_v14 = vld [vmem:[#allocation6_spill] sm:$0xff] }
 0x254   : > { %v4459_v1 = vpop.f32.mrf.mxu0  ;;  %v7879_v28 = vadd.f32 %v4457_v32, %v4117_v25  ;;  %v4356_v12 = vsel %vm4329_vm5, %v4353_v52, %v4355_v36 }
 0x256   : > { %8746 = vst [vmem:[#allocation12_spill] sm:$0xff] %v7879_v28 }
 0x257   : > { %v3412_v63 = vpop.f32.mrf.mxu2 }
 0x258   : > { %v3528_v11 = vadd.f32 %v3412_v63, %v3072_v55 }
 0x259   : > { %v2959_v15 = vpop.f32.mrf.mxu1  ;;  %v7891_v7 = vpop.f32.mrf.mxu3 }
 0x25a   : > { %v4118_v44 = vadd.f32 %v7806_v0, %v3528_v11  ;;  %v3073_v32 = vadd.f32 %v2959_v15, %v7317_v47  ;;  %v3882_v47 = vsel %vm3739_vm3, %v3872_v33, %v3881_v9  ;;  %v6639_v0 = vld [vmem:[%s6833_s12 + $0x90] sm:$0xff]  ;;  %v2854_v11 = vrot.slane %v6585_v60, 2 }
 0x25b   : > { %v3884_v56 = vshrl.u32 %v6639_v0, 16  ;;  %v3887_v25 = vshll.u32 %v6639_v0, 16  ;;  %v3310_v15 = vrot.slane %v6611_v24, 2  ;;  %v4711_v24 = vld [vmem:[%s8690_s2 + $0x118] sm:$0xff] }
 0x25c   : > { %v4462_v48 = vpop.f32.mrf.mxu0  ;;  %2998 = vmatmul.bf16.gmra.mxu1 %v2853_v41  ;;  %3454 = vmatmul.bf16.gmra.mxu2 %v3309_v23  ;;  %v7893_v4 = vadd.f32 %v4459_v1, %v4118_v44  ;;  %v4708_v1 = vld [vmem:[%s8690_s2 + $0x100] sm:$0xff]  ;;  %v4357_v44 = vrot.slane %v6663_v21, 3  ;;  %v2855_v16 = vsel %vm2826_vm4, %v2852_v38, %v2854_v11 }
 0x25d   : > { %4874 = vperm.xlu2 %6728, %v4708_v1   ;;  %v3886_v41 = vrot.slane %v3884_v56, 2  ;;  %v3889_v23 = vrot.slane %v3887_v25, 3 }
 0x25e   : > { %8747 = vst [vmem:[#allocation13_spill] sm:$0xff] %v7893_v4  ;;  %4054 = vmatmul.bf16.gmra.mxu3 %v3882_v47  ;;  %v3311_v47 = vsel %vm2826_vm4, %v3308_v40, %v3310_v15  ;;  %v4358_v60 = vsel %vm4329_vm5, %v4355_v36, %v4357_v44  ;;  %v6640_v40 = vld [vmem:[%s6833_s12 + $0x98] sm:$0xff] }
 0x25f   : > { %4501 = vmatmul.bf16.gmra.mxu0 %v4356_v12  ;;  %v3415_v22 = vpop.f32.mrf.mxu2  ;;  %v3890_v0 = vor.u32 %v3889_v23, %v3886_v41  ;;  %v3893_v21 = vshrl.u32 %v6640_v40, 16  ;;  %v3896_v1 = vshll.u32 %v6640_v40, 16  ;;  %v8751_v23 = vld [vmem:[#allocation8_spill] sm:$0xff] }
 0x260   : > { %v3529_v29 = vadd.f32 %v3415_v22, %v3073_v32 }
 0x261   : > { %v2961_v52 = vpop.f32.mrf.mxu1  ;;  %v7905_v33 = vpop.f32.mrf.mxu3 }
 0x262   : > { %v4119_v55 = vadd.f32 %v7832_v46, %v3529_v29  ;;  %v3074_v27 = vadd.f32 %v2961_v52, %v8748_v14  ;;  %v8750_v29 = vld [vmem:[#allocation7_spill] sm:$0xff] }
 0x263   : > { %v6586_v14 = vld [vmem:[%s6833_s12 + $0x80] sm:$0xff] }
 0x264   : > { %v4464_v39 = vpop.f32.mrf.mxu0  ;;  %v7907_v63 = vadd.f32 %v4462_v48, %v4119_v55 }
 0x265   : > { %4889 = vperm.xlu2 %6728, %v4711_v24  }
 0x266   : > { %8749 = vst [vmem:[#allocation6_spill] sm:$0xff] %v7907_v63 }
 0x267   : > { %v3417_v32 = vpop.f32.mrf.mxu2 }
 0x268   : > { %v3530_v46 = vadd.f32 %v3417_v32, %v3074_v27  ;;  %v6612_v27 = vld [vmem:[%s6833_s12 + $0x88] sm:$0xff] }
 0x269   : > { %v2964_v12 = vpop.f32.mrf.mxu1  ;;  %v7917_v56 = vpop.f32.mrf.mxu3 }
 0x26a   : > { %v4120_v22 = vadd.f32 %v7853_v37, %v3530_v46  ;;  %v3075_v52 = vadd.f32 %v2964_v12, %v8750_v29  ;;  %v3891_v37 = vsel %vm3739_vm3, %v3881_v9, %v3890_v0  ;;  %v6664_v12 = vld [vmem:[%s6833_s12 + $0x88] sm:$0xff]  ;;  %v2856_v9 = vrot.slane %v6586_v14, 2 }
 0x26b   : > { %v3898_v29 = vrot.slane %v3896_v1, 3 }
 0x26c   : > { %v4467_v48 = vpop.f32.mrf.mxu0  ;;  %3003 = vmatmul.bf16.gmra.mxu1 %v2855_v16  ;;  %3459 = vmatmul.bf16.gmra.mxu2 %v3311_v47  ;;  %v7919_v38 = vadd.f32 %v4464_v39, %v4120_v22  ;;  %v3312_v47 = vrot.slane %v6612_v27, 2  ;;  %v3895_v22 = vrot.slane %v3893_v21, 2  ;;  %v2857_v40 = vsel %vm2826_vm4, %v2854_v11, %v2856_v9  ;;  %v3629_v27 = vld [vmem:[%s6833_s12 + $0xa0] sm:$0x7] }
 0x26d   : > { %v3719_v1 = vunpack.c.l.b16 %v3629_v27 }
 0x26e   : > { %4059 = vmatmul.bf16.gmra.mxu3 %v3891_v37 }
 0x26f   : > { %4506 = vmatmul.bf16.gmra.mxu0 %v4358_v60  ;;  %v3420_v25 = vpop.f32.mrf.mxu2 }
 0x270   : > { %v3531_v55 = vadd.f32 %v3420_v25, %v3075_v52  ;;  %v4359_v52 = vrot.slane %v6664_v12, 3  ;;  %v3899_v25 = vor.u32 %v3898_v29, %v3895_v22  ;;  %v6587_v22 = vld [vmem:[%s6833_s12 + $0x88] sm:$0xff]  ;;  %v6613_v29 = vld [vmem:[%s6833_s12 + $0x90] sm:$0xff] }
 0x271   : > { %v2966_v36 = vpop.f32.mrf.mxu1  ;;  %v7928_v39 = vpop.f32.mrf.mxu3 }
 0x272   : > { %v4121_v41 = vadd.f32 %v7877_v2, %v3531_v55  ;;  %v3076_v32 = vadd.f32 %v2966_v36, %v8751_v23  ;;  %v3313_v2 = vsel %vm2826_vm4, %v3310_v15, %v3312_v47  ;;  %v8753_v36 = vld [vmem:[#allocation9_spill] sm:$0xff]  ;;  %v4360_v14 = vsel %vm4329_vm5, %v4357_v44, %v4359_v52 }
 0x273   : > { %v3900_v15 = vsel %vm3739_vm3, %v3890_v0, %v3899_v25  ;;  %v2858_v0 = vrot.slane %v6587_v22, 2 }
 0x274   : > { %v4469_v46 = vpop.f32.mrf.mxu0  ;;  %v7930_v16 = vadd.f32 %v4467_v48, %v4121_v41 }
 0x276   : > { %8752 = vst [vmem:[#allocation7_spill] sm:$0xff] %v7930_v16 }
 0x277   : > { %v3422_v60 = vpop.f32.mrf.mxu2 }
 0x278   : > { %v3532_v24 = vadd.f32 %v3422_v60, %v3076_v32 }
 0x279   : > { %v2969_v37 = vpop.f32.mrf.mxu1  ;;  %v7938_v21 = vpop.f32.mrf.mxu3 }
 0x27a   : > { %v4122_v55 = vadd.f32 %v7891_v7, %v3532_v24  ;;  %v3077_v23 = vadd.f32 %v2969_v37, %v8753_v36  ;;  %v3738_v7 = vpack.c.b16 %v3719_v1, %v3719_v1  ;;  %v8755_v37 = vld [vmem:[#allocation10_spill] sm:$0xff]  ;;  %v6665_v36 = vld [vmem:[%s6833_s12 + $0x90] sm:$0xff] }
 0x27b   : > { %v4361_v1 = vrot.slane %v6665_v36, 3  ;;  %v6666_v36 = vld [vmem:[%s6833_s12 + $0x98] sm:$0xff] }
 0x27c   : > { %v4472_v48 = vpop.f32.mrf.mxu0  ;;  %3008 = vmatmul.bf16.gmra.mxu1 %v2857_v40  ;;  %3464 = vmatmul.bf16.gmra.mxu2 %v3313_v2  ;;  %v7940_v11 = vadd.f32 %v4469_v46, %v4122_v55  ;;  %v3902_v44 = vshrl.u32 %v3738_v7, 16  ;;  %v3905_v60 = vshll.u32 %v3738_v7, 16  ;;  %v2859_v7 = vsel %vm2826_vm4, %v2856_v9, %v2858_v0 }
 0x27d   : > { %v4362_v22 = vsel %vm4329_vm5, %v4359_v52, %v4361_v1 }
 0x27e   : > { %8754 = vst [vmem:[#allocation8_spill] sm:$0xff] %v7940_v11  ;;  %4064 = vmatmul.bf16.gmra.mxu3 %v3900_v15  ;;  %v3904_v27 = vrot.slane %v3902_v44, 2 }
 0x27f   : > { %4511 = vmatmul.bf16.gmra.mxu0 %v4360_v14  ;;  %v3425_v41 = vpop.f32.mrf.mxu2  ;;  %v3314_v14 = vrot.slane %v6613_v29, 2 }
 0x280   : > { %v3533_v32 = vadd.f32 %v3425_v41, %v3077_v23  ;;  %v3907_v23 = vrot.slane %v3905_v60, 3 }
 0x281   : > { %v2971_v12 = vpop.f32.mrf.mxu1  ;;  %v7948_v46 = vpop.f32.mrf.mxu3 }
 0x282   : > { %v4123_v24 = vadd.f32 %v7905_v33, %v3533_v32  ;;  %v3078_v40 = vadd.f32 %v2971_v12, %v8755_v37  ;;  %v3315_v33 = vsel %vm2826_vm4, %v3312_v47, %v3314_v14  ;;  %v3908_v32 = vor.u32 %v3907_v23, %v3904_v27 }
 0x284   : > { %v4474_v2 = vpop.f32.mrf.mxu0  ;;  %v7950_v55 = vadd.f32 %v4472_v48, %v4123_v24  ;;  %v3909_v9 = vsel %vm3739_vm3, %v3899_v25, %v3908_v32 }
 0x286   : > { %8756 = vst [vmem:[#allocation9_spill] sm:$0xff] %v7950_v55 }
 0x287   : > { %v3427_v15 = vpop.f32.mrf.mxu2 }
 0x288   : > { %v3534_v41 = vadd.f32 %v3427_v15, %v3078_v40  ;;  %v6588_v40 = vld [vmem:[%s6833_s12 + $0x90] sm:$0xff]  ;;  %v4363_v15 = vrot.slane %v6666_v36, 3 }
 0x289   : > { %v2974_v45 = vpop.f32.mrf.mxu1  ;;  %v4027_v29 = vpop.f32.mrf.mxu3  ;;  %v2860_v23 = vrot.slane %v6588_v40, 2 }
 0x28a   : > { %v4124_v12 = vadd.f32 %v7917_v56, %v3534_v41  ;;  %v3079_v48 = vadd.f32 %v2974_v45, %v7426_v34  ;;  %v6614_v56 = vld [vmem:[%s6833_s12 + $0x98] sm:$0xff] }
 0x28b   : > { %v3316_v25 = vrot.slane %v6614_v56, 2  ;;  %v2861_v32 = vsel %vm2826_vm4, %v2858_v0, %v2860_v23 }
 0x28c   : > { %v4477_v24 = vpop.f32.mrf.mxu0  ;;  %3013 = vmatmul.bf16.gmra.mxu1 %v2859_v7  ;;  %3469 = vmatmul.bf16.gmra.mxu2 %v3315_v33  ;;  %v7957_v44 = vadd.f32 %v4474_v2, %v4124_v12 }
 0x28e   : > { %4069 = vmatmul.bf16.gmra.mxu3 %v3909_v9  ;;  %v2716_v9 = vld [vmem:[%s6833_s12 + $0x98] sm:$0x3] }
 0x28f   : > { %4516 = vmatmul.bf16.gmra.mxu0 %v4362_v22  ;;  %v3430_v47 = vpop.f32.mrf.mxu2  ;;  %v4364_v22 = vsel %vm4329_vm5, %v4361_v1, %v4363_v15  ;;  %v2806_v40 = vunpack.c.l.b16 %v2716_v9 }
 0x290   : > { %v3535_v60 = vadd.f32 %v3430_v47, %v3079_v48  ;;  %v4219_v47 = vld [vmem:[%s6833_s12 + $0xa0] sm:$0x7] }
 0x291   : > { %v2976_v37 = vpop.f32.mrf.mxu1  ;;  %v4030_v27 = vpop.f32.mrf.mxu3  ;;  %v4309_v56 = vunpack.c.l.b16 %v4219_v47 }
 0x292   : > { %v4125_v34 = vadd.f32 %v7928_v39, %v3535_v60  ;;  %v3080_v45 = vadd.f32 %v2976_v37, %v7440_v58  ;;  %v3317_v39 = vsel %vm2826_vm4, %v3314_v14, %v3316_v25 }
 0x294   : > { %v4479_v52 = vpop.f32.mrf.mxu0  ;;  %v7965_v2 = vadd.f32 %v4477_v24, %v4125_v34  ;;  %v3173_v24 = vld [vmem:[%s6833_s12 + $0xa0] sm:$0x3]  ;;  %s6700_s12 = smul.u32 288, %s8830_s15 }
 0x295   : > { %v3263_v0 = vunpack.c.l.b16 %v3173_v24 }
 0x296   : > { %s8421_s30 = scalar_lea.vmem %s8691_s3, %s6700_s12  ;;  %s8477_s6 = scalar_lea.vmem %s8692_s4, %s6700_s12 }
 0x297   : > { %v3432_v41 = vpop.f32.mrf.mxu2 }
 0x298   : > { %v3536_v7 = vadd.f32 %v3432_v41, %v3080_v45  ;;  %v2825_v45 = vpack.c.b16 %v2806_v40, %v2806_v40 }
 0x299   : > { %v2979_v33 = vpop.f32.mrf.mxu1  ;;  %v4032_v60 = vpop.f32.mrf.mxu3 }
 0x29a   : > { %v4126_v58 = vadd.f32 %v7938_v21, %v3536_v7  ;;  %v3081_v12 = vadd.f32 %v2979_v33, %v7449_v53  ;;  %v3282_v53 = vpack.c.b16 %v3263_v0, %v3263_v0  ;;  %v4328_v7 = vpack.c.b16 %v4309_v56, %v4309_v56 }
 0x29c   : > { %v4482_v48 = vpop.f32.mrf.mxu0  ;;  %3018 = vmatmul.bf16.gmra.mxu1 %v2861_v32  ;;  %3474 = vmatmul.bf16.gmra.mxu2 %v3317_v39  ;;  %v7975_v37 = vadd.f32 %v4479_v52, %v4126_v58  ;;  %v2862_v52 = vrot.slane %v2825_v45, 2  ;;  %v3318_v39 = vrot.slane %v3282_v53, 2  ;;  %v4365_v58 = vrot.slane %v4328_v7, 3 }
 0x29e   : > { %v3319_v47 = vsel %vm2826_vm4, %v3316_v25, %v3318_v39 }
 0x29f   : > { %4521 = vmatmul.bf16.gmra.mxu0 %v4364_v22  ;;  %v3435_v14 = vpop.f32.mrf.mxu2 }
 0x2a0   : > { %v3537_v34 = vadd.f32 %v3435_v14, %v3081_v12  ;;  %v2863_v12 = vsel %vm2826_vm4, %v2860_v23, %v2862_v52 }
 0x2a1   : > { %v2981_v21 = vpop.f32.mrf.mxu1  ;;  %v4035_v33 = vpop.f32.mrf.mxu3 }
 0x2a2   : > { %v4127_v36 = vadd.f32 %v7948_v46, %v3537_v34  ;;  %v3082_v1 = vadd.f32 %v2981_v21, %v7462_v17  ;;  %v4366_v17 = vsel %vm4329_vm5, %v4363_v15, %v4365_v58 }
 0x2a4   : > { %v4484_v41 = vpop.f32.mrf.mxu0  ;;  %v7979_v32 = vadd.f32 %v4482_v48, %v4127_v36 }
 0x2a6   : > { %8757 = vst [vmem:[#allocation10_spill] sm:$0xff] %v7979_v32 }
 0x2a7   : > { %v3437_v22 = vpop.f32.mrf.mxu2 }
 0x2a8   : > { %v3538_v9 = vadd.f32 %v3437_v22, %v3082_v1 }
 0x2a9   : > { %v2984_v24 = vpop.f32.mrf.mxu1  ;;  %v4037_v56 = vpop.f32.mrf.mxu3 }
 0x2aa   : > { %v4128_v40 = vadd.f32 %v4027_v29, %v3538_v9  ;;  %v3083_v46 = vadd.f32 %v2984_v24, %v7490_v13 }
 0x2ac   : > { %v4487_v0 = vpop.f32.mrf.mxu0  ;;  %3023 = vmatmul.bf16.gmra.mxu1 %v2863_v12  ;;  %3479 = vmatmul.bf16.gmra.mxu2 %v3319_v47  ;;  %v7985_v48 = vadd.f32 %v4484_v41, %v4128_v40  ;;  %v7996_v47 = vpop.permute.xlu0 %4714 }
 0x2ad   : > { %8760 = vst [vmem:[#allocation16_spill] sm:$0xff] %v7996_v47  ;;  %v7998_v40 = vpop.permute.xlu1 %4724 }
 0x2ae   : > { %8758 = vst [vmem:[#allocation14_spill] sm:$0xff] %v7985_v48 }
 0x2af   : > { %4526 = vmatmul.bf16.gmra.mxu0 %v4366_v17  ;;  %v3440_v14 = vpop.f32.mrf.mxu2  ;;  %8761 = vst [vmem:[#allocation17_spill] sm:$0xff] %v7998_v40 }
 0x2b0   : > { %v3539_v34 = vadd.f32 %v3440_v14, %v3083_v46 }
 0x2b1   : > { %v2986_v21 = vpop.f32.mrf.mxu1  ;;  %v4040_v13 = vpop.f32.mrf.mxu3 }
 0x2b2   : > { %v4129_v45 = vadd.f32 %v4030_v27, %v3539_v34  ;;  %v3084_v23 = vadd.f32 %v2986_v21, %v7504_v51 }
 0x2b4   : > { %v4489_v53 = vpop.f32.mrf.mxu0  ;;  %v7988_v25 = vadd.f32 %v4487_v0, %v4129_v45  ;;  %v8000_v0 = vpop.permute.xlu2 %4734 }
 0x2b5   : > { %8762 = vst [vmem:[#allocation18_spill] sm:$0xff] %v8000_v0  ;;  %v8005_v45 = vpop.permute.xlu0 %4719 }
 0x2b6   : > { %8759 = vst [vmem:[#allocation15_spill] sm:$0xff] %v7988_v25 }
 0x2b7   : > { %v3442_v29 = vpop.f32.mrf.mxu2  ;;  %8763 = vst [vmem:[#allocation19_spill] sm:$0xff] %v8005_v45 }
 0x2b8   : > { %v3540_v36 = vadd.f32 %v3442_v29, %v3084_v23  ;;  %v8007_v23 = vpop.permute.xlu1 %4729 }
 0x2b9   : > { %v2989_v1 = vpop.f32.mrf.mxu1  ;;  %v4042_v9 = vpop.f32.mrf.mxu3  ;;  %8764 = vst [vmem:[#allocation20_spill] sm:$0xff] %v8007_v23 }
 0x2ba   : > { %v4130_v15 = vadd.f32 %v4032_v60, %v3540_v36  ;;  %v3085_v7 = vadd.f32 %v2989_v1, %v7519_v49 }
 0x2bc   : > { %v4492_v41 = vpop.f32.mrf.mxu0  ;;  %v7991_v52 = vadd.f32 %v4489_v53, %v4130_v15 }
 0x2bf   : > { %v3445_v39 = vpop.f32.mrf.mxu2 }
 0x2c0   : > { %v3541_v58 = vadd.f32 %v3445_v39, %v3085_v7  ;;  %v8010_v7 = vpop.permute.xlu2 %4739  ;;  %v8016_v39 = vpop.permute.xlu0 %4744 }
 0x2c1   : > { %v2991_v22 = vpop.f32.mrf.mxu1  ;;  %v4045_v21 = vpop.f32.mrf.mxu3  ;;  %8765 = vst [vmem:[#allocation21_spill] sm:$0xff] %v8010_v7 }
 0x2c2   : > { %v4131_v27 = vadd.f32 %v4035_v33, %v3541_v58  ;;  %v3086_v51 = vadd.f32 %v2991_v22, %v7531_v50  ;;  %8766 = vst [vmem:[#allocation22_spill] sm:$0xff] %v8016_v39  ;;  %v8018_v58 = vpop.permute.xlu1 %4749 }
 0x2c3   : > { %8767 = vst [vmem:[#allocation23_spill] sm:$0xff] %v8018_v58 }
 0x2c4   : > { %v4494_v24 = vpop.f32.mrf.mxu0  ;;  %v7994_v12 = vadd.f32 %v4492_v41, %v4131_v27 }
 0x2c7   : > { %v3447_v60 = vpop.f32.mrf.mxu2 }
 0x2c8   : > { %v3542_v46 = vadd.f32 %v3447_v60, %v3086_v51  ;;  %v8021_v60 = vpop.permute.xlu2 %4754 }
 0x2c9   : > { %v2994_v49 = vpop.f32.mrf.mxu1  ;;  %8768 = vst [vmem:[#allocation24_spill] sm:$0xff] %v8021_v60 }
 0x2ca   : > { %v4132_v17 = vadd.f32 %v4037_v56, %v3542_v46  ;;  %v3087_v14 = vadd.f32 %v2994_v49, %v7542_v54  ;;  %v8014_v54 = vpop.f32.mrf.mxu3 }
 0x2cc   : > { %v4497_v34 = vpop.f32.mrf.mxu0  ;;  %v8003_v33 = vadd.f32 %v4494_v24, %v4132_v17  ;;  %v8027_v17 = vpop.permute.xlu0 %4759 }
 0x2cd   : > { %8769 = vst [vmem:[#allocation25_spill] sm:$0xff] %v8027_v17 }
 0x2cf   : > { %v3450_v50 = vpop.f32.mrf.mxu2 }
 0x2d0   : > { %v3543_v53 = vadd.f32 %v3450_v50, %v3087_v14  ;;  %v8029_v14 = vpop.permute.xlu1 %4764 }
 0x2d1   : > { %v2996_v29 = vpop.f32.mrf.mxu1  ;;  %8770 = vst [vmem:[#allocation26_spill] sm:$0xff] %v8029_v14 }
 0x2d2   : > { %v4133_v36 = vadd.f32 %v4040_v13, %v3543_v53  ;;  %v3088_v1 = vadd.f32 %v2996_v29, %v7551_v26  ;;  %v8025_v49 = vpop.f32.mrf.mxu3 }
 0x2d4   : > { %v4499_v15 = vpop.f32.mrf.mxu0  ;;  %v8012_v56 = vadd.f32 %v4497_v34, %v4133_v36  ;;  %v4893_v36 = vmul.f32 %v8005_v45, %v7764_v62 }
 0x2d7   : > { %v3452_v41 = vpop.f32.mrf.mxu2 }
 0x2d8   : > { %v3544_v22 = vadd.f32 %v3452_v41, %v3088_v1  ;;  %v4892_v1 = vmul.f32 %v7996_v47, %v7749_v31  ;;  %v4897_v47 = vmul.f32 %v8010_v7, %v7855_v18 }
 0x2d9   : > { %v2999_v27 = vpop.f32.mrf.mxu1 }
 0x2da   : > { %v4134_v51 = vadd.f32 %v4042_v9, %v3544_v22  ;;  %v3089_v24 = vadd.f32 %v2999_v27, %v7571_v8  ;;  %v8035_v9 = vpop.permute.xlu2 %4769  ;;  %v8047_v22 = vpop.permute.xlu0 %4774  ;;  %v4928_v27 = vadd.f32 %v4893_v36, %v4892_v1  ;;  %v4898_v36 = vmul.f32 %v8016_v39, %v7879_v28 }
 0x2db   : > { %8771 = vst [vmem:[#allocation27_spill] sm:$0xff] %v8035_v9 }
 0x2dc   : > { %v4502_v13 = vpop.f32.mrf.mxu0  ;;  %v8023_v26 = vadd.f32 %v4499_v15, %v4134_v51  ;;  %v4894_v15 = vmul.f32 %v7998_v40, %v7790_v42  ;;  %8772 = vst [vmem:[#allocation28_spill] sm:$0xff] %v8047_v22  ;;  %v4895_v51 = vmul.f32 %v8007_v23, %v7808_v59 }
 0x2df   : > { %v3455_v46 = vpop.f32.mrf.mxu2 }
 0x2e0   : > { %v3545_v34 = vadd.f32 %v3455_v46, %v3089_v24 }
 0x2e1   : > { %v8031_v50 = vpop.f32.mrf.mxu1 }
 0x2e2   : > { %v4135_v53 = vadd.f32 %v4045_v21, %v3545_v34  ;;  %v8049_v21 = vpop.permute.xlu1 %4779  ;;  %v4929_v34 = vadd.f32 %v4928_v27, %v4894_v15  ;;  %v8059_v40 = vpop.permute.xlu2 %4784  ;;  %v4899_v15 = vmul.f32 %v8018_v58, %v7893_v4  ;;  %v4902_v58 = vmul.f32 %v8029_v14, %v7930_v16 }
 0x2e3   : > { %8773 = vst [vmem:[#allocation29_spill] sm:$0xff] %v8049_v21  ;;  %v8065_v23 = vpop.permute.xlu0 %4789  ;;  %v4905_v14 = vmul.f32 %v8049_v21, %v7957_v44 }
 0x2e4   : > { %v8033_v29 = vpop.f32.mrf.mxu0  ;;  %v8037_v8 = vadd.f32 %v4502_v13, %v4135_v53  ;;  %v8053_v13 = vpop.f32.mrf.mxu3  ;;  %v4896_v53 = vmul.f32 %v8000_v0, %v7834_v35  ;;  %8774 = vst [vmem:[#allocation30_spill] sm:$0xff] %v8059_v40  ;;  %v4930_v45 = vadd.f32 %v4929_v34, %v4895_v51  ;;  %v4900_v34 = vmul.f32 %v8021_v60, %v7907_v63 }
 0x2e5   : > { %8775 = vst [vmem:[#allocation31_spill] sm:$0xff] %v8065_v23  ;;  %v4907_v16 = vmul.f32 %v8065_v23, %v7975_v37 }
 0x2e6   : > { %v4931_v42 = vadd.f32 %v4930_v45, %v4896_v53 }
 0x2e7   : > { %v8045_v41 = vpop.f32.mrf.mxu2 }
 0x2e8   : > { %v4932_v59 = vadd.f32 %v4931_v42, %v4897_v47  ;;  %v4901_v42 = vmul.f32 %v8027_v17, %v7919_v38 }
 0x2e9   : > { %v3004_v24 = vpop.f32.mrf.mxu1 }
 0x2ea   : > { %v8069_v27 = vpop.permute.xlu1 %4794  ;;  %v4933_v51 = vadd.f32 %v4932_v59, %v4898_v36  ;;  %v8077_v53 = vpop.permute.xlu2 %4799  ;;  %v4903_v59 = vmul.f32 %v8035_v9, %v7940_v11 }
 0x2eb   : > { %8776 = vst [vmem:[#allocation32_spill] sm:$0xff] %v8069_v27  ;;  %v8083_v4 = vpop.permute.xlu0 %4804 }
 0x2ec   : > { %v8055_v46 = vpop.f32.mrf.mxu0  ;;  %v8075_v45 = vpop.f32.mrf.mxu3  ;;  %8777 = vst [vmem:[#allocation33_spill] sm:$0xff] %v8077_v53  ;;  %v4934_v39 = vadd.f32 %v4933_v51, %v4899_v15  ;;  %v4904_v51 = vmul.f32 %v8047_v22, %v7950_v55 }
 0x2ed   : > { %8778 = vst [vmem:[#allocation34_spill] sm:$0xff] %v8083_v4 }
 0x2ee   : > { %v4935_v47 = vadd.f32 %v4934_v39, %v4900_v34 }
 0x2ef   : > { %v3460_v1 = vpop.f32.mrf.mxu2 }
 0x2f0   : > { %v4936_v28 = vadd.f32 %v4935_v47, %v4901_v42  ;;  %v4906_v47 = vmul.f32 %v8059_v40, %v7965_v2 }
 0x2f1   : > { %v3006_v0 = vpop.f32.mrf.mxu1 }
 0x2f2   : > { %v8087_v36 = vpop.permute.xlu1 %4809  ;;  %v4937_v15 = vadd.f32 %v4936_v28, %v4902_v58  ;;  %v8093_v39 = vpop.permute.xlu2 %4814 }
 0x2f3   : > { %v8101_v28 = vpop.permute.xlu0 %4819 }
 0x2f4   : > { %v8071_v35 = vpop.f32.mrf.mxu0  ;;  %v4938_v34 = vadd.f32 %v4937_v15, %v4903_v59  ;;  %v4057_v17 = vpop.f32.mrf.mxu3  ;;  %v4908_v59 = vmul.f32 %v8069_v27, %v7979_v32  ;;  %v4911_v27 = vmul.f32 %v8087_v36, %v7991_v52 }
 0x2f6   : > { %v4939_v42 = vadd.f32 %v4938_v34, %v4904_v51  ;;  %v4909_v34 = vmul.f32 %v8077_v53, %v7985_v48 }
 0x2f7   : > { %v3462_v7 = vpop.f32.mrf.mxu2 }
 0x2f8   : > { %v4940_v11 = vadd.f32 %v4939_v42, %v4905_v14  ;;  %v4910_v42 = vmul.f32 %v8083_v4, %v7988_v25  ;;  %v3092_v25 = vadd.f32 %v3006_v0, %v7615_v6 }
 0x2f9   : > { %v3009_v60 = vpop.f32.mrf.mxu1 }
 0x2fa   : > { %v4941_v55 = vadd.f32 %v4940_v11, %v4906_v47  ;;  %v8107_v15 = vpop.permute.xlu1 %4824  ;;  %v8111_v40 = vpop.permute.xlu2 %4829  ;;  %v3090_v11 = vadd.f32 %v8031_v50, %v7589_v10  ;;  %v4913_v50 = vmul.f32 %v8101_v28, %v8003_v33 }
 0x2fc   : > { %v8089_v63 = vpop.f32.mrf.mxu0  ;;  %v4942_v51 = vadd.f32 %v4941_v55, %v4907_v16  ;;  %v4060_v21 = vpop.f32.mrf.mxu3  ;;  %v3546_v16 = vadd.f32 %v8045_v41, %v3090_v11  ;;  %v3091_v55 = vadd.f32 %v3004_v24, %v7603_v19  ;;  %v3093_v19 = vadd.f32 %v3009_v60, %v7629_v3 }
 0x2fe   : > { %v4943_v14 = vadd.f32 %v4942_v51, %v4908_v59  ;;  %v4912_v59 = vmul.f32 %v8093_v39, %v7994_v12  ;;  %v8123_v51 = vpop.permute.xlu0 %4834  ;;  %v3547_v4 = vadd.f32 %v3460_v1, %v3091_v55  ;;  %v4136_v41 = vadd.f32 %v8014_v54, %v3546_v16 }
 0x2ff   : > { %v3465_v9 = vpop.f32.mrf.mxu2 }
 0x300   : > { %v4944_v47 = vadd.f32 %v4943_v14, %v4909_v34  ;;  %v3548_v14 = vadd.f32 %v3462_v7, %v3092_v25  ;;  %v4137_v6 = vadd.f32 %v8025_v49, %v3547_v4  ;;  %v8141_v3 = vadd.f32 %v8033_v29, %v4136_v41 }
 0x301   : > { %v3011_v58 = vpop.f32.mrf.mxu1  ;;  %v4916_v4 = vmul.f32 %v8123_v51, %v8037_v8 }
 0x302   : > { %v4945_v48 = vadd.f32 %v4944_v47, %v4910_v42  ;;  %v8128_v34 = vpop.permute.xlu1 %4839  ;;  %v4914_v42 = vmul.f32 %v8107_v15, %v8012_v56  ;;  %v8134_v47 = vpop.permute.xlu2 %4844  ;;  %v3094_v0 = vadd.f32 %v3011_v58, %v7641_v61  ;;  %v4138_v7 = vadd.f32 %v8053_v13, %v3548_v14 }
 0x303   : > { %v8148_v61 = vadd.f32 %v8055_v46, %v4137_v6  ;;  %v4917_v13 = vmul.f32 %v8128_v34, %v8141_v3 }
 0x304   : > { %v8103_v22 = vpop.f32.mrf.mxu0  ;;  %v4946_v10 = vadd.f32 %v4945_v48, %v4911_v27  ;;  %v3549_v48 = vadd.f32 %v3465_v9, %v3093_v19  ;;  %v4915_v27 = vmul.f32 %v8111_v40, %v8023_v26  ;;  %v4062_v25 = vpop.f32.mrf.mxu3 }
 0x306   : > { %v4947_v24 = vadd.f32 %v4946_v10, %v4912_v59  ;;  %v4139_v9 = vadd.f32 %v8075_v45, %v3549_v48  ;;  %v8151_v59 = vpop.permute.xlu0 %4849  ;;  %v4918_v45 = vmul.f32 %v8134_v47, %v8148_v61 }
 0x307   : > { %v3467_v23 = vpop.f32.mrf.mxu2 }
 0x308   : > { %v4948_v1 = vadd.f32 %v4947_v24, %v4913_v50  ;;  %v3550_v60 = vadd.f32 %v3467_v23, %v3094_v0  ;;  %v8156_v23 = vadd.f32 %v8071_v35, %v4138_v7  ;;  %v8164_v41 = vadd.f32 %v8089_v63, %v4139_v9 }
 0x309   : > { %v3014_v32 = vpop.f32.mrf.mxu1 }
 0x30a   : > { %v3095_v16 = vadd.f32 %v3014_v32, %v7655_v57  ;;  %v4949_v55 = vadd.f32 %v4948_v1, %v4914_v42  ;;  %v4140_v57 = vadd.f32 %v4057_v17, %v3550_v60  ;;  %v8159_v10 = vpop.permute.xlu1 %4854  ;;  %v4919_v35 = vmul.f32 %v8151_v59, %v8156_v23 }
 0x30b   : > { %v4920_v0 = vmul.f32 %v8159_v10, %v8164_v41 }
 0x30c   : > { %v4517_v53 = vpop.f32.mrf.mxu0  ;;  %v4950_v29 = vadd.f32 %v4949_v55, %v4915_v27  ;;  %v8169_v17 = vadd.f32 %v8103_v22, %v4140_v57  ;;  %v4065_v6 = vpop.f32.mrf.mxu3 }
 0x30e   : > { %v4951_v50 = vadd.f32 %v4950_v29, %v4916_v4  ;;  %v8180_v22 = vpop.permute.xlu0 %4864 }
 0x30f   : > { %v3470_v11 = vpop.f32.mrf.mxu2 }
 0x310   : > { %v3551_v58 = vadd.f32 %v3470_v11, %v3095_v16  ;;  %v4952_v42 = vadd.f32 %v4951_v50, %v4917_v13  ;;  %v8171_v11 = vpop.permute.xlu2 %4859 }
 0x311   : > { %v3016_v54 = vpop.f32.mrf.mxu1  ;;  %v4921_v27 = vmul.f32 %v8171_v11, %v8169_v17 }
 0x312   : > { %v3096_v32 = vadd.f32 %v3016_v54, %v7667_v43  ;;  %v4141_v14 = vadd.f32 %v4060_v21, %v3551_v58  ;;  %v4953_v48 = vadd.f32 %v4952_v42, %v4918_v45  ;;  %v8184_v4 = vpop.permute.xlu1 %4869 }
 0x314   : > { %v4519_v49 = vpop.f32.mrf.mxu0  ;;  %v8175_v63 = vadd.f32 %v4517_v53, %v4141_v14  ;;  %v4954_v1 = vadd.f32 %v4953_v48, %v4919_v35 }
 0x316   : > { %v4955_v60 = vadd.f32 %v4954_v1, %v4920_v0  ;;  %v4922_v16 = vmul.f32 %v8180_v22, %v8175_v63  ;;  %v8191_v48 = vpop.permute.xlu0 %4879 }
 0x317   : > { %v3472_v46 = vpop.f32.mrf.mxu2 }
 0x318   : > { %v3552_v19 = vadd.f32 %v3472_v46, %v3096_v32  ;;  %v4956_v9 = vadd.f32 %v4955_v60, %v4921_v27 }
 0x319   : > { %v3019_v24 = vpop.f32.mrf.mxu1 }
 0x31a   : > { %v4142_v43 = vadd.f32 %v4062_v25, %v3552_v19  ;;  %v3097_v7 = vadd.f32 %v3019_v24, %v7681_v20  ;;  %v4957_v13 = vadd.f32 %v4956_v9, %v4922_v16  ;;  %v4067_v20 = vpop.f32.mrf.mxu3  ;;  %v8779_v9 = vld [vmem:[#allocation3_spill] sm:$0xff] }
 0x31c   : > { %v4522_v21 = vpop.f32.mrf.mxu0  ;;  %v4599_v54 = vadd.f32 %v4519_v49, %v4142_v43  ;;  %v8187_v49 = vpop.permute.xlu2 %4874 }
 0x31e   : > { %v4923_v58 = vmul.f32 %v8184_v4, %v4599_v54 }
 0x31f   : > { %v3475_v25 = vpop.f32.mrf.mxu2 }
 0x320   : > { %v3553_v55 = vadd.f32 %v3475_v25, %v3097_v7  ;;  %v4958_v32 = vadd.f32 %v4957_v13, %v4923_v58 }
 0x321   : > { %v3021_v53 = vpop.f32.mrf.mxu1 }
 0x322   : > { %v4143_v29 = vadd.f32 %v4065_v6, %v3553_v55  ;;  %v3098_v46 = vadd.f32 %v3021_v53, %v7693_v30  ;;  %v8195_v55 = vpop.permute.xlu1 %4884 }
 0x324   : > { %v4600_v57 = vadd.f32 %v4522_v21, %v4143_v29  ;;  %v4524_v45 = vpop.f32.mrf.mxu0  ;;  %v4070_v21 = vpop.f32.mrf.mxu3 }
 0x326   : > { %v4924_v50 = vmul.f32 %v8187_v49, %v4600_v57 }
 0x327   : > { %v3477_v14 = vpop.f32.mrf.mxu2 }
 0x328   : > { %v4959_v19 = vadd.f32 %v4958_v32, %v4924_v50  ;;  %v3554_v24 = vadd.f32 %v3477_v14, %v3098_v46 }
 0x329   : > { %v3024_v42 = vpop.f32.mrf.mxu1 }
 0x32a   : > { %v4144_v35 = vadd.f32 %v4067_v20, %v3554_v24  ;;  %v3099_v0 = vadd.f32 %v3024_v42, %v7713_v5 }
 0x32c   : > { %v4601_v43 = vadd.f32 %v4524_v45, %v4144_v35  ;;  %v4527_v25 = vpop.f32.mrf.mxu0  ;;  %v4072_v32 = vpop.f32.mrf.mxu3 }
 0x32d   : > { %v8199_v45 = vpop.permute.xlu2 %4889 }
 0x32e   : > { %v4925_v6 = vmul.f32 %v8191_v48, %v4601_v43 }
 0x32f   : > { %v3480_v1 = vpop.f32.mrf.mxu2 }
 0x330   : > { %v4960_v27 = vadd.f32 %v4959_v19, %v4925_v6  ;;  %v3555_v7 = vadd.f32 %v3480_v1, %v3099_v0 }
 0x331   : > { %v3026_v30 = vpop.f32.mrf.mxu1 }
 0x332   : > { %v4145_v60 = vadd.f32 %v4070_v21, %v3555_v7  ;;  %v3100_v58 = vadd.f32 %v3026_v30, %v8779_v9 }
 0x334   : > { %v4602_v16 = vadd.f32 %v4527_v25, %v4145_v60  ;;  %v4529_v5 = vpop.f32.mrf.mxu0 }
 0x336   : > { %v4926_v53 = vmul.f32 %v8195_v55, %v4602_v16 }
 0x337   : > { %v3482_v29 = vpop.f32.mrf.mxu2 }
 0x338   : > { %v4961_v13 = vadd.f32 %v4960_v27, %v4926_v53  ;;  %v3556_v20 = vadd.f32 %v3482_v29, %v3100_v58 }
 0x33a   : > { %v4146_v50 = vadd.f32 %v4072_v32, %v3556_v20 }
 0x33c   : > { %v4603_v46 = vadd.f32 %v4529_v5, %v4146_v50 }
 0x33e   : > { %v4927_v14 = vmul.f32 %v8199_v45, %v4603_v46 }
 0x340   : > { %v4962_v19 = vadd.f32 %v4961_v13, %v4927_v14  ;;  %v8783_v13 = vld [vmem:[#allocation5_spill] sm:$0xff] }
 0x342   : > { %v4963_v24 = vrot.slane %v4962_v19, 4 }
 0x344   : > { %v4964_v42 = vadd.f32 %v4963_v24, %v4962_v19  ;;  %v8788_v19 = vld [vmem:[#allocation20_spill] sm:$0xff] }
 0x346   : > { %v4965_v35 = vrot.slane %v4964_v42, 2 }
 0x348   : > { %v4966_v6 = vadd.f32 %v4965_v35, %v4964_v42  ;;  %v8789_v42 = vld [vmem:[#allocation12_spill] sm:$0xff] }
 0x34a   : > { %v4967_v0 = vrot.slane %v4966_v6, 1 }
 0x34c   : > { %v4968_v21 = vadd.f32 %v4967_v0, %v4966_v6  ;;  %v8791_v6 = vld [vmem:[#allocation18_spill] sm:$0xff] }
 0x34e   : > { %v8202_v1 = vmul.f32 0.00390625, %v4968_v21 }
 0x350   : > { %v8205_v27 = vsub.f32 %v4599_v54, %v8202_v1  ;;  %v8208_v7 = vsub.f32 %v4600_v57, %v8202_v1  ;;  %v8211_v25 = vsub.f32 %v4601_v43, %v8202_v1  ;;  %v8214_v60 = vsub.f32 %v4602_v16, %v8202_v1  ;;  %v8780_v57 = vld [vmem:[#allocation4_spill] sm:$0xff]  ;;  %v8782_v16 = vld [vmem:[#allocation19_spill] sm:$0xff] }
 0x351   : > { %v8217_v30 = vsub.f32 %v4603_v46, %v8202_v1  ;;  %v8221_v53 = vsub.f32 %v7749_v31, %v8202_v1  ;;  %v8225_v54 = vsub.f32 %v7764_v62, %v8202_v1  ;;  %v8229_v9 = vsub.f32 %v8780_v57, %v8202_v1  ;;  %v8781_v43 = vld [vmem:[#allocation16_spill] sm:$0xff]  ;;  %v8785_v31 = vld [vmem:[#allocation11_spill] sm:$0xff]  ;;  %v8786_v62 = vld [vmem:[#allocation17_spill] sm:$0xff] }
 0x352   : > { %v8237_v20 = vsub.f32 %v8783_v13, %v8202_v1  ;;  %v8241_v32 = vsub.f32 %v8785_v31, %v8202_v1  ;;  %v8247_v14 = vsub.f32 %v7855_v18, %v8202_v1  ;;  %v8253_v35 = vsub.f32 %v8789_v42, %v8202_v1  ;;  %v8795_v31 = vld [vmem:[#allocation6_spill] sm:$0xff] }
 0x353   : > { %v5006_v58 = vmul.f32 %v8221_v53, %v8781_v43  ;;  %v5007_v29 = vmul.f32 %v8225_v54, %v8782_v16  ;;  %v5008_v50 = vmul.f32 %v8229_v9, %v8786_v62  ;;  %v8792_v43 = vld [vmem:[#allocation13_spill] sm:$0xff]  ;;  %v8265_v62 = vsub.f32 %v8795_v31, %v8202_v1 }
 0x354   : > { %8784 = vst [vmem:[#allocation3_spill] sm:$0xff] %v8237_v20  ;;  %v5009_v24 = vmul.f32 %v8237_v20, %v8788_v19  ;;  %v5010_v0 = vmul.f32 %v8241_v32, %v8791_v6  ;;  %v8794_v16 = vld [vmem:[#allocation21_spill] sm:$0xff]  ;;  %v8796_v19 = vld [vmem:[#allocation22_spill] sm:$0xff] }
 0x355   : > { %v5042_v5 = vmul.f32 %v5006_v58, %v5006_v58  ;;  %v5043_v46 = vmul.f32 %v5007_v29, %v5007_v29  ;;  %8787 = vst [vmem:[#allocation4_spill] sm:$0xff] %v8247_v14  ;;  %v5044_v21 = vmul.f32 %v5008_v50, %v5008_v50  ;;  %v8259_v58 = vsub.f32 %v8792_v43, %v8202_v1 }
 0x356   : > { %8790 = vst [vmem:[#allocation16_spill] sm:$0xff] %v8253_v35  ;;  %v5011_v18 = vmul.f32 %v8247_v14, %v8794_v16  ;;  %v5045_v29 = vmul.f32 %v5009_v24, %v5009_v24  ;;  %v5012_v42 = vmul.f32 %v8253_v35, %v8796_v19  ;;  %v5046_v20 = vmul.f32 %v5010_v0, %v5010_v0  ;;  %v8798_v24 = vld [vmem:[#allocation7_spill] sm:$0xff]  ;;  %v8800_v0 = vld [vmem:[#allocation8_spill] sm:$0xff] }
 0x357   : > { %v5078_v57 = vadd.f32 %v5043_v46, %v5042_v5  ;;  %8793 = vst [vmem:[#allocation19_spill] sm:$0xff] %v8259_v58  ;;  %v8271_v50 = vsub.f32 %v7919_v38, %v8202_v1  ;;  %v8797_v5 = vld [vmem:[#allocation23_spill] sm:$0xff]  ;;  %v8802_v38 = vld [vmem:[#allocation25_spill] sm:$0xff] }
 0x358   : > { %v5013_v46 = vmul.f32 %v8259_v58, %v8797_v5  ;;  %v5047_v43 = vmul.f32 %v5011_v18, %v5011_v18  ;;  %v5048_v14 = vmul.f32 %v5012_v42, %v5012_v42  ;;  %v8295_v42 = vsub.f32 %v7957_v44, %v8202_v1  ;;  %v8809_v44 = vld [vmem:[#allocation29_spill] sm:$0xff] }
 0x359   : > { %v5079_v13 = vadd.f32 %v5078_v57, %v5044_v21  ;;  %v8277_v21 = vsub.f32 %v8798_v24, %v8202_v1  ;;  %v8799_v57 = vld [vmem:[#allocation24_spill] sm:$0xff] }
 0x35a   : > { %v5014_v31 = vmul.f32 %v8265_v62, %v8799_v57  ;;  %v5049_v35 = vmul.f32 %v5013_v46, %v5013_v46  ;;  %8806 = vst [vmem:[#allocation17_spill] sm:$0xff] %v8295_v42  ;;  %v8808_v46 = vld [vmem:[#allocation28_spill] sm:$0xff] }
 0x35b   : > { %v5080_v6 = vadd.f32 %v5079_v13, %v5045_v29  ;;  %v8283_v29 = vsub.f32 %v8800_v0, %v8202_v1  ;;  %v5015_v13 = vmul.f32 %v8271_v50, %v8802_v38 }
 0x35c   : > { %v5050_v58 = vmul.f32 %v5014_v31, %v5014_v31  ;;  %v5019_v31 = vmul.f32 %v8295_v42, %v8809_v44 }
 0x35d   : > { %v5081_v16 = vadd.f32 %v5080_v6, %v5046_v20  ;;  %8801 = vst [vmem:[#allocation5_spill] sm:$0xff] %v8283_v29  ;;  %v8803_v20 = vld [vmem:[#allocation9_spill] sm:$0xff]  ;;  %v8805_v6 = vld [vmem:[#allocation26_spill] sm:$0xff]  ;;  %v5051_v0 = vmul.f32 %v5015_v13, %v5015_v13 }
 0x35e   : > { %v8289_v18 = vsub.f32 %v8803_v20, %v8202_v1  ;;  %v5016_v24 = vmul.f32 %v8277_v21, %v8805_v6 }
 0x35f   : > { %v5082_v19 = vadd.f32 %v5081_v16, %v5047_v43  ;;  %v8807_v43 = vld [vmem:[#allocation27_spill] sm:$0xff] }
 0x360   : > { %8804 = vst [vmem:[#allocation11_spill] sm:$0xff] %v8289_v18  ;;  %v5017_v16 = vmul.f32 %v8283_v29, %v8807_v43  ;;  %v5052_v20 = vmul.f32 %v5016_v24, %v5016_v24  ;;  %v8812_v24 = vld [vmem:[#allocation14_spill] sm:$0xff] }
 0x361   : > { %v5083_v5 = vadd.f32 %v5082_v19, %v5048_v14  ;;  %v8301_v14 = vsub.f32 %v7965_v2, %v8202_v1  ;;  %v5018_v19 = vmul.f32 %v8289_v18, %v8808_v46  ;;  %v8811_v2 = vld [vmem:[#allocation30_spill] sm:$0xff]  ;;  %v5055_v18 = vmul.f32 %v5019_v31, %v5019_v31 }
 0x362   : > { %v8817_v31 = vld [vmem:[#allocation34_spill] sm:$0xff] }
 0x363   : > { %v5084_v57 = vadd.f32 %v5083_v5, %v5049_v35  ;;  %v8307_v35 = vsub.f32 %v7975_v37, %v8202_v1  ;;  %v5053_v5 = vmul.f32 %v5017_v16, %v5017_v16  ;;  %v5054_v29 = vmul.f32 %v5018_v19, %v5018_v19  ;;  %v8813_v37 = vld [vmem:[#allocation31_spill] sm:$0xff] }
 0x364   : > { %v8814_v16 = vld [vmem:[#allocation15_spill] sm:$0xff]  ;;  %v8331_v19 = vsub.f32 %v7991_v52, %v8202_v1 }
 0x365   : > { %v5085_v38 = vadd.f32 %v5084_v57, %v5050_v58  ;;  %v8810_v58 = vld [vmem:[#allocation10_spill] sm:$0xff]  ;;  %v5020_v57 = vmul.f32 %v8301_v14, %v8811_v2 }
 0x366   : > { %v8313_v13 = vsub.f32 %v8810_v58, %v8202_v1  ;;  %v5025_v52 = vmul.f32 %v8331_v19, %v8087_v36 }
 0x367   : > { %v5086_v6 = vadd.f32 %v5085_v38, %v5051_v0  ;;  %v8319_v0 = vsub.f32 %v8812_v24, %v8202_v1  ;;  %v5021_v38 = vmul.f32 %v8307_v35, %v8813_v37  ;;  %v5056_v42 = vmul.f32 %v5020_v57, %v5020_v57 }
 0x369   : > { %v5087_v43 = vadd.f32 %v5086_v6, %v5052_v20  ;;  %v8325_v20 = vsub.f32 %v8814_v16, %v8202_v1  ;;  %v8815_v6 = vld [vmem:[#allocation32_spill] sm:$0xff]  ;;  %v5057_v24 = vmul.f32 %v5021_v38, %v5021_v38 }
 0x36a   : > { %v5022_v58 = vmul.f32 %v8313_v13, %v8815_v6 }
 0x36b   : > { %v5088_v46 = vadd.f32 %v5087_v43, %v5053_v5  ;;  %v8816_v5 = vld [vmem:[#allocation33_spill] sm:$0xff] }
 0x36c   : > { %v5023_v43 = vmul.f32 %v8319_v0, %v8816_v5  ;;  %v5058_v16 = vmul.f32 %v5022_v58, %v5022_v58  ;;  %v8355_v58 = vsub.f32 %v8023_v26, %v8202_v1  ;;  %v5061_v5 = vmul.f32 %v5025_v52, %v5025_v52 }
 0x36d   : > { %v5089_v44 = vadd.f32 %v5088_v46, %v5054_v29  ;;  %v8337_v29 = vsub.f32 %v7994_v12, %v8202_v1  ;;  %v5024_v46 = vmul.f32 %v8325_v20, %v8817_v31 }
 0x36e   : > { %v5059_v57 = vmul.f32 %v5023_v43, %v5023_v43  ;;  %v8361_v43 = vsub.f32 %v8037_v8, %v8202_v1  ;;  %v5029_v26 = vmul.f32 %v8355_v58, %v8111_v40 }
 0x36f   : > { %v5090_v2 = vadd.f32 %v5089_v44, %v5055_v18  ;;  %v8343_v18 = vsub.f32 %v8003_v33, %v8202_v1  ;;  %v5026_v12 = vmul.f32 %v8337_v29, %v8093_v39  ;;  %v5060_v38 = vmul.f32 %v5024_v46, %v5024_v46 }
 0x370   : > { %v8373_v46 = vsub.f32 %v8148_v61, %v8202_v1  ;;  %v5030_v8 = vmul.f32 %v8361_v43, %v8123_v51  ;;  %v5065_v52 = vmul.f32 %v5029_v26, %v5029_v26 }
 0x371   : > { %v5091_v37 = vadd.f32 %v5090_v2, %v5056_v42  ;;  %v8349_v42 = vsub.f32 %v8012_v56, %v8202_v1  ;;  %v5027_v33 = vmul.f32 %v8343_v18, %v8101_v28 }
 0x372   : > { %v5032_v61 = vmul.f32 %v8373_v46, %v8134_v47 }
 0x373   : > { %v5092_v6 = vadd.f32 %v5091_v37, %v5057_v24  ;;  %v5028_v56 = vmul.f32 %v8349_v42, %v8107_v15  ;;  %v5062_v24 = vmul.f32 %v5026_v12, %v5026_v12  ;;  %v8367_v37 = vsub.f32 %v8141_v3, %v8202_v1 }
 0x374   : > { %v5063_v31 = vmul.f32 %v5027_v33, %v5027_v33  ;;  %v8391_v12 = vsub.f32 %v8169_v17, %v8202_v1  ;;  %v5068_v33 = vmul.f32 %v5032_v61, %v5032_v61 }
 0x375   : > { %v5093_v44 = vadd.f32 %v5092_v6, %v5058_v16  ;;  %v5064_v16 = vmul.f32 %v5028_v56, %v5028_v56  ;;  %v8379_v6 = vsub.f32 %v8156_v23, %v8202_v1  ;;  %v5031_v3 = vmul.f32 %v8367_v37, %v8128_v34 }
 0x377   : > { %v5094_v2 = vadd.f32 %v5093_v44, %v5059_v57  ;;  %v8385_v57 = vsub.f32 %v8164_v41, %v8202_v1  ;;  %v5066_v44 = vmul.f32 %v5030_v8, %v5030_v8  ;;  %v5033_v23 = vmul.f32 %v8379_v6, %v8151_v59 }
 0x379   : > { %v5095_v36 = vadd.f32 %v5094_v2, %v5060_v38  ;;  %v5067_v38 = vmul.f32 %v5031_v3, %v5031_v3  ;;  %v8397_v2 = vsub.f32 %v8175_v63, %v8202_v1  ;;  %v5034_v41 = vmul.f32 %v8385_v57, %v8159_v10 }
 0x37a   : > { %v5038_v10 = vmul.f32 %v8208_v7, %v8187_v49 }
 0x37b   : > { %v5096_v39 = vadd.f32 %v5095_v36, %v5061_v5  ;;  %v5035_v5 = vmul.f32 %v8391_v12, %v8171_v11  ;;  %v5069_v36 = vmul.f32 %v5033_v23, %v5033_v23  ;;  %v5036_v56 = vmul.f32 %v8397_v2, %v8180_v22 }
 0x37c   : > { %v5070_v59 = vmul.f32 %v5034_v41, %v5034_v41  ;;  %v5039_v11 = vmul.f32 %v8211_v25, %v8191_v48  ;;  %v5040_v22 = vmul.f32 %v8214_v60, %v8195_v55 }
 0x37d   : > { %v5097_v28 = vadd.f32 %v5096_v39, %v5062_v24  ;;  %v5037_v39 = vmul.f32 %v8205_v27, %v8184_v4  ;;  %v5071_v63 = vmul.f32 %v5035_v5, %v5035_v5  ;;  %v5072_v26 = vmul.f32 %v5036_v56, %v5036_v56 }
 0x37e   : > { %v5041_v4 = vmul.f32 %v8217_v30, %v8199_v45  ;;  %v5075_v3 = vmul.f32 %v5039_v11, %v5039_v11 }
 0x37f   : > { %v5098_v15 = vadd.f32 %v5097_v28, %v5063_v31  ;;  %v5073_v28 = vmul.f32 %v5037_v39, %v5037_v39 }
 0x380   : > { %v5077_v49 = vmul.f32 %v5041_v4, %v5041_v4 }
 0x381   : > { %v5099_v40 = vadd.f32 %v5098_v15, %v5064_v16  ;;  %v5074_v16 = vmul.f32 %v5038_v10, %v5038_v10 }
 0x383   : > { %v5100_v51 = vadd.f32 %v5099_v40, %v5065_v52  ;;  %v5076_v40 = vmul.f32 %v5040_v22, %v5040_v22 }
 0x385   : > { %v5101_v34 = vadd.f32 %v5100_v51, %v5066_v44 }
 0x387   : > { %v5102_v47 = vadd.f32 %v5101_v34, %v5067_v38 }
 0x389   : > { %v5103_v17 = vadd.f32 %v5102_v47, %v5068_v33 }
 0x38b   : > { %v5104_v24 = vadd.f32 %v5103_v17, %v5069_v36 }
 0x38d   : > { %v5105_v1 = vadd.f32 %v5104_v24, %v5070_v59 }
 0x38f   : > { %v5106_v31 = vadd.f32 %v5105_v1, %v5071_v63  ;;  %v5167_v63 = vld [vmem:[%s8421_s30] sm:$0xff] }
 0x391   : > { %v5107_v8 = vadd.f32 %v5106_v31, %v5072_v26  ;;  %v8818_v31 = vld [vmem:[#allocation3_spill] sm:$0xff] }
 0x393   : > { %v5108_v15 = vadd.f32 %v5107_v8, %v5073_v28  ;;  %v8819_v8 = vld [vmem:[#allocation4_spill] sm:$0xff] }
 0x395   : > { %v5109_v52 = vadd.f32 %v5108_v15, %v5074_v16  ;;  %v8821_v15 = vld [vmem:[#allocation19_spill] sm:$0xff] }
 0x397   : > { %v5110_v61 = vadd.f32 %v5109_v52, %v5075_v3 }
 0x399   : > { %v5111_v44 = vadd.f32 %v5110_v61, %v5076_v40  ;;  %v8823_v40 = vld [vmem:[#allocation11_spill] sm:$0xff] }
 0x39b   : > { %v5112_v51 = vadd.f32 %v5111_v44, %v5077_v49  ;;  %v8824_v49 = vld [vmem:[#allocation17_spill] sm:$0xff] }
 0x39d   : > { %v5113_v23 = vrot.slane %v5112_v51, 4 }
 0x39f   : > { %v5114_v48 = vadd.f32 %v5113_v23, %v5112_v51  ;;  %v5169_v23 = vld [vmem:[%s8421_s30 + $0x10] sm:$0xff] }
 0x3a1   : > { %v5115_v38 = vrot.slane %v5114_v48, 2 }
 0x3a3   : > { %v5116_v34 = vadd.f32 %v5115_v38, %v5114_v48  ;;  %v5170_v48 = vld [vmem:[%s8421_s30 + $0x18] sm:$0xff] }
 0x3a5   : > { %v5117_v41 = vrot.slane %v5116_v34, 1 }
 0x3a7   : > { %v5118_v33 = vadd.f32 %v5117_v41, %v5116_v34  ;;  %v5171_v41 = vld [vmem:[%s8421_s30 + $0x20] sm:$0xff] }
 0x3a9   : > { %v5119_v55 = vmul.f32 0.00390625, %v5118_v33 }
 0x3ab   : > { %v5120_v47 = vadd.f32 1e-05, %v5119_v55 }
 0x3ad   : > { %6729 = vrsqrt.f32 %v5120_v47  ;;  %vm5127_vm7 = vweird.f32 %v5120_v47 }
 0x3b3   : > { %v6730_v5 = vpop.eup %6729 }
 0x3b4   : > { %v5122_v36 = vmul.f32 %v6730_v5, %v5120_v47  ;;  %vm5128_vm6 = vweird.f32 %v6730_v5 }
 0x3b5   : > { %vm5129_vm8 = vmor %vm5127_vm7, %vm5128_vm6 }
 0x3b6   : > { %v5123_v45 = vmul.f32 %v6730_v5, %v5122_v36 }
 0x3b8   : > { %v5124_v17 = vmul.f32 0.5, %v5123_v45 }
 0x3ba   : > { %v5125_v56 = vsub.f32 1.5, %v5124_v17  ;;  %v5174_v17 = vld [vmem:[%s8421_s30 + $0x38] sm:$0xff] }
 0x3bc   : > { %v5126_v59 = vmul.f32 %v6730_v5, %v5125_v56 }
 0x3be   : > { %v8416_v24 = vsel %vm5129_vm8, %v6730_v5, %v5126_v59  ;;  %v5175_v59 = vld [vmem:[%s8421_s30 + $0x40] sm:$0xff] }
 0x3bf   : > { %v5131_v39 = vmul.f32 %v8416_v24, %v8221_v53  ;;  %v5132_v1 = vmul.f32 %v8416_v24, %v8225_v54  ;;  %v5133_v26 = vmul.f32 %v8416_v24, %v8229_v9  ;;  %v5134_v11 = vmul.f32 %v8416_v24, %v8818_v31  ;;  %v8820_v53 = vld [vmem:[#allocation16_spill] sm:$0xff] }
 0x3c0   : > { %v5135_v28 = vmul.f32 %v8416_v24, %v8241_v32  ;;  %v5136_v22 = vmul.f32 %v8416_v24, %v8819_v8  ;;  %v5137_v16 = vmul.f32 %v8416_v24, %v8820_v53  ;;  %v5138_v54 = vmul.f32 %v8416_v24, %v8821_v15  ;;  %v8822_v32 = vld [vmem:[#allocation5_spill] sm:$0xff]  ;;  %v5180_v15 = vld [vmem:[%s8421_s30 + $0x68] sm:$0xff] }
 0x3c1   : > { %v5203_v10 = vadd.f32 %v5167_v63, %v5131_v39  ;;  %v5139_v4 = vmul.f32 %v8416_v24, %v8265_v62  ;;  %v5140_v9 = vmul.f32 %v8416_v24, %v8271_v50  ;;  %v8446_v3 = vmul.f32 %v8416_v24, %v8277_v21  ;;  %v5168_v62 = vld [vmem:[%s8421_s30 + $0x8] sm:$0xff] }
 0x3c2   : > { %v8450_v52 = vmul.f32 %v8416_v24, %v8822_v32  ;;  %v8454_v61 = vmul.f32 %v8416_v24, %v8823_v40  ;;  %v8458_v44 = vmul.f32 %v8416_v24, %v8824_v49  ;;  %v8463_v50 = vmul.f32 %v8416_v24, %v8301_v14  ;;  %v5182_v49 = vld [vmem:[%s8421_s30 + $0x78] sm:$0xff] }
 0x3c3   : > { %v8467_v21 = vmul.f32 %v8416_v24, %v8307_v35  ;;  %v8471_v51 = vmul.f32 %v8416_v24, %v8313_v13  ;;  %vm5239_vm9 = vcmp.ge.f32.partialorder %v5203_v10, 0.0  ;;  %v8481_v14 = vmul.f32 %v8416_v24, %v8319_v0 }
 0x3c4   : > { %v8485_v35 = vmul.f32 %v8416_v24, %v8325_v20  ;;  %v8489_v13 = vmul.f32 %v8416_v24, %v8331_v19  ;;  %v5275_v38 = vmul.f32 0.1, %v5203_v10  ;;  %v8494_v34 = vmul.f32 %v8416_v24, %v8337_v29  ;;  %v5172_v29 = vld [vmem:[%s8421_s30 + $0x28] sm:$0xff] }
 0x3c5   : > { %v8498_v0 = vmul.f32 %v8416_v24, %v8343_v18  ;;  %v8502_v20 = vmul.f32 %v8416_v24, %v8349_v42  ;;  %v5204_v19 = vadd.f32 %v5168_v62, %v5132_v1  ;;  %v8507_v33 = vmul.f32 %v8416_v24, %v8355_v58 }
 0x3c6   : > { %v8511_v55 = vmul.f32 %v8416_v24, %v8361_v43  ;;  %v5205_v47 = vadd.f32 %v5169_v23, %v5133_v26  ;;  %v5311_v18 = vsel %vm5239_vm9, %v5203_v10, %v5275_v38  ;;  %v8517_v42 = vmul.f32 %v8416_v24, %v8367_v37  ;;  %v5173_v43 = vld [vmem:[%s8421_s30 + $0x30] sm:$0xff] }
 0x3c7   : > { %v8521_v5 = vmul.f32 %v8416_v24, %v8373_v46  ;;  %v8525_v58 = vmul.f32 %v8416_v24, %v8379_v6  ;;  %v5206_v36 = vadd.f32 %v5170_v48, %v5134_v11  ;;  %5347 = vst [vmem:[%s8477_s6] sm:$0xff] %v5311_v18  ;;  %v8531_v45 = vmul.f32 %v8416_v24, %v8385_v57  ;;  %v5177_v26 = vld [vmem:[%s8421_s30 + $0x50] sm:$0xff]  ;;  %v5183_v48 = vld [vmem:[%s8421_s30 + $0x80] sm:$0xff] }
 0x3c8   : > { %v8535_v37 = vmul.f32 %v8416_v24, %v8391_v12  ;;  %v8539_v46 = vmul.f32 %v8416_v24, %v8397_v2  ;;  %v5207_v56 = vadd.f32 %v5171_v41, %v5135_v28  ;;  %v8544_v6 = vmul.f32 %v8416_v24, %v8205_v27  ;;  %v5176_v2 = vld [vmem:[%s8421_s30 + $0x48] sm:$0xff]  ;;  %v5185_v18 = vld [vmem:[%s8421_s30 + $0x90] sm:$0xff] }
 0x3c9   : > { %v8548_v57 = vmul.f32 %v8416_v24, %v8208_v7  ;;  %v5208_v39 = vadd.f32 %v5172_v29, %v5136_v22  ;;  %v5276_v63 = vmul.f32 0.1, %v5204_v19  ;;  %v8553_v12 = vmul.f32 %v8416_v24, %v8211_v25  ;;  %v5178_v25 = vld [vmem:[%s8421_s30 + $0x58] sm:$0xff]  ;;  %v5179_v22 = vld [vmem:[%s8421_s30 + $0x60] sm:$0xff] }
 0x3ca   : > { %v5209_v1 = vadd.f32 %v5173_v43, %v5137_v16  ;;  %vm5240_vm10 = vcmp.ge.f32.partialorder %v5204_v19, 0.0  ;;  %v5277_v10 = vmul.f32 0.1, %v5205_v47  ;;  %v8558_v27 = vmul.f32 %v8416_v24, %v8214_v60 }
 0x3cb   : > { %v5210_v7 = vadd.f32 %v5174_v17, %v5138_v54  ;;  %vm5241_vm11 = vcmp.ge.f32.partialorder %v5205_v47, 0.0  ;;  %v5278_v31 = vmul.f32 0.1, %v5206_v36  ;;  %v8563_v11 = vmul.f32 %v8416_v24, %v8217_v30  ;;  %v5181_v24 = vld [vmem:[%s8421_s30 + $0x70] sm:$0xff]  ;;  %v5186_v17 = vld [vmem:[%s8421_s30 + $0x98] sm:$0xff] }
 0x3cc   : > { %v5211_v28 = vadd.f32 %v5175_v59, %v5139_v4  ;;  %vm5242_vm12 = vcmp.ge.f32.partialorder %v5206_v36, 0.0  ;;  %v5279_v8 = vmul.f32 0.1, %v5207_v56  ;;  %v5212_v53 = vadd.f32 %v5176_v2, %v5140_v9 }
 0x3cd   : > { %vm5243_vm13 = vcmp.ge.f32.partialorder %v5207_v56, 0.0  ;;  %v5280_v16 = vmul.f32 0.1, %v5208_v39  ;;  %v5312_v60 = vsel %vm5240_vm10, %v5204_v19, %v5276_v63  ;;  %v5213_v54 = vadd.f32 %v5177_v26, %v8446_v3  ;;  %v5184_v19 = vld [vmem:[%s8421_s30 + $0x88] sm:$0xff] }
 0x3ce   : > { %vm5244_vm14 = vcmp.ge.f32.partialorder %v5208_v39, 0.0  ;;  %v5281_v32 = vmul.f32 0.1, %v5209_v1  ;;  %v5313_v30 = vsel %vm5241_vm11, %v5205_v47, %v5277_v10  ;;  %v5214_v4 = vadd.f32 %v5178_v25, %v8450_v52  ;;  %5348 = vst [vmem:[%s8477_s6 + $0x8] sm:$0xff] %v5312_v60 }
 0x3cf   : > { %vm5245_vm15 = vcmp.ge.f32.partialorder %v5209_v1, 0.0  ;;  %v5282_v9 = vmul.f32 0.1, %v5210_v7  ;;  %v5314_v40 = vsel %vm5242_vm12, %v5206_v36, %v5278_v31  ;;  %v5215_v62 = vadd.f32 %v5179_v22, %v8454_v61  ;;  %5349 = vst [vmem:[%s8477_s6 + $0x10] sm:$0xff] %v5313_v30  ;;  %v5193_v30 = vld [vmem:[%s8421_s30 + $0xd0] sm:$0xff] }
 0x3d0   : > { %vm5246_vm0 = vcmp.ge.f32.partialorder %v5210_v7, 0.0  ;;  %v5283_v3 = vmul.f32 0.1, %v5211_v28  ;;  %v5315_v23 = vsel %vm5243_vm13, %v5207_v56, %v5279_v8  ;;  %v5216_v38 = vadd.f32 %v5180_v15, %v8458_v44  ;;  %5350 = vst [vmem:[%s8477_s6 + $0x18] sm:$0xff] %v5314_v40  ;;  %v5192_v15 = vld [vmem:[%s8421_s30 + $0xc8] sm:$0xff] }
 0x3d1   : > { %vm5247_vm1 = vcmp.ge.f32.partialorder %v5211_v28, 0.0  ;;  %v5284_v52 = vmul.f32 0.1, %v5212_v53  ;;  %v5316_v41 = vsel %vm5244_vm14, %v5208_v39, %v5280_v16  ;;  %v5217_v61 = vadd.f32 %v5181_v24, %v8463_v50  ;;  %5351 = vst [vmem:[%s8477_s6 + $0x20] sm:$0xff] %v5315_v23  ;;  %v5187_v39 = vld [vmem:[%s8421_s30 + $0xa0] sm:$0xff] }
 0x3d2   : > { %vm5248_vm2 = vcmp.ge.f32.partialorder %v5212_v53, 0.0  ;;  %v5285_v29 = vmul.f32 0.1, %v5213_v54  ;;  %v5317_v47 = vsel %vm5245_vm15, %v5209_v1, %v5281_v32  ;;  %v5218_v44 = vadd.f32 %v5182_v49, %v8467_v21  ;;  %5352 = vst [vmem:[%s8477_s6 + $0x28] sm:$0xff] %v5316_v41  ;;  %v5188_v1 = vld [vmem:[%s8421_s30 + $0xa8] sm:$0xff]  ;;  %v5197_v41 = vld [vmem:[%s8421_s30 + $0xf0] sm:$0xff] }
 0x3d3   : > { %vm5249_vm3 = vcmp.ge.f32.partialorder %v5213_v54, 0.0  ;;  %v5286_v43 = vmul.f32 0.1, %v5214_v4  ;;  %v5318_v36 = vsel %vm5246_vm0, %v5210_v7, %v5282_v9  ;;  %v5219_v50 = vadd.f32 %v5183_v48, %v8471_v51  ;;  %5353 = vst [vmem:[%s8477_s6 + $0x30] sm:$0xff] %v5317_v47  ;;  %v5189_v7 = vld [vmem:[%s8421_s30 + $0xb0] sm:$0xff]  ;;  %v5194_v9 = vld [vmem:[%s8421_s30 + $0xd8] sm:$0xff] }
 0x3d4   : > { %vm5250_vm4 = vcmp.ge.f32.partialorder %v5214_v4, 0.0  ;;  %v5287_v56 = vmul.f32 0.1, %v5215_v62  ;;  %v5319_v59 = vsel %vm5247_vm1, %v5211_v28, %v5283_v3  ;;  %v5220_v21 = vadd.f32 %v5184_v19, %v8481_v14  ;;  %5354 = vst [vmem:[%s8477_s6 + $0x38] sm:$0xff] %v5318_v36  ;;  %v5190_v28 = vld [vmem:[%s8421_s30 + $0xb8] sm:$0xff]  ;;  %v5196_v48 = vld [vmem:[%s8421_s30 + $0xe8] sm:$0xff] }
 0x3d5   : > { %vm5251_vm5 = vcmp.ge.f32.partialorder %v5215_v62, 0.0  ;;  %v5288_v63 = vmul.f32 0.1, %v5216_v38  ;;  %v5320_v2 = vsel %vm5248_vm2, %v5212_v53, %v5284_v52  ;;  %v5221_v51 = vadd.f32 %v5185_v18, %v8485_v35  ;;  %5355 = vst [vmem:[%s8477_s6 + $0x40] sm:$0xff] %v5319_v59  ;;  %v5191_v53 = vld [vmem:[%s8421_s30 + $0xc0] sm:$0xff]  ;;  %v5201_v59 = vld [vmem:[%s8421_s30 + $0x110] sm:$0xff] }
 0x3d6   : > { %vm5252_vm6 = vcmp.ge.f32.partialorder %v5216_v38, 0.0  ;;  %v5289_v10 = vmul.f32 0.1, %v5217_v61  ;;  %v5321_v26 = vsel %vm5249_vm3, %v5213_v54, %v5285_v29  ;;  %v5222_v14 = vadd.f32 %v5186_v17, %v8489_v13  ;;  %5356 = vst [vmem:[%s8477_s6 + $0x48] sm:$0xff] %v5320_v2  ;;  %v5198_v29 = vld [vmem:[%s8421_s30 + $0xf8] sm:$0xff]  ;;  %v5200_v17 = vld [vmem:[%s8421_s30 + $0x108] sm:$0xff] }
 0x3d7   : > { %vm5253_vm7 = vcmp.ge.f32.partialorder %v5217_v61, 0.0  ;;  %v5290_v31 = vmul.f32 0.1, %v5218_v44  ;;  %v5322_v25 = vsel %vm5250_vm4, %v5214_v4, %v5286_v43  ;;  %v5223_v35 = vadd.f32 %v5187_v39, %v8494_v34  ;;  %5357 = vst [vmem:[%s8477_s6 + $0x50] sm:$0xff] %v5321_v26 }
 0x3d8   : > { %vm5254_vm8 = vcmp.ge.f32.partialorder %v5218_v44, 0.0  ;;  %v5291_v8 = vmul.f32 0.1, %v5219_v50  ;;  %v5323_v22 = vsel %vm5251_vm5, %v5215_v62, %v5287_v56  ;;  %v5224_v13 = vadd.f32 %v5188_v1, %v8498_v0  ;;  %5358 = vst [vmem:[%s8477_s6 + $0x58] sm:$0xff] %v5322_v25  ;;  %v5195_v62 = vld [vmem:[%s8421_s30 + $0xe0] sm:$0xff] }
 0x3d9   : > { %vm5255_vm9 = vcmp.ge.f32.partialorder %v5219_v50, 0.0  ;;  %v5292_v16 = vmul.f32 0.1, %v5220_v21  ;;  %v5324_v60 = vsel %vm5252_vm6, %v5216_v38, %v5288_v63  ;;  %v5225_v34 = vadd.f32 %v5189_v7, %v8502_v20  ;;  %5359 = vst [vmem:[%s8477_s6 + $0x60] sm:$0xff] %v5323_v22  ;;  %v5202_v63 = vld [vmem:[%s8421_s30 + $0x118] sm:$0xff] }
 0x3da   : > { %vm5256_vm10 = vcmp.ge.f32.partialorder %v5220_v21, 0.0  ;;  %v5293_v54 = vmul.f32 0.1, %v5221_v51  ;;  %v5325_v32 = vsel %vm5253_vm7, %v5217_v61, %v5289_v10  ;;  %v5226_v0 = vadd.f32 %v5190_v28, %v8507_v33  ;;  %5360 = vst [vmem:[%s8477_s6 + $0x68] sm:$0xff] %v5324_v60 }
 0x3db   : > { %vm5257_vm11 = vcmp.ge.f32.partialorder %v5221_v51, 0.0  ;;  %v5294_v24 = vmul.f32 0.1, %v5222_v14  ;;  %v5326_v4 = vsel %vm5254_vm8, %v5218_v44, %v5290_v31  ;;  %v5227_v20 = vadd.f32 %v5191_v53, %v8511_v55  ;;  %5361 = vst [vmem:[%s8477_s6 + $0x70] sm:$0xff] %v5325_v32  ;;  %v5199_v44 = vld [vmem:[%s8421_s30 + $0x100] sm:$0xff] }
 0x3dc   : > { %vm5258_vm12 = vcmp.ge.f32.partialorder %v5222_v14, 0.0  ;;  %v5295_v40 = vmul.f32 0.1, %v5223_v35  ;;  %v5327_v49 = vsel %vm5255_vm9, %v5219_v50, %v5291_v8  ;;  %v5228_v33 = vadd.f32 %v5192_v15, %v8517_v42  ;;  %5362 = vst [vmem:[%s8477_s6 + $0x78] sm:$0xff] %v5326_v4 }
 0x3dd   : > { %vm5259_vm13 = vcmp.ge.f32.partialorder %v5223_v35, 0.0  ;;  %v5296_v3 = vmul.f32 0.1, %v5224_v13  ;;  %v5328_v23 = vsel %vm5256_vm10, %v5220_v21, %v5292_v16  ;;  %v5229_v55 = vadd.f32 %v5193_v30, %v8521_v5  ;;  %5363 = vst [vmem:[%s8477_s6 + $0x80] sm:$0xff] %v5327_v49 }
 0x3de   : > { %vm5260_vm14 = vcmp.ge.f32.partialorder %v5224_v13, 0.0  ;;  %v5297_v38 = vmul.f32 0.1, %v5225_v34  ;;  %v5329_v52 = vsel %vm5257_vm11, %v5221_v51, %v5293_v54  ;;  %v5230_v42 = vadd.f32 %v5194_v9, %v8525_v58  ;;  %5364 = vst [vmem:[%s8477_s6 + $0x88] sm:$0xff] %v5328_v23 }
 0x3df   : > { %vm5261_vm15 = vcmp.ge.f32.partialorder %v5225_v34, 0.0  ;;  %v5298_v19 = vmul.f32 0.1, %v5226_v0  ;;  %v5330_v61 = vsel %vm5258_vm12, %v5222_v14, %v5294_v24  ;;  %v5231_v5 = vadd.f32 %v5195_v62, %v8531_v45  ;;  %5365 = vst [vmem:[%s8477_s6 + $0x90] sm:$0xff] %v5329_v52 }
 0x3e0   : > { %vm5262_vm0 = vcmp.ge.f32.partialorder %v5226_v0, 0.0  ;;  %v5299_v47 = vmul.f32 0.1, %v5227_v20  ;;  %v5331_v18 = vsel %vm5259_vm13, %v5223_v35, %v5295_v40  ;;  %v5232_v58 = vadd.f32 %v5196_v48, %v8535_v37  ;;  %5366 = vst [vmem:[%s8477_s6 + $0x98] sm:$0xff] %v5330_v61 }
 0x3e1   : > { %vm5263_vm1 = vcmp.ge.f32.partialorder %v5227_v20, 0.0  ;;  %v5300_v43 = vmul.f32 0.1, %v5228_v33  ;;  %v5332_v36 = vsel %vm5260_vm14, %v5224_v13, %v5296_v3  ;;  %v5233_v45 = vadd.f32 %v5197_v41, %v8539_v46  ;;  %5367 = vst [vmem:[%s8477_s6 + $0xa0] sm:$0xff] %v5331_v18 }
 0x3e2   : > { %vm5264_vm2 = vcmp.ge.f32.partialorder %v5228_v33, 0.0  ;;  %v5301_v50 = vmul.f32 0.1, %v5229_v55  ;;  %v5333_v56 = vsel %vm5261_vm15, %v5225_v34, %v5297_v38  ;;  %v5234_v37 = vadd.f32 %v5198_v29, %v8544_v6  ;;  %5368 = vst [vmem:[%s8477_s6 + $0xa8] sm:$0xff] %v5332_v36 }
 0x3e3   : > { %vm5265_vm3 = vcmp.ge.f32.partialorder %v5229_v55, 0.0  ;;  %v5302_v39 = vmul.f32 0.1, %v5230_v42  ;;  %v5334_v21 = vsel %vm5262_vm0, %v5226_v0, %v5298_v19  ;;  %v5235_v2 = vadd.f32 %v5199_v44, %v8548_v57  ;;  %5369 = vst [vmem:[%s8477_s6 + $0xb0] sm:$0xff] %v5333_v56 }
 0x3e4   : > { %vm5266_vm4 = vcmp.ge.f32.partialorder %v5230_v42, 0.0  ;;  %v5303_v46 = vmul.f32 0.1, %v5231_v5  ;;  %v5335_v1 = vsel %vm5263_vm1, %v5227_v20, %v5299_v47  ;;  %v5236_v51 = vadd.f32 %v5200_v17, %v8553_v12  ;;  %5370 = vst [vmem:[%s8477_s6 + $0xb8] sm:$0xff] %v5334_v21 }
 0x3e5   : > { %vm5267_vm5 = vcmp.ge.f32.partialorder %v5231_v5, 0.0  ;;  %v5304_v10 = vmul.f32 0.1, %v5232_v58  ;;  %v5336_v6 = vsel %vm5264_vm2, %v5228_v33, %v5300_v43  ;;  %v5237_v26 = vadd.f32 %v5201_v59, %v8558_v27  ;;  %5371 = vst [vmem:[%s8477_s6 + $0xc0] sm:$0xff] %v5335_v1 }
 0x3e6   : > { %vm5268_vm6 = vcmp.ge.f32.partialorder %v5232_v58, 0.0  ;;  %v5305_v7 = vmul.f32 0.1, %v5233_v45  ;;  %v5337_v57 = vsel %vm5265_vm3, %v5229_v55, %v5301_v50  ;;  %v5238_v14 = vadd.f32 %v5202_v63, %v8563_v11  ;;  %5372 = vst [vmem:[%s8477_s6 + $0xc8] sm:$0xff] %v5336_v6 }
 0x3e7   : > { %vm5269_vm7 = vcmp.ge.f32.partialorder %v5233_v45, 0.0  ;;  %v5306_v31 = vmul.f32 0.1, %v5234_v37  ;;  %v5338_v12 = vsel %vm5266_vm4, %v5230_v42, %v5302_v39  ;;  %vm5270_vm8 = vcmp.ge.f32.partialorder %v5234_v37, 0.0  ;;  %5373 = vst [vmem:[%s8477_s6 + $0xd0] sm:$0xff] %v5337_v57 }
 0x3e8   : > { %v5307_v25 = vmul.f32 0.1, %v5235_v2  ;;  %v5339_v28 = vsel %vm5267_vm5, %v5231_v5, %v5303_v46  ;;  %vm5271_vm9 = vcmp.ge.f32.partialorder %v5235_v2, 0.0  ;;  %v5308_v27 = vmul.f32 0.1, %v5236_v51  ;;  %5374 = vst [vmem:[%s8477_s6 + $0xd8] sm:$0xff] %v5338_v12 }
 0x3e9   : > { %v5340_v35 = vsel %vm5268_vm6, %v5232_v58, %v5304_v10  ;;  %vm5272_vm10 = vcmp.ge.f32.partialorder %v5236_v51, 0.0  ;;  %v5309_v11 = vmul.f32 0.1, %v5237_v26  ;;  %v5341_v8 = vsel %vm5269_vm7, %v5233_v45, %v5305_v7  ;;  %5375 = vst [vmem:[%s8477_s6 + $0xe0] sm:$0xff] %v5339_v28 }
 0x3ea   : > { %vm5273_vm11 = vcmp.ge.f32.partialorder %v5237_v26, 0.0  ;;  %v5310_v22 = vmul.f32 0.1, %v5238_v14  ;;  %v5342_v53 = vsel %vm5270_vm8, %v5234_v37, %v5306_v31  ;;  %vm5274_vm12 = vcmp.ge.f32.partialorder %v5238_v14, 0.0  ;;  %5376 = vst [vmem:[%s8477_s6 + $0xe8] sm:$0xff] %v5340_v35 }
 0x3eb   : > { %v5343_v13 = vsel %vm5271_vm9, %v5235_v2, %v5307_v25  ;;  %v5344_v16 = vsel %vm5272_vm10, %v5236_v51, %v5308_v27  ;;  %5377 = vst [vmem:[%s8477_s6 + $0xf0] sm:$0xff] %v5341_v8  ;;  %v5345_v60 = vsel %vm5273_vm11, %v5237_v26, %v5309_v11 }
 0x3ec   : > { %5378 = vst [vmem:[%s8477_s6 + $0xf8] sm:$0xff] %v5342_v53  ;;  %v5346_v15 = vsel %vm5274_vm12, %v5238_v14, %v5310_v22 }
 0x3ed   : > { %5379 = vst [vmem:[%s8477_s6 + $0x100] sm:$0xff] %v5343_v13 }
 0x3ee   : > { %5380 = vst [vmem:[%s8477_s6 + $0x108] sm:$0xff] %v5344_v16 }
 0x3ef   : > { %5381 = vst [vmem:[%s8477_s6 + $0x110] sm:$0xff] %v5345_v60 }
 0x3f0   : > { %5382 = vst [vmem:[%s8477_s6 + $0x118] sm:$0xff] %v5346_v15 }
 0x3f1 PF: > { %s14_s17 = sadd.s32 1, %s6753_s17   ;;  %s8825_s15 = smov %s6749_s16 }
 0x3f2   : > { %p11_p5 = scmp.ge.s32.totalorder %s14_s17, 4   ;;  %s8826_s16 = smov %s8828_s18 }
 0x3f4   :  { %13 = sbr.rel (!%p11_p5) target bundleno = 2 (0x2), region = 72 }

</bundles_post_ra>
